<compile_context>
chip_gen: v5e
topology: v5e:2x2
jax: 0.10.0
libtpu: 0.0.40
codegen_flags: <defaults>
</compile_context>

<pallas_src>
import functools

import jax
import jax.numpy as jnp
import numpy as np
from jax.experimental import pallas as pl
from jax.experimental.pallas import tpu as pltpu


def _self_attention_kernel(x_ref, wq_ref, bq_ref, wk_ref, bk_ref, wv_ref, bv_ref,
                           wo_ref, bo_ref, o_ref, *, heads, head_dim):
    """One grid step = TB (b, s) rows: full multi-head attention over the `n` axis.

    All heads go through ONE scores einsum / ONE softmax / ONE PV einsum (heads are
    stacked onto the batch axis) instead of an unrolled per-head loop.
    1/sqrt(head_dim) is already folded into Wq/bq on the wrapper side.
    """
    tb, n, d = x_ref.shape
    m = tb * n
    hd = head_dim
    hw = heads * hd

    # ---- fused Q/K/V projections: three (m, d) x (d, hw) bf16 MXU matmuls --------
    xf = x_ref[...].reshape(m, d).astype(jnp.bfloat16)
    q = jnp.dot(xf, wq_ref[...], preferred_element_type=jnp.float32) + bq_ref[...]
    k = jnp.dot(xf, wk_ref[...], preferred_element_type=jnp.float32) + bk_ref[...]
    v = jnp.dot(xf, wv_ref[...], preferred_element_type=jnp.float32) + bv_ref[...]

    # ---- stack heads onto the batch axis: (m, hw) -> (heads*tb, n, hd) -----------
    # Static lane slices + leading-axis concat only (no mixed sublane/batch
    # transpose, which Mosaic may not lower); batch index = h*tb + b.
    def split_heads(t):
        return jnp.concatenate(
            [t[:, h * hd:(h + 1) * hd].reshape(tb, n, hd) for h in range(heads)],
            axis=0)

    qh = split_heads(q)                                   # f32: keep scores accurate
    kh = split_heads(k)
    vh = split_heads(v).astype(jnp.bfloat16)

    # ---- heads-batched attention: one einsum / one softmax / one einsum ----------
    s = jnp.einsum("bqd,bkd->bqk", qh, kh,
                   preferred_element_type=jnp.float32)     # (heads*tb, n, n)
    s = s - jnp.max(s, axis=-1, keepdims=True)
    p = jnp.exp(s)                                         # f32 softmax (EUP)
    p = p * pl.reciprocal(jnp.sum(p, axis=-1, keepdims=True), approx=False)
    ctx = jnp.einsum("bqk,bkd->bqd", p.astype(jnp.bfloat16), vh,
                     preferred_element_type=jnp.float32)   # (heads*tb, n, hd)

    # back to (m, hw): per-head (tb, n, hd) slab -> (m, hd), concat along lanes.
    ctx = jnp.concatenate(
        [ctx[h * tb:(h + 1) * tb].reshape(m, hd) for h in range(heads)], axis=-1)

    # ---- fused output projection: single (m, hw) x (hw, d) bf16 MXU matmul -------
    out = jnp.dot(ctx.astype(jnp.bfloat16), wo_ref[...],
                  preferred_element_type=jnp.float32) + bo_ref[...]
    o_ref[...] = out.reshape(tb, n, d).astype(o_ref.dtype)   # lane-dense (m, d)


def _vmem_limit_bytes():
    # Chip-adaptive scoped-VMEM budget: ~75% of physical, capped at 100 MiB
    # (v5e/v6e: 128 MiB physical -> ~96 MiB; v7x: 64 MiB physical -> 48 MiB).
    try:
        phys = int(pltpu.get_tpu_info().vmem_capacity_bytes)
    except Exception:
        phys = 64 * 1024 * 1024        # conservative default valid on every generation
    return min(100 * 1024 * 1024, (phys * 3) // 4)


def _choose_block_batch(B, n, d, hw, vmem_budget, target_rows=1024):
    """Rows per grid step: aim for ~target_rows MXU rows per step (keeps the 256-wide
    MXU pipeline full), bounded by a VMEM estimate.  The grid is a serial loop on
    single-TC chips (v5e/v6e), so we do NOT force >= 2 grid blocks."""
    def vmem_est(tb):
        m = tb * n
        io = 2 * (m * d * 4) * 2                 # x + out blocks, f32, double-buffered
        w = 4 * (d * hw * 2) + 4 * (hw * 4)       # bf16 weights + f32 biases, 1 buffer
        tmp = 9 * m * hw * 4                      # q/k/v, head-stacked copies, ctx, out
        return io + w + tmp

    tb = min(B, max(1, target_rows // max(n, 1)))
    while tb > 1 and vmem_est(tb) > vmem_budget:
        tb -= 1
    return tb


def self_attention_pallas(x, params):
    # TODO(synk): the PyTorch module instantiates nn.Dropout but never calls it in
    # forward(), so no dropout is applied here either.
    b, s, n, d = x.shape
    heads = params["heads"]
    head_dim = d // heads
    hw = heads * head_dim
    inv_scale = 1.0 / (float(head_dim) ** 0.5)

    B = b * s
    vmem_limit = _vmem_limit_bytes()
    TB = _choose_block_batch(B, n, d, hw, vmem_budget=(vmem_limit * 4) // 5)

    # Pad B up to a multiple of TB (padded rows are independent of real rows since
    # attention only mixes within one (b, s) row) and slice the result back.
    n_blocks = -(-B // TB)
    Bp = n_blocks * TB
    x2 = x.reshape(B, n, d)
    if Bp != B:
        x2 = jnp.pad(x2, ((0, Bp - B), (0, 0), (0, 0)))

    # Weights resident in VMEM as bf16; 1/sqrt(head_dim) folded into Wq / bq once here
    # (outside the grid loop), so the kernel never multiplies by the scale.
    wq = (params["wq"].reshape(d, hw) * inv_scale).astype(jnp.bfloat16)
    wk = params["wk"].reshape(d, hw).astype(jnp.bfloat16)
    wv = params["wv"].reshape(d, hw).astype(jnp.bfloat16)
    wo = params["wo"].reshape(hw, d).astype(jnp.bfloat16)
    bq = (params["bq"].reshape(1, hw) * inv_scale).astype(jnp.float32)
    bk = params["bk"].reshape(1, hw).astype(jnp.float32)
    bv = params["bv"].reshape(1, hw).astype(jnp.float32)
    bo = params["bo"].reshape(1, d).astype(jnp.float32)

    kernel = functools.partial(_self_attention_kernel, heads=heads, head_dim=head_dim)

    def resident_spec(shape):
        # Whole-array block, constant block index, single-buffered: fetched once and
        # kept resident for the whole grid (no second pipeline buffer wasted).
        nd = len(shape)
        return pl.BlockSpec(shape, lambda i: (0,) * nd,
                            pipeline_mode=pl.Buffered(1))

    out = pl.pallas_call(
        kernel,
        out_shape=jax.ShapeDtypeStruct((Bp, n, d), x.dtype),
        grid_spec=pltpu.PrefetchScalarGridSpec(
            num_scalar_prefetch=0,
            grid=(n_blocks,),
            in_specs=[
                pl.BlockSpec((TB, n, d), lambda i: (i, 0, 0)),   # x (streamed)
                resident_spec((d, hw)), resident_spec((1, hw)),  # Wq, bq (pre-scaled)
                resident_spec((d, hw)), resident_spec((1, hw)),  # Wk, bk
                resident_spec((d, hw)), resident_spec((1, hw)),  # Wv, bv
                resident_spec((hw, d)), resident_spec((1, d)),   # Wo, bo
            ],
            out_specs=pl.BlockSpec((TB, n, d), lambda i: (i, 0, 0)),
        ),
        compiler_params=pltpu.CompilerParams(
            dimension_semantics=("parallel",),
            vmem_limit_bytes=vmem_limit),
    )(x2, wq, bq, wk, bk, wv, bv, wo, bo)
    return out[:B].reshape(b, s, n, d)


def self_attention_ref(x, params):
    """Pure-JAX reference mirroring the PyTorch forward exactly."""
    heads = params["heads"]
    d = x.shape[-1]
    hd = d // heads
    q = jnp.einsum("bsnd,dhk->bsnhk", x, params["wq"]) + params["bq"]
    k = jnp.einsum("bsnd,dhk->bsnhk", x, params["wk"]) + params["bk"]
    v = jnp.einsum("bsnd,dhk->bsnhk", x, params["wv"]) + params["bv"]
    q = q.transpose(0, 1, 3, 2, 4)   # (b, s, h, n, hd)
    k = k.transpose(0, 1, 3, 2, 4)
    v = v.transpose(0, 1, 3, 2, 4)
    attn = jnp.einsum("bshnk,bshmk->bshnm", q, k) / (float(hd) ** 0.5)
    attn = jax.nn.softmax(attn, axis=-1)
    o = jnp.einsum("bshnm,bshmk->bshnk", attn, v)
    o = o.transpose(0, 1, 3, 2, 4)   # (b, s, n, h, hd)
    out = jnp.einsum("bsnhk,hkd->bsnd", o, params["wo"]) + params["bo"]
    return out


def init_params(key, in_dim=512, heads=8):
    # Test-harness init uses fan-in scaling so activations stay O(1); the raw
    # torch.randn init (std 1) makes attention scores ~O(500) and the softmax
    # numerically degenerate for any finite-precision implementation.
    head_dim = in_dim // heads
    kq, kk, kv, ko = jax.random.split(key, 4)
    sc = 1.0 / float(np.sqrt(in_dim))
    return {
        "heads": heads,
        "wq": jax.random.normal(kq, (in_dim, heads, head_dim), jnp.float32) * sc,
        "bq": jnp.zeros((heads, head_dim), jnp.float32),
        "wk": jax.random.normal(kk, (in_dim, heads, head_dim), jnp.float32) * sc,
        "bk": jnp.zeros((heads, head_dim), jnp.float32),
        "wv": jax.random.normal(kv, (in_dim, heads, head_dim), jnp.float32) * sc,
        "bv": jnp.zeros((heads, head_dim), jnp.float32),
        "wo": jax.random.normal(ko, (heads, head_dim, in_dim), jnp.float32) * sc,
        "bo": jnp.zeros((in_dim,), jnp.float32),
    }


if __name__ == "__main__":
    key = jax.random.PRNGKey(0)
    kx, kp = jax.random.split(key)

    in_dim, heads = 512, 8
    b, s, n = 2, 2, 8                       # small (b, s, seq) like the PyTorch example
    x = jax.random.normal(kx, (b, s, n, in_dim), jnp.float32)
    params = init_params(kp, in_dim=in_dim, heads=heads)

    out = jax.block_until_ready(self_attention_pallas(x, params))
    ref = self_attention_ref(x, params)

    out_np, ref_np = np.asarray(out), np.asarray(ref)
    # bf16 MXU operands (f32 accumulation) -> ~1e-3..1e-2 relative error vs f32 ref.
    scale = float(np.max(np.abs(ref_np)))
    np.testing.assert_allclose(out_np, ref_np, rtol=2e-2, atol=2e-2 * scale)
    print("KERNEL_OK")
</pallas_src>

<mosaic_0001>
module attributes {stable_mosaic.version = 11 : i64} {
  func.func @_self_attention_kernel(%arg0: i32, %arg1: memref<4x8x512xf32, #tpu.memory_space<vmem>>, %arg2: memref<512x512xbf16, #tpu.memory_space<vmem>>, %arg3: memref<1x512xf32, #tpu.memory_space<vmem>>, %arg4: memref<512x512xbf16, #tpu.memory_space<vmem>>, %arg5: memref<1x512xf32, #tpu.memory_space<vmem>>, %arg6: memref<512x512xbf16, #tpu.memory_space<vmem>>, %arg7: memref<1x512xf32, #tpu.memory_space<vmem>>, %arg8: memref<512x512xbf16, #tpu.memory_space<vmem>>, %arg9: memref<1x512xf32, #tpu.memory_space<vmem>>, %arg10: memref<4x8x512xf32, #tpu.memory_space<vmem>>) attributes {dimension_semantics = [#tpu.dimension_semantics<parallel>], iteration_bounds = array<i64: 1>, scalar_prefetch = 0 : i64, scratch_operands = 0 : i64, tpu.core_type = #tpu.core_type<tc>, window_params = [{transform_indices = @transform_0, window_bounds = array<i64: 4, 8, 512>}, {pipeline_mode = #tpu.pipeline_mode<synchronous>, transform_indices = @transform_1, window_bounds = array<i64: 512, 512>}, {pipeline_mode = #tpu.pipeline_mode<synchronous>, transform_indices = @transform_2, window_bounds = array<i64: 1, 512>}, {pipeline_mode = #tpu.pipeline_mode<synchronous>, transform_indices = @transform_3, window_bounds = array<i64: 512, 512>}, {pipeline_mode = #tpu.pipeline_mode<synchronous>, transform_indices = @transform_4, window_bounds = array<i64: 1, 512>}, {pipeline_mode = #tpu.pipeline_mode<synchronous>, transform_indices = @transform_5, window_bounds = array<i64: 512, 512>}, {pipeline_mode = #tpu.pipeline_mode<synchronous>, transform_indices = @transform_6, window_bounds = array<i64: 1, 512>}, {pipeline_mode = #tpu.pipeline_mode<synchronous>, transform_indices = @transform_7, window_bounds = array<i64: 512, 512>}, {pipeline_mode = #tpu.pipeline_mode<synchronous>, transform_indices = @transform_8, window_bounds = array<i64: 1, 512>}, {transform_indices = @transform_9, window_bounds = array<i64: 4, 8, 512>}]} {
    %c0 = arith.constant 0 : index
    %c0_0 = arith.constant 0 : index
    %c0_1 = arith.constant 0 : index
    %0 = vector.load %arg1[%c0, %c0_0, %c0_1] : memref<4x8x512xf32, #tpu.memory_space<vmem>>, vector<4x8x512xf32>
    %1 = vector.shape_cast %0 : vector<4x8x512xf32> to vector<32x512xf32>
    %2 = arith.truncf %1 : vector<32x512xf32> to vector<32x512xbf16>
    %c0_2 = arith.constant 0 : index
    %c0_3 = arith.constant 0 : index
    %3 = vector.load %arg2[%c0_2, %c0_3] : memref<512x512xbf16, #tpu.memory_space<vmem>>, vector<512x512xbf16>
    %cst = arith.constant dense<0.000000e+00> : vector<32x512xf32>
    %4 = tpu.matmul %2, %3, %cst {dimension_numbers = #tpu.dot_dimension_numbers<[1], [0], [0], [1], [0, 0, 1, 1], [], []>} : vector<32x512xbf16>, vector<512x512xbf16>, vector<32x512xf32> -> vector<32x512xf32>
    %c0_4 = arith.constant 0 : index
    %c0_5 = arith.constant 0 : index
    %5 = vector.load %arg3[%c0_4, %c0_5] : memref<1x512xf32, #tpu.memory_space<vmem>>, vector<1x512xf32>
    %6 = vector.broadcast %5 : vector<1x512xf32> to vector<32x512xf32>
    %7 = arith.addf %4, %6 : vector<32x512xf32>
    %c0_6 = arith.constant 0 : index
    %c0_7 = arith.constant 0 : index
    %8 = vector.load %arg4[%c0_6, %c0_7] : memref<512x512xbf16, #tpu.memory_space<vmem>>, vector<512x512xbf16>
    %cst_8 = arith.constant dense<0.000000e+00> : vector<32x512xf32>
    %9 = tpu.matmul %2, %8, %cst_8 {dimension_numbers = #tpu.dot_dimension_numbers<[1], [0], [0], [1], [0, 0, 1, 1], [], []>} : vector<32x512xbf16>, vector<512x512xbf16>, vector<32x512xf32> -> vector<32x512xf32>
    %c0_9 = arith.constant 0 : index
    %c0_10 = arith.constant 0 : index
    %10 = vector.load %arg5[%c0_9, %c0_10] : memref<1x512xf32, #tpu.memory_space<vmem>>, vector<1x512xf32>
    %11 = vector.broadcast %10 : vector<1x512xf32> to vector<32x512xf32>
    %12 = arith.addf %9, %11 : vector<32x512xf32>
    %c0_11 = arith.constant 0 : index
    %c0_12 = arith.constant 0 : index
    %13 = vector.load %arg6[%c0_11, %c0_12] : memref<512x512xbf16, #tpu.memory_space<vmem>>, vector<512x512xbf16>
    %cst_13 = arith.constant dense<0.000000e+00> : vector<32x512xf32>
    %14 = tpu.matmul %2, %13, %cst_13 {dimension_numbers = #tpu.dot_dimension_numbers<[1], [0], [0], [1], [0, 0, 1, 1], [], []>} : vector<32x512xbf16>, vector<512x512xbf16>, vector<32x512xf32> -> vector<32x512xf32>
    %c0_14 = arith.constant 0 : index
    %c0_15 = arith.constant 0 : index
    %15 = vector.load %arg7[%c0_14, %c0_15] : memref<1x512xf32, #tpu.memory_space<vmem>>, vector<1x512xf32>
    %16 = vector.broadcast %15 : vector<1x512xf32> to vector<32x512xf32>
    %17 = arith.addf %14, %16 : vector<32x512xf32>
    %18 = vector.extract_strided_slice %7 {offsets = [0, 0], sizes = [32, 64], strides = [1, 1]} : vector<32x512xf32> to vector<32x64xf32>
    %19 = vector.shape_cast %18 : vector<32x64xf32> to vector<4x8x64xf32>
    %20 = vector.extract_strided_slice %7 {offsets = [0, 64], sizes = [32, 64], strides = [1, 1]} : vector<32x512xf32> to vector<32x64xf32>
    %21 = vector.shape_cast %20 : vector<32x64xf32> to vector<4x8x64xf32>
    %22 = vector.extract_strided_slice %7 {offsets = [0, 128], sizes = [32, 64], strides = [1, 1]} : vector<32x512xf32> to vector<32x64xf32>
    %23 = vector.shape_cast %22 : vector<32x64xf32> to vector<4x8x64xf32>
    %24 = vector.extract_strided_slice %7 {offsets = [0, 192], sizes = [32, 64], strides = [1, 1]} : vector<32x512xf32> to vector<32x64xf32>
    %25 = vector.shape_cast %24 : vector<32x64xf32> to vector<4x8x64xf32>
    %26 = vector.extract_strided_slice %7 {offsets = [0, 256], sizes = [32, 64], strides = [1, 1]} : vector<32x512xf32> to vector<32x64xf32>
    %27 = vector.shape_cast %26 : vector<32x64xf32> to vector<4x8x64xf32>
    %28 = vector.extract_strided_slice %7 {offsets = [0, 320], sizes = [32, 64], strides = [1, 1]} : vector<32x512xf32> to vector<32x64xf32>
    %29 = vector.shape_cast %28 : vector<32x64xf32> to vector<4x8x64xf32>
    %30 = vector.extract_strided_slice %7 {offsets = [0, 384], sizes = [32, 64], strides = [1, 1]} : vector<32x512xf32> to vector<32x64xf32>
    %31 = vector.shape_cast %30 : vector<32x64xf32> to vector<4x8x64xf32>
    %32 = vector.extract_strided_slice %7 {offsets = [0, 448], sizes = [32, 64], strides = [1, 1]} : vector<32x512xf32> to vector<32x64xf32>
    %33 = vector.shape_cast %32 : vector<32x64xf32> to vector<4x8x64xf32>
    %34 = tpu.concatenate %19, %21, %23, %25, %27, %29, %31, %33 in 0 : vector<4x8x64xf32>, vector<4x8x64xf32>, vector<4x8x64xf32>, vector<4x8x64xf32>, vector<4x8x64xf32>, vector<4x8x64xf32>, vector<4x8x64xf32>, vector<4x8x64xf32> -> vector<32x8x64xf32>
    %35 = vector.extract_strided_slice %12 {offsets = [0, 0], sizes = [32, 64], strides = [1, 1]} : vector<32x512xf32> to vector<32x64xf32>
    %36 = vector.shape_cast %35 : vector<32x64xf32> to vector<4x8x64xf32>
    %37 = vector.extract_strided_slice %12 {offsets = [0, 64], sizes = [32, 64], strides = [1, 1]} : vector<32x512xf32> to vector<32x64xf32>
    %38 = vector.shape_cast %37 : vector<32x64xf32> to vector<4x8x64xf32>
    %39 = vector.extract_strided_slice %12 {offsets = [0, 128], sizes = [32, 64], strides = [1, 1]} : vector<32x512xf32> to vector<32x64xf32>
    %40 = vector.shape_cast %39 : vector<32x64xf32> to vector<4x8x64xf32>
    %41 = vector.extract_strided_slice %12 {offsets = [0, 192], sizes = [32, 64], strides = [1, 1]} : vector<32x512xf32> to vector<32x64xf32>
    %42 = vector.shape_cast %41 : vector<32x64xf32> to vector<4x8x64xf32>
    %43 = vector.extract_strided_slice %12 {offsets = [0, 256], sizes = [32, 64], strides = [1, 1]} : vector<32x512xf32> to vector<32x64xf32>
    %44 = vector.shape_cast %43 : vector<32x64xf32> to vector<4x8x64xf32>
    %45 = vector.extract_strided_slice %12 {offsets = [0, 320], sizes = [32, 64], strides = [1, 1]} : vector<32x512xf32> to vector<32x64xf32>
    %46 = vector.shape_cast %45 : vector<32x64xf32> to vector<4x8x64xf32>
    %47 = vector.extract_strided_slice %12 {offsets = [0, 384], sizes = [32, 64], strides = [1, 1]} : vector<32x512xf32> to vector<32x64xf32>
    %48 = vector.shape_cast %47 : vector<32x64xf32> to vector<4x8x64xf32>
    %49 = vector.extract_strided_slice %12 {offsets = [0, 448], sizes = [32, 64], strides = [1, 1]} : vector<32x512xf32> to vector<32x64xf32>
    %50 = vector.shape_cast %49 : vector<32x64xf32> to vector<4x8x64xf32>
    %51 = tpu.concatenate %36, %38, %40, %42, %44, %46, %48, %50 in 0 : vector<4x8x64xf32>, vector<4x8x64xf32>, vector<4x8x64xf32>, vector<4x8x64xf32>, vector<4x8x64xf32>, vector<4x8x64xf32>, vector<4x8x64xf32>, vector<4x8x64xf32> -> vector<32x8x64xf32>
    %52 = vector.extract_strided_slice %17 {offsets = [0, 0], sizes = [32, 64], strides = [1, 1]} : vector<32x512xf32> to vector<32x64xf32>
    %53 = vector.shape_cast %52 : vector<32x64xf32> to vector<4x8x64xf32>
    %54 = vector.extract_strided_slice %17 {offsets = [0, 64], sizes = [32, 64], strides = [1, 1]} : vector<32x512xf32> to vector<32x64xf32>
    %55 = vector.shape_cast %54 : vector<32x64xf32> to vector<4x8x64xf32>
    %56 = vector.extract_strided_slice %17 {offsets = [0, 128], sizes = [32, 64], strides = [1, 1]} : vector<32x512xf32> to vector<32x64xf32>
    %57 = vector.shape_cast %56 : vector<32x64xf32> to vector<4x8x64xf32>
    %58 = vector.extract_strided_slice %17 {offsets = [0, 192], sizes = [32, 64], strides = [1, 1]} : vector<32x512xf32> to vector<32x64xf32>
    %59 = vector.shape_cast %58 : vector<32x64xf32> to vector<4x8x64xf32>
    %60 = vector.extract_strided_slice %17 {offsets = [0, 256], sizes = [32, 64], strides = [1, 1]} : vector<32x512xf32> to vector<32x64xf32>
    %61 = vector.shape_cast %60 : vector<32x64xf32> to vector<4x8x64xf32>
    %62 = vector.extract_strided_slice %17 {offsets = [0, 320], sizes = [32, 64], strides = [1, 1]} : vector<32x512xf32> to vector<32x64xf32>
    %63 = vector.shape_cast %62 : vector<32x64xf32> to vector<4x8x64xf32>
    %64 = vector.extract_strided_slice %17 {offsets = [0, 384], sizes = [32, 64], strides = [1, 1]} : vector<32x512xf32> to vector<32x64xf32>
    %65 = vector.shape_cast %64 : vector<32x64xf32> to vector<4x8x64xf32>
    %66 = vector.extract_strided_slice %17 {offsets = [0, 448], sizes = [32, 64], strides = [1, 1]} : vector<32x512xf32> to vector<32x64xf32>
    %67 = vector.shape_cast %66 : vector<32x64xf32> to vector<4x8x64xf32>
    %68 = tpu.concatenate %53, %55, %57, %59, %61, %63, %65, %67 in 0 : vector<4x8x64xf32>, vector<4x8x64xf32>, vector<4x8x64xf32>, vector<4x8x64xf32>, vector<4x8x64xf32>, vector<4x8x64xf32>, vector<4x8x64xf32>, vector<4x8x64xf32> -> vector<32x8x64xf32>
    %69 = arith.truncf %68 : vector<32x8x64xf32> to vector<32x8x64xbf16>
    "tpu.trace_start"() <{level = 10 : i32, message = "bqd,bkd->bqk"}> : () -> ()
    %cst_16 = arith.constant dense<0.000000e+00> : vector<32x8x8xf32>
    %70 = tpu.matmul %34, %51, %cst_16 {dimension_numbers = #tpu.dot_dimension_numbers<[2], [2], [1], [1], [0, 0, 0, 1, 1, 1], [0], [0]>} : vector<32x8x64xf32>, vector<32x8x64xf32>, vector<32x8x8xf32> -> vector<32x8x8xf32>
    "tpu.trace_stop"() : () -> ()
    %cst_17 = arith.constant dense<0xFF800000> : vector<32x8xf32>
    %71 = vector.multi_reduction <maximumf>, %70, %cst_17 [2] : vector<32x8x8xf32> to vector<32x8xf32>
    %72 = vector.shape_cast %71 : vector<32x8xf32> to vector<32x8x1xf32>
    %73 = vector.broadcast %72 : vector<32x8x1xf32> to vector<32x8x8xf32>
    %74 = arith.subf %70, %73 : vector<32x8x8xf32>
    %75 = math.exp %74 : vector<32x8x8xf32>
    %cst_18 = arith.constant dense<0.000000e+00> : vector<32x8xf32>
    %76 = vector.multi_reduction <add>, %75, %cst_18 [2] : vector<32x8x8xf32> to vector<32x8xf32>
    %77 = vector.shape_cast %76 : vector<32x8xf32> to vector<32x8x1xf32>
    %78 = tpu.reciprocal %77 : vector<32x8x1xf32> -> vector<32x8x1xf32>
    %79 = vector.broadcast %78 : vector<32x8x1xf32> to vector<32x8x8xf32>
    %80 = arith.mulf %75, %79 : vector<32x8x8xf32>
    %81 = arith.truncf %80 : vector<32x8x8xf32> to vector<32x8x8xbf16>
    "tpu.trace_start"() <{level = 10 : i32, message = "bqk,bkd->bqd"}> : () -> ()
    %cst_19 = arith.constant dense<0.000000e+00> : vector<32x8x64xf32>
    %82 = tpu.matmul %81, %69, %cst_19 {dimension_numbers = #tpu.dot_dimension_numbers<[2], [1], [1], [2], [0, 0, 0, 1, 1, 2], [0], [0]>} : vector<32x8x8xbf16>, vector<32x8x64xbf16>, vector<32x8x64xf32> -> vector<32x8x64xf32>
    "tpu.trace_stop"() : () -> ()
    %83 = vector.extract_strided_slice %82 {offsets = [0, 0, 0], sizes = [4, 8, 64], strides = [1, 1, 1]} : vector<32x8x64xf32> to vector<4x8x64xf32>
    %84 = vector.shape_cast %83 : vector<4x8x64xf32> to vector<32x64xf32>
    %85 = vector.extract_strided_slice %82 {offsets = [4, 0, 0], sizes = [4, 8, 64], strides = [1, 1, 1]} : vector<32x8x64xf32> to vector<4x8x64xf32>
    %86 = vector.shape_cast %85 : vector<4x8x64xf32> to vector<32x64xf32>
    %87 = vector.extract_strided_slice %82 {offsets = [8, 0, 0], sizes = [4, 8, 64], strides = [1, 1, 1]} : vector<32x8x64xf32> to vector<4x8x64xf32>
    %88 = vector.shape_cast %87 : vector<4x8x64xf32> to vector<32x64xf32>
    %89 = vector.extract_strided_slice %82 {offsets = [12, 0, 0], sizes = [4, 8, 64], strides = [1, 1, 1]} : vector<32x8x64xf32> to vector<4x8x64xf32>
    %90 = vector.shape_cast %89 : vector<4x8x64xf32> to vector<32x64xf32>
    %91 = vector.extract_strided_slice %82 {offsets = [16, 0, 0], sizes = [4, 8, 64], strides = [1, 1, 1]} : vector<32x8x64xf32> to vector<4x8x64xf32>
    %92 = vector.shape_cast %91 : vector<4x8x64xf32> to vector<32x64xf32>
    %93 = vector.extract_strided_slice %82 {offsets = [20, 0, 0], sizes = [4, 8, 64], strides = [1, 1, 1]} : vector<32x8x64xf32> to vector<4x8x64xf32>
    %94 = vector.shape_cast %93 : vector<4x8x64xf32> to vector<32x64xf32>
    %95 = vector.extract_strided_slice %82 {offsets = [24, 0, 0], sizes = [4, 8, 64], strides = [1, 1, 1]} : vector<32x8x64xf32> to vector<4x8x64xf32>
    %96 = vector.shape_cast %95 : vector<4x8x64xf32> to vector<32x64xf32>
    %97 = vector.extract_strided_slice %82 {offsets = [28, 0, 0], sizes = [4, 8, 64], strides = [1, 1, 1]} : vector<32x8x64xf32> to vector<4x8x64xf32>
    %98 = vector.shape_cast %97 : vector<4x8x64xf32> to vector<32x64xf32>
    %99 = tpu.concatenate %84, %86, %88, %90, %92, %94, %96, %98 in 1 : vector<32x64xf32>, vector<32x64xf32>, vector<32x64xf32>, vector<32x64xf32>, vector<32x64xf32>, vector<32x64xf32>, vector<32x64xf32>, vector<32x64xf32> -> vector<32x512xf32>
    %100 = arith.truncf %99 : vector<32x512xf32> to vector<32x512xbf16>
    %c0_20 = arith.constant 0 : index
    %c0_21 = arith.constant 0 : index
    %101 = vector.load %arg8[%c0_20, %c0_21] : memref<512x512xbf16, #tpu.memory_space<vmem>>, vector<512x512xbf16>
    %cst_22 = arith.constant dense<0.000000e+00> : vector<32x512xf32>
    %102 = tpu.matmul %100, %101, %cst_22 {dimension_numbers = #tpu.dot_dimension_numbers<[1], [0], [0], [1], [0, 0, 1, 1], [], []>} : vector<32x512xbf16>, vector<512x512xbf16>, vector<32x512xf32> -> vector<32x512xf32>
    %c0_23 = arith.constant 0 : index
    %c0_24 = arith.constant 0 : index
    %103 = vector.load %arg9[%c0_23, %c0_24] : memref<1x512xf32, #tpu.memory_space<vmem>>, vector<1x512xf32>
    %104 = vector.broadcast %103 : vector<1x512xf32> to vector<32x512xf32>
    %105 = arith.addf %102, %104 : vector<32x512xf32>
    %106 = vector.shape_cast %105 : vector<32x512xf32> to vector<4x8x512xf32>
    %c0_25 = arith.constant 0 : index
    %c0_26 = arith.constant 0 : index
    %c0_27 = arith.constant 0 : index
    %107 = vector.load %arg10[%c0_25, %c0_26, %c0_27] : memref<4x8x512xf32, #tpu.memory_space<vmem>>, vector<4x8x512xf32>
    tpu.vector_store %arg10[%c0_25, %c0_26, %c0_27], %106 {strides = array<i32>} : memref<4x8x512xf32, #tpu.memory_space<vmem>>, vector<4x8x512xf32>,
    return
  }
  func.func @transform_0(%arg0: i32) -> (i32, i32, i32) {
    %c0_i32 = arith.constant 0 : i32
    %c0_i32_0 = arith.constant 0 : i32
    %c0_i32_1 = arith.constant 0 : i32
    return %arg0, %c0_i32, %c0_i32_0 : i32, i32, i32
  }
  func.func @transform_1(%arg0: i32) -> (i32, i32) {
    %c0_i32 = arith.constant 0 : i32
    %c0_i32_0 = arith.constant 0 : i32
    %c0_i32_1 = arith.constant 0 : i32
    return %c0_i32, %c0_i32_0 : i32, i32
  }
  func.func @transform_2(%arg0: i32) -> (i32, i32) {
    %c0_i32 = arith.constant 0 : i32
    %c0_i32_0 = arith.constant 0 : i32
    %c0_i32_1 = arith.constant 0 : i32
    return %c0_i32, %c0_i32_0 : i32, i32
  }
  func.func @transform_3(%arg0: i32) -> (i32, i32) {
    %c0_i32 = arith.constant 0 : i32
    %c0_i32_0 = arith.constant 0 : i32
    %c0_i32_1 = arith.constant 0 : i32
    return %c0_i32, %c0_i32_0 : i32, i32
  }
  func.func @transform_4(%arg0: i32) -> (i32, i32) {
    %c0_i32 = arith.constant 0 : i32
    %c0_i32_0 = arith.constant 0 : i32
    %c0_i32_1 = arith.constant 0 : i32
    return %c0_i32, %c0_i32_0 : i32, i32
  }
  func.func @transform_5(%arg0: i32) -> (i32, i32) {
    %c0_i32 = arith.constant 0 : i32
    %c0_i32_0 = arith.constant 0 : i32
    %c0_i32_1 = arith.constant 0 : i32
    return %c0_i32, %c0_i32_0 : i32, i32
  }
  func.func @transform_6(%arg0: i32) -> (i32, i32) {
    %c0_i32 = arith.constant 0 : i32
    %c0_i32_0 = arith.constant 0 : i32
    %c0_i32_1 = arith.constant 0 : i32
    return %c0_i32, %c0_i32_0 : i32, i32
  }
  func.func @transform_7(%arg0: i32) -> (i32, i32) {
    %c0_i32 = arith.constant 0 : i32
    %c0_i32_0 = arith.constant 0 : i32
    %c0_i32_1 = arith.constant 0 : i32
    return %c0_i32, %c0_i32_0 : i32, i32
  }
  func.func @transform_8(%arg0: i32) -> (i32, i32) {
    %c0_i32 = arith.constant 0 : i32
    %c0_i32_0 = arith.constant 0 : i32
    %c0_i32_1 = arith.constant 0 : i32
    return %c0_i32, %c0_i32_0 : i32, i32
  }
  func.func @transform_9(%arg0: i32) -> (i32, i32, i32) {
    %c0_i32 = arith.constant 0 : i32
    %c0_i32_0 = arith.constant 0 : i32
    %c0_i32_1 = arith.constant 0 : i32
    return %arg0, %c0_i32, %c0_i32_0 : i32, i32, i32
  }
}

</mosaic_0001>

<bundles_post_ra>
// kernel: tpu_custom_call.1
= control target key start
LH: loop header
LB: loop body
LE: loop exit
PB: predicated region body
PF: predicated region fallthrough
CT: control target
= control target key end

     0   :  { %14 = vsyncpa [#allocation3], 0  ;;  %s11753_s0 = inlined_call_operand.hbm [shape: f32[4,8,512], index: 0, kind: input, shape index: {}]   ;;  %s11754_s1 = inlined_call_operand.hbm [shape: bf16[512,512], index: 1, kind: input, shape index: {}]   ;;  %s11755_s2 = inlined_call_operand.hbm [shape: f32[1,512], index: 2, kind: input, shape index: {}]   ;;  %s11756_s3 = inlined_call_operand.hbm [shape: bf16[512,512], index: 3, kind: input, shape index: {}]   ;;  %s11757_s4 = inlined_call_operand.hbm [shape: f32[1,512], index: 4, kind: input, shape index: {}]   ;;  %s11758_s5 = inlined_call_operand.hbm [shape: bf16[512,512], index: 5, kind: input, shape index: {}]   ;;  %s11759_s6 = inlined_call_operand.vmem [shape: f32[1,512], index: 6, kind: input, shape index: {}]   ;;  %s11760_s7 = inlined_call_operand.hbm [shape: bf16[512,512], index: 7, kind: input, shape index: {}]   ;;  %s11761_s8 = inlined_call_operand.hbm [shape: f32[1,512], index: 8, kind: input, shape index: {}]   ;;  %s11762_s9 = inlined_call_operand.hbm [shape: f32[4,8,512], index: 9, kind: output, shape index: {}]  }
   0x1   :  { %15 = vsyncpa [#allocation6], 0 }
   0x2   :  { %16 = vsyncpa [#allocation9], 0 }
   0x3   :  { %17 = vsyncpa [#allocation12], 0 }
   0x4   :  { %18 = vsyncpa [#allocation15], 0  ;;  %s37_s11 = sshll.u32 %s11754_s1, 4  ;;  %s38_s11 = int_to_ptr.hbm [resolvable:$true] %s37_s11 }
   0x5   :  { %19 = vsyncpa [#allocation4], 0  ;;  %s10110_s12 = smov [#allocation5]   ;;  %s61_s16 = sshll.u32 %s11756_s3, 4  ;;  %s62_s16 = int_to_ptr.hbm [resolvable:$true] %s61_s16 }
   0x6   :  { %s39_s13 = sshll.u32 %s10110_s12, 4  ;;  %s10111_s17 = smov 256   ;;  %s40_s13 = int_to_ptr.vmem [resolvable:$true] %s39_s13 }
   0x7   :  { %s10112_s18 = smov 16   ;;  %s10113_s19 = smov [#allocation8]  }
   0x8   :  { %45 = dma.hbm_to_vmem [thread:$0]  %s38_s11, 16384, %s40_s13, [#allocation6], %s10111_s17, %s10111_s17, %s10112_s18  }
   0x9   :  { %s63_s20 = sshll.u32 %s10113_s19, 4  ;;  %s85_s22 = sshll.u32 %s11758_s5, 4  ;;  %s64_s20 = int_to_ptr.vmem [resolvable:$true] %s63_s20  ;;  %s86_s22 = int_to_ptr.hbm [resolvable:$true] %s85_s22 }
   0xa   :  { %69 = dma.hbm_to_vmem [thread:$0]  %s62_s16, 16384, %s64_s20, [#allocation9], %s10111_s17, %s10111_s17, %s10112_s18  }
   0xb   :  { %s24_s24 = sshll.u32 %s11753_s0, 4  ;;  %s10114_s25 = smov [#allocation11]   ;;  %s25_s24 = int_to_ptr.hbm [resolvable:$true] %s24_s24 }
   0xc   :  { %s87_s26 = sshll.u32 %s10114_s25, 4  ;;  %s10115_s27 = smov [#allocation2]   ;;  %s88_s26 = int_to_ptr.vmem [resolvable:$true] %s87_s26 }
   0xd   :  { %93 = dma.hbm_to_vmem [thread:$0]  %s86_s22, 16384, %s88_s26, [#allocation12], %s10111_s17, %s10111_s17, %s10112_s18  }
   0xe   :  { %s26_s5 = sshll.u32 %s10115_s27, 4  ;;  %s10116_s28 = smov 512   ;;  %s27_s5 = int_to_ptr.vmem [resolvable:$true] %s26_s5 }
   0xf   :  { %s10117_s29 = smov 32   ;;  %s51_s0 = sshll.u32 %s11755_s2, 4  ;;  %s52_s0 = int_to_ptr.hbm [resolvable:$true] %s51_s0 }
  0x10   :  { %32 = dma.hbm_to_vmem [thread:$0]  %s25_s24, 2048, %s27_s5, [#allocation3], %s10116_s28, %s10116_s28, %s10117_s29  }
  0x11   :  { %s10118_s11 = smov [#allocation7]   ;;  %s75_s15 = sshll.u32 %s11757_s4, 4  ;;  %s76_s15 = int_to_ptr.hbm [resolvable:$true] %s75_s15 }
  0x12   :  { %s53_s12 = sshll.u32 %s10118_s11, 4  ;;  %s10119_s16 = smov [#allocation10]   ;;  %s54_s12 = int_to_ptr.vmem [resolvable:$true] %s53_s12 }
  0x13   :  { %56 = dma.hbm_to_vmem [thread:$0]  %s52_s0, 64, %s54_s12, [#allocation6]  }
  0x14   :  { %s77_s19 = sshll.u32 %s10119_s16, 4  ;;  %s100_s1 = sshll.u32 %s11760_s7, 4  ;;  %s78_s19 = int_to_ptr.vmem [resolvable:$true] %s77_s19  ;;  %s101_s1 = int_to_ptr.hbm [resolvable:$true] %s100_s1 }
  0x15   :  { %80 = dma.hbm_to_vmem [thread:$0]  %s76_s15, 64, %s78_s19, [#allocation9]  }
  0x16   :  { %s114_s3 = sshll.u32 %s11761_s8, 4  ;;  %s10120_s23 = smov [#allocation13]   ;;  %s115_s3 = int_to_ptr.hbm [resolvable:$true] %s114_s3 }
  0x17   :  { %s102_s24 = sshll.u32 %s10120_s23, 4  ;;  %s10121_s4 = smov [#allocation14]   ;;  %s103_s24 = int_to_ptr.vmem [resolvable:$true] %s102_s24 }
  0x18   :  { %108 = dma.hbm_to_vmem [thread:$0]  %s101_s1, 16384, %s103_s24, [#allocation12], %s10111_s17, %s10111_s17, %s10112_s18  }
  0x19   :  { %s116_s25 = sshll.u32 %s10121_s4, 4  ;;  %s117_s25 = int_to_ptr.vmem [resolvable:$true] %s116_s25 }
  0x1a   :  { %119 = dma.hbm_to_vmem [thread:$0]  %s115_s3, 64, %s117_s25, [#allocation15]  }
  0x1b   :  { %10098 = dma.done.wait [#allocation3], 2048  }
  0x1c   :  { %10099 = vsyncadd [#allocation3], 4294965248 }
  0x1d   :  { %10100 = dma.done.wait [#allocation6], 16448  }
  0x1e   :  { %10101 = vsyncadd [#allocation6], 4294950848 }
  0x1f   :  { %10102 = dma.done.wait [#allocation9], 16448  }
  0x20   :  { %10103 = vsyncadd [#allocation9], 4294950848 }
  0x21   :  { %10104 = dma.done.wait [#allocation12], 32768  }
  0x22   :  { %10105 = vsyncadd [#allocation12], 4294934528 }
  0x23   :  { %10106 = dma.done.wait [#allocation15], 64  }
  0x24   :  { %10107 = vsyncadd [#allocation15], 4294967232  ;;  %v7117_v0 = vld [vmem:[#allocation5 + $0xe0] sm:$0xf]  ;;  %v9177_v1 = vld [vmem:[#allocation5 + $0xec] sm:$0xf0] }
  0x25   :  { %v7245_v2 = vld [vmem:[#allocation5 + $0x1e0] sm:$0xf]  ;;  %v7118_v3 = vor.u32 %v9177_v1, %v7117_v0  ;;  %v9209_v4 = vld [vmem:[#allocation5 + $0x1ec] sm:$0xf0]  ;;  %s10122_s7 = smov 64   ;;  %vm3615_vm0 = vcmask 523264  }
  0x26   :  { %v7373_v5 = vld [vmem:[#allocation5 + $0x2e0] sm:$0xf]  ;;  %v9241_v6 = vld [vmem:[#allocation5 + $0x2ec] sm:$0xf0]  ;;  %v7246_v7 = vor.u32 %v9209_v4, %v7245_v2  ;;  %vm5188_vm1 = vcmask 1043456   ;;  %vm4384_vm2 = vcmask 64512  }
  0x27   :  { %v7374_v8 = vor.u32 %v9241_v6, %v7373_v5  ;;  %v7501_v9 = vld [vmem:[#allocation5 + $0x3e0] sm:$0xf]  ;;  %v9273_v10 = vld [vmem:[#allocation5 + $0x3ec] sm:$0xf0]  ;;  %955 = vmatpush.bf16.msra.mxu0 %v7118_v3  ;;  %s6986_s5 = sshll.u32 %s11762_s9, 4  ;;  %s6987_s5 = int_to_ptr.hbm [resolvable:$true] %s6986_s5 }
  0x28   :  { %v7101_v11 = vld [vmem:[#allocation5 + $0xc0] sm:$0xf]  ;;  %v7502_v12 = vor.u32 %v9273_v10, %v7501_v9  ;;  %v9173_v13 = vld [vmem:[#allocation5 + $0xcc] sm:$0xf0]  ;;  %974 = vmatpush.bf16.msra.mxu1 %v7246_v7 }
  0x29   :  { %v7229_v14 = vld [vmem:[#allocation5 + $0x1c0] sm:$0xf]  ;;  %v9205_v15 = vld [vmem:[#allocation5 + $0x1cc] sm:$0xf0]  ;;  %993 = vmatpush.bf16.msra.mxu2 %v7374_v8  ;;  %v7102_v16 = vor.u32 %v9173_v13, %v7101_v11 }
  0x2a   :  { %v7230_v17 = vor.u32 %v9205_v15, %v7229_v14  ;;  %v7357_v18 = vld [vmem:[#allocation5 + $0x2c0] sm:$0xf]  ;;  %v9237_v19 = vld [vmem:[#allocation5 + $0x2cc] sm:$0xf0]  ;;  %1012 = vmatpush.bf16.msra.mxu3 %v7502_v12 }
  0x2b   :  { %v7485_v20 = vld [vmem:[#allocation5 + $0x3c0] sm:$0xf]  ;;  %v7358_v21 = vor.u32 %v9237_v19, %v7357_v18  ;;  %v9269_v22 = vld [vmem:[#allocation5 + $0x3cc] sm:$0xf0]  ;;  %956 = vmatpush.bf16.msra.mxu0 %v7102_v16 }
  0x2c   :  { %v7085_v23 = vld [vmem:[#allocation5 + $0xa0] sm:$0xf]  ;;  %v9169_v24 = vld [vmem:[#allocation5 + $0xac] sm:$0xf0]  ;;  %v7486_v25 = vor.u32 %v9269_v22, %v7485_v20  ;;  %975 = vmatpush.bf16.msra.mxu1 %v7230_v17 }
  0x2d   :  { %v7213_v26 = vld [vmem:[#allocation5 + $0x1a0] sm:$0xf]  ;;  %v9201_v27 = vld [vmem:[#allocation5 + $0x1ac] sm:$0xf0]  ;;  %v7086_v29 = vor.u32 %v9169_v24, %v7085_v23  ;;  %994 = vmatpush.bf16.msra.mxu2 %v7358_v21 }
  0x2e   :  { %v7341_v28 = vld [vmem:[#allocation5 + $0x2a0] sm:$0xf]  ;;  %v9233_v30 = vld [vmem:[#allocation5 + $0x2ac] sm:$0xf0]  ;;  %v7214_v33 = vor.u32 %v9201_v27, %v7213_v26  ;;  %1013 = vmatpush.bf16.msra.mxu3 %v7486_v25 }
  0x2f   :  { %v7469_v31 = vld [vmem:[#allocation5 + $0x3a0] sm:$0xf]  ;;  %v9265_v32 = vld [vmem:[#allocation5 + $0x3ac] sm:$0xf0]  ;;  %v7342_v34 = vor.u32 %v9233_v30, %v7341_v28  ;;  %957 = vmatpush.bf16.msra.mxu0 %v7086_v29  ;;  %v154_v30 = vld [vmem:[#allocation2 + $0x8] sm:$0xff] }
  0x30   :  { %v7069_v35 = vld [vmem:[#allocation5 + $0x80] sm:$0xf]  ;;  %v9165_v36 = vld [vmem:[#allocation5 + $0x8c] sm:$0xf0]  ;;  %v7470_v38 = vor.u32 %v9265_v32, %v7469_v31  ;;  %976 = vmatpush.bf16.msra.mxu1 %v7214_v33  ;;  %v158_v31 = vld [vmem:[#allocation2 + $0x28] sm:$0xff] }
  0x31   :  { %v7197_v37 = vld [vmem:[#allocation5 + $0x180] sm:$0xf]  ;;  %v9197_v39 = vld [vmem:[#allocation5 + $0x18c] sm:$0xf0]  ;;  %v7070_v44 = vor.u32 %v9165_v36, %v7069_v35  ;;  %995 = vmatpush.bf16.msra.mxu2 %v7342_v34  ;;  %v9175_v32 = vld [vmem:[#allocation5 + $0xe4] sm:$0xf] }
  0x32   :  { %v7325_v40 = vld [vmem:[#allocation5 + $0x280] sm:$0xf]  ;;  %v9229_v41 = vld [vmem:[#allocation5 + $0x28c] sm:$0xf0]  ;;  %v7198_v45 = vor.u32 %v9197_v39, %v7197_v37  ;;  %1014 = vmatpush.bf16.msra.mxu3 %v7470_v38  ;;  %v7119_v33 = vld [vmem:[#allocation5 + $0xf0] sm:$0xf0] }
  0x33   :  { %v7453_v42 = vld [vmem:[#allocation5 + $0x380] sm:$0xf]  ;;  %v9261_v43 = vld [vmem:[#allocation5 + $0x38c] sm:$0xf0]  ;;  %v7326_v46 = vor.u32 %v9229_v41, %v7325_v40  ;;  %958 = vmatpush.bf16.msra.mxu0 %v7070_v44  ;;  %v9207_v36 = vld [vmem:[#allocation5 + $0x1e4] sm:$0xf]  ;;  %v7122_v44 = vor.u32 %v9175_v32, %v7119_v33 }
  0x34   :  { %v7053_v47 = vld [vmem:[#allocation5 + $0x60] sm:$0xf]  ;;  %v9161_v48 = vld [vmem:[#allocation5 + $0x6c] sm:$0xf0]  ;;  %v7454_v50 = vor.u32 %v9261_v43, %v7453_v42  ;;  %977 = vmatpush.bf16.msra.mxu1 %v7198_v45  ;;  %v7247_v37 = vld [vmem:[#allocation5 + $0x1f0] sm:$0xf0] }
  0x35   :  { %v7181_v49 = vld [vmem:[#allocation5 + $0x160] sm:$0xf]  ;;  %v9193_v51 = vld [vmem:[#allocation5 + $0x16c] sm:$0xf0]  ;;  %v7054_v56 = vor.u32 %v9161_v48, %v7053_v47  ;;  %996 = vmatpush.bf16.msra.mxu2 %v7326_v46  ;;  %v156_v41 = vld [vmem:[#allocation2 + $0x18] sm:$0xff] }
  0x36   :  { %v7309_v52 = vld [vmem:[#allocation5 + $0x260] sm:$0xf]  ;;  %v9225_v53 = vld [vmem:[#allocation5 + $0x26c] sm:$0xf0]  ;;  %v7182_v57 = vor.u32 %v9193_v51, %v7181_v49  ;;  %1015 = vmatpush.bf16.msra.mxu3 %v7454_v50  ;;  %v160_v42 = vld [vmem:[#allocation2 + $0x38] sm:$0xff]  ;;  %v7250_v49 = vor.u32 %v9207_v36, %v7247_v37 }
  0x37   :  { %v7437_v54 = vld [vmem:[#allocation5 + $0x360] sm:$0xf]  ;;  %v9257_v55 = vld [vmem:[#allocation5 + $0x36c] sm:$0xf0]  ;;  %v7310_v58 = vor.u32 %v9225_v53, %v7309_v52  ;;  %959 = vmatpush.bf16.msra.mxu0 %v7054_v56  ;;  %v9239_v45 = vld [vmem:[#allocation5 + $0x2e4] sm:$0xf]  ;;  %v10215_v53 = vpack.c.bf16 %v158_v31, %v154_v30 }
  0x38   :  { %v7037_v59 = vld [vmem:[#allocation5 + $0x40] sm:$0xf]  ;;  %v9157_v60 = vld [vmem:[#allocation5 + $0x4c] sm:$0xf0]  ;;  %v7438_v62 = vor.u32 %v9257_v55, %v7437_v54  ;;  %978 = vmatpush.bf16.msra.mxu1 %v7182_v57  ;;  %v7375_v46 = vld [vmem:[#allocation5 + $0x2f0] sm:$0xf0]  ;;  %v10219_v57 = vpack.c.bf16 %v160_v42, %v156_v41 }
  0x39   :  { %v7165_v61 = vld [vmem:[#allocation5 + $0x140] sm:$0xf]  ;;  %v9189_v63 = vld [vmem:[#allocation5 + $0x14c] sm:$0xf0]  ;;  %v7038_v4 = vor.u32 %v9157_v60, %v7037_v59  ;;  %997 = vmatpush.bf16.msra.mxu2 %v7310_v58  ;;  %v9271_v47 = vld [vmem:[#allocation5 + $0x3e4] sm:$0xf]  ;;  %v7378_v58 = vor.u32 %v9239_v45, %v7375_v46 }
  0x3a   :  { %v7293_v0 = vld [vmem:[#allocation5 + $0x240] sm:$0xf]  ;;  %v9221_v1 = vld [vmem:[#allocation5 + $0x24c] sm:$0xf0]  ;;  %v7166_v5 = vor.u32 %v9189_v63, %v7165_v61  ;;  %1016 = vmatpush.bf16.msra.mxu3 %v7438_v62  ;;  %v7503_v50 = vld [vmem:[#allocation5 + $0x3f0] sm:$0xf0] }
  0x3b   :  { %v7421_v2 = vld [vmem:[#allocation5 + $0x340] sm:$0xf]  ;;  %v9253_v3 = vld [vmem:[#allocation5 + $0x34c] sm:$0xf0]  ;;  %v7294_v6 = vor.u32 %v9221_v1, %v7293_v0  ;;  %960 = vmatpush.bf16.msra.mxu0 %v7038_v4  ;;  %v9171_v51 = vld [vmem:[#allocation5 + $0xc4] sm:$0xf]  ;;  %v7506_v59 = vor.u32 %v9271_v47, %v7503_v50 }
  0x3c   :  { %v7021_v7 = vld [vmem:[#allocation5 + $0x20] sm:$0xf]  ;;  %v9153_v8 = vld [vmem:[#allocation5 + $0x2c] sm:$0xf0]  ;;  %v7422_v10 = vor.u32 %v9253_v3, %v7421_v2  ;;  %979 = vmatpush.bf16.msra.mxu1 %v7166_v5  ;;  %v7103_v52 = vld [vmem:[#allocation5 + $0xd0] sm:$0xf0] }
  0x3d   :  { %v7149_v9 = vld [vmem:[#allocation5 + $0x120] sm:$0xf]  ;;  %v9185_v11 = vld [vmem:[#allocation5 + $0x12c] sm:$0xf0]  ;;  %v7022_v17 = vor.u32 %v9153_v8, %v7021_v7  ;;  %998 = vmatpush.bf16.msra.mxu2 %v7294_v6  ;;  %v9203_v55 = vld [vmem:[#allocation5 + $0x1c4] sm:$0xf]  ;;  %v7106_v60 = vor.u32 %v9171_v51, %v7103_v52 }
  0x3e   :  { %v7277_v12 = vld [vmem:[#allocation5 + $0x220] sm:$0xf]  ;;  %v9217_v13 = vld [vmem:[#allocation5 + $0x22c] sm:$0xf0]  ;;  %v7150_v21 = vor.u32 %v9185_v11, %v7149_v9  ;;  %1017 = vmatpush.bf16.msra.mxu3 %v7422_v10  ;;  %v7231_v56 = vld [vmem:[#allocation5 + $0x1d0] sm:$0xf0] }
  0x3f   :  { %v7405_v14 = vld [vmem:[#allocation5 + $0x320] sm:$0xf]  ;;  %v9249_v15 = vld [vmem:[#allocation5 + $0x32c] sm:$0xf0]  ;;  %v7278_v22 = vor.u32 %v9217_v13, %v7277_v12  ;;  %961 = vmatpush.bf16.msra.mxu0 %v7022_v17  ;;  %v9235_v61 = vld [vmem:[#allocation5 + $0x2c4] sm:$0xf]  ;;  %v7234_v0 = vor.u32 %v9203_v55, %v7231_v56 }
  0x40   :  { %v7005_v16 = vld [vmem:[#allocation5] sm:$0xf]  ;;  %v9149_v18 = vld [vmem:[#allocation5 + $0xc] sm:$0xf0]  ;;  %v7406_v26 = vor.u32 %v9249_v15, %v7405_v14  ;;  %980 = vmatpush.bf16.msra.mxu1 %v7150_v21  ;;  %v7359_v62 = vld [vmem:[#allocation5 + $0x2d0] sm:$0xf0] }
  0x41   :  { %v7133_v19 = vld [vmem:[#allocation5 + $0x100] sm:$0xf]  ;;  %v9181_v20 = vld [vmem:[#allocation5 + $0x10c] sm:$0xf0]  ;;  %v7006_v34 = vor.u32 %v9149_v18, %v7005_v16  ;;  %999 = vmatpush.bf16.msra.mxu2 %v7278_v22  ;;  %v9267_v63 = vld [vmem:[#allocation5 + $0x3c4] sm:$0xf]  ;;  %v7362_v6 = vor.u32 %v9235_v61, %v7359_v62 }
  0x42   :  { %v7261_v23 = vld [vmem:[#allocation5 + $0x200] sm:$0xf]  ;;  %v9213_v24 = vld [vmem:[#allocation5 + $0x20c] sm:$0xf0]  ;;  %v7134_v38 = vor.u32 %v9181_v20, %v7133_v19  ;;  %1018 = vmatpush.bf16.msra.mxu3 %v7406_v26  ;;  %v7487_v1 = vld [vmem:[#allocation5 + $0x3d0] sm:$0xf0] }
  0x43   :  { %v7389_v25 = vld [vmem:[#allocation5 + $0x300] sm:$0xf]  ;;  %v9245_v27 = vld [vmem:[#allocation5 + $0x30c] sm:$0xf0]  ;;  %v7262_v39 = vor.u32 %v9213_v24, %v7261_v23  ;;  %962 = vmatpush.bf16.msra.mxu0 %v7006_v34  ;;  %v9167_v2 = vld [vmem:[#allocation5 + $0xa4] sm:$0xf]  ;;  %v7490_v7 = vor.u32 %v9267_v63, %v7487_v1 }
  0x44   :  { %v153_v28 = vld [vmem:[#allocation2] sm:$0xff]  ;;  %v155_v35 = vld [vmem:[#allocation2 + $0x10] sm:$0xff]  ;;  %v7390_v43 = vor.u32 %v9245_v27, %v7389_v25  ;;  %981 = vmatpush.bf16.msra.mxu1 %v7134_v38  ;;  %v164_v37 = vld [vmem:[#allocation2 + $0x58] sm:$0xff] }
  0x45   :  { %v157_v29 = vld [vmem:[#allocation2 + $0x20] sm:$0xff]  ;;  %v159_v40 = vld [vmem:[#allocation2 + $0x30] sm:$0xff]  ;;  %1000 = vmatpush.bf16.msra.mxu2 %v7262_v39  ;;  %v168_v38 = vld [vmem:[#allocation2 + $0x78] sm:$0xff] }
  0x46   :  { %v10213_v48 = vpack.c.bf16 %v157_v29, %v153_v28  ;;  %v10217_v54 = vpack.c.bf16 %v159_v40, %v155_v35  ;;  %1019 = vmatpush.bf16.msra.mxu3 %v7390_v43  ;;  %v7087_v3 = vld [vmem:[#allocation5 + $0xb0] sm:$0xf0]  ;;  %v9199_v4 = vld [vmem:[#allocation5 + $0x1a4] sm:$0xf]  ;;  %v162_v28 = vld [vmem:[#allocation2 + $0x48] sm:$0xff]  ;;  %v10231_v56 = vpack.c.bf16 %v168_v38, %v164_v37 }
  0x47   :  { %1031 = vmatpush.bf16.msrb.mxu0 %v7122_v44  ;;  %982 = vmatmul.bf16.vlgmr.msra.gmra.mxu1 %v10215_v53  ;;  %v7215_v5 = vld [vmem:[#allocation5 + $0x1b0] sm:$0xf0]  ;;  %v7090_v8 = vor.u32 %v9167_v2, %v7087_v3  ;;  %v9231_v9 = vld [vmem:[#allocation5 + $0x2a4] sm:$0xf]  ;;  %v166_v29 = vld [vmem:[#allocation2 + $0x68] sm:$0xff] }
  0x48   :  { %963 = vmatmul.bf16.vlgmr.msra.gmra.mxu0 %v10213_v48  ;;  %1050 = vmatpush.bf16.msrb.mxu1 %v7250_v49  ;;  %v7343_v10 = vld [vmem:[#allocation5 + $0x2b0] sm:$0xf0]  ;;  %v9263_v11 = vld [vmem:[#allocation5 + $0x3a4] sm:$0xf]  ;;  %v7218_v12 = vor.u32 %v9199_v4, %v7215_v5  ;;  %v10227_v50 = vpack.c.bf16 %v166_v29, %v162_v28 }
  0x49   :  { %1001 = vmatmul.bf16.vlgmr.msra.gmra.mxu2 %v10217_v54  ;;  %1020 = vmatmul.bf16.vlgmr.msra.gmra.mxu3 %v10219_v57  ;;  %v7471_v13 = vld [vmem:[#allocation5 + $0x3b0] sm:$0xf0]  ;;  %v9163_v14 = vld [vmem:[#allocation5 + $0x84] sm:$0xf]  ;;  %v7346_v18 = vor.u32 %v9231_v9, %v7343_v10 }
  0x4a   :  { %1069 = vmatpush.bf16.msrb.mxu2 %v7378_v58  ;;  %1088 = vmatpush.bf16.msrb.mxu3 %v7506_v59  ;;  %v7071_v15 = vld [vmem:[#allocation5 + $0x90] sm:$0xf0]  ;;  %v9195_v16 = vld [vmem:[#allocation5 + $0x184] sm:$0xf]  ;;  %v7474_v22 = vor.u32 %v9263_v11, %v7471_v13 }
  0x4b   :  { %1032 = vmatpush.bf16.msrb.mxu0 %v7106_v60  ;;  %v7199_v17 = vld [vmem:[#allocation5 + $0x190] sm:$0xf0]  ;;  %v9227_v19 = vld [vmem:[#allocation5 + $0x284] sm:$0xf]  ;;  %v7074_v23 = vor.u32 %v9163_v14, %v7071_v15 }
  0x4c   :  { %1051 = vmatpush.bf16.msrb.mxu1 %v7234_v0  ;;  %v7327_v20 = vld [vmem:[#allocation5 + $0x290] sm:$0xf0]  ;;  %v9259_v21 = vld [vmem:[#allocation5 + $0x384] sm:$0xf]  ;;  %v7202_v27 = vor.u32 %v9195_v16, %v7199_v17 }
  0x4d   :  { %v7455_v24 = vld [vmem:[#allocation5 + $0x390] sm:$0xf0]  ;;  %v161_v25 = vld [vmem:[#allocation2 + $0x40] sm:$0xff]  ;;  %v7330_v35 = vor.u32 %v9227_v19, %v7327_v20  ;;  %v9178_v19 = vld [vmem:[#allocation5 + $0xf4] sm:$0xf0] }
  0x4e   :  { %1070 = vmatpush.bf16.msrb.mxu2 %v7362_v6  ;;  %1089 = vmatpush.bf16.msrb.mxu3 %v7490_v7  ;;  %v165_v26 = vld [vmem:[#allocation2 + $0x60] sm:$0xff]  ;;  %v7055_v31 = vld [vmem:[#allocation5 + $0x70] sm:$0xf0]  ;;  %v7458_v39 = vor.u32 %v9259_v21, %v7455_v24  ;;  %v7253_v21 = vld [vmem:[#allocation5 + $0x1e8] sm:$0xf] }
  0x4f   :  { %1033 = vmatpush.bf16.msrb.mxu0 %v7090_v8  ;;  %v9159_v30 = vld [vmem:[#allocation5 + $0x64] sm:$0xf]  ;;  %v163_v32 = vld [vmem:[#allocation2 + $0x50] sm:$0xff]  ;;  %v10225_v44 = vpack.c.bf16 %v165_v26, %v161_v25 }
  0x50   :  { %1052 = vmatpush.bf16.msrb.mxu1 %v7218_v12  ;;  %v9191_v33 = vld [vmem:[#allocation5 + $0x164] sm:$0xf]  ;;  %v7183_v34 = vld [vmem:[#allocation5 + $0x170] sm:$0xf0]  ;;  %v7058_v40 = vor.u32 %v9159_v30, %v7055_v31  ;;  %v7381_v31 = vld [vmem:[#allocation5 + $0x2e8] sm:$0xf] }
  0x51   :  { %v167_v36 = vld [vmem:[#allocation2 + $0x70] sm:$0xff]  ;;  %v9223_v41 = vld [vmem:[#allocation5 + $0x264] sm:$0xf]  ;;  %v7186_v45 = vor.u32 %v9191_v33, %v7183_v34  ;;  %v7509_v34 = vld [vmem:[#allocation5 + $0x3e8] sm:$0xf] }
  0x52   :  { %1071 = vmatpush.bf16.msrb.mxu2 %v7346_v18  ;;  %1090 = vmatpush.bf16.msrb.mxu3 %v7474_v22  ;;  %v7311_v42 = vld [vmem:[#allocation5 + $0x270] sm:$0xf0]  ;;  %v9255_v43 = vld [vmem:[#allocation5 + $0x364] sm:$0xf]  ;;  %v10229_v51 = vpack.c.bf16 %v167_v36, %v163_v32  ;;  %v7125_v18 = vld [vmem:[#allocation5 + $0xe8] sm:$0xf] }
  0x53   :  { %1034 = vmatpush.bf16.msrb.mxu0 %v7074_v23  ;;  %v7439_v46 = vld [vmem:[#allocation5 + $0x370] sm:$0xf0]  ;;  %v9155_v47 = vld [vmem:[#allocation5 + $0x44] sm:$0xf]  ;;  %v7314_v58 = vor.u32 %v9223_v41, %v7311_v42  ;;  %v9210_v22 = vld [vmem:[#allocation5 + $0x1f4] sm:$0xf0]  ;;  %v7126_v30 = vor.u32 %v9178_v19, %v7125_v18 }
  0x54   :  { %1053 = vmatpush.bf16.msrb.mxu1 %v7202_v27  ;;  %v7039_v49 = vld [vmem:[#allocation5 + $0x50] sm:$0xf0]  ;;  %v9187_v52 = vld [vmem:[#allocation5 + $0x144] sm:$0xf]  ;;  %v7442_v59 = vor.u32 %v9255_v43, %v7439_v46  ;;  %v9242_v32 = vld [vmem:[#allocation5 + $0x2f4] sm:$0xf0]  ;;  %v7254_v33 = vor.u32 %v9210_v22, %v7253_v21 }
  0x55   :  { %v7167_v55 = vld [vmem:[#allocation5 + $0x150] sm:$0xf0]  ;;  %v7042_v60 = vor.u32 %v9155_v47, %v7039_v49  ;;  %v9219_v61 = vld [vmem:[#allocation5 + $0x244] sm:$0xf]  ;;  %v7382_v38 = vor.u32 %v9242_v32, %v7381_v31  ;;  %v7237_v41 = vld [vmem:[#allocation5 + $0x1c8] sm:$0xf] }
  0x56   :  { %1072 = vmatpush.bf16.msrb.mxu2 %v7330_v35  ;;  %1091 = vmatpush.bf16.msrb.mxu3 %v7458_v39  ;;  %v7295_v62 = vld [vmem:[#allocation5 + $0x250] sm:$0xf0]  ;;  %v9251_v63 = vld [vmem:[#allocation5 + $0x344] sm:$0xf]  ;;  %v7170_v0 = vor.u32 %v9187_v52, %v7167_v55  ;;  %v9274_v35 = vld [vmem:[#allocation5 + $0x3f4] sm:$0xf0] }
  0x57   :  { %1035 = vmatpush.bf16.msrb.mxu0 %v7058_v40  ;;  %v7423_v1 = vld [vmem:[#allocation5 + $0x350] sm:$0xf0]  ;;  %v9151_v2 = vld [vmem:[#allocation5 + $0x24] sm:$0xf]  ;;  %987 = vmatmul.bf16.gmra.mxu1 %v10227_v50  ;;  %v7298_v6 = vor.u32 %v9219_v61, %v7295_v62  ;;  %v7109_v39 = vld [vmem:[#allocation5 + $0xc8] sm:$0xf]  ;;  %v7510_v42 = vor.u32 %v9274_v35, %v7509_v34 }
  0x58   :  { %968 = vmatmul.bf16.gmra.mxu0 %v10225_v44  ;;  %1054 = vmatpush.bf16.msrb.mxu1 %v7186_v45  ;;  %v7023_v3 = vld [vmem:[#allocation5 + $0x30] sm:$0xf0]  ;;  %v9183_v4 = vld [vmem:[#allocation5 + $0x124] sm:$0xf]  ;;  %v7426_v8 = vor.u32 %v9251_v63, %v7423_v1  ;;  %v9174_v40 = vld [vmem:[#allocation5 + $0xd4] sm:$0xf0] }
  0x59   :  { %1006 = vmatmul.bf16.gmra.mxu2 %v10229_v51  ;;  %v7151_v5 = vld [vmem:[#allocation5 + $0x130] sm:$0xf0]  ;;  %1025 = vmatmul.bf16.gmra.mxu3 %v10231_v56  ;;  %v9215_v7 = vld [vmem:[#allocation5 + $0x224] sm:$0xf]  ;;  %v7026_v9 = vor.u32 %v9151_v2, %v7023_v3  ;;  %v9206_v43 = vld [vmem:[#allocation5 + $0x1d4] sm:$0xf0]  ;;  %v7110_v52 = vor.u32 %v9174_v40, %v7109_v39 }
  0x5a   :  { %1073 = vmatpush.bf16.msrb.mxu2 %v7314_v58  ;;  %1092 = vmatpush.bf16.msrb.mxu3 %v7442_v59  ;;  %v7279_v10 = vld [vmem:[#allocation5 + $0x230] sm:$0xf0]  ;;  %v9247_v11 = vld [vmem:[#allocation5 + $0x324] sm:$0xf]  ;;  %v7154_v13 = vor.u32 %v9183_v4, %v7151_v5  ;;  %v7365_v45 = vld [vmem:[#allocation5 + $0x2c8] sm:$0xf]  ;;  %v7238_v55 = vor.u32 %v9206_v43, %v7237_v41 }
  0x5b   :  { %1036 = vmatpush.bf16.msrb.mxu0 %v7042_v60  ;;  %v7407_v12 = vld [vmem:[#allocation5 + $0x330] sm:$0xf0]  ;;  %v9147_v14 = vld [vmem:[#allocation5 + $0x4] sm:$0xf]  ;;  %v7282_v20 = vor.u32 %v9215_v7, %v7279_v10  ;;  %v9238_v46 = vld [vmem:[#allocation5 + $0x2d4] sm:$0xf0] }
  0x5c   :  { %1055 = vmatpush.bf16.msrb.mxu1 %v7170_v0  ;;  %v7007_v15 = vld [vmem:[#allocation5 + $0x10] sm:$0xf0]  ;;  %v9179_v16 = vld [vmem:[#allocation5 + $0x104] sm:$0xf]  ;;  %v7410_v23 = vor.u32 %v9247_v11, %v7407_v12  ;;  %v7493_v47 = vld [vmem:[#allocation5 + $0x3c8] sm:$0xf]  ;;  %v7366_v58 = vor.u32 %v9238_v46, %v7365_v45 }
  0x5d   :  { %v7135_v17 = vld [vmem:[#allocation5 + $0x110] sm:$0xf0]  ;;  %v7010_v24 = vor.u32 %v9147_v14, %v7007_v15  ;;  %v9211_v25 = vld [vmem:[#allocation5 + $0x204] sm:$0xf]  ;;  %v9270_v49 = vld [vmem:[#allocation5 + $0x3d4] sm:$0xf0] }
  0x5e   :  { %1074 = vmatpush.bf16.msrb.mxu2 %v7298_v6  ;;  %1093 = vmatpush.bf16.msrb.mxu3 %v7426_v8  ;;  %v7263_v26 = vld [vmem:[#allocation5 + $0x210] sm:$0xf0]  ;;  %v9243_v27 = vld [vmem:[#allocation5 + $0x304] sm:$0xf]  ;;  %v7138_v28 = vor.u32 %v9179_v16, %v7135_v17  ;;  %v7093_v59 = vld [vmem:[#allocation5 + $0xa8] sm:$0xf]  ;;  %v7494_v62 = vor.u32 %v9270_v49, %v7493_v47 }
  0x5f   :  { %1037 = vmatpush.bf16.msrb.mxu0 %v7026_v9  ;;  %v7391_v29 = vld [vmem:[#allocation5 + $0x310] sm:$0xf0]  ;;  %v7266_v36 = vor.u32 %v9211_v25, %v7263_v26  ;;  %v9170_v60 = vld [vmem:[#allocation5 + $0xb4] sm:$0xf0]  ;;  %v7221_v61 = vld [vmem:[#allocation5 + $0x1a8] sm:$0xf] }
  0x60   :  { %1056 = vmatpush.bf16.msrb.mxu1 %v7154_v13  ;;  %v7394_v37 = vor.u32 %v9243_v27, %v7391_v29  ;;  %v9202_v63 = vld [vmem:[#allocation5 + $0x1b4] sm:$0xf0]  ;;  %v7349_v0 = vld [vmem:[#allocation5 + $0x2a8] sm:$0xf]  ;;  %v7094_v4 = vor.u32 %v9170_v60, %v7093_v59 }
  0x61   :  { %v9234_v1 = vld [vmem:[#allocation5 + $0x2b4] sm:$0xf0]  ;;  %v7477_v2 = vld [vmem:[#allocation5 + $0x3a8] sm:$0xf]  ;;  %v7222_v5 = vor.u32 %v9202_v63, %v7221_v61 }
  0x62   :  { %1075 = vmatpush.bf16.msrb.mxu2 %v7282_v20  ;;  %1094 = vmatpush.bf16.msrb.mxu3 %v7410_v23  ;;  %v9266_v3 = vld [vmem:[#allocation5 + $0x3b4] sm:$0xf0]  ;;  %v7350_v6 = vor.u32 %v9234_v1, %v7349_v0  ;;  %v7077_v7 = vld [vmem:[#allocation5 + $0x88] sm:$0xf] }
  0x63   :  { %1038 = vmatpush.bf16.msrb.mxu0 %v7010_v24  ;;  %v9166_v8 = vld [vmem:[#allocation5 + $0x94] sm:$0xf0]  ;;  %v7205_v9 = vld [vmem:[#allocation5 + $0x188] sm:$0xf]  ;;  %v7478_v10 = vor.u32 %v9266_v3, %v7477_v2 }
  0x64   :  { %1057 = vmatpush.bf16.msrb.mxu1 %v7138_v28  ;;  %v9198_v11 = vld [vmem:[#allocation5 + $0x194] sm:$0xf0]  ;;  %v7333_v12 = vld [vmem:[#allocation5 + $0x288] sm:$0xf]  ;;  %v7078_v16 = vor.u32 %v9166_v8, %v7077_v7  ;;  %v9176_v8 = vld [vmem:[#allocation5 + $0xec] sm:$0xf] }
  0x65   :  { %v9230_v13 = vld [vmem:[#allocation5 + $0x294] sm:$0xf0]  ;;  %v7461_v14 = vld [vmem:[#allocation5 + $0x388] sm:$0xf]  ;;  %v7206_v17 = vor.u32 %v9198_v11, %v7205_v9  ;;  %v7127_v9 = vld [vmem:[#allocation5 + $0xf8] sm:$0xf0] }
  0x66   :  { %1076 = vmatpush.bf16.msrb.mxu2 %v7266_v36  ;;  %1095 = vmatpush.bf16.msrb.mxu3 %v7394_v37  ;;  %v9262_v15 = vld [vmem:[#allocation5 + $0x394] sm:$0xf0]  ;;  %v7334_v18 = vor.u32 %v9230_v13, %v7333_v12  ;;  %v7061_v19 = vld [vmem:[#allocation5 + $0x68] sm:$0xf]  ;;  %v7255_v12 = vld [vmem:[#allocation5 + $0x1f8] sm:$0xf0] }
  0x67   :  { %1107 = vmatpush.bf16.msra.mxu0 %v7126_v30  ;;  %1058 = vmatmul.bf16.vlgmr.msrb.gmra.mxu1 %v10215_v53  ;;  %v9162_v20 = vld [vmem:[#allocation5 + $0x74] sm:$0xf0]  ;;  %v7189_v21 = vld [vmem:[#allocation5 + $0x168] sm:$0xf]  ;;  %v7462_v22 = vor.u32 %v9262_v15, %v7461_v14  ;;  %v9240_v13 = vld [vmem:[#allocation5 + $0x2ec] sm:$0xf] }
  0x68   :  { %1126 = vmatpush.bf16.msra.mxu1 %v7254_v33  ;;  %1039 = vmatmul.bf16.vlgmr.msrb.gmra.mxu0 %v10213_v48  ;;  %v9194_v23 = vld [vmem:[#allocation5 + $0x174] sm:$0xf0]  ;;  %v7317_v24 = vld [vmem:[#allocation5 + $0x268] sm:$0xf]  ;;  %v7062_v28 = vor.u32 %v9162_v20, %v7061_v19  ;;  %v7383_v14 = vld [vmem:[#allocation5 + $0x2f8] sm:$0xf0]  ;;  %v7130_v20 = vor.u32 %v9176_v8, %v7127_v9 }
  0x69   :  { %1077 = vmatmul.bf16.vlgmr.msrb.gmra.mxu2 %v10217_v54  ;;  %1096 = vmatmul.bf16.vlgmr.msrb.gmra.mxu3 %v10219_v57  ;;  %v9226_v25 = vld [vmem:[#allocation5 + $0x274] sm:$0xf0]  ;;  %v7445_v26 = vld [vmem:[#allocation5 + $0x368] sm:$0xf]  ;;  %v7190_v29 = vor.u32 %v9194_v23, %v7189_v21  ;;  %v9172_v23 = vld [vmem:[#allocation5 + $0xcc] sm:$0xf] }
  0x6a   :  { %1145 = vmatpush.bf16.msra.mxu2 %v7382_v38  ;;  %1164 = vmatpush.bf16.msra.mxu3 %v7510_v42  ;;  %v9258_v27 = vld [vmem:[#allocation5 + $0x374] sm:$0xf0]  ;;  %v7318_v30 = vor.u32 %v9226_v25, %v7317_v24  ;;  %v7045_v31 = vld [vmem:[#allocation5 + $0x48] sm:$0xf]  ;;  %v7111_v24 = vld [vmem:[#allocation5 + $0xd8] sm:$0xf0] }
  0x6b   :  { %1108 = vmatpush.bf16.msra.mxu0 %v7110_v52  ;;  %v9158_v32 = vld [vmem:[#allocation5 + $0x54] sm:$0xf0]  ;;  %v7173_v33 = vld [vmem:[#allocation5 + $0x148] sm:$0xf]  ;;  %v7446_v34 = vor.u32 %v9258_v27, %v7445_v26  ;;  %v9204_v25 = vld [vmem:[#allocation5 + $0x1cc] sm:$0xf] }
  0x6c   :  { %1127 = vmatpush.bf16.msra.mxu1 %v7238_v55  ;;  %v9190_v35 = vld [vmem:[#allocation5 + $0x154] sm:$0xf0]  ;;  %v7301_v36 = vld [vmem:[#allocation5 + $0x248] sm:$0xf]  ;;  %v7046_v40 = vor.u32 %v9158_v32, %v7045_v31  ;;  %v7239_v27 = vld [vmem:[#allocation5 + $0x1d8] sm:$0xf0]  ;;  %v7114_v32 = vor.u32 %v9172_v23, %v7111_v24 }
  0x6d   :  { %v9222_v37 = vld [vmem:[#allocation5 + $0x254] sm:$0xf0]  ;;  %v7429_v38 = vld [vmem:[#allocation5 + $0x348] sm:$0xf]  ;;  %v7174_v41 = vor.u32 %v9190_v35, %v7173_v33  ;;  %v7495_v31 = vld [vmem:[#allocation5 + $0x3d8] sm:$0xf0]  ;;  %v7242_v33 = vor.u32 %v9204_v25, %v7239_v27 }
  0x6e   :  { %1146 = vmatpush.bf16.msra.mxu2 %v7366_v58  ;;  %1165 = vmatpush.bf16.msra.mxu3 %v7494_v62  ;;  %v9254_v39 = vld [vmem:[#allocation5 + $0x354] sm:$0xf0]  ;;  %v7302_v42 = vor.u32 %v9222_v37, %v7301_v36  ;;  %v7029_v43 = vld [vmem:[#allocation5 + $0x28] sm:$0xf]  ;;  %v9168_v35 = vld [vmem:[#allocation5 + $0xac] sm:$0xf] }
  0x6f   :  { %1109 = vmatpush.bf16.msra.mxu0 %v7094_v4  ;;  %v9154_v45 = vld [vmem:[#allocation5 + $0x34] sm:$0xf0]  ;;  %v7157_v46 = vld [vmem:[#allocation5 + $0x128] sm:$0xf]  ;;  %v7430_v47 = vor.u32 %v9254_v39, %v7429_v38  ;;  %v7095_v36 = vld [vmem:[#allocation5 + $0xb8] sm:$0xf0] }
  0x70   :  { %1128 = vmatpush.bf16.msra.mxu1 %v7222_v5  ;;  %v9186_v49 = vld [vmem:[#allocation5 + $0x134] sm:$0xf0]  ;;  %v7285_v52 = vld [vmem:[#allocation5 + $0x228] sm:$0xf]  ;;  %v7030_v60 = vor.u32 %v9154_v45, %v7029_v43  ;;  %v9200_v37 = vld [vmem:[#allocation5 + $0x1ac] sm:$0xf]  ;;  %v7098_v45 = vor.u32 %v9168_v35, %v7095_v36 }
  0x71   :  { %v9218_v55 = vld [vmem:[#allocation5 + $0x234] sm:$0xf0]  ;;  %v7413_v58 = vld [vmem:[#allocation5 + $0x328] sm:$0xf]  ;;  %v7158_v63 = vor.u32 %v9186_v49, %v7157_v46  ;;  %v7223_v39 = vld [vmem:[#allocation5 + $0x1b8] sm:$0xf0] }
  0x72   :  { %1147 = vmatpush.bf16.msra.mxu2 %v7350_v6  ;;  %1166 = vmatpush.bf16.msra.mxu3 %v7478_v10  ;;  %v9250_v59 = vld [vmem:[#allocation5 + $0x334] sm:$0xf0]  ;;  %v7013_v61 = vld [vmem:[#allocation5 + $0x8] sm:$0xf]  ;;  %v7286_v0 = vor.u32 %v9218_v55, %v7285_v52  ;;  %v9208_v10 = vld [vmem:[#allocation5 + $0x1ec] sm:$0xf]  ;;  %v7226_v46 = vor.u32 %v9200_v37, %v7223_v39 }
  0x73   :  { %1110 = vmatpush.bf16.msra.mxu0 %v7078_v16  ;;  %v9150_v62 = vld [vmem:[#allocation5 + $0x14] sm:$0xf0]  ;;  %v7141_v1 = vld [vmem:[#allocation5 + $0x108] sm:$0xf]  ;;  %v7414_v4 = vor.u32 %v9250_v59, %v7413_v58  ;;  %v7258_v21 = vor.u32 %v9208_v10, %v7255_v12  ;;  %v7479_v43 = vld [vmem:[#allocation5 + $0x3b8] sm:$0xf0] }
  0x74   :  { %1129 = vmatpush.bf16.msra.mxu1 %v7206_v17  ;;  %v9182_v2 = vld [vmem:[#allocation5 + $0x114] sm:$0xf0]  ;;  %v7269_v3 = vld [vmem:[#allocation5 + $0x208] sm:$0xf]  ;;  %v7014_v11 = vor.u32 %v9150_v62, %v7013_v61  ;;  %v9272_v17 = vld [vmem:[#allocation5 + $0x3ec] sm:$0xf] }
  0x75   :  { %v9214_v5 = vld [vmem:[#allocation5 + $0x214] sm:$0xf0]  ;;  %v7397_v6 = vld [vmem:[#allocation5 + $0x308] sm:$0xf]  ;;  %v7142_v15 = vor.u32 %v9182_v2, %v7141_v1  ;;  %v9164_v49 = vld [vmem:[#allocation5 + $0x8c] sm:$0xf] }
  0x76   :  { %1148 = vmatpush.bf16.msra.mxu2 %v7334_v18  ;;  %1167 = vmatpush.bf16.msra.mxu3 %v7462_v22  ;;  %v9246_v7 = vld [vmem:[#allocation5 + $0x314] sm:$0xf0]  ;;  %v7270_v16 = vor.u32 %v9214_v5, %v7269_v3  ;;  %v7511_v18 = vld [vmem:[#allocation5 + $0x3f8] sm:$0xf0]  ;;  %v7386_v22 = vor.u32 %v9240_v13, %v7383_v14  ;;  %v9196_v55 = vld [vmem:[#allocation5 + $0x18c] sm:$0xf] }
  0x77   :  { %1111 = vmatpush.bf16.msra.mxu0 %v7062_v28  ;;  %1063 = vmatmul.bf16.gmra.mxu1 %v10227_v50  ;;  %v7398_v19 = vor.u32 %v9246_v7, %v7397_v6  ;;  %v7514_v26 = vor.u32 %v9272_v17, %v7511_v18  ;;  %v9236_v28 = vld [vmem:[#allocation5 + $0x2cc] sm:$0xf]  ;;  %v7079_v52 = vld [vmem:[#allocation5 + $0x98] sm:$0xf0] }
  0x78   :  { %1130 = vmatpush.bf16.msra.mxu1 %v7190_v29  ;;  %1044 = vmatmul.bf16.gmra.mxu0 %v10225_v44  ;;  %v7367_v29 = vld [vmem:[#allocation5 + $0x2d8] sm:$0xf0]  ;;  %v9260_v62 = vld [vmem:[#allocation5 + $0x38c] sm:$0xf] }
  0x79   :  { %1082 = vmatmul.bf16.gmra.mxu2 %v10229_v51  ;;  %1101 = vmatmul.bf16.gmra.mxu3 %v10231_v56  ;;  %v7207_v59 = vld [vmem:[#allocation5 + $0x198] sm:$0xf0]  ;;  %v9160_v3 = vld [vmem:[#allocation5 + $0x6c] sm:$0xf] }
  0x7a   :  { %1149 = vmatpush.bf16.msra.mxu2 %v7318_v30  ;;  %1168 = vmatpush.bf16.msra.mxu3 %v7446_v34  ;;  %v9268_v30 = vld [vmem:[#allocation5 + $0x3cc] sm:$0xf]  ;;  %v7370_v34 = vor.u32 %v9236_v28, %v7367_v29  ;;  %v7335_v61 = vld [vmem:[#allocation5 + $0x298] sm:$0xf0]  ;;  %v7210_v1 = vor.u32 %v9196_v55, %v7207_v59  ;;  %v9305_v55 = vld [vmem:[#allocation8 + $0xec] sm:$0xf0] }
  0x7b   :  { %1112 = vmatpush.bf16.msra.mxu0 %v7046_v40  ;;  %v7498_v38 = vor.u32 %v9268_v30, %v7495_v31  ;;  %v9232_v40 = vld [vmem:[#allocation5 + $0x2ac] sm:$0xf]  ;;  %v7191_v7 = vld [vmem:[#allocation5 + $0x178] sm:$0xf0] }
  0x7c   :  { %1131 = vmatpush.bf16.msra.mxu1 %v7174_v41  ;;  %v7351_v41 = vld [vmem:[#allocation5 + $0x2b8] sm:$0xf0]  ;;  %v9192_v5 = vld [vmem:[#allocation5 + $0x16c] sm:$0xf] }
  0x7d   :  { %v9224_v8 = vld [vmem:[#allocation5 + $0x26c] sm:$0xf]  ;;  %v7319_v9 = vld [vmem:[#allocation5 + $0x278] sm:$0xf0]  ;;  %v7194_v13 = vor.u32 %v9192_v5, %v7191_v7  ;;  %v7613_v7 = vld [vmem:[#allocation8 + $0xc0] sm:$0xf] }
  0x7e   :  { %1150 = vmatpush.bf16.msra.mxu2 %v7302_v42  ;;  %1169 = vmatpush.bf16.msra.mxu3 %v7430_v47  ;;  %v9264_v42 = vld [vmem:[#allocation5 + $0x3ac] sm:$0xf]  ;;  %v7354_v47 = vor.u32 %v9232_v40, %v7351_v41  ;;  %v7322_v14 = vor.u32 %v9224_v8, %v7319_v9  ;;  %v7431_v23 = vld [vmem:[#allocation5 + $0x358] sm:$0xf0]  ;;  %v9301_v8 = vld [vmem:[#allocation8 + $0xcc] sm:$0xf0] }
  0x7f   :  { %1113 = vmatpush.bf16.msra.mxu0 %v7030_v60  ;;  %v7482_v58 = vor.u32 %v9264_v42, %v7479_v43  ;;  %v9228_v60 = vld [vmem:[#allocation5 + $0x28c] sm:$0xf]  ;;  %v7031_v28 = vld [vmem:[#allocation5 + $0x38] sm:$0xf0]  ;;  %v7741_v9 = vld [vmem:[#allocation8 + $0x1c0] sm:$0xf] }
  0x80   :  { %1132 = vmatpush.bf16.msra.mxu1 %v7158_v63  ;;  %v7463_v63 = vld [vmem:[#allocation5 + $0x398] sm:$0xf0]  ;;  %v7338_v2 = vor.u32 %v9228_v60, %v7335_v61  ;;  %v9256_v10 = vld [vmem:[#allocation5 + $0x36c] sm:$0xf]  ;;  %v9337_v60 = vld [vmem:[#allocation8 + $0x1ec] sm:$0xf0] }
  0x81   :  { %v7466_v6 = vor.u32 %v9260_v62, %v7463_v63  ;;  %v9188_v17 = vld [vmem:[#allocation5 + $0x14c] sm:$0xf]  ;;  %v7159_v31 = vld [vmem:[#allocation5 + $0x138] sm:$0xf0]  ;;  %v7885_v61 = vld [vmem:[#allocation8 + $0x2e0] sm:$0xf] }
  0x82   :  { %1151 = vmatpush.bf16.msra.mxu2 %v7286_v0  ;;  %1170 = vmatpush.bf16.msra.mxu3 %v7414_v4  ;;  %v7082_v0 = vor.u32 %v9164_v49, %v7079_v52  ;;  %v7063_v4 = vld [vmem:[#allocation5 + $0x78] sm:$0xf0]  ;;  %v9152_v27 = vld [vmem:[#allocation5 + $0x2c] sm:$0xf]  ;;  %v7629_v52 = vld [vmem:[#allocation8 + $0xe0] sm:$0xf] }
  0x83   :  { %1114 = vmatpush.bf16.msra.mxu0 %v7014_v11  ;;  %v7447_v11 = vld [vmem:[#allocation5 + $0x378] sm:$0xf0]  ;;  %v7066_v12 = vor.u32 %v9160_v3, %v7063_v4  ;;  %v9184_v29 = vld [vmem:[#allocation5 + $0x12c] sm:$0xf]  ;;  %v7034_v36 = vor.u32 %v9152_v27, %v7031_v28  ;;  %v9369_v62 = vld [vmem:[#allocation8 + $0x2ec] sm:$0xf0]  ;;  %v7630_v4 = vor.u32 %v9305_v55, %v7629_v52 }
  0x84   :  { %1133 = vmatpush.bf16.msra.mxu1 %v7142_v15  ;;  %v9156_v15 = vld [vmem:[#allocation5 + $0x4c] sm:$0xf]  ;;  %v7450_v18 = vor.u32 %v9256_v10, %v7447_v11  ;;  %v7415_v35 = vld [vmem:[#allocation5 + $0x338] sm:$0xf0]  ;;  %v7162_v39 = vor.u32 %v9184_v29, %v7159_v31  ;;  %v9333_v11 = vld [vmem:[#allocation8 + $0x1cc] sm:$0xf0] }
  0x85   :  { %v9148_v37 = vld [vmem:[#allocation5 + $0xc] sm:$0xf]  ;;  %v7143_v42 = vld [vmem:[#allocation5 + $0x118] sm:$0xf0]  ;;  %v9393_v27 = vld [vmem:[#allocation8 + $0x3ac] sm:$0xf0] }
  0x86   :  { %1152 = vmatpush.bf16.msra.mxu2 %v7270_v16  ;;  %1171 = vmatpush.bf16.msra.mxu3 %v7398_v19  ;;  %v7047_v16 = vld [vmem:[#allocation5 + $0x58] sm:$0xf0]  ;;  %v9180_v41 = vld [vmem:[#allocation5 + $0x10c] sm:$0xf]  ;;  %v7581_v31 = vld [vmem:[#allocation8 + $0x80] sm:$0xf] }
  0x87   :  { %1183 = vmatpush.bf16.msrb.mxu0 %v7130_v20  ;;  %1134 = vmatmul.bf16.vlgmr.msra.gmra.mxu1 %v10215_v53  ;;  %v7175_v19 = vld [vmem:[#allocation5 + $0x158] sm:$0xf0]  ;;  %v9220_v20 = vld [vmem:[#allocation5 + $0x24c] sm:$0xf]  ;;  %v7050_v24 = vor.u32 %v9156_v15, %v7047_v16  ;;  %v7146_v63 = vor.u32 %v9180_v41, %v7143_v42  ;;  %v9397_v15 = vld [vmem:[#allocation8 + $0x3cc] sm:$0xf0]  ;;  %v7614_v16 = vor.u32 %v9301_v8, %v7613_v7 }
  0x88   :  { %1202 = vmatpush.bf16.msrb.mxu1 %v7258_v21  ;;  %1115 = vmatmul.bf16.vlgmr.msra.gmra.mxu0 %v10213_v48  ;;  %v7303_v21 = vld [vmem:[#allocation5 + $0x258] sm:$0xf0]  ;;  %v7178_v25 = vor.u32 %v9188_v17, %v7175_v19  ;;  %v9212_v43 = vld [vmem:[#allocation5 + $0x20c] sm:$0xf]  ;;  %v7742_v17 = vor.u32 %v9333_v11, %v7741_v9  ;;  %v7821_v52 = vld [vmem:[#allocation8 + $0x260] sm:$0xf] }
  0x89   :  { %1153 = vmatmul.bf16.vlgmr.msra.gmra.mxu2 %v10217_v54  ;;  %1172 = vmatmul.bf16.vlgmr.msra.gmra.mxu3 %v10219_v57  ;;  %v7399_v49 = vld [vmem:[#allocation5 + $0x318] sm:$0xf0]  ;;  %v9353_v55 = vld [vmem:[#allocation8 + $0x26c] sm:$0xf0]  ;;  %v7533_v11 = vld [vmem:[#allocation8 + $0x20] sm:$0xf] }
  0x8a   :  { %1221 = vmatpush.bf16.msrb.mxu2 %v7386_v22  ;;  %1240 = vmatpush.bf16.msrb.mxu3 %v7514_v26  ;;  %v9252_v22 = vld [vmem:[#allocation5 + $0x34c] sm:$0xf]  ;;  %v7306_v26 = vor.u32 %v9220_v20, %v7303_v21  ;;  %v7597_v20 = vld [vmem:[#allocation8 + $0xa0] sm:$0xf]  ;;  %v9297_v21 = vld [vmem:[#allocation8 + $0xac] sm:$0xf0] }
  0x8b   :  { %1184 = vmatpush.bf16.msrb.mxu0 %v7114_v32  ;;  %v7434_v30 = vor.u32 %v9252_v22, %v7431_v23  ;;  %v9216_v32 = vld [vmem:[#allocation5 + $0x22c] sm:$0xf]  ;;  %v7725_v22 = vld [vmem:[#allocation8 + $0x1a0] sm:$0xf]  ;;  %v9329_v23 = vld [vmem:[#allocation8 + $0x1ac] sm:$0xf0]  ;;  %v7598_v28 = vor.u32 %v9297_v21, %v7597_v20 }
  0x8c   :  { %1203 = vmatpush.bf16.msrb.mxu1 %v7242_v33  ;;  %v7287_v33 = vld [vmem:[#allocation5 + $0x238] sm:$0xf0]  ;;  %v7726_v29 = vor.u32 %v9329_v23, %v7725_v22  ;;  %v9381_v7 = vld [vmem:[#allocation8 + $0x34c] sm:$0xf0]  ;;  %v7517_v21 = vld [vmem:[#allocation8] sm:$0xf] }
  0x8d   :  { %v7290_v40 = vor.u32 %v9216_v32, %v7287_v33  ;;  %v9293_v32 = vld [vmem:[#allocation8 + $0x8c] sm:$0xf0]  ;;  %v7709_v33 = vld [vmem:[#allocation8 + $0x180] sm:$0xf] }
  0x8e   :  { %1222 = vmatpush.bf16.msrb.mxu2 %v7370_v34  ;;  %1241 = vmatpush.bf16.msrb.mxu3 %v7498_v38  ;;  %v9248_v34 = vld [vmem:[#allocation5 + $0x32c] sm:$0xf]  ;;  %v7015_v38 = vld [vmem:[#allocation5 + $0x18] sm:$0xf0]  ;;  %v9277_v22 = vld [vmem:[#allocation8 + $0xc] sm:$0xf0] }
  0x8f   :  { %1185 = vmatpush.bf16.msrb.mxu0 %v7098_v45  ;;  %v7418_v45 = vor.u32 %v9248_v34, %v7415_v35  ;;  %v7018_v59 = vor.u32 %v9148_v37, %v7015_v38  ;;  %v9325_v35 = vld [vmem:[#allocation8 + $0x18c] sm:$0xf0]  ;;  %v7965_v38 = vld [vmem:[#allocation8 + $0x380] sm:$0xf] }
  0x90   :  { %1204 = vmatpush.bf16.msrb.mxu1 %v7226_v46  ;;  %v7271_v46 = vld [vmem:[#allocation5 + $0x218] sm:$0xf0]  ;;  %v9357_v37 = vld [vmem:[#allocation8 + $0x28c] sm:$0xf0]  ;;  %v7710_v41 = vor.u32 %v9325_v35, %v7709_v33  ;;  %v7631_v33 = vld [vmem:[#allocation8 + $0xf0] sm:$0xf0]  ;;  %v7518_v35 = vor.u32 %v9277_v22, %v7517_v21 }
  0x91   :  { %v7583_v21 = vld [vmem:[#allocation8 + $0x90] sm:$0xf0]  ;;  %v9323_v22 = vld [vmem:[#allocation8 + $0x184] sm:$0xf] }
  0x92   :  { %1223 = vmatpush.bf16.msrb.mxu2 %v7354_v47  ;;  %1242 = vmatpush.bf16.msrb.mxu3 %v7482_v58  ;;  %v9244_v47 = vld [vmem:[#allocation5 + $0x30c] sm:$0xf]  ;;  %v7757_v58 = vld [vmem:[#allocation8 + $0x1e0] sm:$0xf] }
  0x93   :  { %1186 = vmatpush.bf16.msrb.mxu0 %v7082_v0  ;;  %v7274_v0 = vor.u32 %v9212_v43, %v7271_v46  ;;  %v7402_v3 = vor.u32 %v9244_v47, %v7399_v49  ;;  %v7758_v5 = vor.u32 %v9337_v60, %v7757_v58  ;;  %v7565_v43 = vld [vmem:[#allocation8 + $0x60] sm:$0xf]  ;;  %v9321_v49 = vld [vmem:[#allocation8 + $0x16c] sm:$0xf0] }
  0x94   :  { %1205 = vmatpush.bf16.msrb.mxu1 %v7210_v1  ;;  %v8013_v1 = vld [vmem:[#allocation8 + $0x3e0] sm:$0xf] }
  0x95   :  { %v7693_v46 = vld [vmem:[#allocation8 + $0x160] sm:$0xf] }
  0x96   :  { %1224 = vmatpush.bf16.msrb.mxu2 %v7338_v2  ;;  %1243 = vmatpush.bf16.msrb.mxu3 %v7466_v6  ;;  %v9401_v2 = vld [vmem:[#allocation8 + $0x3ec] sm:$0xf0]  ;;  %v7886_v6 = vor.u32 %v9369_v62, %v7885_v61  ;;  %v7949_v58 = vld [vmem:[#allocation8 + $0x360] sm:$0xf]  ;;  %v7694_v61 = vor.u32 %v9321_v49, %v7693_v46  ;;  %v7822_v62 = vor.u32 %v9353_v55, %v7821_v52  ;;  %v9299_v46 = vld [vmem:[#allocation8 + $0xc4] sm:$0xf] }
  0x97   :  { %1187 = vmatpush.bf16.msrb.mxu0 %v7066_v12  ;;  %1139 = vmatmul.bf16.gmra.mxu1 %v10227_v50  ;;  %v8014_v10 = vor.u32 %v9401_v2, %v8013_v1  ;;  %v7869_v12 = vld [vmem:[#allocation8 + $0x2c0] sm:$0xf]  ;;  %v7615_v52 = vld [vmem:[#allocation8 + $0xd0] sm:$0xf0]  ;;  %v9331_v55 = vld [vmem:[#allocation8 + $0x1c4] sm:$0xf] }
  0x98   :  { %1206 = vmatpush.bf16.msrb.mxu1 %v7194_v13  ;;  %1120 = vmatmul.bf16.gmra.mxu0 %v10225_v44  ;;  %v9365_v13 = vld [vmem:[#allocation8 + $0x2cc] sm:$0xf0]  ;;  %v7677_v1 = vld [vmem:[#allocation8 + $0x140] sm:$0xf] }
  0x99   :  { %1158 = vmatmul.bf16.gmra.mxu2 %v10229_v51  ;;  %1177 = vmatmul.bf16.gmra.mxu3 %v10231_v56 }
  0x9a   :  { %1225 = vmatpush.bf16.msrb.mxu2 %v7322_v14  ;;  %1244 = vmatpush.bf16.msrb.mxu3 %v7450_v18  ;;  %v7997_v14 = vld [vmem:[#allocation8 + $0x3c0] sm:$0xf]  ;;  %v7870_v18 = vor.u32 %v9365_v13, %v7869_v12  ;;  %v9281_v12 = vld [vmem:[#allocation8 + $0x2c] sm:$0xf0] }
  0x9b   :  { %1188 = vmatpush.bf16.msrb.mxu0 %v7050_v24  ;;  %v7998_v19 = vor.u32 %v9397_v15, %v7997_v14  ;;  %v7853_v24 = vld [vmem:[#allocation8 + $0x2a0] sm:$0xf]  ;;  %v9313_v15 = vld [vmem:[#allocation8 + $0x12c] sm:$0xf0]  ;;  %v7534_v20 = vor.u32 %v9281_v12, %v7533_v11  ;;  %v7855_v11 = vld [vmem:[#allocation8 + $0x2b0] sm:$0xf0] }
  0x9c   :  { %1207 = vmatpush.bf16.msrb.mxu1 %v7178_v25  ;;  %v9361_v25 = vld [vmem:[#allocation8 + $0x2ac] sm:$0xf0]  ;;  %v7661_v13 = vld [vmem:[#allocation8 + $0x120] sm:$0xf] }
  0x9d   :  { %v7662_v23 = vor.u32 %v9313_v15, %v7661_v13  ;;  %v9391_v13 = vld [vmem:[#allocation8 + $0x3a4] sm:$0xf] }
  0x9e   :  { %1226 = vmatpush.bf16.msrb.mxu2 %v7306_v26  ;;  %1245 = vmatpush.bf16.msrb.mxu3 %v7434_v30  ;;  %v7981_v26 = vld [vmem:[#allocation8 + $0x3a0] sm:$0xf]  ;;  %v7854_v30 = vor.u32 %v9361_v25, %v7853_v24 }
  0x9f   :  { %1189 = vmatpush.bf16.msrb.mxu0 %v7034_v36  ;;  %v7982_v34 = vor.u32 %v9393_v27, %v7981_v26  ;;  %v7837_v36 = vld [vmem:[#allocation8 + $0x280] sm:$0xf]  ;;  %v9309_v26 = vld [vmem:[#allocation8 + $0x10c] sm:$0xf0] }
  0xa0   :  { %1208 = vmatpush.bf16.msrb.mxu1 %v7162_v39  ;;  %v9389_v39 = vld [vmem:[#allocation8 + $0x38c] sm:$0xf0]  ;;  %v7838_v42 = vor.u32 %v9357_v37, %v7837_v36  ;;  %v7645_v25 = vld [vmem:[#allocation8 + $0x100] sm:$0xf]  ;;  %v7759_v36 = vld [vmem:[#allocation8 + $0x1f0] sm:$0xf0] }
  0xa1   :  { %v7966_v47 = vor.u32 %v9389_v39, %v7965_v38  ;;  %v7773_v27 = vld [vmem:[#allocation8 + $0x200] sm:$0xf]  ;;  %v9367_v37 = vld [vmem:[#allocation8 + $0x2e4] sm:$0xf]  ;;  %v7887_v38 = vld [vmem:[#allocation8 + $0x2f0] sm:$0xf0]  ;;  %v7646_v39 = vor.u32 %v9309_v26, %v7645_v25 }
  0xa2   :  { %1227 = vmatpush.bf16.msrb.mxu2 %v7290_v40  ;;  %1246 = vmatpush.bf16.msrb.mxu3 %v7418_v45  ;;  %v7582_v40 = vor.u32 %v9293_v32, %v7581_v31  ;;  %v9289_v45 = vld [vmem:[#allocation8 + $0x6c] sm:$0xf0]  ;;  %v9303_v32 = vld [vmem:[#allocation8 + $0xe4] sm:$0xf]  ;;  %v7890_v49 = vor.u32 %v9367_v37, %v7887_v38  ;;  %v7839_v26 = vld [vmem:[#allocation8 + $0x290] sm:$0xf0] }
  0xa3   :  { %1190 = vmatpush.bf16.msrb.mxu0 %v7018_v59  ;;  %v9385_v59 = vld [vmem:[#allocation8 + $0x36c] sm:$0xf0]  ;;  %v7566_v60 = vor.u32 %v9289_v45, %v7565_v43  ;;  %v7634_v45 = vor.u32 %v9303_v32, %v7631_v33  ;;  %v9355_v25 = vld [vmem:[#allocation8 + $0x284] sm:$0xf] }
  0xa4   :  { %1209 = vmatpush.bf16.msrb.mxu1 %v7146_v63  ;;  %v7549_v63 = vld [vmem:[#allocation8 + $0x40] sm:$0xf]  ;;  %v7950_v2 = vor.u32 %v9385_v59, %v7949_v58  ;;  %v9373_v31 = vld [vmem:[#allocation8 + $0x30c] sm:$0xf0]  ;;  %v7743_v58 = vld [vmem:[#allocation8 + $0x1d0] sm:$0xf0]  ;;  %v7842_v33 = vor.u32 %v9355_v25, %v7839_v26 }
  0xa6   :  { %1228 = vmatpush.bf16.msrb.mxu2 %v7274_v0  ;;  %1247 = vmatpush.bf16.msrb.mxu3 %v7402_v3  ;;  %v9285_v0 = vld [vmem:[#allocation8 + $0x4c] sm:$0xf0] }
  0xa7   :  { %2037 = vmatpush.bf16.msra.mxu0 %v7630_v4  ;;  %1210 = vmatmul.bf16.vlgmr.msrb.gmra.mxu1 %v10215_v53  ;;  %v9317_v3 = vld [vmem:[#allocation8 + $0x14c] sm:$0xf0]  ;;  %v7805_v4 = vld [vmem:[#allocation8 + $0x240] sm:$0xf]  ;;  %v7550_v8 = vor.u32 %v9285_v0, %v7549_v63  ;;  %v9395_v63 = vld [vmem:[#allocation8 + $0x3c4] sm:$0xf] }
  0xa8   :  { %2056 = vmatpush.bf16.msra.mxu1 %v7758_v5  ;;  %1191 = vmatmul.bf16.vlgmr.msrb.gmra.mxu0 %v10213_v48  ;;  %v9349_v5 = vld [vmem:[#allocation8 + $0x24c] sm:$0xf0]  ;;  %v7678_v9 = vor.u32 %v9317_v3, %v7677_v1  ;;  %v7999_v0 = vld [vmem:[#allocation8 + $0x3d0] sm:$0xf0]  ;;  %v7618_v1 = vor.u32 %v9299_v46, %v7615_v52  ;;  %v7746_v3 = vor.u32 %v9331_v55, %v7743_v58 }
  0xa9   :  { %1229 = vmatmul.bf16.vlgmr.msrb.gmra.mxu2 %v10217_v54  ;;  %1248 = vmatmul.bf16.vlgmr.msrb.gmra.mxu3 %v10219_v57  ;;  %v7951_v46 = vld [vmem:[#allocation8 + $0x370] sm:$0xf0] }
  0xaa   :  { %2075 = vmatpush.bf16.msra.mxu2 %v7886_v6  ;;  %2094 = vmatpush.bf16.msra.mxu3 %v8014_v10  ;;  %v7933_v6 = vld [vmem:[#allocation8 + $0x340] sm:$0xf]  ;;  %v7806_v10 = vor.u32 %v9349_v5, %v7805_v4 }
  0xab   :  { %2038 = vmatpush.bf16.msra.mxu0 %v7614_v16  ;;  %v7934_v14 = vor.u32 %v9381_v7, %v7933_v6  ;;  %v7789_v16 = vld [vmem:[#allocation8 + $0x220] sm:$0xf]  ;;  %v7599_v6 = vld [vmem:[#allocation8 + $0xb0] sm:$0xf0]  ;;  %v9327_v7 = vld [vmem:[#allocation8 + $0x1a4] sm:$0xf] }
  0xac   :  { %2057 = vmatpush.bf16.msra.mxu1 %v7742_v17  ;;  %v9345_v17 = vld [vmem:[#allocation8 + $0x22c] sm:$0xf0] }
  0xad   :  { %v7790_v24 = vor.u32 %v9345_v17, %v7789_v16 }
  0xae   :  { %2076 = vmatpush.bf16.msra.mxu2 %v7870_v18  ;;  %2095 = vmatpush.bf16.msra.mxu3 %v7998_v19  ;;  %v7917_v18 = vld [vmem:[#allocation8 + $0x320] sm:$0xf]  ;;  %v9377_v19 = vld [vmem:[#allocation8 + $0x32c] sm:$0xf0] }
  0xaf   :  { %2039 = vmatpush.bf16.msra.mxu0 %v7598_v28  ;;  %v7918_v28 = vor.u32 %v9377_v19, %v7917_v18 }
  0xb0   :  { %2058 = vmatpush.bf16.msra.mxu1 %v7726_v29  ;;  %v9341_v29 = vld [vmem:[#allocation8 + $0x20c] sm:$0xf0] }
  0xb2   :  { %2077 = vmatpush.bf16.msra.mxu2 %v7854_v30  ;;  %2096 = vmatpush.bf16.msra.mxu3 %v7982_v34  ;;  %v7901_v30 = vld [vmem:[#allocation8 + $0x300] sm:$0xf]  ;;  %v9335_v34 = vld [vmem:[#allocation8 + $0x1e4] sm:$0xf] }
  0xb3   :  { %2040 = vmatpush.bf16.msra.mxu0 %v7582_v40  ;;  %v7774_v40 = vor.u32 %v9341_v29, %v7773_v27  ;;  %v7902_v43 = vor.u32 %v9373_v31, %v7901_v30  ;;  %v9387_v27 = vld [vmem:[#allocation8 + $0x384] sm:$0xf] }
  0xb4   :  { %2059 = vmatpush.bf16.msra.mxu1 %v7710_v41  ;;  %v9399_v41 = vld [vmem:[#allocation8 + $0x3e4] sm:$0xf] }
  0xb5   :  { %v9287_v30 = vld [vmem:[#allocation8 + $0x64] sm:$0xf] }
  0xb6   :  { %2078 = vmatpush.bf16.msra.mxu2 %v7838_v42  ;;  %2097 = vmatpush.bf16.msra.mxu3 %v7966_v47  ;;  %v8015_v42 = vld [vmem:[#allocation8 + $0x3f0] sm:$0xf0]  ;;  %v7762_v47 = vor.u32 %v9335_v34, %v7759_v36 }
  0xb7   :  { %2041 = vmatpush.bf16.msra.mxu0 %v7566_v60  ;;  %1215 = vmatmul.bf16.gmra.mxu1 %v10227_v50  ;;  %v8018_v59 = vor.u32 %v9399_v41, %v8015_v42  ;;  %v9363_v60 = vld [vmem:[#allocation8 + $0x2c4] sm:$0xf]  ;;  %v7567_v34 = vld [vmem:[#allocation8 + $0x70] sm:$0xf0] }
  0xb8   :  { %2060 = vmatpush.bf16.msra.mxu1 %v7694_v61  ;;  %1196 = vmatmul.bf16.gmra.mxu0 %v10225_v44  ;;  %v7871_v61 = vld [vmem:[#allocation8 + $0x2d0] sm:$0xf0] }
  0xb9   :  { %1234 = vmatmul.bf16.gmra.mxu2 %v10229_v51  ;;  %1253 = vmatmul.bf16.gmra.mxu3 %v10231_v56  ;;  %v7874_v4 = vor.u32 %v9363_v60, %v7871_v61  ;;  %v7695_v36 = vld [vmem:[#allocation8 + $0x170] sm:$0xf0]  ;;  %v9283_v60 = vld [vmem:[#allocation8 + $0x44] sm:$0xf] }
  0xba   :  { %2079 = vmatpush.bf16.msra.mxu2 %v7822_v62  ;;  %2098 = vmatpush.bf16.msra.mxu3 %v7950_v2  ;;  %v10261_v62 = vld [vmem:[#allocation7] sm:$0xf]  ;;  %v9295_v2 = vld [vmem:[#allocation8 + $0xa4] sm:$0xf]  ;;  %v7551_v61 = vld [vmem:[#allocation8 + $0x50] sm:$0xf0] }
  0xbb   :  { %2042 = vmatpush.bf16.msra.mxu0 %v7550_v8  ;;  %v10264_v5 = vperm.slane %v10261_v62, 0  ;;  %v8002_v8 = vor.u32 %v9395_v63, %v7999_v0  ;;  %v7602_v16 = vor.u32 %v9295_v2, %v7599_v6  ;;  %v9315_v63 = vld [vmem:[#allocation8 + $0x144] sm:$0xf]  ;;  %v7935_v6 = vld [vmem:[#allocation8 + $0x350] sm:$0xf0] }
  0xbc   :  { %2061 = vmatpush.bf16.msra.mxu1 %v7678_v9  ;;  %v7727_v9 = vld [vmem:[#allocation8 + $0x1b0] sm:$0xf0]  ;;  %v9347_v2 = vld [vmem:[#allocation8 + $0x244] sm:$0xf] }
  0xbd   :  { %v7730_v18 = vor.u32 %v9327_v7, %v7727_v9  ;;  %v7554_v7 = vor.u32 %v9283_v60, %v7551_v61 }
  0xbe   :  { %2080 = vmatpush.bf16.msra.mxu2 %v7806_v10  ;;  %2099 = vmatpush.bf16.msra.mxu3 %v7934_v14  ;;  %v9359_v10 = vld [vmem:[#allocation8 + $0x2a4] sm:$0xf]  ;;  %v7983_v14 = vld [vmem:[#allocation8 + $0x3b0] sm:$0xf0] }
  0xbf   :  { %2043 = vmatpush.bf16.msra.mxu0 %v7534_v20  ;;  %v7858_v19 = vor.u32 %v9359_v10, %v7855_v11  ;;  %v9291_v20 = vld [vmem:[#allocation8 + $0x84] sm:$0xf] }
  0xc0   :  { %2062 = vmatpush.bf16.msra.mxu1 %v7662_v23  ;;  %v7986_v23 = vor.u32 %v9391_v13, %v7983_v14  ;;  %v7586_v29 = vor.u32 %v9291_v20, %v7583_v21  ;;  %v9311_v13 = vld [vmem:[#allocation8 + $0x124] sm:$0xf]  ;;  %v7663_v14 = vld [vmem:[#allocation8 + $0x130] sm:$0xf0] }
  0xc1   :  { %v7666_v26 = vor.u32 %v9311_v13, %v7663_v14  ;;  %v9366_v13 = vld [vmem:[#allocation8 + $0x2d4] sm:$0xf0] }
  0xc2   :  { %2081 = vmatpush.bf16.msra.mxu2 %v7790_v24  ;;  %2100 = vmatpush.bf16.msra.mxu3 %v7918_v28  ;;  %v7711_v24 = vld [vmem:[#allocation8 + $0x190] sm:$0xf0] }
  0xc3   :  { %2044 = vmatpush.bf16.msra.mxu0 %v7518_v35  ;;  %v7967_v28 = vld [vmem:[#allocation8 + $0x390] sm:$0xf0]  ;;  %v7714_v32 = vor.u32 %v9323_v22, %v7711_v24  ;;  %v9319_v35 = vld [vmem:[#allocation8 + $0x164] sm:$0xf] }
  0xc4   :  { %2063 = vmatpush.bf16.msra.mxu1 %v7646_v39  ;;  %v983_v15 = vpop.f32.mrf.mxu1  ;;  %v7970_v37 = vor.u32 %v9387_v27, %v7967_v28  ;;  %v9351_v39 = vld [vmem:[#allocation8 + $0x264] sm:$0xf]  ;;  %v7698_v52 = vor.u32 %v9319_v35, %v7695_v36  ;;  %v7519_v28 = vld [vmem:[#allocation8 + $0x10] sm:$0xf0] }
  0xc5   :  { %v964_v12 = vpop.f32.mrf.mxu0  ;;  %v9375_v22 = vld [vmem:[#allocation8 + $0x324] sm:$0xf]  ;;  %v7775_v36 = vld [vmem:[#allocation8 + $0x210] sm:$0xf0] }
  0xc6   :  { %2082 = vmatpush.bf16.msra.mxu2 %v7774_v40  ;;  %2101 = vmatpush.bf16.msra.mxu3 %v7902_v43  ;;  %v965_v17 = vadd.f32 %v964_v12, %v10264_v5  ;;  %v7823_v40 = vld [vmem:[#allocation8 + $0x270] sm:$0xf0]  ;;  %v9275_v27 = vld [vmem:[#allocation8 + $0x4] sm:$0xf] }
  0xc7   :  { %2113 = vmatpush.bf16.msrb.mxu0 %v7634_v45  ;;  %2064 = vmatmul.bf16.vlgmr.msra.gmra.mxu1 %v10215_v53  ;;  %v9383_v45 = vld [vmem:[#allocation8 + $0x364] sm:$0xf]  ;;  %v7535_v12 = vld [vmem:[#allocation8 + $0x30] sm:$0xf0] }
  0xc8   :  { %2132 = vmatpush.bf16.msrb.mxu1 %v7762_v47  ;;  %v984_v31 = vadd.f32 %v983_v15, %v965_v17  ;;  %2045 = vmatmul.bf16.vlgmr.msra.gmra.mxu0 %v10213_v48  ;;  %v7954_v0 = vor.u32 %v9383_v45, %v7951_v46  ;;  %v9343_v17 = vld [vmem:[#allocation8 + $0x224] sm:$0xf]  ;;  %v7893_v45 = vld [vmem:[#allocation8 + $0x2e8] sm:$0xf]  ;;  %v9370_v46 = vld [vmem:[#allocation8 + $0x2f4] sm:$0xf0] }
  0xc9   :  { %2083 = vmatmul.bf16.vlgmr.msra.gmra.mxu2 %v10217_v54  ;;  %2102 = vmatmul.bf16.vlgmr.msra.gmra.mxu3 %v10219_v57 }
  0xca   :  { %2151 = vmatpush.bf16.msrb.mxu2 %v7890_v49  ;;  %2170 = vmatpush.bf16.msrb.mxu3 %v8018_v59  ;;  %v7570_v49 = vor.u32 %v9287_v30, %v7567_v34  ;;  %v7826_v59 = vor.u32 %v9351_v39, %v7823_v40  ;;  %v9339_v34 = vld [vmem:[#allocation8 + $0x204] sm:$0xf]  ;;  %v7637_v39 = vld [vmem:[#allocation8 + $0xe8] sm:$0xf]  ;;  %v9306_v40 = vld [vmem:[#allocation8 + $0xf4] sm:$0xf0] }
  0xcb   :  { %2114 = vmatpush.bf16.msrb.mxu0 %v7618_v1  ;;  %v7679_v1 = vld [vmem:[#allocation8 + $0x150] sm:$0xf0]  ;;  %v7638_v61 = vor.u32 %v9306_v40, %v7637_v39  ;;  %v7589_v39 = vld [vmem:[#allocation8 + $0x88] sm:$0xf]  ;;  %v9294_v40 = vld [vmem:[#allocation8 + $0x94] sm:$0xf0] }
  0xcc   :  { %2133 = vmatpush.bf16.msrb.mxu1 %v7746_v3  ;;  %v1002_v38 = vpop.f32.mrf.mxu2  ;;  %v1021_v42 = vpop.f32.mrf.mxu3  ;;  %v7807_v3 = vld [vmem:[#allocation8 + $0x250] sm:$0xf0]  ;;  %v7682_v10 = vor.u32 %v9315_v63, %v7679_v1  ;;  %v7894_v1 = vor.u32 %v9370_v46, %v7893_v45  ;;  %v9326_v45 = vld [vmem:[#allocation8 + $0x194] sm:$0xf0]  ;;  %v7845_v46 = vld [vmem:[#allocation8 + $0x288] sm:$0xf] }
  0xcd   :  { %v1003_v41 = vadd.f32 %v1002_v38, %v984_v31  ;;  %v966_v43 = vpop.f32.mrf.mxu0  ;;  %v985_v47 = vpop.f32.mrf.mxu1  ;;  %v7810_v11 = vor.u32 %v9347_v2, %v7807_v3  ;;  %v7903_v38 = vld [vmem:[#allocation8 + $0x310] sm:$0xf0] }
  0xce   :  { %2152 = vmatpush.bf16.msrb.mxu2 %v7874_v4  ;;  %2171 = vmatpush.bf16.msrb.mxu3 %v8002_v8  ;;  %v967_v58 = vadd.f32 %v966_v43, %v10264_v5  ;;  %v9379_v4 = vld [vmem:[#allocation8 + $0x344] sm:$0xf]  ;;  %v9338_v43 = vld [vmem:[#allocation8 + $0x1f4] sm:$0xf0] }
  0xcf   :  { %2115 = vmatpush.bf16.msrb.mxu0 %v7602_v16  ;;  %v10271_v55 = vadd.f32 %v1021_v42, %v1003_v41  ;;  %v9279_v8 = vld [vmem:[#allocation8 + $0x24] sm:$0xf]  ;;  %v7938_v15 = vor.u32 %v9379_v4, %v7935_v6  ;;  %v7765_v41 = vld [vmem:[#allocation8 + $0x1e8] sm:$0xf]  ;;  %v7522_v42 = vor.u32 %v9275_v27, %v7519_v28 }
  0xd0   :  { %2134 = vmatpush.bf16.msrb.mxu1 %v7730_v18  ;;  %v986_v9 = vadd.f32 %v985_v47, %v967_v58  ;;  %v7791_v18 = vld [vmem:[#allocation8 + $0x230] sm:$0xf0]  ;;  %v7538_v25 = vor.u32 %v9279_v8, %v7535_v12  ;;  %v8021_v58 = vld [vmem:[#allocation8 + $0x3e8] sm:$0xf] }
  0xd1   :  { %3427 = vrot.lane.b32.xlu1 %v10271_v55, %s10122_s7  ;;  %v7794_v31 = vor.u32 %v9343_v17, %v7791_v18  ;;  %v7621_v6 = vld [vmem:[#allocation8 + $0xc8] sm:$0xf]  ;;  %v9398_v17 = vld [vmem:[#allocation8 + $0x3d4] sm:$0xf0] }
  0xd2   :  { %2153 = vmatpush.bf16.msrb.mxu2 %v7858_v19  ;;  %2172 = vmatpush.bf16.msrb.mxu3 %v7986_v23  ;;  %v7919_v23 = vld [vmem:[#allocation8 + $0x330] sm:$0xf0]  ;;  %v7749_v8 = vld [vmem:[#allocation8 + $0x1c8] sm:$0xf] }
  0xd3   :  { %2116 = vmatpush.bf16.msrb.mxu0 %v7586_v29  ;;  %v7922_v35 = vor.u32 %v9375_v22, %v7919_v23  ;;  %v7877_v12 = vld [vmem:[#allocation8 + $0x2c8] sm:$0xf]  ;;  %v9298_v22 = vld [vmem:[#allocation8 + $0xb4] sm:$0xf0] }
  0xd4   :  { %2135 = vmatpush.bf16.msrb.mxu1 %v7714_v32  ;;  %v1004_v16 = vpop.f32.mrf.mxu2  ;;  %v1023_v20 = vpop.f32.mrf.mxu3  ;;  %v9307_v32 = vld [vmem:[#allocation8 + $0x104] sm:$0xf]  ;;  %v7733_v23 = vld [vmem:[#allocation8 + $0x1a8] sm:$0xf] }
  0xd5   :  { %v1005_v19 = vadd.f32 %v1004_v16, %v986_v9  ;;  %v969_v21 = vpop.f32.mrf.mxu0  ;;  %v988_v24 = vpop.f32.mrf.mxu1  ;;  %v8005_v16 = vld [vmem:[#allocation8 + $0x3c8] sm:$0xf] }
  0xd6   :  { %2154 = vmatpush.bf16.msrb.mxu2 %v7842_v33  ;;  %2173 = vmatpush.bf16.msrb.mxu3 %v7970_v37  ;;  %v970_v30 = vadd.f32 %v969_v21, %v10264_v5  ;;  %v7647_v33 = vld [vmem:[#allocation8 + $0x110] sm:$0xf0]  ;;  %v9371_v37 = vld [vmem:[#allocation8 + $0x304] sm:$0xf]  ;;  %v7605_v21 = vld [vmem:[#allocation8 + $0xa8] sm:$0xf] }
  0xd7   :  { %2117 = vmatpush.bf16.msrb.mxu0 %v7570_v49  ;;  %v10276_v29 = vadd.f32 %v1023_v20, %v1005_v19  ;;  %v7650_v49 = vor.u32 %v9307_v32, %v7647_v33  ;;  %v7906_v60 = vor.u32 %v9371_v37, %v7903_v38  ;;  %2069 = vmatmul.bf16.gmra.mxu1 %v10227_v50  ;;  %v7989_v28 = vld [vmem:[#allocation8 + $0x3a8] sm:$0xf] }
  0xd8   :  { %2136 = vmatpush.bf16.msrb.mxu1 %v7698_v52  ;;  %v989_v47 = vadd.f32 %v988_v24, %v970_v30  ;;  %v7778_v52 = vor.u32 %v9339_v34, %v7775_v36  ;;  %2050 = vmatmul.bf16.gmra.mxu0 %v10225_v44  ;;  %v7878_v20 = vor.u32 %v9366_v13, %v7877_v12  ;;  %v9394_v30 = vld [vmem:[#allocation8 + $0x3b4] sm:$0xf0] }
  0xd9   :  { %3429 = vrot.lane.b32.xlu1 %v10276_v29, %s10122_s7  ;;  %2088 = vmatmul.bf16.gmra.mxu2 %v10229_v51  ;;  %v8006_v24 = vor.u32 %v9398_v17, %v8005_v16  ;;  %v7606_v32 = vor.u32 %v9298_v22, %v7605_v21  ;;  %v7685_v21 = vld [vmem:[#allocation8 + $0x148] sm:$0xf] }
  0xda   :  { %2155 = vmatpush.bf16.msrb.mxu2 %v7826_v59  ;;  %2174 = vmatpush.bf16.msrb.mxu3 %v7954_v0  ;;  %v9402_v59 = vld [vmem:[#allocation8 + $0x3f4] sm:$0xf0]  ;;  %v7766_v0 = vor.u32 %v9338_v43, %v7765_v41  ;;  %v7717_v41 = vld [vmem:[#allocation8 + $0x188] sm:$0xf] }
  0xdb   :  { %2118 = vmatpush.bf16.msrb.mxu0 %v7554_v7  ;;  %v9302_v7 = vld [vmem:[#allocation8 + $0xd4] sm:$0xf0]  ;;  %2107 = vmatmul.bf16.gmra.mxu3 %v10231_v56  ;;  %v8022_v9 = vor.u32 %v9402_v59, %v8021_v58  ;;  %v7973_v58 = vld [vmem:[#allocation8 + $0x388] sm:$0xf] }
  0xdc   :  { %2137 = vmatpush.bf16.msrb.mxu1 %v7682_v10  ;;  %v1007_v63 = vpop.f32.mrf.mxu2  ;;  %v1026_v3 = vpop.f32.mrf.mxu3  ;;  %v7622_v18 = vor.u32 %v9302_v7, %v7621_v6  ;;  %v9390_v59 = vld [vmem:[#allocation8 + $0x394] sm:$0xf0]  ;;  %v7829_v6 = vld [vmem:[#allocation8 + $0x268] sm:$0xf] }
  0xdd   :  { %v1008_v2 = vadd.f32 %v1007_v63, %v989_v47  ;;  %v971_v4 = vpop.f32.mrf.mxu0  ;;  %v990_v10 = vpop.f32.mrf.mxu1  ;;  %v9358_v47 = vld [vmem:[#allocation8 + $0x294] sm:$0xf0] }
  0xde   :  { %2156 = vmatpush.bf16.msrb.mxu2 %v7810_v11  ;;  %2175 = vmatpush.bf16.msrb.mxu3 %v7938_v15  ;;  %v9334_v11 = vld [vmem:[#allocation8 + $0x1d4] sm:$0xf0]  ;;  %v972_v15 = vadd.f32 %v971_v4, %v10264_v5  ;;  %v7846_v63 = vor.u32 %v9358_v47, %v7845_v46 }
  0xdf   :  { %2119 = vmatpush.bf16.msrb.mxu0 %v7538_v25  ;;  %v10285_v14 = vadd.f32 %v1026_v3, %v1008_v2  ;;  %v7750_v19 = vor.u32 %v9334_v11, %v7749_v8  ;;  %v9330_v25 = vld [vmem:[#allocation8 + $0x1b4] sm:$0xf0]  ;;  %v7701_v2 = vld [vmem:[#allocation8 + $0x168] sm:$0xf]  ;;  %v7974_v3 = vor.u32 %v9390_v59, %v7973_v58 }
  0xe0   :  { %2138 = vmatpush.bf16.msrb.mxu1 %v7666_v26  ;;  %v7861_v26 = vld [vmem:[#allocation8 + $0x2a8] sm:$0xf]  ;;  %v9362_v5 = vld [vmem:[#allocation8 + $0x2b4] sm:$0xf0]  ;;  %v991_v27 = vadd.f32 %v990_v10, %v972_v15  ;;  %v7734_v34 = vor.u32 %v9330_v25, %v7733_v23 }
  0xe1   :  { %3431 = vrot.lane.b32.xlu0 %v10285_v14, %s10122_s7  ;;  %v9322_v4 = vld [vmem:[#allocation8 + $0x174] sm:$0xf0]  ;;  %v7813_v25 = vld [vmem:[#allocation8 + $0x248] sm:$0xf] }
  0xe2   :  { %2157 = vmatpush.bf16.msrb.mxu2 %v7794_v31  ;;  %2176 = vmatpush.bf16.msrb.mxu3 %v7922_v35  ;;  %v10291_v31 = vperm.slane %v10261_v62, 1  ;;  %v7862_v35 = vor.u32 %v9362_v5, %v7861_v26  ;;  %v9354_v7 = vld [vmem:[#allocation8 + $0x274] sm:$0xf0]  ;;  %v7702_v13 = vor.u32 %v9322_v4, %v7701_v2 }
  0xe3   :  { %2120 = vmatpush.bf16.msrb.mxu0 %v7522_v42  ;;  %v7990_v42 = vor.u32 %v9394_v30, %v7989_v28  ;;  %v9386_v10 = vld [vmem:[#allocation8 + $0x374] sm:$0xf0]  ;;  %v7830_v15 = vor.u32 %v9354_v7, %v7829_v6  ;;  %v7941_v28 = vld [vmem:[#allocation8 + $0x348] sm:$0xf] }
  0xe4   :  { %2139 = vmatpush.bf16.msrb.mxu1 %v7650_v49  ;;  %v1009_v33 = vpop.f32.mrf.mxu2  ;;  %v1028_v37 = vpop.f32.mrf.mxu3  ;;  %v9350_v26 = vld [vmem:[#allocation8 + $0x254] sm:$0xf0] }
  0xe5   :  { %v1010_v36 = vadd.f32 %v1009_v33, %v991_v27  ;;  %v1040_v38 = vpop.f32.mrf.mxu0  ;;  %v1059_v43 = vpop.f32.mrf.mxu1  ;;  %v9382_v30 = vld [vmem:[#allocation8 + $0x354] sm:$0xf0] }
  0xe6   :  { %2158 = vmatpush.bf16.msrb.mxu2 %v7778_v52  ;;  %2177 = vmatpush.bf16.msrb.mxu3 %v7906_v60  ;;  %v1041_v52 = vadd.f32 %v1040_v38, %v10291_v31  ;;  %v7590_v60 = vor.u32 %v9294_v40, %v7589_v39  ;;  %v7942_v38 = vor.u32 %v9382_v30, %v7941_v28  ;;  %v9314_v39 = vld [vmem:[#allocation8 + $0x134] sm:$0xf0]  ;;  %v7797_v40 = vld [vmem:[#allocation8 + $0x228] sm:$0xf]  ;;  %v9300_v30 = vld [vmem:[#allocation8 + $0xcc] sm:$0xf] }
  0xe7   :  { %2189 = vmatpush.bf16.msra.mxu0 %v7638_v61  ;;  %v10293_v49 = vadd.f32 %v1028_v37, %v1010_v36  ;;  %v7718_v61 = vor.u32 %v9326_v45, %v7717_v41  ;;  %2140 = vmatmul.bf16.vlgmr.msrb.gmra.mxu1 %v10215_v53  ;;  %v9282_v36 = vld [vmem:[#allocation8 + $0x34] sm:$0xf0]  ;;  %v7669_v37 = vld [vmem:[#allocation8 + $0x128] sm:$0xf] }
  0xe8   :  { %2208 = vmatpush.bf16.msra.mxu1 %v7766_v0  ;;  %v7573_v0 = vld [vmem:[#allocation8 + $0x68] sm:$0xf]  ;;  %v1060_v8 = vadd.f32 %v1059_v43, %v1041_v52  ;;  %2121 = vmatmul.bf16.vlgmr.msrb.gmra.mxu0 %v10213_v48  ;;  %v9346_v41 = vld [vmem:[#allocation8 + $0x234] sm:$0xf0]  ;;  %v7670_v59 = vor.u32 %v9314_v39, %v7669_v37  ;;  %v9364_v37 = vld [vmem:[#allocation8 + $0x2cc] sm:$0xf] }
  0xe9   :  { %3433 = vrot.lane.b32.xlu1 %v10293_v49, %s10122_s7  ;;  %2159 = vmatmul.bf16.vlgmr.msrb.gmra.mxu2 %v10217_v54  ;;  %v7925_v43 = vld [vmem:[#allocation8 + $0x328] sm:$0xf]  ;;  %v9378_v45 = vld [vmem:[#allocation8 + $0x334] sm:$0xf0] }
  0xea   :  { %2227 = vmatpush.bf16.msra.mxu2 %v7894_v1  ;;  %2246 = vmatpush.bf16.msra.mxu3 %v8022_v9  ;;  %v9290_v1 = vld [vmem:[#allocation8 + $0x74] sm:$0xf0]  ;;  %v7957_v9 = vld [vmem:[#allocation8 + $0x368] sm:$0xf]  ;;  %v7926_v4 = vor.u32 %v9378_v45, %v7925_v43 }
  0xeb   :  { %2190 = vmatpush.bf16.msra.mxu0 %v7622_v18  ;;  %v7574_v11 = vor.u32 %v9290_v1, %v7573_v0  ;;  %v7958_v22 = vor.u32 %v9386_v10, %v7957_v9  ;;  %2178 = vmatmul.bf16.vlgmr.msrb.gmra.mxu3 %v10219_v57  ;;  %v7525_v52 = vld [vmem:[#allocation8 + $0x8] sm:$0xf]  ;;  %v9278_v58 = vld [vmem:[#allocation8 + $0x14] sm:$0xf0] }
  0xec   :  { %2209 = vmatpush.bf16.msra.mxu1 %v7750_v19  ;;  %v1078_v12 = vpop.f32.mrf.mxu2  ;;  %v1097_v17 = vpop.f32.mrf.mxu3  ;;  %v7557_v19 = vld [vmem:[#allocation8 + $0x48] sm:$0xf]  ;;  %v9310_v2 = vld [vmem:[#allocation8 + $0x114] sm:$0xf0] }
  0xed   :  { %v1079_v16 = vadd.f32 %v1078_v12, %v1060_v8  ;;  %v1042_v18 = vpop.f32.mrf.mxu0  ;;  %v1061_v23 = vpop.f32.mrf.mxu1  ;;  %v7653_v1 = vld [vmem:[#allocation8 + $0x108] sm:$0xf]  ;;  %v9342_v7 = vld [vmem:[#allocation8 + $0x214] sm:$0xf0]  ;;  %v7639_v12 = vld [vmem:[#allocation8 + $0xf8] sm:$0xf0] }
  0xee   :  { %2228 = vmatpush.bf16.msra.mxu2 %v7878_v20  ;;  %2247 = vmatpush.bf16.msra.mxu3 %v8006_v24  ;;  %v9286_v20 = vld [vmem:[#allocation8 + $0x54] sm:$0xf0]  ;;  %v1043_v27 = vadd.f32 %v1042_v18, %v10291_v31  ;;  %v7909_v8 = vld [vmem:[#allocation8 + $0x308] sm:$0xf]  ;;  %v9368_v18 = vld [vmem:[#allocation8 + $0x2ec] sm:$0xf] }
  0xef   :  { %2191 = vmatpush.bf16.msra.mxu0 %v7606_v32  ;;  %v9318_v24 = vld [vmem:[#allocation8 + $0x154] sm:$0xf0]  ;;  %v10301_v5 = vadd.f32 %v1097_v17, %v1079_v16  ;;  %v7558_v32 = vor.u32 %v9286_v20, %v7557_v19  ;;  %v7526_v16 = vor.u32 %v9278_v58, %v7525_v52  ;;  %v7767_v17 = vld [vmem:[#allocation8 + $0x1f8] sm:$0xf0]  ;;  %v7654_v20 = vor.u32 %v9310_v2, %v7653_v1  ;;  %v9360_v2 = vld [vmem:[#allocation8 + $0x2ac] sm:$0xf] }
  0xf0   :  { %2210 = vmatpush.bf16.msra.mxu1 %v7734_v34  ;;  %v7686_v33 = vor.u32 %v9318_v24, %v7685_v21  ;;  %v7814_v34 = vor.u32 %v9350_v26, %v7813_v25  ;;  %v9374_v9 = vld [vmem:[#allocation8 + $0x314] sm:$0xf0]  ;;  %v7895_v19 = vld [vmem:[#allocation8 + $0x2f8] sm:$0xf0] }
  0xf1   :  { %3439 = vrot.lane.b32.xlu1 %v10301_v5, %s10122_s7  ;;  %v7910_v24 = vor.u32 %v9374_v9, %v7909_v8  ;;  %v7898_v28 = vor.u32 %v9368_v18, %v7895_v19  ;;  %v7735_v1 = vld [vmem:[#allocation8 + $0x1b8] sm:$0xf0]  ;;  %v9356_v18 = vld [vmem:[#allocation8 + $0x28c] sm:$0xf] }
  0xf2   :  { %2229 = vmatpush.bf16.msra.mxu2 %v7862_v35  ;;  %2248 = vmatpush.bf16.msra.mxu3 %v7990_v42  ;;  %v7541_v35 = vld [vmem:[#allocation8 + $0x28] sm:$0xf]  ;;  %v1062_v42 = vadd.f32 %v1061_v23, %v1043_v27  ;;  %v8023_v23 = vld [vmem:[#allocation8 + $0x3f8] sm:$0xf0] }
  0xf3   :  { %2192 = vmatpush.bf16.msra.mxu0 %v7590_v60  ;;  %v7542_v46 = vor.u32 %v9282_v36, %v7541_v35  ;;  %v7798_v60 = vor.u32 %v9346_v41, %v7797_v40  ;;  %v7751_v36 = vld [vmem:[#allocation8 + $0x1d8] sm:$0xf0]  ;;  %v9396_v41 = vld [vmem:[#allocation8 + $0x3cc] sm:$0xf] }
  0xf4   :  { %2211 = vmatpush.bf16.msra.mxu1 %v7718_v61  ;;  %v1080_v47 = vpop.f32.mrf.mxu2  ;;  %v7847_v19 = vld [vmem:[#allocation8 + $0x298] sm:$0xf0] }
  0xf5   :  { %v1081_v61 = vadd.f32 %v1080_v47, %v1062_v42  ;;  %v1045_v0 = vpop.f32.mrf.mxu0  ;;  %v1064_v6 = vpop.f32.mrf.mxu1  ;;  %v8007_v42 = vld [vmem:[#allocation8 + $0x3d8] sm:$0xf0] }
  0xf6   :  { %2230 = vmatpush.bf16.msra.mxu2 %v7846_v63  ;;  %2249 = vmatpush.bf16.msra.mxu3 %v7974_v3  ;;  %v1099_v63 = vpop.f32.mrf.mxu3  ;;  %v7781_v3 = vld [vmem:[#allocation8 + $0x208] sm:$0xf]  ;;  %v1046_v10 = vadd.f32 %v1045_v0, %v10291_v31  ;;  %v8010_v0 = vor.u32 %v9396_v41, %v8007_v42  ;;  %v7959_v41 = vld [vmem:[#allocation8 + $0x378] sm:$0xf0] }
  0xf7   :  { %2193 = vmatpush.bf16.msra.mxu0 %v7574_v11  ;;  %v9304_v11 = vld [vmem:[#allocation8 + $0xec] sm:$0xf]  ;;  %v7782_v21 = vor.u32 %v9342_v7, %v7781_v3  ;;  %v7863_v3 = vld [vmem:[#allocation8 + $0x2b8] sm:$0xf0]  ;;  %2145 = vmatmul.bf16.gmra.mxu1 %v10227_v50 }
  0xf8   :  { %2212 = vmatpush.bf16.msra.mxu1 %v7702_v13  ;;  %v9336_v13 = vld [vmem:[#allocation8 + $0x1ec] sm:$0xf]  ;;  %v7642_v25 = vor.u32 %v9304_v11, %v7639_v12  ;;  %v1065_v26 = vadd.f32 %v1064_v6, %v1046_v10  ;;  %2126 = vmatmul.bf16.gmra.mxu0 %v10225_v44  ;;  %v7991_v6 = vld [vmem:[#allocation8 + $0x3b8] sm:$0xf0]  ;;  %v7866_v9 = vor.u32 %v9360_v2, %v7863_v3 }
  0xf9   :  { %v7770_v27 = vor.u32 %v9336_v13, %v7767_v17  ;;  %2164 = vmatmul.bf16.gmra.mxu2 %v10229_v51  ;;  %v9292_v10 = vld [vmem:[#allocation8 + $0x8c] sm:$0xf]  ;;  %v7591_v11 = vld [vmem:[#allocation8 + $0x98] sm:$0xf0] }
  0xfa   :  { %2231 = vmatpush.bf16.msra.mxu2 %v7830_v15  ;;  %2250 = vmatpush.bf16.msra.mxu3 %v7958_v22  ;;  %v10308_v15 = vadd.f32 %v1099_v63, %v1081_v61  ;;  %v9400_v22 = vld [vmem:[#allocation8 + $0x3ec] sm:$0xf]  ;;  %v7719_v17 = vld [vmem:[#allocation8 + $0x198] sm:$0xf0] }
  0xfb   :  { %2194 = vmatpush.bf16.msra.mxu0 %v7558_v32  ;;  %v7623_v32 = vld [vmem:[#allocation8 + $0xd8] sm:$0xf0]  ;;  %v9328_v61 = vld [vmem:[#allocation8 + $0x1ac] sm:$0xf]  ;;  %2183 = vmatmul.bf16.gmra.mxu3 %v10231_v56 }
  0xfc   :  { %2213 = vmatpush.bf16.msra.mxu1 %v7686_v33  ;;  %3441 = vrot.lane.b32.xlu2 %v10308_v15, %s10122_s7  ;;  %v9332_v33 = vld [vmem:[#allocation8 + $0x1cc] sm:$0xf]  ;;  %v1083_v35 = vpop.f32.mrf.mxu2  ;;  %v7626_v45 = vor.u32 %v9300_v30, %v7623_v32  ;;  %v7738_v8 = vor.u32 %v9328_v61, %v7735_v1  ;;  %v7815_v61 = vld [vmem:[#allocation8 + $0x258] sm:$0xf0] }
  0xfd   :  { %v1084_v39 = vadd.f32 %v1083_v35, %v1065_v26  ;;  %v1047_v43 = vpop.f32.mrf.mxu0  ;;  %v7754_v47 = vor.u32 %v9332_v33, %v7751_v36  ;;  %v9324_v12 = vld [vmem:[#allocation8 + $0x18c] sm:$0xf]  ;;  %v7575_v33 = vld [vmem:[#allocation8 + $0x78] sm:$0xf0] }
  0xfe   :  { %2232 = vmatpush.bf16.msra.mxu2 %v7814_v34  ;;  %2251 = vmatpush.bf16.msra.mxu3 %v7942_v38  ;;  %v8026_v34 = vor.u32 %v9400_v22, %v8023_v23  ;;  %v7879_v38 = vld [vmem:[#allocation8 + $0x2d8] sm:$0xf0]  ;;  %v1102_v40 = vpop.f32.mrf.mxu3  ;;  %v1048_v58 = vadd.f32 %v1047_v43, %v10291_v31  ;;  %v9388_v22 = vld [vmem:[#allocation8 + $0x38c] sm:$0xf] }
  0xff   :  { %2195 = vmatpush.bf16.msra.mxu0 %v7542_v46  ;;  %v1066_v46 = vpop.f32.mrf.mxu1  ;;  %v7882_v52 = vor.u32 %v9364_v37, %v7879_v38  ;;  %v10314_v63 = vadd.f32 %v1102_v40, %v1084_v39  ;;  %v7975_v23 = vld [vmem:[#allocation8 + $0x398] sm:$0xf0]  ;;  %v9288_v32 = vld [vmem:[#allocation8 + $0x6c] sm:$0xf] }
 0x100   :  { %2214 = vmatpush.bf16.msra.mxu1 %v7670_v59  ;;  %v9296_v59 = vld [vmem:[#allocation8 + $0xac] sm:$0xf]  ;;  %v1067_v7 = vadd.f32 %v1066_v46, %v1048_v58  ;;  %v7978_v35 = vor.u32 %v9388_v22, %v7975_v23  ;;  %v7703_v37 = vld [vmem:[#allocation8 + $0x178] sm:$0xf0]  ;;  %v7578_v42 = vor.u32 %v9288_v32, %v7575_v33 }
 0x101   :  { %v9352_v38 = vld [vmem:[#allocation8 + $0x26c] sm:$0xf]  ;;  %v7831_v39 = vld [vmem:[#allocation8 + $0x278] sm:$0xf0] }
 0x102   :  { %2233 = vmatpush.bf16.msra.mxu2 %v7798_v60  ;;  %2252 = vmatpush.bf16.msra.mxu3 %v7926_v4  ;;  %v7607_v60 = vld [vmem:[#allocation8 + $0xb8] sm:$0xf0]  ;;  %v9392_v4 = vld [vmem:[#allocation8 + $0x3ac] sm:$0xf] }
 0x103   :  { %2196 = vmatpush.bf16.msra.mxu0 %v7526_v16  ;;  %v7610_v31 = vor.u32 %v9296_v59, %v7607_v60  ;;  %v7994_v13 = vor.u32 %v9392_v4, %v7991_v6  ;;  %v9384_v40 = vld [vmem:[#allocation8 + $0x36c] sm:$0xf]  ;;  %v7687_v59 = vld [vmem:[#allocation8 + $0x158] sm:$0xf0] }
 0x104   :  { %2215 = vmatpush.bf16.msra.mxu1 %v7654_v20  ;;  %3443 = vrot.lane.b32.xlu2 %v10314_v63, %s10122_s7  ;;  %v1085_v16 = vpop.f32.mrf.mxu2  ;;  %v9284_v46 = vld [vmem:[#allocation8 + $0x4c] sm:$0xf]  ;;  %v7962_v58 = vor.u32 %v9384_v40, %v7959_v41  ;;  %v7943_v2 = vld [vmem:[#allocation8 + $0x358] sm:$0xf0]  ;;  %v8141_v40 = vld [vmem:[#allocation11 + $0xe0] sm:$0xf] }
 0x105   :  { %v1086_v20 = vadd.f32 %v1085_v16, %v1067_v7  ;;  %v1116_v30 = vpop.f32.mrf.mxu0  ;;  %v9348_v60 = vld [vmem:[#allocation8 + $0x24c] sm:$0xf]  ;;  %v7927_v23 = vld [vmem:[#allocation8 + $0x338] sm:$0xf0]  ;;  %v9433_v41 = vld [vmem:[#allocation11 + $0xec] sm:$0xf0] }
 0x106   :  { %2234 = vmatpush.bf16.msra.mxu2 %v7782_v21  ;;  %2253 = vmatpush.bf16.msra.mxu3 %v7910_v24  ;;  %v1104_v21 = vpop.f32.mrf.mxu3  ;;  %v10322_v24 = vperm.slane %v10261_v62, 2  ;;  %v9380_v1 = vld [vmem:[#allocation8 + $0x34c] sm:$0xf] }
 0x107   :  { %2265 = vmatpush.bf16.msrb.mxu0 %v7642_v25  ;;  %v7594_v25 = vor.u32 %v9292_v10, %v7591_v11  ;;  %v10324_v26 = vadd.f32 %v1104_v21, %v1086_v20  ;;  %v1135_v36 = vpop.f32.mrf.mxu1  ;;  %v9280_v10 = vld [vmem:[#allocation8 + $0x2c] sm:$0xf]  ;;  %v7543_v11 = vld [vmem:[#allocation8 + $0x38] sm:$0xf0]  ;;  %2216 = vmatmul.bf16.vlgmr.msra.gmra.mxu1 %v10215_v53 }
 0x108   :  { %2284 = vmatpush.bf16.msrb.mxu1 %v7770_v27  ;;  %v7722_v27 = vor.u32 %v9324_v12, %v7719_v17  ;;  %v1117_v62 = vadd.f32 %v1116_v30, %v10322_v24  ;;  %v9312_v12 = vld [vmem:[#allocation8 + $0x12c] sm:$0xf]  ;;  %2197 = vmatmul.bf16.vlgmr.msra.gmra.mxu0 %v10213_v48  ;;  %v7671_v17 = vld [vmem:[#allocation8 + $0x138] sm:$0xf0] }
 0x109   :  { %3445 = vrot.lane.b32.xlu0 %v10324_v26, %s10122_s7  ;;  %2235 = vmatmul.bf16.vlgmr.msra.gmra.mxu2 %v10217_v54  ;;  %v9376_v22 = vld [vmem:[#allocation8 + $0x32c] sm:$0xf]  ;;  %v7674_v30 = vor.u32 %v9312_v12, %v7671_v17  ;;  %v8125_v12 = vld [vmem:[#allocation11 + $0xc0] sm:$0xf]  ;;  %v9461_v17 = vld [vmem:[#allocation11 + $0x1cc] sm:$0xf0] }
 0x10a   :  { %2303 = vmatpush.bf16.msrb.mxu2 %v7898_v28  ;;  %2322 = vmatpush.bf16.msrb.mxu3 %v8026_v34  ;;  %v7850_v28 = vor.u32 %v9356_v18, %v7847_v19  ;;  %v9320_v34 = vld [vmem:[#allocation8 + $0x16c] sm:$0xf]  ;;  %v7799_v19 = vld [vmem:[#allocation8 + $0x238] sm:$0xf0] }
 0x10b   :  { %2266 = vmatpush.bf16.msrb.mxu0 %v7626_v45  ;;  %v7706_v43 = vor.u32 %v9320_v34, %v7703_v37  ;;  %v7834_v45 = vor.u32 %v9352_v38, %v7831_v39  ;;  %v9344_v18 = vld [vmem:[#allocation8 + $0x22c] sm:$0xf]  ;;  %2254 = vmatmul.bf16.vlgmr.msra.gmra.mxu3 %v10219_v57  ;;  %v7655_v34 = vld [vmem:[#allocation8 + $0x118] sm:$0xf0] }
 0x10c   :  { %2285 = vmatpush.bf16.msrb.mxu1 %v7754_v47  ;;  %v7559_v47 = vld [vmem:[#allocation8 + $0x58] sm:$0xf0]  ;;  %v1154_v3 = vpop.f32.mrf.mxu2  ;;  %v7802_v32 = vor.u32 %v9344_v18, %v7799_v19  ;;  %v9308_v33 = vld [vmem:[#allocation8 + $0x10c] sm:$0xf]  ;;  %v8381_v18 = vld [vmem:[#allocation11 + $0x2c0] sm:$0xf] }
 0x10d   :  { %v7562_v4 = vor.u32 %v9284_v46, %v7559_v47  ;;  %v7783_v37 = vld [vmem:[#allocation8 + $0x218] sm:$0xf0]  ;;  %v9372_v38 = vld [vmem:[#allocation8 + $0x30c] sm:$0xf]  ;;  %v9465_v46 = vld [vmem:[#allocation11 + $0x1ec] sm:$0xf0] }
 0x10e   :  { %2304 = vmatpush.bf16.msrb.mxu2 %v7882_v52  ;;  %2323 = vmatpush.bf16.msrb.mxu3 %v8010_v0  ;;  %v9316_v52 = vld [vmem:[#allocation8 + $0x14c] sm:$0xf]  ;;  %v1136_v0 = vadd.f32 %v1135_v36, %v1117_v62  ;;  %v7930_v36 = vor.u32 %v9376_v22, %v7927_v23  ;;  %v7911_v39 = vld [vmem:[#allocation8 + $0x318] sm:$0xf0]  ;;  %v8397_v47 = vld [vmem:[#allocation11 + $0x2e0] sm:$0xf] }
 0x10f   :  { %2267 = vmatpush.bf16.msrb.mxu0 %v7610_v31  ;;  %v1173_v31 = vpop.f32.mrf.mxu3  ;;  %v7690_v7 = vor.u32 %v9316_v52, %v7687_v59  ;;  %v1137_v16 = vpop.f32.mrf.mxu1  ;;  %v9497_v52 = vld [vmem:[#allocation11 + $0x2ec] sm:$0xf0] }
 0x110   :  { %2286 = vmatpush.bf16.msrb.mxu1 %v7738_v8  ;;  %v1155_v6 = vadd.f32 %v1154_v3, %v1136_v0  ;;  %v7818_v8 = vor.u32 %v9348_v60, %v7815_v61  ;;  %v7658_v60 = vor.u32 %v9308_v33, %v7655_v34  ;;  %v8525_v0 = vld [vmem:[#allocation11 + $0x3e0] sm:$0xf]  ;;  %v7914_v3 = vor.u32 %v9372_v38, %v7911_v39  ;;  %v9493_v19 = vld [vmem:[#allocation11 + $0x2cc] sm:$0xf0] }
 0x111   :  { %v9525_v22 = vld [vmem:[#allocation11 + $0x3cc] sm:$0xf0]  ;;  %v8109_v33 = vld [vmem:[#allocation11 + $0xa0] sm:$0xf] }
 0x112   :  { %2305 = vmatpush.bf16.msrb.mxu2 %v7866_v9  ;;  %2324 = vmatpush.bf16.msrb.mxu3 %v7994_v13  ;;  %v1118_v9 = vpop.f32.mrf.mxu0  ;;  %v7946_v13 = vor.u32 %v9380_v1, %v7943_v2  ;;  %v10332_v20 = vadd.f32 %v1173_v31, %v1155_v6  ;;  %v9529_v1 = vld [vmem:[#allocation11 + $0x3ec] sm:$0xf0]  ;;  %v8365_v39 = vld [vmem:[#allocation11 + $0x2a0] sm:$0xf] }
 0x113   :  { %2268 = vmatpush.bf16.msrb.mxu0 %v7594_v25  ;;  %v1119_v21 = vadd.f32 %v1118_v9, %v10322_v24  ;;  %v7546_v25 = vor.u32 %v9280_v10, %v7543_v11  ;;  %v8526_v10 = vor.u32 %v9529_v1, %v8525_v0  ;;  %v9425_v34 = vld [vmem:[#allocation11 + $0xac] sm:$0xf0]  ;;  %v8349_v1 = vld [vmem:[#allocation11 + $0x280] sm:$0xf] }
 0x114   :  { %2287 = vmatpush.bf16.msrb.mxu1 %v7722_v27  ;;  %v9276_v27 = vld [vmem:[#allocation8 + $0xc] sm:$0xf]  ;;  %3451 = vrot.lane.b32.xlu0 %v10332_v20, %s10122_s7  ;;  %v9457_v38 = vld [vmem:[#allocation11 + $0x1ac] sm:$0xf0] }
 0x115   :  { %v1138_v62 = vadd.f32 %v1137_v16, %v1119_v21  ;;  %v8253_v16 = vld [vmem:[#allocation11 + $0x1c0] sm:$0xf] }
 0x116   :  { %2306 = vmatpush.bf16.msrb.mxu2 %v7850_v28  ;;  %2325 = vmatpush.bf16.msrb.mxu3 %v7978_v35  ;;  %v7527_v28 = vld [vmem:[#allocation8 + $0x18] sm:$0xf0]  ;;  %v9340_v35 = vld [vmem:[#allocation8 + $0x20c] sm:$0xf]  ;;  %v8509_v21 = vld [vmem:[#allocation11 + $0x3c0] sm:$0xf] }
 0x117   :  { %2269 = vmatpush.bf16.msrb.mxu0 %v7578_v42  ;;  %v8269_v42 = vld [vmem:[#allocation11 + $0x1e0] sm:$0xf]  ;;  %v1175_v59 = vpop.f32.mrf.mxu3  ;;  %v7786_v61 = vor.u32 %v9340_v35, %v7783_v37  ;;  %v1140_v31 = vpop.f32.mrf.mxu1  ;;  %v8510_v37 = vor.u32 %v9525_v22, %v8509_v21  ;;  %2221 = vmatmul.bf16.gmra.mxu1 %v10227_v50  ;;  %v9449_v22 = vld [vmem:[#allocation11 + $0x16c] sm:$0xf0] }
 0x118   :  { %2288 = vmatpush.bf16.msrb.mxu1 %v7706_v43  ;;  %v1156_v43 = vpop.f32.mrf.mxu2  ;;  %v8237_v35 = vld [vmem:[#allocation11 + $0x1a0] sm:$0xf]  ;;  %2202 = vmatmul.bf16.gmra.mxu0 %v10225_v44 }
 0x119   :  { %2240 = vmatmul.bf16.gmra.mxu2 %v10229_v51 }
 0x11a   :  { %2307 = vmatpush.bf16.msrb.mxu2 %v7834_v45  ;;  %2326 = vmatpush.bf16.msrb.mxu3 %v7962_v58  ;;  %v7530_v45 = vor.u32 %v9276_v27, %v7527_v28  ;;  %v1157_v58 = vadd.f32 %v1156_v43, %v1138_v62  ;;  %v1121_v2 = vpop.f32.mrf.mxu0  ;;  %v8254_v27 = vor.u32 %v9461_v17, %v8253_v16  ;;  %v9489_v62 = vld [vmem:[#allocation11 + $0x2ac] sm:$0xf0]  ;;  %v8077_v16 = vld [vmem:[#allocation11 + $0x60] sm:$0xf] }
 0x11b   :  { %2270 = vmatpush.bf16.msrb.mxu0 %v7562_v4  ;;  %v8142_v4 = vor.u32 %v9433_v41, %v8141_v40  ;;  %v1122_v6 = vadd.f32 %v1121_v2, %v10322_v24  ;;  %v8382_v28 = vor.u32 %v9493_v19, %v8381_v18  ;;  %v9521_v43 = vld [vmem:[#allocation11 + $0x3ac] sm:$0xf0]  ;;  %2259 = vmatmul.bf16.gmra.mxu3 %v10231_v56  ;;  %v8205_v18 = vld [vmem:[#allocation11 + $0x160] sm:$0xf] }
 0x11c   :  { %2289 = vmatpush.bf16.msrb.mxu1 %v7690_v7  ;;  %v8270_v7 = vor.u32 %v9465_v46, %v8269_v42  ;;  %v10339_v9 = vadd.f32 %v1175_v59, %v1157_v58  ;;  %v8493_v42 = vld [vmem:[#allocation11 + $0x3a0] sm:$0xf]  ;;  %v8110_v46 = vor.u32 %v9425_v34, %v8109_v33  ;;  %v8366_v58 = vor.u32 %v9489_v62, %v8365_v39  ;;  %v9421_v59 = vld [vmem:[#allocation11 + $0x8c] sm:$0xf0] }
 0x11d   :  { %v1141_v11 = vadd.f32 %v1140_v31, %v1122_v6  ;;  %v8494_v0 = vor.u32 %v9521_v43, %v8493_v42  ;;  %v9485_v2 = vld [vmem:[#allocation11 + $0x28c] sm:$0xf0]  ;;  %v8477_v6 = vld [vmem:[#allocation11 + $0x380] sm:$0xf] }
 0x11e   :  { %2308 = vmatpush.bf16.msrb.mxu2 %v7818_v8  ;;  %2327 = vmatpush.bf16.msrb.mxu3 %v7946_v13  ;;  %v8398_v8 = vor.u32 %v9497_v52, %v8397_v47  ;;  %v9429_v13 = vld [vmem:[#allocation11 + $0xcc] sm:$0xf0]  ;;  %v8093_v47 = vld [vmem:[#allocation11 + $0x80] sm:$0xf]  ;;  %v8238_v52 = vor.u32 %v9457_v38, %v8237_v35 }
 0x11f   :  { %2271 = vmatpush.bf16.msrb.mxu0 %v7546_v25  ;;  %v8126_v23 = vor.u32 %v9429_v13, %v8125_v12  ;;  %3453 = vrot.lane.b32.xlu1 %v10339_v9, %s10122_s7  ;;  %v1142_v40 = vpop.f32.mrf.mxu1  ;;  %v9517_v31 = vld [vmem:[#allocation11 + $0x38c] sm:$0xf0]  ;;  %v8061_v38 = vld [vmem:[#allocation11 + $0x40] sm:$0xf] }
 0x120   :  { %2290 = vmatpush.bf16.msrb.mxu1 %v7674_v30  ;;  %v1159_v25 = vpop.f32.mrf.mxu2  ;;  %v9417_v17 = vld [vmem:[#allocation11 + $0x6c] sm:$0xf0]  ;;  %v8478_v21 = vor.u32 %v9517_v31, %v8477_v6  ;;  %v8189_v62 = vld [vmem:[#allocation11 + $0x140] sm:$0xf] }
 0x121   :  { %v1160_v30 = vadd.f32 %v1159_v25, %v1141_v11  ;;  %v8350_v11 = vor.u32 %v9485_v2, %v8349_v1  ;;  %v9481_v25 = vld [vmem:[#allocation11 + $0x26c] sm:$0xf0]  ;;  %v8078_v34 = vor.u32 %v9417_v17, %v8077_v16  ;;  %v8317_v43 = vld [vmem:[#allocation11 + $0x240] sm:$0xf] }
 0x122   :  { %2309 = vmatpush.bf16.msrb.mxu2 %v7802_v32  ;;  %2328 = vmatpush.bf16.msrb.mxu3 %v7930_v36  ;;  %v1178_v32 = vpop.f32.mrf.mxu3  ;;  %v1123_v36 = vpop.f32.mrf.mxu0  ;;  %v9513_v33 = vld [vmem:[#allocation11 + $0x36c] sm:$0xf0]  ;;  %v8045_v1 = vld [vmem:[#allocation11 + $0x20] sm:$0xf] }
 0x123   :  { %2272 = vmatpush.bf16.msrb.mxu0 %v7530_v45  ;;  %v10346_v41 = vadd.f32 %v1178_v32, %v1160_v30  ;;  %v1124_v45 = vadd.f32 %v1123_v36, %v10322_v24  ;;  %v8461_v32 = vld [vmem:[#allocation11 + $0x360] sm:$0xf]  ;;  %v8206_v36 = vor.u32 %v9449_v22, %v8205_v18  ;;  %v9413_v39 = vld [vmem:[#allocation11 + $0x4c] sm:$0xf0] }
 0x124   :  { %2291 = vmatpush.bf16.msrb.mxu1 %v7658_v60  ;;  %v8221_v60 = vld [vmem:[#allocation11 + $0x180] sm:$0xf]  ;;  %v9445_v42 = vld [vmem:[#allocation11 + $0x14c] sm:$0xf0] }
 0x125   :  { %v1143_v24 = vadd.f32 %v1142_v40, %v1124_v45  ;;  %v8462_v40 = vor.u32 %v9513_v33, %v8461_v32  ;;  %v9477_v45 = vld [vmem:[#allocation11 + $0x24c] sm:$0xf0]  ;;  %v8029_v18 = vld [vmem:[#allocation11] sm:$0xf] }
 0x126   :  { %2310 = vmatpush.bf16.msrb.mxu2 %v7786_v61  ;;  %2329 = vmatpush.bf16.msrb.mxu3 %v7914_v3  ;;  %v9453_v61 = vld [vmem:[#allocation11 + $0x18c] sm:$0xf0]  ;;  %v9881_v3 = vld [vmem:[#allocation7] sm:$0xf]  ;;  %v8413_v33 = vld [vmem:[#allocation11 + $0x300] sm:$0xf] }
 0x127   :  { %3119 = vmatpush.bf16.msra.mxu0 %v8142_v4  ;;  %v10350_v4 = vperm.slane %v9881_v3, 3  ;;  %v9409_v2 = vld [vmem:[#allocation11 + $0x2c] sm:$0xf0]  ;;  %v8173_v3 = vld [vmem:[#allocation11 + $0x120] sm:$0xf]  ;;  %2292 = vmatmul.bf16.vlgmr.msrb.gmra.mxu1 %v10215_v53 }
 0x128   :  { %3138 = vmatpush.bf16.msra.mxu1 %v8270_v7  ;;  %v8094_v7 = vor.u32 %v9421_v59, %v8093_v47  ;;  %v9509_v47 = vld [vmem:[#allocation11 + $0x34c] sm:$0xf0]  ;;  %v8190_v59 = vor.u32 %v9445_v42, %v8189_v62  ;;  %2273 = vmatmul.bf16.vlgmr.msrb.gmra.mxu0 %v10213_v48  ;;  %v8046_v17 = vor.u32 %v9409_v2, %v8045_v1  ;;  %v8271_v62 = vld [vmem:[#allocation11 + $0x1f0] sm:$0xf0] }
 0x129   :  { %v9441_v31 = vld [vmem:[#allocation11 + $0x12c] sm:$0xf0]  ;;  %2311 = vmatmul.bf16.vlgmr.msrb.gmra.mxu2 %v10217_v54  ;;  %v8399_v42 = vld [vmem:[#allocation11 + $0x2f0] sm:$0xf0] }
 0x12a   :  { %3157 = vmatpush.bf16.msra.mxu2 %v8398_v8  ;;  %3176 = vmatpush.bf16.msra.mxu3 %v8526_v10  ;;  %v1161_v8 = vpop.f32.mrf.mxu2  ;;  %v8222_v10 = vor.u32 %v9453_v61, %v8221_v60  ;;  %v1180_v13 = vpop.f32.mrf.mxu3  ;;  %v8318_v60 = vor.u32 %v9477_v45, %v8317_v43  ;;  %v9469_v32 = vld [vmem:[#allocation11 + $0x20c] sm:$0xf0] }
 0x12b   :  { %3120 = vmatpush.bf16.msra.mxu0 %v8126_v23  ;;  %v1162_v12 = vadd.f32 %v1161_v8, %v1143_v24  ;;  %v1192_v19 = vpop.f32.mrf.mxu0  ;;  %v8333_v23 = vld [vmem:[#allocation11 + $0x260] sm:$0xf]  ;;  %v9473_v8 = vld [vmem:[#allocation11 + $0x22c] sm:$0xf0]  ;;  %2330 = vmatmul.bf16.vlgmr.msrb.gmra.mxu3 %v10219_v57 }
 0x12c   :  { %3139 = vmatpush.bf16.msra.mxu1 %v8254_v27  ;;  %v1193_v27 = vadd.f32 %v1192_v19, %v10350_v4  ;;  %v9405_v19 = vld [vmem:[#allocation11 + $0xc] sm:$0xf0] }
 0x12d   :  { %v10353_v30 = vadd.f32 %v1180_v13, %v1162_v12  ;;  %v8429_v12 = vld [vmem:[#allocation11 + $0x320] sm:$0xf]  ;;  %v9505_v13 = vld [vmem:[#allocation11 + $0x32c] sm:$0xf0] }
 0x12e   :  { %3158 = vmatpush.bf16.msra.mxu2 %v8382_v28  ;;  %3177 = vmatpush.bf16.msra.mxu3 %v8510_v37  ;;  %v1211_v28 = vpop.f32.mrf.mxu1  ;;  %v8334_v37 = vor.u32 %v9481_v25, %v8333_v23  ;;  %v8157_v23 = vld [vmem:[#allocation11 + $0x100] sm:$0xf]  ;;  %v9437_v25 = vld [vmem:[#allocation11 + $0x10c] sm:$0xf0] }
 0x12f   :  { %3121 = vmatpush.bf16.msra.mxu0 %v8110_v46  ;;  %v1212_v35 = vadd.f32 %v1211_v28, %v1193_v27  ;;  %v8445_v46 = vld [vmem:[#allocation11 + $0x340] sm:$0xf]  ;;  %v8430_v28 = vor.u32 %v9505_v13, %v8429_v12  ;;  %v8158_v45 = vor.u32 %v9437_v25, %v8157_v23  ;;  %v8255_v13 = vld [vmem:[#allocation11 + $0x1d0] sm:$0xf0] }
 0x130   :  { %3140 = vmatpush.bf16.msra.mxu1 %v8238_v52  ;;  %v8062_v52 = vor.u32 %v9413_v39, %v8061_v38  ;;  %v8446_v6 = vor.u32 %v9509_v47, %v8445_v46  ;;  %v8285_v27 = vld [vmem:[#allocation11 + $0x200] sm:$0xf]  ;;  %v9463_v38 = vld [vmem:[#allocation11 + $0x1e4] sm:$0xf]  ;;  %v8030_v39 = vor.u32 %v9405_v19, %v8029_v18  ;;  %v8511_v19 = vld [vmem:[#allocation11 + $0x3d0] sm:$0xf0] }
 0x131   :  { %v8286_v46 = vor.u32 %v9469_v32, %v8285_v27  ;;  %v9527_v47 = vld [vmem:[#allocation11 + $0x3e4] sm:$0xf]  ;;  %v8111_v27 = vld [vmem:[#allocation11 + $0xb0] sm:$0xf0] }
 0x132   :  { %3159 = vmatpush.bf16.msra.mxu2 %v8366_v58  ;;  %3178 = vmatpush.bf16.msra.mxu3 %v8494_v0  ;;  %v1230_v58 = vpop.f32.mrf.mxu2  ;;  %v1249_v0 = vpop.f32.mrf.mxu3  ;;  %v9523_v18 = vld [vmem:[#allocation11 + $0x3c4] sm:$0xf]  ;;  %v8239_v32 = vld [vmem:[#allocation11 + $0x1b0] sm:$0xf0] }
 0x133   :  { %3122 = vmatpush.bf16.msra.mxu0 %v8094_v7  ;;  %v1231_v61 = vadd.f32 %v1230_v58, %v1212_v35  ;;  %v1194_v24 = vpop.f32.mrf.mxu0  ;;  %v8301_v7 = vld [vmem:[#allocation11 + $0x220] sm:$0xf] }
 0x134   :  { %3141 = vmatpush.bf16.msra.mxu1 %v8222_v10  ;;  %v1195_v16 = vadd.f32 %v1194_v24, %v10350_v4  ;;  %v8302_v22 = vor.u32 %v9473_v8, %v8301_v7  ;;  %v8127_v7 = vld [vmem:[#allocation11 + $0xd0] sm:$0xf0]  ;;  %v9459_v8 = vld [vmem:[#allocation11 + $0x1c4] sm:$0xf] }
 0x135   :  { %v8258_v23 = vor.u32 %v9459_v8, %v8255_v13  ;;  %v8079_v13 = vld [vmem:[#allocation11 + $0x70] sm:$0xf0] }
 0x136   :  { %3160 = vmatpush.bf16.msra.mxu2 %v8350_v11  ;;  %3179 = vmatpush.bf16.msra.mxu3 %v8478_v21  ;;  %v1213_v10 = vpop.f32.mrf.mxu1  ;;  %v10358_v11 = vadd.f32 %v1249_v0, %v1231_v61  ;;  %v8174_v21 = vor.u32 %v9441_v31, %v8173_v3  ;;  %v8274_v3 = vor.u32 %v9463_v38, %v8271_v62  ;;  %v9427_v31 = vld [vmem:[#allocation11 + $0xc4] sm:$0xf]  ;;  %v8495_v38 = vld [vmem:[#allocation11 + $0x3b0] sm:$0xf0] }
 0x137   :  { %3123 = vmatpush.bf16.msra.mxu0 %v8078_v34  ;;  %v9501_v34 = vld [vmem:[#allocation11 + $0x30c] sm:$0xf0]  ;;  %v1214_v35 = vadd.f32 %v1213_v10, %v1195_v16  ;;  %v9491_v16 = vld [vmem:[#allocation11 + $0x2c4] sm:$0xf]  ;;  %2297 = vmatmul.bf16.gmra.mxu1 %v10227_v50 }
 0x138   :  { %3142 = vmatpush.bf16.msra.mxu1 %v8206_v36  ;;  %v9431_v36 = vld [vmem:[#allocation11 + $0xe4] sm:$0xf]  ;;  %v8414_v61 = vor.u32 %v9501_v34, %v8413_v33  ;;  %v8514_v33 = vor.u32 %v9523_v18, %v8511_v19  ;;  %2278 = vmatmul.bf16.gmra.mxu0 %v10225_v44  ;;  %v8207_v18 = vld [vmem:[#allocation11 + $0x170] sm:$0xf0] }
 0x139   :  { %v9487_v34 = vld [vmem:[#allocation11 + $0x2a4] sm:$0xf]  ;;  %2316 = vmatmul.bf16.gmra.mxu2 %v10229_v51 }
 0x13a   :  { %3161 = vmatpush.bf16.msra.mxu2 %v8334_v37  ;;  %3180 = vmatpush.bf16.msra.mxu3 %v8462_v40  ;;  %v8143_v37 = vld [vmem:[#allocation11 + $0xf0] sm:$0xf0]  ;;  %v9495_v40 = vld [vmem:[#allocation11 + $0x2e4] sm:$0xf]  ;;  %v1232_v43 = vpop.f32.mrf.mxu2 }
 0x13b   :  { %3124 = vmatpush.bf16.msra.mxu0 %v8062_v52  ;;  %v8527_v52 = vld [vmem:[#allocation11 + $0x3f0] sm:$0xf0]  ;;  %v1233_v58 = vadd.f32 %v1232_v43, %v1214_v35  ;;  %v8146_v0 = vor.u32 %v9431_v36, %v8143_v37  ;;  %v8402_v24 = vor.u32 %v9495_v40, %v8399_v42  ;;  %v9519_v37 = vld [vmem:[#allocation11 + $0x3a4] sm:$0xf]  ;;  %2335 = vmatmul.bf16.gmra.mxu3 %v10231_v56 }
 0x13c   :  { %3143 = vmatpush.bf16.msra.mxu1 %v8190_v59  ;;  %v1251_v59 = vpop.f32.mrf.mxu3  ;;  %v8530_v10 = vor.u32 %v9527_v47, %v8527_v52  ;;  %v8367_v35 = vld [vmem:[#allocation11 + $0x2b0] sm:$0xf0]  ;;  %v9479_v19 = vld [vmem:[#allocation11 + $0x264] sm:$0xf] }
 0x13e   :  { %3162 = vmatpush.bf16.msra.mxu2 %v8318_v60  ;;  %3181 = vmatpush.bf16.msra.mxu3 %v8446_v6  ;;  %v1197_v60 = vpop.f32.mrf.mxu0  ;;  %v1216_v2 = vpop.f32.mrf.mxu1  ;;  %v10363_v6 = vadd.f32 %v1251_v59, %v1233_v58  ;;  %v9419_v58 = vld [vmem:[#allocation11 + $0x84] sm:$0xf]  ;;  %v8095_v59 = vld [vmem:[#allocation11 + $0x90] sm:$0xf0] }
 0x13f   :  { %3125 = vmatpush.bf16.msra.mxu0 %v8046_v17  ;;  %v1198_v1 = vadd.f32 %v1197_v60, %v10350_v4  ;;  %v8383_v17 = vld [vmem:[#allocation11 + $0x2d0] sm:$0xf0]  ;;  %v9451_v60 = vld [vmem:[#allocation11 + $0x184] sm:$0xf] }
 0x140   :  { %3144 = vmatpush.bf16.msra.mxu1 %v8174_v21  ;;  %v8130_v21 = vor.u32 %v9427_v31, %v8127_v7  ;;  %v8386_v25 = vor.u32 %v9491_v16, %v8383_v17  ;;  %v10372_v31 = vld [vmem:[#allocation10] sm:$0xf]  ;;  %v9447_v16 = vld [vmem:[#allocation11 + $0x164] sm:$0xf] }
 0x141   :  { %v1217_v12 = vadd.f32 %v1216_v2, %v1198_v1  ;;  %v9483_v1 = vld [vmem:[#allocation11 + $0x284] sm:$0xf]  ;;  %v8351_v2 = vld [vmem:[#allocation11 + $0x290] sm:$0xf0] }
 0x142   :  { %3163 = vmatpush.bf16.msra.mxu2 %v8302_v22  ;;  %3182 = vmatpush.bf16.msra.mxu3 %v8430_v28  ;;  %v9423_v22 = vld [vmem:[#allocation11 + $0xa4] sm:$0xf]  ;;  %v1235_v36 = vpop.f32.mrf.mxu2 }
 0x143   :  { %3126 = vmatpush.bf16.msra.mxu0 %v8030_v39  ;;  %v9455_v28 = vld [vmem:[#allocation11 + $0x1a4] sm:$0xf]  ;;  %v1236_v39 = vadd.f32 %v1235_v36, %v1217_v12  ;;  %v8114_v42 = vor.u32 %v9423_v22, %v8111_v27 }
 0x144   :  { %3145 = vmatpush.bf16.msra.mxu1 %v8158_v45  ;;  %v1254_v62 = vpop.f32.mrf.mxu3  ;;  %v8242_v43 = vor.u32 %v9455_v28, %v8239_v32  ;;  %v9415_v12 = vld [vmem:[#allocation11 + $0x64] sm:$0xf]  ;;  %v10375_v32 = vperm.slane %v10372_v31, 0 }
 0x145   :  { %v10365_v47 = vadd.f32 %v1254_v62, %v1236_v39  ;;  %v8063_v39 = vld [vmem:[#allocation11 + $0x50] sm:$0xf0]  ;;  %v9443_v62 = vld [vmem:[#allocation11 + $0x144] sm:$0xf] }
 0x146   :  { %3164 = vmatpush.bf16.msra.mxu2 %v8286_v46  ;;  %3183 = vmatpush.bf16.msra.mxu3 %v8414_v61  ;;  %v1199_v40 = vpop.f32.mrf.mxu0  ;;  %v1218_v45 = vpop.f32.mrf.mxu1  ;;  %v8370_v46 = vor.u32 %v9487_v34, %v8367_v35  ;;  %v8498_v61 = vor.u32 %v9519_v37, %v8495_v38  ;;  %v8210_v34 = vor.u32 %v9447_v16, %v8207_v18  ;;  %v9411_v38 = vld [vmem:[#allocation11 + $0x44] sm:$0xf] }
 0x147   :  { %3195 = vmatpush.bf16.msrb.mxu0 %v8146_v0  ;;  %v1200_v52 = vadd.f32 %v1199_v40, %v10350_v4  ;;  %v8223_v0 = vld [vmem:[#allocation11 + $0x190] sm:$0xf0]  ;;  %v8098_v4 = vor.u32 %v9419_v58, %v8095_v59  ;;  %v9507_v58 = vld [vmem:[#allocation11 + $0x344] sm:$0xf]  ;;  %3146 = vmatmul.bf16.vlgmr.msra.gmra.mxu1 %v10215_v53 }
 0x148   :  { %3214 = vmatpush.bf16.msrb.mxu1 %v8274_v3  ;;  %v9515_v3 = vld [vmem:[#allocation11 + $0x384] sm:$0xf]  ;;  %v8226_v8 = vor.u32 %v9451_v60, %v8223_v0  ;;  %v8447_v59 = vld [vmem:[#allocation11 + $0x350] sm:$0xf0]  ;;  %v8066_v60 = vor.u32 %v9411_v38, %v8063_v39  ;;  %3127 = vmatmul.bf16.vlgmr.msra.gmra.mxu0 %v10213_v48 }
 0x149   :  { %v1219_v7 = vadd.f32 %v1218_v45, %v1200_v52  ;;  %v9475_v45 = vld [vmem:[#allocation11 + $0x244] sm:$0xf]  ;;  %v8287_v38 = vld [vmem:[#allocation11 + $0x210] sm:$0xf0]  ;;  %3165 = vmatmul.bf16.vlgmr.msra.gmra.mxu2 %v10217_v54 }
 0x14a   :  { %3233 = vmatpush.bf16.msrb.mxu2 %v8402_v24  ;;  %3252 = vmatpush.bf16.msrb.mxu3 %v8530_v10  ;;  %v8479_v24 = vld [vmem:[#allocation11 + $0x390] sm:$0xf0]  ;;  %v8354_v10 = vor.u32 %v9483_v1, %v8351_v2  ;;  %v1237_v22 = vpop.f32.mrf.mxu2  ;;  %v9407_v1 = vld [vmem:[#allocation11 + $0x24] sm:$0xf] }
 0x14b   :  { %3196 = vmatpush.bf16.msrb.mxu0 %v8130_v21  ;;  %v8482_v17 = vor.u32 %v9515_v3, %v8479_v24  ;;  %v8335_v21 = vld [vmem:[#allocation11 + $0x270] sm:$0xf0]  ;;  %v1238_v27 = vadd.f32 %v1237_v22, %v1219_v7  ;;  %v9439_v3 = vld [vmem:[#allocation11 + $0x124] sm:$0xf]  ;;  %v8450_v24 = vor.u32 %v9507_v58, %v8447_v59  ;;  %3184 = vmatmul.bf16.vlgmr.msra.gmra.mxu3 %v10219_v57  ;;  %v9466_v58 = vld [vmem:[#allocation11 + $0x1f4] sm:$0xf0] }
 0x14c   :  { %3215 = vmatpush.bf16.msrb.mxu1 %v8258_v23  ;;  %v9511_v23 = vld [vmem:[#allocation11 + $0x364] sm:$0xf]  ;;  %v1256_v28 = vpop.f32.mrf.mxu3  ;;  %v8338_v35 = vor.u32 %v9479_v19, %v8335_v21  ;;  %v8047_v2 = vld [vmem:[#allocation11 + $0x30] sm:$0xf0]  ;;  %v8405_v59 = vld [vmem:[#allocation11 + $0x2e8] sm:$0xf] }
 0x14d   :  { %v10377_v36 = vadd.f32 %v1256_v28, %v1238_v27  ;;  %v9471_v7 = vld [vmem:[#allocation11 + $0x224] sm:$0xf]  ;;  %v8050_v16 = vor.u32 %v9407_v1, %v8047_v2  ;;  %v8031_v19 = vld [vmem:[#allocation11 + $0x10] sm:$0xf0]  ;;  %v8533_v1 = vld [vmem:[#allocation11 + $0x3e8] sm:$0xf] }
 0x14e   :  { %3234 = vmatpush.bf16.msrb.mxu2 %v8386_v25  ;;  %3253 = vmatpush.bf16.msrb.mxu3 %v8514_v33  ;;  %v8463_v25 = vld [vmem:[#allocation11 + $0x370] sm:$0xf0]  ;;  %v8082_v33 = vor.u32 %v9415_v12, %v8079_v13  ;;  %v2046_v37 = vpop.f32.mrf.mxu0  ;;  %v9503_v12 = vld [vmem:[#allocation11 + $0x324] sm:$0xf]  ;;  %v9530_v2 = vld [vmem:[#allocation11 + $0x3f4] sm:$0xf0] }
 0x14f   :  { %3197 = vmatpush.bf16.msrb.mxu0 %v8114_v42  ;;  %v8466_v40 = vor.u32 %v9511_v23, %v8463_v25  ;;  %v2065_v42 = vpop.f32.mrf.mxu1  ;;  %v2047_v52 = vadd.f32 %v2046_v37, %v10375_v32  ;;  %v8431_v13 = vld [vmem:[#allocation11 + $0x330] sm:$0xf0]  ;;  %v9403_v18 = vld [vmem:[#allocation11 + $0x4] sm:$0xf] }
 0x150   :  { %3216 = vmatpush.bf16.msrb.mxu1 %v8242_v43  ;;  %v8191_v43 = vld [vmem:[#allocation11 + $0x150] sm:$0xf0]  ;;  %v9435_v28 = vld [vmem:[#allocation11 + $0x104] sm:$0xf] }
 0x151   :  { %v9499_v39 = vld [vmem:[#allocation11 + $0x304] sm:$0xf] }
 0x152   :  { %3235 = vmatpush.bf16.msrb.mxu2 %v8370_v46  ;;  %3254 = vmatpush.bf16.msrb.mxu3 %v8498_v61  ;;  %v8319_v46 = vld [vmem:[#allocation11 + $0x250] sm:$0xf0]  ;;  %v8194_v61 = vor.u32 %v9443_v62, %v8191_v43  ;;  %v8149_v43 = vld [vmem:[#allocation11 + $0xe8] sm:$0xf] }
 0x153   :  { %3198 = vmatpush.bf16.msrb.mxu0 %v8098_v4  ;;  %v8322_v0 = vor.u32 %v9475_v45, %v8319_v46  ;;  %v8175_v4 = vld [vmem:[#allocation11 + $0x130] sm:$0xf0]  ;;  %v9434_v45 = vld [vmem:[#allocation11 + $0xf4] sm:$0xf0]  ;;  %v8277_v46 = vld [vmem:[#allocation11 + $0x1e8] sm:$0xf] }
 0x154   :  { %3217 = vmatpush.bf16.msrb.mxu1 %v8226_v8  ;;  %v8303_v8 = vld [vmem:[#allocation11 + $0x230] sm:$0xf0]  ;;  %v8178_v21 = vor.u32 %v9439_v3, %v8175_v4  ;;  %v2103_v25 = vpop.f32.mrf.mxu3  ;;  %v8133_v4 = vld [vmem:[#allocation11 + $0xc8] sm:$0xf] }
 0x155   :  { %v8306_v22 = vor.u32 %v9471_v7, %v8303_v8  ;;  %v8415_v62 = vld [vmem:[#allocation11 + $0x310] sm:$0xf0]  ;;  %v8278_v8 = vor.u32 %v9466_v58, %v8277_v46  ;;  %v9458_v46 = vld [vmem:[#allocation11 + $0x1b4] sm:$0xf0] }
 0x156   :  { %3236 = vmatpush.bf16.msrb.mxu2 %v8354_v10  ;;  %3255 = vmatpush.bf16.msrb.mxu3 %v8482_v17  ;;  %v2066_v10 = vadd.f32 %v2065_v42, %v2047_v52  ;;  %v2084_v17 = vpop.f32.mrf.mxu2  ;;  %v2048_v27 = vpop.f32.mrf.mxu0  ;;  %v8034_v52 = vor.u32 %v9403_v18, %v8031_v19  ;;  %v8418_v3 = vor.u32 %v9499_v39, %v8415_v62  ;;  %v8389_v18 = vld [vmem:[#allocation11 + $0x2c8] sm:$0xf]  ;;  %v9494_v19 = vld [vmem:[#allocation11 + $0x2d4] sm:$0xf0] }
 0x157   :  { %3199 = vmatpush.bf16.msrb.mxu0 %v8082_v33  ;;  %v8159_v33 = vld [vmem:[#allocation11 + $0x110] sm:$0xf0]  ;;  %v2067_v37 = vpop.f32.mrf.mxu1  ;;  %v2049_v42 = vadd.f32 %v2048_v27, %v10375_v32  ;;  %v8117_v62 = vld [vmem:[#allocation11 + $0xa8] sm:$0xf]  ;;  %v9490_v58 = vld [vmem:[#allocation11 + $0x2b4] sm:$0xf0]  ;;  %3151 = vmatmul.bf16.gmra.mxu1 %v10227_v50 }
 0x158   :  { %3218 = vmatpush.bf16.msrb.mxu1 %v8210_v34  ;;  %v2085_v23 = vadd.f32 %v2084_v17, %v2066_v10  ;;  %v9467_v34 = vld [vmem:[#allocation11 + $0x204] sm:$0xf]  ;;  %v8534_v17 = vor.u32 %v9530_v2, %v8533_v1  ;;  %3132 = vmatmul.bf16.gmra.mxu0 %v10225_v44 }
 0x159   :  { %v2068_v7 = vadd.f32 %v2067_v37, %v2049_v42  ;;  %v8390_v37 = vor.u32 %v9494_v19, %v8389_v18  ;;  %v9426_v42 = vld [vmem:[#allocation11 + $0xb4] sm:$0xf0]  ;;  %3170 = vmatmul.bf16.gmra.mxu2 %v10229_v51 }
 0x15a   :  { %3237 = vmatpush.bf16.msrb.mxu2 %v8338_v35  ;;  %3256 = vmatpush.bf16.msrb.mxu3 %v8466_v40  ;;  %v8434_v35 = vor.u32 %v9503_v12, %v8431_v13  ;;  %v10383_v40 = vadd.f32 %v2103_v25, %v2085_v23  ;;  %v9430_v12 = vld [vmem:[#allocation11 + $0xd4] sm:$0xf0]  ;;  %v8261_v13 = vld [vmem:[#allocation11 + $0x1c8] sm:$0xf] }
 0x15b   :  { %3200 = vmatpush.bf16.msrb.mxu0 %v8066_v60  ;;  %v9498_v60 = vld [vmem:[#allocation11 + $0x2f4] sm:$0xf0]  ;;  %3189 = vmatmul.bf16.gmra.mxu3 %v10231_v56 }
 0x15c   :  { %3219 = vmatpush.bf16.msrb.mxu1 %v8194_v61  ;;  %v8162_v61 = vor.u32 %v9435_v28, %v8159_v33  ;;  %3475 = vrot.lane.b32.xlu0 %v10383_v40, %s10122_s7  ;;  %v8406_v10 = vor.u32 %v9498_v60, %v8405_v59  ;;  %v9526_v23 = vld [vmem:[#allocation11 + $0x3d4] sm:$0xf0]  ;;  %v2105_v27 = vpop.f32.mrf.mxu3  ;;  %v8134_v33 = vor.u32 %v9430_v12, %v8133_v4  ;;  %v8501_v59 = vld [vmem:[#allocation11 + $0x3a8] sm:$0xf] }
 0x15d   :  { %v9522_v60 = vld [vmem:[#allocation11 + $0x3b4] sm:$0xf0]  ;;  %v8229_v4 = vld [vmem:[#allocation11 + $0x188] sm:$0xf] }
 0x15e   :  { %3238 = vmatpush.bf16.msrb.mxu2 %v8322_v0  ;;  %3257 = vmatpush.bf16.msrb.mxu3 %v8450_v24  ;;  %v8290_v0 = vor.u32 %v9467_v34, %v8287_v38  ;;  %v8150_v24 = vor.u32 %v9434_v45, %v8149_v43  ;;  %v2051_v28 = vpop.f32.mrf.mxu0  ;;  %v8245_v43 = vld [vmem:[#allocation11 + $0x1a8] sm:$0xf]  ;;  %v9486_v12 = vld [vmem:[#allocation11 + $0x294] sm:$0xf0] }
 0x15f   :  { %3201 = vmatpush.bf16.msrb.mxu0 %v8050_v16  ;;  %v9462_v16 = vld [vmem:[#allocation11 + $0x1d4] sm:$0xf0]  ;;  %v2052_v39 = vadd.f32 %v2051_v28, %v10375_v32  ;;  %v8246_v1 = vor.u32 %v9458_v46, %v8245_v43 }
 0x160   :  { %3220 = vmatpush.bf16.msrb.mxu1 %v8178_v21  ;;  %v2086_v21 = vpop.f32.mrf.mxu2  ;;  %v8262_v34 = vor.u32 %v9462_v16, %v8261_v13  ;;  %v8485_v16 = vld [vmem:[#allocation11 + $0x388] sm:$0xf]  ;;  %v9482_v43 = vld [vmem:[#allocation11 + $0x274] sm:$0xf0] }
 0x161   :  { %v2087_v25 = vadd.f32 %v2086_v21, %v2068_v7  ;;  %v8502_v7 = vor.u32 %v9522_v60, %v8501_v59  ;;  %v9514_v46 = vld [vmem:[#allocation11 + $0x374] sm:$0xf0]  ;;  %v8069_v60 = vld [vmem:[#allocation11 + $0x48] sm:$0xf] }
 0x162   :  { %3239 = vmatpush.bf16.msrb.mxu2 %v8306_v22  ;;  %3258 = vmatpush.bf16.msrb.mxu3 %v8434_v35  ;;  %v8517_v22 = vld [vmem:[#allocation11 + $0x3c8] sm:$0xf]  ;;  %v2070_v35 = vpop.f32.mrf.mxu1 }
 0x163   :  { %3202 = vmatpush.bf16.msrb.mxu0 %v8034_v52  ;;  %v10389_v38 = vadd.f32 %v2105_v27, %v2087_v25  ;;  %v8518_v45 = vor.u32 %v9526_v23, %v8517_v22  ;;  %v8373_v52 = vld [vmem:[#allocation11 + $0x2a8] sm:$0xf] }
 0x164   :  { %3221 = vmatpush.bf16.msrb.mxu1 %v8162_v61  ;;  %v8118_v61 = vor.u32 %v9426_v42, %v8117_v62  ;;  %v8374_v2 = vor.u32 %v9490_v58, %v8373_v52  ;;  %v2108_v19 = vpop.f32.mrf.mxu3  ;;  %v9450_v62 = vld [vmem:[#allocation11 + $0x174] sm:$0xf0]  ;;  %v8341_v42 = vld [vmem:[#allocation11 + $0x268] sm:$0xf] }
 0x165   :  { %3477 = vrot.lane.b32.xlu0 %v10389_v38, %s10122_s7  ;;  %v8342_v59 = vor.u32 %v9482_v43, %v8341_v42  ;;  %v9506_v42 = vld [vmem:[#allocation11 + $0x334] sm:$0xf0] }
 0x166   :  { %3240 = vmatpush.bf16.msrb.mxu2 %v8290_v0  ;;  %3259 = vmatpush.bf16.msrb.mxu3 %v8418_v3  ;;  %v2071_v0 = vadd.f32 %v2070_v35, %v2052_v39  ;;  %v8101_v3 = vld [vmem:[#allocation11 + $0x88] sm:$0xf]  ;;  %v2053_v21 = vpop.f32.mrf.mxu0 }
 0x167   :  { %3271 = vmatpush.bf16.msra.mxu0 %v8150_v24  ;;  %v9422_v24 = vld [vmem:[#allocation11 + $0x94] sm:$0xf0]  ;;  %v2054_v28 = vadd.f32 %v2053_v21, %v10375_v32  ;;  %v8213_v35 = vld [vmem:[#allocation11 + $0x168] sm:$0xf]  ;;  %3222 = vmatmul.bf16.vlgmr.msrb.gmra.mxu1 %v10215_v53 }
 0x168   :  { %3290 = vmatpush.bf16.msra.mxu1 %v8278_v8  ;;  %v9454_v8 = vld [vmem:[#allocation11 + $0x194] sm:$0xf0]  ;;  %v2089_v13 = vpop.f32.mrf.mxu2  ;;  %v8102_v22 = vor.u32 %v9422_v24, %v8101_v3  ;;  %v8214_v58 = vor.u32 %v9450_v62, %v8213_v35  ;;  %v8325_v3 = vld [vmem:[#allocation11 + $0x248] sm:$0xf]  ;;  %3203 = vmatmul.bf16.vlgmr.msrb.gmra.mxu0 %v10213_v48 }
 0x169   :  { %v2090_v18 = vadd.f32 %v2089_v13, %v2071_v0  ;;  %v8230_v25 = vor.u32 %v9454_v8, %v8229_v4  ;;  %v8197_v0 = vld [vmem:[#allocation11 + $0x148] sm:$0xf]  ;;  %v9478_v24 = vld [vmem:[#allocation11 + $0x254] sm:$0xf0]  ;;  %v10404_v13 = vperm.slane %v10372_v31, 1  ;;  %3241 = vmatmul.bf16.vlgmr.msrb.gmra.mxu2 %v10217_v54 }
 0x16a   :  { %3309 = vmatpush.bf16.msra.mxu2 %v8406_v10  ;;  %3328 = vmatpush.bf16.msra.mxu3 %v8534_v17  ;;  %v8357_v10 = vld [vmem:[#allocation11 + $0x288] sm:$0xf]  ;;  %v9518_v17 = vld [vmem:[#allocation11 + $0x394] sm:$0xf0]  ;;  %v2072_v23 = vpop.f32.mrf.mxu1 }
 0x16b   :  { %3272 = vmatpush.bf16.msra.mxu0 %v8134_v33  ;;  %v8358_v27 = vor.u32 %v9486_v12, %v8357_v10  ;;  %v8085_v33 = vld [vmem:[#allocation11 + $0x68] sm:$0xf]  ;;  %v10396_v39 = vadd.f32 %v2108_v19, %v2090_v18  ;;  %v2073_v52 = vadd.f32 %v2072_v23, %v2054_v28  ;;  %v9510_v8 = vld [vmem:[#allocation11 + $0x354] sm:$0xf0]  ;;  %v8326_v18 = vor.u32 %v9478_v24, %v8325_v3  ;;  %v9432_v24 = vld [vmem:[#allocation11 + $0xec] sm:$0xf] }
 0x16c   :  { %3291 = vmatpush.bf16.msra.mxu1 %v8262_v34  ;;  %v9418_v34 = vld [vmem:[#allocation11 + $0x74] sm:$0xf0]  ;;  %v2110_v12 = vpop.f32.mrf.mxu3  ;;  %v8053_v21 = vld [vmem:[#allocation11 + $0x28] sm:$0xf]  ;;  %3260 = vmatmul.bf16.vlgmr.msrb.gmra.mxu3 %v10219_v57 }
 0x16d   :  { %v8086_v32 = vor.u32 %v9418_v34, %v8085_v33  ;;  %3479 = vrot.lane.b32.xlu2 %v10396_v39, %s10122_s7  ;;  %v8181_v23 = vld [vmem:[#allocation11 + $0x128] sm:$0xf]  ;;  %v9442_v33 = vld [vmem:[#allocation11 + $0x134] sm:$0xf0] }
 0x16e   :  { %3310 = vmatpush.bf16.msra.mxu2 %v8390_v37  ;;  %3329 = vmatpush.bf16.msra.mxu3 %v8518_v45  ;;  %v8486_v37 = vor.u32 %v9518_v17, %v8485_v16  ;;  %v8469_v45 = vld [vmem:[#allocation11 + $0x368] sm:$0xf]  ;;  %v2122_v19 = vpop.f32.mrf.mxu0  ;;  %v9474_v35 = vld [vmem:[#allocation11 + $0x234] sm:$0xf0] }
 0x16f   :  { %3273 = vmatpush.bf16.msra.mxu0 %v8118_v61  ;;  %v9414_v61 = vld [vmem:[#allocation11 + $0x54] sm:$0xf0]  ;;  %v8309_v34 = vld [vmem:[#allocation11 + $0x228] sm:$0xf] }
 0x170   :  { %3292 = vmatpush.bf16.msra.mxu1 %v8246_v1  ;;  %v8470_v1 = vor.u32 %v9514_v46, %v8469_v45  ;;  %v2091_v4 = vpop.f32.mrf.mxu2  ;;  %v8070_v16 = vor.u32 %v9414_v61, %v8069_v60  ;;  %v8437_v62 = vld [vmem:[#allocation11 + $0x328] sm:$0xf]  ;;  %v9406_v46 = vld [vmem:[#allocation11 + $0x14] sm:$0xf0] }
 0x171   :  { %v2092_v10 = vadd.f32 %v2091_v4, %v2073_v52  ;;  %v8037_v45 = vld [vmem:[#allocation11 + $0x8] sm:$0xf]  ;;  %v8310_v52 = vor.u32 %v9474_v35, %v8309_v34  ;;  %v8438_v61 = vor.u32 %v9506_v42, %v8437_v62  ;;  %v8151_v4 = vld [vmem:[#allocation11 + $0xf8] sm:$0xf0] }
 0x172   :  { %3311 = vmatpush.bf16.msra.mxu2 %v8374_v2  ;;  %3330 = vmatpush.bf16.msra.mxu3 %v8502_v7  ;;  %v9446_v2 = vld [vmem:[#allocation11 + $0x154] sm:$0xf0]  ;;  %v8453_v7 = vld [vmem:[#allocation11 + $0x348] sm:$0xf]  ;;  %v2141_v28 = vpop.f32.mrf.mxu1  ;;  %v8154_v34 = vor.u32 %v9432_v24, %v8151_v4  ;;  %v9424_v4 = vld [vmem:[#allocation11 + $0xac] sm:$0xf] }
 0x173   :  { %3274 = vmatpush.bf16.msra.mxu0 %v8102_v22  ;;  %v8198_v17 = vor.u32 %v9446_v2, %v8197_v0  ;;  %v9410_v22 = vld [vmem:[#allocation11 + $0x34] sm:$0xf0]  ;;  %v8293_v60 = vld [vmem:[#allocation11 + $0x208] sm:$0xf] }
 0x174   :  { %3293 = vmatpush.bf16.msra.mxu1 %v8230_v25  ;;  %v8454_v25 = vor.u32 %v9510_v8, %v8453_v7  ;;  %v8054_v43 = vor.u32 %v9410_v22, %v8053_v21  ;;  %v9470_v0 = vld [vmem:[#allocation11 + $0x214] sm:$0xf0]  ;;  %v9464_v7 = vld [vmem:[#allocation11 + $0x1ec] sm:$0xf]  ;;  %v8038_v8 = vor.u32 %v9406_v46, %v8037_v45  ;;  %v2179_v22 = vpop.f32.mrf.mxu3  ;;  %v8135_v45 = vld [vmem:[#allocation11 + $0xd8] sm:$0xf0] }
 0x175   :  { %v9502_v2 = vld [vmem:[#allocation11 + $0x314] sm:$0xf0]  ;;  %v9460_v46 = vld [vmem:[#allocation11 + $0x1cc] sm:$0xf] }
 0x176   :  { %3312 = vmatpush.bf16.msra.mxu2 %v8358_v27  ;;  %3331 = vmatpush.bf16.msra.mxu3 %v8486_v37  ;;  %v10406_v27 = vadd.f32 %v2110_v12, %v2092_v10  ;;  %v2123_v37 = vadd.f32 %v2122_v19, %v10404_v13  ;;  %v8279_v12 = vld [vmem:[#allocation11 + $0x1f8] sm:$0xf0]  ;;  %v8294_v19 = vor.u32 %v9470_v0, %v8293_v60 }
 0x177   :  { %3275 = vmatpush.bf16.msra.mxu0 %v8086_v32  ;;  %v8182_v32 = vor.u32 %v9442_v33, %v8181_v23  ;;  %v9528_v23 = vld [vmem:[#allocation11 + $0x3ec] sm:$0xf]  ;;  %v2124_v33 = vpop.f32.mrf.mxu0  ;;  %v8391_v60 = vld [vmem:[#allocation11 + $0x2d8] sm:$0xf0]  ;;  %3227 = vmatmul.bf16.gmra.mxu1 %v10227_v50 }
 0x178   :  { %3294 = vmatpush.bf16.msra.mxu1 %v8214_v58  ;;  %v8165_v58 = vld [vmem:[#allocation11 + $0x108] sm:$0xf]  ;;  %3481 = vrot.lane.b32.xlu2 %v10406_v27, %s10122_s7  ;;  %v2142_v3 = vadd.f32 %v2141_v28, %v2123_v37  ;;  %v2160_v10 = vpop.f32.mrf.mxu2  ;;  %v8282_v37 = vor.u32 %v9464_v7, %v8279_v12  ;;  %v2125_v42 = vadd.f32 %v2124_v33, %v10404_v13  ;;  %v8519_v0 = vld [vmem:[#allocation11 + $0x3d8] sm:$0xf0] }
 0x179   :  { %v8119_v7 = vld [vmem:[#allocation11 + $0xb8] sm:$0xf0]  ;;  %3208 = vmatmul.bf16.gmra.mxu0 %v10225_v44  ;;  %3246 = vmatmul.bf16.gmra.mxu2 %v10229_v51 }
 0x17a   :  { %3313 = vmatpush.bf16.msra.mxu2 %v8342_v59  ;;  %3332 = vmatpush.bf16.msra.mxu3 %v8470_v1  ;;  %v9438_v59 = vld [vmem:[#allocation11 + $0x114] sm:$0xf0]  ;;  %v8421_v1 = vld [vmem:[#allocation11 + $0x308] sm:$0xf]  ;;  %v2161_v21 = vadd.f32 %v2160_v10, %v2142_v3  ;;  %v2143_v35 = vpop.f32.mrf.mxu1 }
 0x17b   :  { %3276 = vmatpush.bf16.msra.mxu0 %v8070_v16  ;;  %v9496_v16 = vld [vmem:[#allocation11 + $0x2ec] sm:$0xf]  ;;  %v8422_v28 = vor.u32 %v9502_v2, %v8421_v1  ;;  %v2144_v2 = vadd.f32 %v2143_v35, %v2125_v42 }
 0x17c   :  { %3295 = vmatpush.bf16.msra.mxu1 %v8198_v17  ;;  %v8407_v17 = vld [vmem:[#allocation11 + $0x2f8] sm:$0xf0]  ;;  %v9452_v42 = vld [vmem:[#allocation11 + $0x18c] sm:$0xf]  ;;  %3265 = vmatmul.bf16.gmra.mxu3 %v10231_v56 }
 0x17d   :  { %v8410_v62 = vor.u32 %v9496_v16, %v8407_v17  ;;  %v8247_v16 = vld [vmem:[#allocation11 + $0x1b8] sm:$0xf0]  ;;  %v9488_v17 = vld [vmem:[#allocation11 + $0x2ac] sm:$0xf] }
 0x17e   :  { %3314 = vmatpush.bf16.msra.mxu2 %v8326_v18  ;;  %3333 = vmatpush.bf16.msra.mxu3 %v8454_v25  ;;  %v8166_v18 = vor.u32 %v9438_v59, %v8165_v58  ;;  %v8535_v25 = vld [vmem:[#allocation11 + $0x3f8] sm:$0xf0]  ;;  %v9492_v59 = vld [vmem:[#allocation11 + $0x2cc] sm:$0xf] }
 0x17f   :  { %3277 = vmatpush.bf16.msra.mxu0 %v8054_v43  ;;  %v9428_v43 = vld [vmem:[#allocation11 + $0xcc] sm:$0xf]  ;;  %v8263_v58 = vld [vmem:[#allocation11 + $0x1d8] sm:$0xf0]  ;;  %v8394_v24 = vor.u32 %v9492_v59, %v8391_v60  ;;  %v2127_v35 = vpop.f32.mrf.mxu0 }
 0x180   :  { %3296 = vmatpush.bf16.msra.mxu1 %v8182_v32  ;;  %v10416_v32 = vadd.f32 %v2179_v22, %v2161_v21  ;;  %v8138_v1 = vor.u32 %v9428_v43, %v8135_v45  ;;  %v8266_v3 = vor.u32 %v9460_v46, %v8263_v58  ;;  %v2162_v12 = vpop.f32.mrf.mxu2  ;;  %v2181_v21 = vpop.f32.mrf.mxu3  ;;  %v9520_v22 = vld [vmem:[#allocation11 + $0x3ac] sm:$0xf]  ;;  %v8231_v46 = vld [vmem:[#allocation11 + $0x198] sm:$0xf0]  ;;  %v2128_v59 = vadd.f32 %v2127_v35, %v10404_v13 }
 0x181   :  { %v8359_v58 = vld [vmem:[#allocation11 + $0x298] sm:$0xf0]  ;;  %v9516_v60 = vld [vmem:[#allocation11 + $0x38c] sm:$0xf] }
 0x182   :  { %3315 = vmatpush.bf16.msra.mxu2 %v8310_v52  ;;  %3334 = vmatpush.bf16.msra.mxu3 %v8438_v61  ;;  %v8538_v52 = vor.u32 %v9528_v23, %v8535_v25  ;;  %v9524_v61 = vld [vmem:[#allocation11 + $0x3cc] sm:$0xf]  ;;  %v8503_v23 = vld [vmem:[#allocation11 + $0x3b8] sm:$0xf0]  ;;  %v8122_v25 = vor.u32 %v9424_v4, %v8119_v7  ;;  %v2146_v45 = vpop.f32.mrf.mxu1 }
 0x183   :  { %3278 = vmatpush.bf16.msra.mxu0 %v8038_v8  ;;  %v9456_v8 = vld [vmem:[#allocation11 + $0x1ac] sm:$0xf]  ;;  %v8522_v10 = vor.u32 %v9524_v61, %v8519_v0  ;;  %3487 = vrot.lane.b32.xlu2 %v10416_v32, %s10122_s7  ;;  %v8506_v43 = vor.u32 %v9520_v22, %v8503_v23  ;;  %v8487_v61 = vld [vmem:[#allocation11 + $0x398] sm:$0xf0] }
 0x184   :  { %3297 = vmatpush.bf16.msra.mxu1 %v8166_v18  ;;  %v8375_v18 = vld [vmem:[#allocation11 + $0x2b8] sm:$0xf0]  ;;  %v9448_v4 = vld [vmem:[#allocation11 + $0x16c] sm:$0xf]  ;;  %v8490_v7 = vor.u32 %v9516_v60, %v8487_v61 }
 0x185   :  { %v9412_v35 = vld [vmem:[#allocation11 + $0x4c] sm:$0xf]  ;;  %v8455_v61 = vld [vmem:[#allocation11 + $0x358] sm:$0xf0] }
 0x186   :  { %3316 = vmatpush.bf16.msra.mxu2 %v8294_v19  ;;  %3335 = vmatpush.bf16.msra.mxu3 %v8422_v28  ;;  %v2163_v19 = vadd.f32 %v2162_v12, %v2144_v2  ;;  %v8250_v28 = vor.u32 %v9456_v8, %v8247_v16  ;;  %v8215_v8 = vld [vmem:[#allocation11 + $0x178] sm:$0xf0]  ;;  %v2147_v16 = vadd.f32 %v2146_v45, %v2128_v59  ;;  %v9508_v60 = vld [vmem:[#allocation11 + $0x34c] sm:$0xf] }
 0x187   :  { %3347 = vmatpush.bf16.msrb.mxu0 %v8154_v34  ;;  %v8378_v34 = vor.u32 %v9488_v17, %v8375_v18  ;;  %v8343_v12 = vld [vmem:[#allocation11 + $0x278] sm:$0xf0]  ;;  %v9512_v17 = vld [vmem:[#allocation11 + $0x36c] sm:$0xf]  ;;  %3298 = vmatmul.bf16.vlgmr.msra.gmra.mxu1 %v10215_v53 }
 0x188   :  { %3366 = vmatpush.bf16.msrb.mxu1 %v8282_v37  ;;  %v10420_v33 = vadd.f32 %v2181_v21, %v2163_v19  ;;  %v9420_v37 = vld [vmem:[#allocation11 + $0x8c] sm:$0xf]  ;;  %v8471_v18 = vld [vmem:[#allocation11 + $0x378] sm:$0xf0]  ;;  %v2165_v19 = vpop.f32.mrf.mxu2  ;;  %v2184_v23 = vpop.f32.mrf.mxu3 }
 0x189   :  { %v2166_v22 = vadd.f32 %v2165_v19, %v2147_v16  ;;  %v8199_v45 = vld [vmem:[#allocation11 + $0x158] sm:$0xf0]  ;;  %v9504_v16 = vld [vmem:[#allocation11 + $0x32c] sm:$0xf]  ;;  %3279 = vmatmul.bf16.vlgmr.msra.gmra.mxu0 %v10213_v48  ;;  %3317 = vmatmul.bf16.vlgmr.msra.gmra.mxu2 %v10217_v54 }
 0x18a   :  { %3385 = vmatpush.bf16.msrb.mxu2 %v8410_v62  ;;  %3404 = vmatpush.bf16.msrb.mxu3 %v8538_v52  ;;  %v8103_v62 = vld [vmem:[#allocation11 + $0x98] sm:$0xf0]  ;;  %v9484_v52 = vld [vmem:[#allocation11 + $0x28c] sm:$0xf] }
 0x18b   :  { %3348 = vmatpush.bf16.msrb.mxu0 %v8138_v1  ;;  %3489 = vrot.lane.b32.xlu0 %v10420_v33, %s10122_s7  ;;  %v8106_v0 = vor.u32 %v9420_v37, %v8103_v62  ;;  %v8234_v1 = vor.u32 %v9452_v42, %v8231_v46  ;;  %v8362_v2 = vor.u32 %v9484_v52, %v8359_v58  ;;  %v8071_v37 = vld [vmem:[#allocation11 + $0x58] sm:$0xf0]  ;;  %v9444_v62 = vld [vmem:[#allocation11 + $0x14c] sm:$0xf] }
 0x18c   :  { %3367 = vmatpush.bf16.msrb.mxu1 %v8266_v3  ;;  %v9416_v3 = vld [vmem:[#allocation11 + $0x6c] sm:$0xf]  ;;  %3457 = vrot.lane.b32.xlu2 %v10353_v30, %s10122_s7  ;;  %v8474_v42 = vor.u32 %v9512_v17, %v8471_v18  ;;  %v8327_v52 = vld [vmem:[#allocation11 + $0x258] sm:$0xf0]  ;;  %v10430_v58 = vadd.f32 %v2184_v23, %v2166_v22 }
 0x18d   :  { %v9476_v46 = vld [vmem:[#allocation11 + $0x24c] sm:$0xf]  ;;  %v8439_v17 = vld [vmem:[#allocation11 + $0x338] sm:$0xf0]  ;;  %3336 = vmatmul.bf16.vlgmr.msra.gmra.mxu3 %v10219_v57 }
 0x18e   :  { %3386 = vmatpush.bf16.msrb.mxu2 %v8394_v24  ;;  %3405 = vmatpush.bf16.msrb.mxu3 %v8522_v10  ;;  %v8087_v24 = vld [vmem:[#allocation11 + $0x78] sm:$0xf0]  ;;  %v9480_v10 = vld [vmem:[#allocation11 + $0x26c] sm:$0xf] }
 0x18f   :  { %3349 = vmatpush.bf16.msrb.mxu0 %v8122_v25  ;;  %v8090_v21 = vor.u32 %v9416_v3, %v8087_v24  ;;  %v8218_v25 = vor.u32 %v9448_v4, %v8215_v8  ;;  %v9408_v3 = vld [vmem:[#allocation11 + $0x2c] sm:$0xf]  ;;  %v8055_v24 = vld [vmem:[#allocation11 + $0x38] sm:$0xf0] }
 0x190   :  { %3368 = vmatpush.bf16.msrb.mxu1 %v8250_v28  ;;  %v8346_v28 = vor.u32 %v9480_v10, %v8343_v12  ;;  %v9440_v4 = vld [vmem:[#allocation11 + $0x12c] sm:$0xf]  ;;  %v8183_v8 = vld [vmem:[#allocation11 + $0x138] sm:$0xf0]  ;;  %v2167_v18 = vpop.f32.mrf.mxu2  ;;  %v8058_v19 = vor.u32 %v9408_v3, %v8055_v24  ;;  %v2186_v22 = vpop.f32.mrf.mxu3  ;;  %v1391_v24 = vperm.slane %v10372_v31, 2 }
 0x191   :  { %v8311_v10 = vld [vmem:[#allocation11 + $0x238] sm:$0xf0]  ;;  %v8186_v23 = vor.u32 %v9440_v4, %v8183_v8 }
 0x192   :  { %3387 = vmatpush.bf16.msrb.mxu2 %v8378_v34  ;;  %3406 = vmatpush.bf16.msrb.mxu3 %v8506_v43  ;;  %v2129_v34 = vpop.f32.mrf.mxu0  ;;  %v2148_v43 = vpop.f32.mrf.mxu1 }
 0x193   :  { %3350 = vmatpush.bf16.msrb.mxu0 %v8106_v0  ;;  %v2130_v59 = vadd.f32 %v2129_v34, %v10404_v13  ;;  %v8074_v0 = vor.u32 %v9412_v35, %v8071_v37  ;;  %v9472_v13 = vld [vmem:[#allocation11 + $0x22c] sm:$0xf]  ;;  %3491 = vrot.lane.b32.xlu0 %v10430_v58, %s10122_s7  ;;  %v8039_v35 = vld [vmem:[#allocation11 + $0x18] sm:$0xf0] }
 0x194   :  { %3369 = vmatpush.bf16.msrb.mxu1 %v8234_v1  ;;  %v8202_v1 = vor.u32 %v9444_v62, %v8199_v45  ;;  %3463 = vrot.lane.b32.xlu2 %v10358_v11, %s10122_s7  ;;  %v9404_v34 = vld [vmem:[#allocation11 + $0xc] sm:$0xf]  ;;  %v8442_v62 = vor.u32 %v9504_v16, %v8439_v17 }
 0x195   :  { %v2149_v12 = vadd.f32 %v2148_v43, %v2130_v59  ;;  %v9436_v37 = vld [vmem:[#allocation11 + $0x10c] sm:$0xf]  ;;  %v8167_v43 = vld [vmem:[#allocation11 + $0x118] sm:$0xf0] }
 0x196   :  { %3388 = vmatpush.bf16.msrb.mxu2 %v8362_v2  ;;  %3407 = vmatpush.bf16.msrb.mxu3 %v8490_v7  ;;  %v8330_v2 = vor.u32 %v9476_v46, %v8327_v52  ;;  %v8458_v7 = vor.u32 %v9508_v60, %v8455_v61  ;;  %v9468_v45 = vld [vmem:[#allocation11 + $0x20c] sm:$0xf]  ;;  %v8295_v46 = vld [vmem:[#allocation11 + $0x218] sm:$0xf0]  ;;  %v8042_v61 = vor.u32 %v9404_v34, %v8039_v35 }
 0x197   :  { %3351 = vmatpush.bf16.msrb.mxu0 %v8090_v21  ;;  %v2168_v21 = vadd.f32 %v2167_v18, %v2149_v12  ;;  %v9500_v59 = vld [vmem:[#allocation11 + $0x30c] sm:$0xf]  ;;  %v8423_v60 = vld [vmem:[#allocation11 + $0x318] sm:$0xf0]  ;;  %3303 = vmatmul.bf16.gmra.mxu1 %v10227_v50 }
 0x198   :  { %3370 = vmatpush.bf16.msrb.mxu1 %v8218_v25  ;;  %v8314_v25 = vor.u32 %v9472_v13, %v8311_v10  ;;  %v2236_v3 = vpop.f32.mrf.mxu2  ;;  %v2255_v4 = vpop.f32.mrf.mxu3 }
 0x199   :  { %v10438_v52 = vadd.f32 %v2186_v22, %v2168_v21  ;;  %3284 = vmatmul.bf16.gmra.mxu0 %v10225_v44  ;;  %3322 = vmatmul.bf16.gmra.mxu2 %v10229_v51 }
 0x19a   :  { %3389 = vmatpush.bf16.msrb.mxu2 %v8346_v28  ;;  %3408 = vmatpush.bf16.msrb.mxu3 %v8474_v42  ;;  %v2198_v28 = vpop.f32.mrf.mxu0  ;;  %v2217_v42 = vpop.f32.mrf.mxu1 }
 0x19b   :  { %3352 = vmatpush.bf16.msrb.mxu0 %v8074_v0  ;;  %v8170_v0 = vor.u32 %v9436_v37, %v8167_v43  ;;  %3493 = vrot.lane.b32.xlu1 %v10438_v52, %s10122_s7  ;;  %v2199_v18 = vadd.f32 %v2198_v28, %v1391_v24 }
 0x19c   :  { %3371 = vmatpush.bf16.msrb.mxu1 %v8202_v1  ;;  %v8298_v1 = vor.u32 %v9468_v45, %v8295_v46  ;;  %3465 = vrot.lane.b32.xlu0 %v10363_v6, %s10122_s7  ;;  %v1392_v45 = vperm.slane %v10372_v31, 3 }
 0x19d   :  { %3341 = vmatmul.bf16.gmra.mxu3 %v10231_v56 }
 0x19e   :  { %3390 = vmatpush.bf16.msrb.mxu2 %v8330_v2  ;;  %3409 = vmatpush.bf16.msrb.mxu3 %v8458_v7  ;;  %v8426_v2 = vor.u32 %v9500_v59, %v8423_v60 }
 0x19f   :  { %3353 = vmatpush.bf16.msrb.mxu0 %v8058_v19 }
 0x1a0   :  { %3372 = vmatpush.bf16.msrb.mxu1 %v8186_v23  ;;  %v2238_v12 = vpop.f32.mrf.mxu2  ;;  %v2257_v17 = vpop.f32.mrf.mxu3 }
 0x1a2   :  { %3391 = vmatpush.bf16.msrb.mxu2 %v8314_v25  ;;  %3410 = vmatpush.bf16.msrb.mxu3 %v8442_v62  ;;  %v2200_v7 = vpop.f32.mrf.mxu0  ;;  %v2219_v8 = vpop.f32.mrf.mxu1 }
 0x1a3   :  { %3354 = vmatpush.bf16.msrb.mxu0 %v8042_v61  ;;  %v2201_v13 = vadd.f32 %v2200_v7, %v1391_v24  ;;  %3455 = vrot.lane.b32.xlu1 %v10346_v41, %s10122_s7 }
 0x1a4   :  { %3373 = vmatpush.bf16.msrb.mxu1 %v8170_v0  ;;  %3467 = vrot.lane.b32.xlu0 %v10365_v47, %s10122_s7  ;;  %v10480_v0 = vpop.permute.xlu0 %3431 }
 0x1a5   :  { %v2220_v10 = vadd.f32 %v2219_v8, %v2201_v13 }
 0x1a6   :  { %3392 = vmatpush.bf16.msrb.mxu2 %v8298_v1  ;;  %3411 = vmatpush.bf16.msrb.mxu3 %v8426_v2 }
 0x1a7   :  { %8539 = vmatpush.xpose.msk.msra.mxu0 %vm3615_vm0, %v10383_v40  ;;  %v2239_v16 = vadd.f32 %v2238_v12, %v2220_v10  ;;  %3374 = vmatmul.bf16.vlgmr.msrb.gmra.mxu1 %v10215_v53 }
 0x1a8   :  { %8541 = vmatpush.xpose.msk.msra.mxu1 %vm3615_vm0, %v10389_v38  ;;  %v2241_v23 = vpop.f32.mrf.mxu2  ;;  %v2260_v34 = vpop.f32.mrf.mxu3 }
 0x1a9   :  { %v10461_v38 = vadd.f32 %v2257_v17, %v2239_v16  ;;  %3355 = vmatmul.bf16.vlgmr.msrb.gmra.mxu0 %v10213_v48  ;;  %3393 = vmatmul.bf16.vlgmr.msrb.gmra.mxu2 %v10217_v54 }
 0x1aa   :  { %8543 = vmatpush.xpose.msk.msra.mxu2 %vm3615_vm0, %v10396_v39  ;;  %8545 = vmatpush.xpose.msk.msra.mxu3 %vm3615_vm0, %v10406_v27  ;;  %v2203_v40 = vpop.f32.mrf.mxu0  ;;  %v2222_v19 = vpop.f32.mrf.mxu1  ;;  %v2218_v39 = vadd.f32 %v2217_v42, %v2199_v18 }
 0x1ab   :  { %v2204_v21 = vadd.f32 %v2203_v40, %v1391_v24  ;;  %3501 = vrot.lane.b32.xlu2 %v10461_v38, %s10122_s7  ;;  %3469 = vrot.lane.b32.xlu1 %v10377_v36, %s10122_s7 }
 0x1ac   :  { %v2237_v22 = vadd.f32 %v2236_v3, %v2218_v39  ;;  %v10488_v10 = vpop.permute.xlu0 %3445 }
 0x1ad   :  { %v2223_v27 = vadd.f32 %v2222_v19, %v2204_v21  ;;  %3412 = vmatmul.bf16.vlgmr.msrb.gmra.mxu3 %v10219_v57 }
 0x1ae   :  { %v10472_v42 = vadd.f32 %v2255_v4, %v2237_v22 }
 0x1af   :  { %v2242_v25 = vadd.f32 %v2241_v23, %v2223_v27 }
 0x1b0   :  { %v2243_v46 = vpop.f32.mrf.mxu2  ;;  %v2262_v60 = vpop.f32.mrf.mxu3 }
 0x1b1   :  { %v10470_v37 = vadd.f32 %v2260_v34, %v2242_v25 }
 0x1b2   :  { %v2205_v35 = vpop.f32.mrf.mxu0  ;;  %v2224_v28 = vpop.f32.mrf.mxu1 }
 0x1b3   :  { %v2206_v62 = vadd.f32 %v2205_v35, %v1391_v24  ;;  %3503 = vrot.lane.b32.xlu2 %v10470_v37, %s10122_s7  ;;  %3499 = vrot.lane.b32.xlu1 %v10472_v42, %s10122_s7  ;;  %v10484_v24 = vpop.permute.xlu2 %3441 }
 0x1b4   :  { %v10502_v53 = vpop.permute.xlu0 %3451 }
 0x1b5   :  { %v2225_v43 = vadd.f32 %v2224_v28, %v2206_v62 }
 0x1b7   :  { %v2244_v59 = vadd.f32 %v2243_v46, %v2225_v43  ;;  %3379 = vmatmul.bf16.gmra.mxu1 %v10227_v50 }
 0x1b8   :  { %v2312_v7 = vpop.f32.mrf.mxu2  ;;  %v2331_v13 = vpop.f32.mrf.mxu3 }
 0x1b9   :  { %v10482_v2 = vadd.f32 %v2262_v60, %v2244_v59  ;;  %3360 = vmatmul.bf16.gmra.mxu0 %v10225_v44  ;;  %3398 = vmatmul.bf16.gmra.mxu2 %v10229_v51  ;;  %v3428_v44 = vpop.permute.xlu1 %3427 }
 0x1ba   :  { %v2274_v61 = vpop.f32.mrf.mxu0  ;;  %v2293_v1 = vpop.f32.mrf.mxu1 }
 0x1bb   :  { %v2275_v3 = vadd.f32 %v2274_v61, %v1392_v45  ;;  %3505 = vrot.lane.b32.xlu0 %v10482_v2, %s10122_s7  ;;  %v10498_v40 = vpop.permute.xlu2 %3443 }
 0x1bd   :  { %v2294_v4 = vadd.f32 %v2293_v1, %v2275_v3  ;;  %3417 = vmatmul.bf16.gmra.mxu3 %v10231_v56  ;;  %v10520_v56 = vld [vmem:[%s11759_s6] sm:$0xf]  ;;  %s10123_s6 = smov [#allocation16]  }
 0x1be   :  { %s6984_s18 = sshll.u32 %s10123_s6, 4  ;;  %s6985_s18 = int_to_ptr.vmem [resolvable:$true] %s6984_s18 }
 0x1bf   :  { %v2313_v8 = vadd.f32 %v2312_v7, %v2294_v4 }
 0x1c0   :  { %v2314_v19 = vpop.f32.mrf.mxu2  ;;  %v2333_v39 = vpop.f32.mrf.mxu3 }
 0x1c1   :  { %v10493_v16 = vadd.f32 %v2331_v13, %v2313_v8  ;;  %v2471_v8 = vperm.slane %v10520_v56, 0  ;;  %v3430_v13 = vpop.permute.xlu1 %3429 }
 0x1c2   :  { %v2276_v31 = vpop.f32.mrf.mxu0  ;;  %v2295_v12 = vpop.f32.mrf.mxu1 }
 0x1c3   :  { %v2277_v17 = vadd.f32 %v2276_v31, %v1392_v45  ;;  %3511 = vrot.lane.b32.xlu0 %v10493_v16, %s10122_s7 }
 0x1c5   :  { %v2296_v18 = vadd.f32 %v2295_v12, %v2277_v17 }
 0x1c7   :  { %v2315_v21 = vadd.f32 %v2314_v19, %v2296_v18  ;;  %v3480_v57 = vpop.permute.xlu2 %3479  ;;  %8542 = vmatmul.msk.f32.vlgmr.msra.gmra.mxu1 %vm3615_vm0, %v10276_v29 }
 0x1c8   :  { %8551 = vmatpush.xpose.msk.msrb.mxu2 %vm3615_vm0, %v3480_v57  ;;  %v2317_v25 = vpop.f32.mrf.mxu2  ;;  %v2336_v35 = vpop.f32.mrf.mxu3 }
 0x1c9   :  { %v10500_v48 = vadd.f32 %v2333_v39, %v2315_v21  ;;  %8540 = vmatmul.msk.f32.vlgmr.msra.gmra.mxu0 %vm3615_vm0, %v10271_v55  ;;  %8544 = vmatmul.msk.f32.vlgmr.msra.gmra.mxu2 %vm3615_vm0, %v10285_v14 }
 0x1ca   :  { %v2279_v27 = vpop.f32.mrf.mxu0  ;;  %v2298_v54 = vpop.f32.mrf.mxu1 }
 0x1cb   :  { %v2280_v22 = vadd.f32 %v2279_v27, %v1392_v45  ;;  %3513 = vrot.lane.b32.xlu1 %v10500_v48, %s10122_s7  ;;  %v3434_v27 = vpop.permute.xlu1 %3433 }
 0x1cc   :  { %8559 = vmatpush.xpose.msk.msra.mxu2 %vm3615_vm0, %v10430_v58 }
 0x1cd   :  { %v2299_v23 = vadd.f32 %v2298_v54, %v2280_v22  ;;  %8546 = vmatmul.msk.f32.vlgmr.msra.gmra.mxu3 %vm3615_vm0, %v10293_v49 }
 0x1ce   :  { %v3476_v43 = vpop.permute.xlu0 %3475 }
 0x1cf   :  { %v2318_v34 = vadd.f32 %v2317_v25, %v2299_v23  ;;  %8547 = vmatpush.xpose.msk.msrb.mxu0 %vm3615_vm0, %v3476_v43 }
 0x1d0   :  { %v2319_v51 = vpop.f32.mrf.mxu2  ;;  %v2338_v1 = vpop.f32.mrf.mxu3 }
 0x1d1   :  { %v10511_v46 = vadd.f32 %v2336_v35, %v2318_v34  ;;  %8552 = vmatmul.msk.f32.vlgmr.msrb.gmra.mxu2 %vm3615_vm0, %v10480_v0 }
 0x1d2   :  { %v2281_v28 = vpop.f32.mrf.mxu0  ;;  %v2300_v62 = vpop.f32.mrf.mxu1  ;;  %8548 = vmatmul.msk.f32.vlgmr.msrb.gmra.mxu0 %vm3615_vm0, %v3428_v44 }
 0x1d3   :  { %v2282_v59 = vadd.f32 %v2281_v28, %v1392_v45  ;;  %v3482_v60 = vpop.permute.xlu2 %3481  ;;  %3515 = vrot.lane.b32.xlu1 %v10511_v46, %s10122_s7  ;;  %8555 = vmatpush.xpose.msk.msra.mxu0 %vm3615_vm0, %v10416_v32 }
 0x1d4   :  { %8553 = vmatpush.xpose.msk.msrb.mxu3 %vm3615_vm0, %v3482_v60 }
 0x1d5   :  { %v2301_v50 = vadd.f32 %v2300_v62, %v2282_v59  ;;  %v3440_v62 = vpop.permute.xlu1 %3439 }
 0x1d7   :  { %v2320_v61 = vadd.f32 %v2319_v51, %v2301_v50  ;;  %v3478_v4 = vpop.permute.xlu0 %3477  ;;  %8554 = vmatmul.msk.f32.vlgmr.msrb.gmra.mxu3 %vm3615_vm0, %v3434_v27 }
 0x1d8   :  { %8549 = vmatpush.xpose.msk.msrb.mxu1 %vm3615_vm0, %v3478_v4  ;;  %v3166_v31 = vpop.f32.mrf.mxu2  ;;  %v3185_v17 = vpop.f32.mrf.mxu3  ;;  %8561 = vmatpush.xpose.msk.msra.mxu3 %vm3615_vm0, %v10438_v52 }
 0x1d9   :  { %v10522_v7 = vadd.f32 %v2338_v1, %v2320_v61  ;;  %8560 = vmatmul.msk.f32.vlgmr.msra.gmra.mxu2 %vm3615_vm0, %v10314_v63 }
 0x1da   :  { %v3128_v3 = vpop.f32.mrf.mxu0  ;;  %v3147_v45 = vpop.f32.mrf.mxu1  ;;  %8556 = vmatmul.msk.f32.vlgmr.msra.gmra.mxu0 %vm3615_vm0, %v10301_v5 }
 0x1db   :  { %3517 = vrot.lane.b32.xlu2 %v10522_v7, %s10122_s7  ;;  %v3129_v12 = vadd.f32 %v3128_v3, %v2471_v8  ;;  %8550 = vmatmul.msk.f32.vlgmr.msrb.gmra.mxu1 %vm3615_vm0, %v3430_v13 }
 0x1dc   :  { %8557 = vmatpush.xpose.msk.msra.mxu1 %vm3615_vm0, %v10420_v33 }
 0x1dd   :  { %v3148_v29 = vadd.f32 %v3147_v45, %v3129_v12  ;;  %v3488_v39 = vpop.permute.xlu2 %3487 }
 0x1de   :  { %8563 = vmatpush.xpose.msk.msrb.mxu0 %vm3615_vm0, %v3488_v39 }
 0x1df   :  { %v3167_v14 = vadd.f32 %v3166_v31, %v3148_v29  ;;  %8562 = vmatmul.msk.f32.vlgmr.msra.gmra.mxu3 %vm3615_vm0, %v10324_v26 }
 0x1e0   :  { %v3168_v49 = vpop.f32.mrf.mxu2  ;;  %v3187_v58 = vpop.f32.mrf.mxu3 }
 0x1e1   :  { %v10550_v33 = vadd.f32 %v3185_v17, %v3167_v14 }
 0x1e2   :  { %v3130_v18 = vpop.f32.mrf.mxu0  ;;  %v3149_v19 = vpop.f32.mrf.mxu1  ;;  %8571 = vmatpush.xpose.msk.msra.mxu0 %vm3615_vm0, %v10472_v42 }
 0x1e3   :  { %v3131_v55 = vadd.f32 %v3130_v18, %v2471_v8  ;;  %8558 = vmatmul.msk.f32.vlgmr.msra.gmra.mxu1 %vm3615_vm0, %v10308_v15  ;;  %8564 = vmatmul.msk.f32.vlgmr.msrb.gmra.mxu0 %vm3615_vm0, %v3440_v62  ;;  %v10571_v15 = vperm.slane %v10520_v56, 1 }
 0x1e5   :  { %v3150_v21 = vadd.f32 %v3149_v19, %v3131_v55  ;;  %v3454_v55 = vpop.permute.xlu1 %3453 }
 0x1e6   :  { %v10563_v0 = vpop.permute.xlu2 %3457 }
 0x1e7   :  { %v3169_v32 = vadd.f32 %v3168_v49, %v3150_v21 }
 0x1e8   :  { %v3171_v23 = vpop.f32.mrf.mxu2  ;;  %v3190_v34 = vpop.f32.mrf.mxu3 }
 0x1e9   :  { %v10552_v52 = vadd.f32 %v3187_v58, %v3169_v32 }
 0x1ea   :  { %v3133_v54 = vpop.f32.mrf.mxu0  ;;  %v3152_v22 = vpop.f32.mrf.mxu1 }
 0x1eb   :  { %v9673_v57 = vpack.i.bf16 %v10552_v52, %v10550_v33  ;;  %v3134_v25 = vadd.f32 %v3133_v54, %v2471_v8  ;;  %8572 = vmatmul.msk.f32.vlgmr.msra.gmra.mxu0 %vm3615_vm0, %v10332_v20 }
 0x1ed   :  { %9674 = vrot.lane.b32.xlu1 %v9673_v57, %s10122_s7  ;;  %v3153_v43 = vadd.f32 %v3152_v22, %v3134_v25 }
 0x1ee   :  { %v10574_v1 = vpop.permute.xlu2 %3463 }
 0x1ef   :  { %v3172_v63 = vadd.f32 %v3171_v23, %v3153_v43 }
 0x1f0   :  { %v3173_v60 = vpop.f32.mrf.mxu2  ;;  %v3192_v44 = vpop.f32.mrf.mxu3 }
 0x1f1   :  { %v10576_v3 = vadd.f32 %v3190_v34, %v3172_v63 }
 0x1f2   :  { %v3135_v35 = vpop.f32.mrf.mxu0  ;;  %v3154_v28 = vpop.f32.mrf.mxu1 }
 0x1f3   :  { %v3136_v5 = vadd.f32 %v3135_v35, %v2471_v8 }
 0x1f5   :  { %v3155_v59 = vadd.f32 %v3154_v28, %v3136_v5 }
 0x1f7   :  { %v3174_v26 = vadd.f32 %v3173_v60, %v3155_v59 }
 0x1f8   :  { %v3242_v13 = vpop.f32.mrf.mxu2  ;;  %v3261_v12 = vpop.f32.mrf.mxu3 }
 0x1f9   :  { %v10578_v45 = vadd.f32 %v3192_v44, %v3174_v26 }
 0x1fa   :  { %v3204_v50 = vpop.f32.mrf.mxu0  ;;  %v3223_v51 = vpop.f32.mrf.mxu1 }
 0x1fb   :  { %v3205_v42 = vadd.f32 %v3204_v50, %v10571_v15  ;;  %v9678_v8 = vpack.i.bf16 %v10578_v45, %v10576_v3 }
 0x1fd   :  { %v3490_v61 = vpop.permute.xlu0 %3489  ;;  %v3224_v4 = vadd.f32 %v3223_v51, %v3205_v42  ;;  %9679 = vrot.lane.b32.xlu2 %v9678_v8, %s10122_s7 }
 0x1fe   :  { %8565 = vmatpush.xpose.msk.msrb.mxu1 %vm3615_vm0, %v3490_v61 }
 0x1ff   :  { %v3243_v31 = vadd.f32 %v3242_v13, %v3224_v4  ;;  %v3586_v13 = vpack.c.bf16 %v10578_v45, %v10578_v45 }
 0x200   :  { %v10604_v20 = vpop.f32.mrf.mxu2 }
 0x201   :  { %8566 = vmatmul.msk.f32.vlgmr.msrb.gmra.mxu1 %vm3615_vm0, %v10484_v24  ;;  %v10594_v19 = vadd.f32 %v3261_v12, %v3243_v31  ;;  %v10606_v24 = vpop.f32.mrf.mxu3  ;;  %v5247_v45 = vsel %vm5188_vm1, %v3586_v13, 0 }
 0x202   :  { %8573 = vmatpush.xpose.msk.msra.mxu1 %vm3615_vm0, %v10461_v38  ;;  %v10590_v17 = vpop.f32.mrf.mxu0  ;;  %v10592_v18 = vpop.f32.mrf.mxu1 }
 0x205   :  { %v3502_v38 = vpop.permute.xlu2 %3501  ;;  %v3492_v29 = vpop.permute.xlu0 %3491 }
 0x206   :  { %8581 = vmatpush.xpose.msk.msrb.mxu1 %vm3615_vm0, %v3502_v38  ;;  %8567 = vmatpush.xpose.msk.msrb.mxu2 %vm3615_vm0, %v3492_v29 }
 0x209   :  { %8574 = vmatmul.msk.f32.vlgmr.msra.gmra.mxu1 %vm3615_vm0, %v10339_v9  ;;  %8568 = vmatmul.msk.f32.vlgmr.msrb.gmra.mxu2 %vm3615_vm0, %v10498_v40 }
 0x20a   :  { %8575 = vmatpush.xpose.msk.msra.mxu2 %vm3615_vm0, %v10470_v37  ;;  %8589 = vmatpush.xpose.msk.msra.mxu1 %vm3615_vm0, %v10500_v48  ;;  %v3209_v14 = vpop.f32.mrf.mxu0  ;;  %v3228_v49 = vpop.f32.mrf.mxu1 }
 0x20b   :  { %v3210_v39 = vadd.f32 %v3209_v14, %v10571_v15  ;;  %v3247_v37 = vpop.f32.mrf.mxu2  ;;  %v3266_v48 = vpop.f32.mrf.mxu3 }
 0x20d   :  { %v3504_v21 = vpop.permute.xlu2 %3503  ;;  %v3494_v27 = vpop.permute.xlu1 %3493  ;;  %v3229_v9 = vadd.f32 %v3228_v49, %v3210_v39 }
 0x20e   :  { %8583 = vmatpush.xpose.msk.msrb.mxu2 %vm3615_vm0, %v3504_v21  ;;  %8569 = vmatpush.xpose.msk.msrb.mxu3 %vm3615_vm0, %v3494_v27 }
 0x20f   :  { %v3248_v40 = vadd.f32 %v3247_v37, %v3229_v9 }
 0x211   :  { %8582 = vmatmul.msk.f32.vlgmr.msrb.gmra.mxu1 %vm3615_vm0, %v3454_v55  ;;  %8570 = vmatmul.msk.f32.vlgmr.msrb.gmra.mxu3 %vm3615_vm0, %v10488_v10  ;;  %v10630_v10 = vpop.permute.xlu0 %3465  ;;  %v3584_v55 = vpack.c.bf16 %v10552_v52, %v10552_v52 }
 0x212   :  { %8577 = vmatpush.xpose.msk.msra.mxu3 %vm3615_vm0, %v10482_v2  ;;  %8576 = vmatmul.msk.f32.vlgmr.msra.gmra.mxu2 %vm3615_vm0, %v10346_v41  ;;  %v10622_v32 = vpop.f32.mrf.mxu0  ;;  %v10624_v58 = vpop.f32.mrf.mxu1  ;;  %v10626_v2 = vadd.f32 %v3266_v48, %v3248_v40  ;;  %v10633_v41 = vperm.slane %v10520_v56, 2  ;;  %v3585_v40 = vpack.c.bf16 %v10576_v3, %v10576_v3 }
 0x213   :  { %8591 = vmatpush.xpose.msk.msra.mxu2 %vm3615_vm0, %v10511_v46  ;;  %v10638_v46 = vpop.f32.mrf.mxu2  ;;  %v10640_v22 = vpop.f32.mrf.mxu3 }
 0x215   :  { %v3456_v54 = vpop.permute.xlu1 %3455 }
 0x219   :  { %8590 = vmatmul.msk.f32.vlgmr.msra.gmra.mxu1 %vm3615_vm0, %v10363_v6  ;;  %8578 = vmatmul.msk.f32.vlgmr.msra.gmra.mxu3 %vm3615_vm0, %v10353_v30  ;;  %v10645_v35 = vpop.permute.xlu0 %3467 }
 0x21a   :  { %8584 = vmatmul.msk.f32.vlgmr.msrb.gmra.mxu2 %vm3615_vm0, %v3456_v54  ;;  %v3280_v57 = vpop.f32.mrf.mxu0  ;;  %v3299_v25 = vpop.f32.mrf.mxu1 }
 0x21b   :  { %v3281_v23 = vadd.f32 %v3280_v57, %v10633_v41  ;;  %v3318_v28 = vpop.f32.mrf.mxu2  ;;  %v3337_v30 = vpop.f32.mrf.mxu3 }
 0x21d   :  { %v3470_v34 = vpop.permute.xlu1 %3469  ;;  %v3300_v6 = vadd.f32 %v3299_v25, %v3281_v23 }
 0x21f   :  { %v3319_v5 = vadd.f32 %v3318_v28, %v3300_v6 }
 0x221   :  { %v10651_v59 = vadd.f32 %v3337_v30, %v3319_v5  ;;  %v5228_v5 = vsel %vm5188_vm1, %v3585_v40, 0 }
 0x222   :  { %8592 = vmatmul.msk.f32.vlgmr.msra.gmra.mxu2 %vm3615_vm0, %v10365_v47  ;;  %v10647_v62 = vpop.f32.mrf.mxu0  ;;  %v10649_v43 = vpop.f32.mrf.mxu1 }
 0x223   :  { %v10658_v47 = vpop.f32.mrf.mxu2  ;;  %v10660_v60 = vpop.f32.mrf.mxu3 }
 0x225   :  { %v3500_v63 = vpop.permute.xlu1 %3499 }
 0x226   :  { %8579 = vmatpush.xpose.msk.msrb.mxu0 %vm3615_vm0, %v3500_v63 }
 0x229   :  { %8580 = vmatmul.msk.f32.vlgmr.msrb.gmra.mxu0 %vm3615_vm0, %v10502_v53 }
 0x22a   :  { %8587 = vmatpush.xpose.msk.msra.mxu0 %vm3615_vm0, %v10493_v16  ;;  %v3285_v26 = vpop.f32.mrf.mxu0  ;;  %v3304_v50 = vpop.f32.mrf.mxu1  ;;  %v3583_v16 = vpack.c.bf16 %v10550_v33, %v10550_v33  ;;  %v10681_v33 = vperm.slane %v10520_v56, 3 }
 0x22b   :  { %v3286_v44 = vadd.f32 %v3285_v26, %v10633_v41  ;;  %v3323_v53 = vpop.f32.mrf.mxu2  ;;  %v3342_v4 = vpop.f32.mrf.mxu3 }
 0x22d   :  { %v3506_v42 = vpop.permute.xlu0 %3505  ;;  %v3305_v51 = vadd.f32 %v3304_v50, %v3286_v44 }
 0x22e   :  { %8585 = vmatpush.xpose.msk.msrb.mxu3 %vm3615_vm0, %v3506_v42 }
 0x22f   :  { %v3324_v61 = vadd.f32 %v3323_v53, %v3305_v51 }
 0x231   :  { %8586 = vmatmul.msk.f32.vlgmr.msrb.gmra.mxu3 %vm3615_vm0, %v10563_v0  ;;  %8588 = vmatmul.msk.f32.vlgmr.msra.gmra.mxu0 %vm3615_vm0, %v10358_v11  ;;  %v5190_v11 = vsel %vm5188_vm1, %v3583_v16, 0 }
 0x232   :  { %8593 = vmatpush.xpose.msk.msra.mxu3 %vm3615_vm0, %v10522_v7  ;;  %v3287_v8 = vpop.f32.mrf.mxu0  ;;  %v3306_v31 = vpop.f32.mrf.mxu1  ;;  %v10674_v7 = vadd.f32 %v3342_v4, %v3324_v61 }
 0x233   :  { %v3288_v0 = vadd.f32 %v3287_v8, %v10633_v41  ;;  %v3325_v14 = vpop.f32.mrf.mxu2  ;;  %v3344_v39 = vpop.f32.mrf.mxu3 }
 0x235   :  { %v3512_v12 = vpop.permute.xlu0 %3511  ;;  %v3518_v38 = vpop.permute.xlu2 %3517  ;;  %v3307_v29 = vadd.f32 %v3306_v31, %v3288_v0 }
 0x236   :  { %8595 = vmatpush.xpose.msk.msrb.mxu0 %vm3615_vm0, %v3512_v12  ;;  %8601 = vmatpush.xpose.msk.msrb.mxu3 %vm3615_vm0, %v3518_v38 }
 0x237   :  { %v3326_v21 = vadd.f32 %v3325_v14, %v3307_v29 }
 0x239   :  { %8594 = vmatmul.msk.f32.vlgmr.msra.gmra.mxu3 %vm3615_vm0, %v10377_v36  ;;  %8596 = vmatmul.msk.f32.vlgmr.msrb.gmra.mxu0 %vm3615_vm0, %v10574_v1  ;;  %v10691_v37 = vadd.f32 %v3344_v39, %v3326_v21  ;;  %v5209_v36 = vsel %vm5188_vm1, %v3584_v55, 0 }
 0x23a   :  { %5199 = vmatpush.bf16.msra.mxu0 %v5190_v11  ;;  %5256 = vmatpush.bf16.msra.mxu3 %v5247_v45  ;;  %v3356_v49 = vpop.f32.mrf.mxu0  ;;  %v3375_v27 = vpop.f32.mrf.mxu1 }
 0x23b   :  { %v3357_v56 = vadd.f32 %v3356_v49, %v10681_v33  ;;  %v3394_v48 = vpop.f32.mrf.mxu2  ;;  %v3413_v57 = vpop.f32.mrf.mxu3 }
 0x23d   :  { %v3514_v9 = vpop.permute.xlu1 %3513  ;;  %v3376_v1 = vadd.f32 %v3375_v27, %v3357_v56 }
 0x23e   :  { %8597 = vmatpush.xpose.msk.msrb.mxu1 %vm3615_vm0, %v3514_v9 }
 0x23f   :  { %v3395_v54 = vadd.f32 %v3394_v48, %v3376_v1 }
 0x241   :  { %8598 = vmatmul.msk.f32.vlgmr.msrb.gmra.mxu1 %vm3615_vm0, %v10630_v10  ;;  %8602 = vmatmul.msk.f32.vlgmr.msrb.gmra.mxu3 %vm3615_vm0, %v3470_v34  ;;  %v10706_v6 = vadd.f32 %v3413_v57, %v3395_v54 }
 0x242   :  { %5218 = vmatpush.bf16.msra.mxu1 %v5209_v36  ;;  %v10702_v23 = vpop.f32.mrf.mxu0  ;;  %v10704_v25 = vpop.f32.mrf.mxu1 }
 0x243   :  { %11775 = vst [vmem:[#allocation23_spill] sm:$0xff] %v10702_v23  ;;  %v10712_v10 = vpop.f32.mrf.mxu2  ;;  %v10714_v3 = vpop.f32.mrf.mxu3 }
 0x244   :  { %11776 = vst [vmem:[#allocation24_spill] sm:$0xff] %v10704_v25 }
 0x245   :  { %11777 = vst [vmem:[#allocation25_spill] sm:$0xff] %v10706_v6  ;;  %v3516_v28 = vpop.permute.xlu1 %3515 }
 0x246   :  { %8599 = vmatpush.xpose.msk.msrb.mxu2 %vm3615_vm0, %v3516_v28  ;;  %11778 = vst [vmem:[#allocation26_spill] sm:$0xff] %v10712_v10 }
 0x247   :  { %11779 = vst [vmem:[#allocation27_spill] sm:$0xff] %v10714_v3 }
 0x249   :  { %8600 = vmatmul.msk.f32.vlgmr.msrb.gmra.mxu2 %vm3615_vm0, %v10645_v35 }
 0x24a   :  { %5237 = vmatpush.bf16.msra.mxu2 %v5228_v5  ;;  %v3361_v34 = vpop.f32.mrf.mxu0  ;;  %v3380_v63 = vpop.f32.mrf.mxu1 }
 0x24b   :  { %v3362_v30 = vadd.f32 %v3361_v34, %v10681_v33  ;;  %v3399_v44 = vpop.f32.mrf.mxu2  ;;  %v3418_v42 = vpop.f32.mrf.mxu3 }
 0x24d   :  { %v3381_v26 = vadd.f32 %v3380_v63, %v3362_v30 }
 0x24f   :  { %v3400_v50 = vadd.f32 %v3399_v44, %v3381_v26 }
 0x251   :  { %v10721_v53 = vadd.f32 %v3418_v42, %v3400_v50 }
 0x252   :  { %v10717_v51 = vpop.f32.mrf.mxu0  ;;  %v10719_v16 = vpop.f32.mrf.mxu1 }
 0x253   :  { %11780 = vst [vmem:[#allocation28_spill] sm:$0xff] %v10721_v53  ;;  %v10723_v35 = vpop.f32.mrf.mxu2  ;;  %v10725_v13 = vpop.f32.mrf.mxu3 }
 0x254   :  { %11781 = vst [vmem:[#allocation29_spill] sm:$0xff] %v10723_v35 }
 0x255   :  { %11782 = vst [vmem:[#allocation30_spill] sm:$0xff] %v10725_v13 }
 0x257   :  { %v9680_v61 = vpop.permute.xlu2 %9679 }
 0x258   :  { %v9682_v4 = vunpack.i.h.bf16 %v9680_v61  ;;  %v9681_v8 = vunpack.i.l.bf16 %v9680_v61 }
 0x25a   :  { %v10727_v31 = vpop.f32.mrf.mxu0  ;;  %v3590_v12 = vpack.c.bf16 %v9682_v4, %v9682_v4  ;;  %v3589_v0 = vpack.c.bf16 %v9681_v8, %v9681_v8  ;;  %v10729_v38 = vpop.f32.mrf.mxu1 }
 0x25b   :  { %v4385_v11 = vsel %vm4384_vm2, %v10727_v31, -inf  ;;  %v4388_v45 = vsel %vm4384_vm2, %v10729_v38, -inf  ;;  %v10737_v49 = vpop.f32.mrf.mxu2  ;;  %v10739_v9 = vpop.f32.mrf.mxu3 }
 0x25c   :  { %4386 = vmax.xlane.f32.xlu2 %v4385_v11  ;;  %4389 = vmax.xlane.f32.xlu0 %v4388_v45  ;;  %v5304_v55 = vsel %vm5188_vm1, %v3589_v0, 0  ;;  %v5323_v29 = vsel %vm5188_vm1, %v3590_v12, 0  ;;  %v4391_v36 = vsel %vm4384_vm2, %v10737_v49, -inf  ;;  %v4394_v48 = vsel %vm4384_vm2, %v10739_v9, -inf }
 0x25d   :  { %5313 = vmatpush.bf16.msrb.mxu2 %v5304_v55  ;;  %5332 = vmatpush.bf16.msrb.mxu3 %v5323_v29 }
 0x25e   :  { %4392 = vmax.xlane.f32.xlu1 %v4391_v36 }
 0x25f   :  { %v9675_v14 = vpop.permute.xlu1 %9674 }
 0x260   :  { %v9677_v21 = vunpack.i.h.bf16 %v9675_v14  ;;  %v9676_v39 = vunpack.i.l.bf16 %v9675_v14 }
 0x262   :  { %v3588_v56 = vpack.c.bf16 %v9677_v21, %v9677_v21  ;;  %v3587_v27 = vpack.c.bf16 %v9676_v39, %v9676_v39  ;;  %v10743_v1 = vpop.f32.mrf.mxu0  ;;  %v10745_v40 = vpop.f32.mrf.mxu1 }
 0x263   :  { %v4400_v28 = vsel %vm4384_vm2, %v10745_v40, -inf  ;;  %v10753_v5 = vpop.f32.mrf.mxu3  ;;  %v4397_v63 = vsel %vm4384_vm2, %v10743_v1, -inf  ;;  %v10765_v50 = vpop.f32.mrf.mxu2 }
 0x264   :  { %v5266_v54 = vsel %vm5188_vm1, %v3587_v27, 0  ;;  %v5285_v57 = vsel %vm5188_vm1, %v3588_v56, 0  ;;  %4395 = vmax.xlane.f32.xlu2 %v4394_v48  ;;  %4401 = vmax.xlane.f32.xlu0 %v4400_v28  ;;  %v4406_v4 = vsel %vm4384_vm2, %v10753_v5, -inf  ;;  %v4403_v8 = vsel %vm4384_vm2, %v10765_v50, -inf }
 0x265   :  { %5275 = vmatpush.bf16.msrb.mxu0 %v5266_v54  ;;  %5294 = vmatpush.bf16.msrb.mxu1 %v5285_v57 }
 0x26a   :  { %v10755_v34 = vpop.f32.mrf.mxu0  ;;  %v10757_v30 = vpop.f32.mrf.mxu1 }
 0x26b   :  { %v4409_v26 = vsel %vm4384_vm2, %v10755_v34, -inf  ;;  %v4412_v44 = vsel %vm4384_vm2, %v10757_v30, -inf  ;;  %v10767_v42 = vpop.f32.mrf.mxu3  ;;  %v10777_v0 = vpop.f32.mrf.mxu2 }
 0x26c   :  { %4398 = vmax.xlane.f32.xlu2 %v4397_v63  ;;  %4413 = vmax.xlane.f32.xlu1 %v4412_v44  ;;  %v4418_v12 = vsel %vm4384_vm2, %v10767_v42, -inf  ;;  %v4415_v55 = vsel %vm4384_vm2, %v10777_v0, -inf }
 0x26d   :  { %4410 = vmax.xlane.f32.xlu0 %v4409_v26 }
 0x272   :  { %v10769_v61 = vpop.f32.mrf.mxu0 }
 0x273   :  { %v4421_v14 = vsel %vm4384_vm2, %v10769_v61, -inf }
 0x274   :  { %4407 = vmax.xlane.f32.xlu2 %v4406_v4  ;;  %4404 = vmax.xlane.f32.xlu1 %v4403_v8 }
 0x275   :  { %4419 = vmax.xlane.f32.xlu0 %v4418_v12 }
 0x27a   :  { %v10779_v11 = vpop.f32.mrf.mxu0 }
 0x27b   :  { %v4433_v29 = vsel %vm4384_vm2, %v10779_v11, -inf }
 0x27c   :  { %4416 = vmax.xlane.f32.xlu2 %v4415_v55  ;;  %4422 = vmax.xlane.f32.xlu1 %v4421_v14 }
 0x27d   :  { %4434 = vmax.xlane.f32.xlu0 %v4433_v29 }
 0x27e   :  { %v10781_v45 = vpop.f32.mrf.mxu1 }
 0x27f   :  { %v4424_v39 = vsel %vm4384_vm2, %v10781_v45, -inf }
 0x284   :  { %4425 = vmax.xlane.f32.xlu2 %v4424_v39 }
 0x286   :  { %v10789_v21 = vpop.f32.mrf.mxu1 }
 0x287   :  { %v4436_v56 = vsel %vm4384_vm2, %v10789_v21, -inf }
 0x288   :  { %4437 = vmax.xlane.f32.xlu1 %v4436_v56 }
 0x28c   :  { %v10795_v27 = vpop.f32.mrf.mxu2 }
 0x28d   :  { %v4427_v36 = vsel %vm4384_vm2, %v10795_v27, -inf }
 0x28e   :  { %4428 = vmax.xlane.f32.xlu2 %v4427_v36  ;;  %v10807_v63 = vpop.f32.mrf.mxu1 }
 0x28f   :  { %v4448_v26 = vsel %vm4384_vm2, %v10807_v63, -inf }
 0x294   :  { %v10799_v48 = vpop.f32.mrf.mxu3 }
 0x295   :  { %v10801_v54 = vpop.f32.mrf.mxu2  ;;  %v4430_v57 = vsel %vm4384_vm2, %v10799_v48, -inf }
 0x296   :  { %v4439_v28 = vsel %vm4384_vm2, %v10801_v54, -inf  ;;  %4431 = vmax.xlane.f32.xlu0 %v4430_v57  ;;  %v10823_v14 = vpop.f32.mrf.mxu1 }
 0x297   :  { %4440 = vmax.xlane.f32.xlu1 %v4439_v28  ;;  %v4460_v57 = vsel %vm4384_vm2, %v10823_v14, -inf }
 0x29c   :  { %v10815_v8 = vpop.f32.mrf.mxu3 }
 0x29d   :  { %v4442_v55 = vsel %vm4384_vm2, %v10815_v8, -inf  ;;  %v10825_v39 = vpop.f32.mrf.mxu2 }
 0x29e   :  { %4449 = vmax.xlane.f32.xlu0 %v4448_v26  ;;  %v4451_v36 = vsel %vm4384_vm2, %v10825_v39, -inf }
 0x2a6   :  { %v10811_v44 = vpop.f32.mrf.mxu0 }
 0x2a7   :  { %v4445_v4 = vsel %vm4384_vm2, %v10811_v44, -inf }
 0x2a8   :  { %4446 = vmax.xlane.f32.xlu2 %v4445_v4 }
 0x2ae   :  { %v10817_v12 = vpop.f32.mrf.mxu0 }
 0x2af   :  { %v4457_v29 = vsel %vm4384_vm2, %v10817_v12, -inf }
 0x2b0   :  { %4443 = vmax.xlane.f32.xlu2 %v4442_v55  ;;  %4458 = vmax.xlane.f32.xlu0 %v4457_v29  ;;  %v10839_v55 = vpop.f32.mrf.mxu2 }
 0x2b1   :  { %v4463_v29 = vsel %vm4384_vm2, %v10839_v55, -inf }
 0x2b4   :  { %v10835_v26 = vpop.f32.mrf.mxu3 }
 0x2b5   :  { %v4454_v4 = vsel %vm4384_vm2, %v10835_v26, -inf }
 0x2b6   :  { %v10827_v56 = vpop.f32.mrf.mxu0 }
 0x2b7   :  { %11783 = vst [vmem:[#allocation31_spill] sm:$0xff] %v10827_v56  ;;  %v4469_v28 = vsel %vm4384_vm2, %v10827_v56, -inf }
 0x2b8   :  { %4452 = vmax.xlane.f32.xlu2 %v4451_v36  ;;  %4461 = vmax.xlane.f32.xlu0 %v4460_v57 }
 0x2b9   :  { %4470 = vmax.xlane.f32.xlu1 %v4469_v28 }
 0x2bc   :  { %v10843_v52 = vpop.f32.mrf.mxu3 }
 0x2bd   :  { %v4466_v6 = vsel %vm4384_vm2, %v10843_v52, -inf }
 0x2be   :  { %v10849_v10 = vpop.f32.mrf.mxu1 }
 0x2c0   :  { %4455 = vmax.xlane.f32.xlu0 %v4454_v4 }
 0x2c8   :  { %4464 = vmax.xlane.f32.xlu0 %v4463_v29  ;;  %v4472_v29 = vsel %vm4384_vm2, %v10849_v10, -inf }
 0x2cf   :  { %v4387_v36 = vpop.xlane.xlu2 %4386  ;;  %v4390_v57 = vpop.xlane.xlu0 %4389 }
 0x2d0   :  { %4467 = vmax.xlane.f32.xlu0 %v4466_v6  ;;  %v4481_v28 = vsub.f32 %v10727_v31, %v4387_v36  ;;  %v4482_v3 = vsub.f32 %v10729_v38, %v4390_v57 }
 0x2d1   :  { %v4393_v25 = vpop.xlane.xlu1 %4392 }
 0x2d2   :  { %v4513_v4 = vmul.f32 1.442695, %v4481_v28  ;;  %v4515_v56 = vmul.f32 1.442695, %v4482_v3  ;;  %v4483_v53 = vsub.f32 %v10737_v49, %v4393_v25 }
 0x2d4   :  { %9753 = vpow2.f32 %v4513_v4  ;;  %v4517_v31 = vmul.f32 1.442695, %v4483_v53 }
 0x2d5   :  { %9755 = vpow2.f32 %v4515_v56 }
 0x2d6   :  { %9757 = vpow2.f32 %v4517_v31 }
 0x2d7   :  { %v4396_v6 = vpop.xlane.xlu2 %4395  ;;  %v4402_v23 = vpop.xlane.xlu0 %4401 }
 0x2d8   :  { %4473 = vmax.xlane.f32.xlu0 %v4472_v29  ;;  %v4484_v13 = vsub.f32 %v10739_v9, %v4396_v6  ;;  %v4486_v38 = vsub.f32 %v10745_v40, %v4402_v23 }
 0x2da   :  { %v10856_v36 = vpop.eup %9753  ;;  %v4519_v57 = vmul.f32 1.442695, %v4484_v13  ;;  %v4523_v56 = vmul.f32 1.442695, %v4486_v38 }
 0x2db   :  { %v10858_v3 = vpop.eup %9755  ;;  %v4577_v25 = vsel %vm4384_vm2, %v10856_v36, 0.0 }
 0x2dc   :  { %9759 = vpow2.f32 %v4519_v57  ;;  %v4580_v28 = vsel %vm4384_vm2, %v10858_v3, 0.0  ;;  %v10865_v13 = vpop.eup %9757 }
 0x2dd   :  { %9761 = vpow2.f32 %v4523_v56  ;;  %4581 = vadd.xlane.f32.xlu1 %v4580_v28 }
 0x2df   :  { %v4399_v53 = vpop.xlane.xlu2 %4398  ;;  %v4414_v49 = vpop.xlane.xlu1 %4413 }
 0x2e0   :  { %4578 = vadd.xlane.f32.xlu0 %v4577_v25  ;;  %v4485_v23 = vsub.f32 %v10743_v1, %v4399_v53  ;;  %v4411_v9 = vpop.xlane.xlu0 %4410  ;;  %v4490_v40 = vsub.f32 %v10757_v30, %v4414_v49  ;;  %v4583_v1 = vsel %vm4384_vm2, %v10865_v13, 0.0 }
 0x2e1   :  { %v4489_v6 = vsub.f32 %v10755_v34, %v4411_v9 }
 0x2e2   :  { %v10868_v4 = vpop.eup %9759  ;;  %v4521_v29 = vmul.f32 1.442695, %v4485_v23  ;;  %v4531_v38 = vmul.f32 1.442695, %v4490_v40 }
 0x2e3   :  { %v10871_v31 = vpop.eup %9761  ;;  %v4586_v57 = vsel %vm4384_vm2, %v10868_v4, 0.0  ;;  %v4529_v56 = vmul.f32 1.442695, %v4489_v6 }
 0x2e4   :  { %9763 = vpow2.f32 %v4521_v29  ;;  %4587 = vadd.xlane.f32.xlu2 %v4586_v57  ;;  %v4592_v30 = vsel %vm4384_vm2, %v10871_v31, 0.0 }
 0x2e5   :  { %9765 = vpow2.f32 %v4531_v38  ;;  %4584 = vadd.xlane.f32.xlu1 %v4583_v1 }
 0x2e6   :  { %9767 = vpow2.f32 %v4529_v56 }
 0x2e7   :  { %v4408_v28 = vpop.xlane.xlu2 %4407  ;;  %v4405_v34 = vpop.xlane.xlu1 %4404 }
 0x2e8   :  { %4593 = vadd.xlane.f32.xlu0 %v4592_v30  ;;  %v4488_v25 = vsub.f32 %v10753_v5, %v4408_v28  ;;  %v4487_v53 = vsub.f32 %v10765_v50, %v4405_v34 }
 0x2ea   :  { %v10881_v49 = vpop.eup %9763  ;;  %v4527_v23 = vmul.f32 1.442695, %v4488_v25  ;;  %v4525_v40 = vmul.f32 1.442695, %v4487_v53 }
 0x2eb   :  { %v10883_v9 = vpop.eup %9765  ;;  %v4589_v29 = vsel %vm4384_vm2, %v10881_v49, 0.0 }
 0x2ec   :  { %9769 = vpow2.f32 %v4527_v23  ;;  %4590 = vadd.xlane.f32.xlu2 %v4589_v29  ;;  %v4604_v6 = vsel %vm4384_vm2, %v10883_v9, 0.0  ;;  %v10889_v38 = vpop.eup %9767  ;;  %v10903_v23 = vpop.xlane.xlu0 %4419 }
 0x2ed   :  { %9771 = vpow2.f32 %v4525_v40  ;;  %v4601_v56 = vsel %vm4384_vm2, %v10889_v38, 0.0 }
 0x2ef   :  { %v4417_v5 = vpop.xlane.xlu2 %4416  ;;  %v4423_v50 = vpop.xlane.xlu1 %4422 }
 0x2f0   :  { %4605 = vadd.xlane.f32.xlu0 %v4604_v6  ;;  %v4493_v1 = vsub.f32 %v10769_v61, %v4423_v50  ;;  %v4491_v34 = vsub.f32 %v10777_v0, %v4417_v5  ;;  %v10905_v61 = vpop.f32.mrf.mxu3  ;;  %v10907_v50 = vpop.f32.mrf.mxu2 }
 0x2f1   :  { %v4478_v0 = vsel %vm4384_vm2, %v10905_v61, -inf }
 0x2f2   :  { %v10891_v57 = vpop.eup %9769  ;;  %v4537_v53 = vmul.f32 1.442695, %v4493_v1  ;;  %v4533_v40 = vmul.f32 1.442695, %v4491_v34  ;;  %v3207_v1 = vadd.f32 %v10590_v17, %v10571_v15 }
 0x2f3   :  { %v10894_v30 = vpop.eup %9771  ;;  %v4598_v28 = vsel %vm4384_vm2, %v10891_v57, 0.0 }
 0x2f4   :  { %4602 = vadd.xlane.f32.xlu2 %v4601_v56  ;;  %4599 = vadd.xlane.f32.xlu1 %v4598_v28  ;;  %v4595_v25 = vsel %vm4384_vm2, %v10894_v30, 0.0  ;;  %9773 = vpow2.f32 %v4537_v53  ;;  %v4475_v56 = vsel %vm4384_vm2, %v10907_v50, -inf  ;;  %v4435_v53 = vpop.xlane.xlu0 %4434 }
 0x2f5   :  { %9775 = vpow2.f32 %v4533_v40  ;;  %v4497_v17 = vsub.f32 %v10779_v11, %v4435_v53 }
 0x2f7   :  { %v4426_v6 = vpop.xlane.xlu2 %4425 }
 0x2f8   :  { %4596 = vadd.xlane.f32.xlu0 %v4595_v25  ;;  %v4494_v5 = vsub.f32 %v10781_v45, %v4426_v6 }
 0x2fa   :  { %v10917_v34 = vpop.eup %9773  ;;  %v4539_v25 = vmul.f32 1.442695, %v4494_v5 }
 0x2fb   :  { %v4438_v29 = vpop.xlane.xlu1 %4437  ;;  %v4613_v40 = vsel %vm4384_vm2, %v10917_v34, 0.0 }
 0x2fc   :  { %v4498_v35 = vsub.f32 %v10789_v21, %v4438_v29  ;;  %4479 = vmax.xlane.f32.xlu2 %v4478_v0  ;;  %v3226_v21 = vadd.f32 %v10592_v18, %v3207_v1  ;;  %v10920_v29 = vpop.eup %9775  ;;  %v4545_v0 = vmul.f32 1.442695, %v4497_v17 }
 0x2fe   :  { %v4547_v28 = vmul.f32 1.442695, %v4498_v35  ;;  %v3245_v45 = vadd.f32 %v10604_v20, %v3226_v21  ;;  %v4607_v35 = vsel %vm4384_vm2, %v10920_v29, 0.0  ;;  %v3283_v21 = vadd.f32 %v10647_v62, %v10633_v41 }
 0x300   :  { %4476 = vmax.xlane.f32.xlu0 %v4475_v56  ;;  %9777 = vpow2.f32 %v4547_v28  ;;  %v10929_v6 = vadd.f32 %v10606_v24, %v3245_v45 }
 0x301   :  { %9779 = vpow2.f32 %v4539_v25  ;;  %v4429_v41 = vpop.xlane.xlu2 %4428 }
 0x302   :  { %v9683_v20 = vpack.i.bf16 %v10929_v6, %v10594_v19  ;;  %9781 = vpow2.f32 %v4545_v0 }
 0x304   :  { %4614 = vadd.xlane.f32.xlu2 %v4613_v40 }
 0x306   :  { %v10931_v18 = vpop.eup %9777 }
 0x307   :  { %v10933_v1 = vpop.eup %9779  ;;  %v4628_v11 = vsel %vm4384_vm2, %v10931_v18, 0.0 }
 0x308   :  { %4608 = vadd.xlane.f32.xlu0 %v4607_v35  ;;  %v4616_v24 = vsel %vm4384_vm2, %v10933_v1, 0.0  ;;  %v10943_v25 = vpop.eup %9781 }
 0x309   :  { %v4432_v5 = vpop.xlane.xlu0 %4431  ;;  %v4625_v53 = vsel %vm4384_vm2, %v10943_v25, 0.0 }
 0x30a   :  { %v4496_v56 = vsub.f32 %v10799_v48, %v4432_v5  ;;  %v3302_v48 = vadd.f32 %v10649_v43, %v3283_v21  ;;  %v3212_v5 = vadd.f32 %v10622_v32, %v10571_v15  ;;  %v4495_v15 = vsub.f32 %v10795_v27, %v4429_v41 }
 0x30c   :  { %4629 = vadd.xlane.f32.xlu2 %v4628_v11  ;;  %v4543_v28 = vmul.f32 1.442695, %v4496_v56  ;;  %v3321_v17 = vadd.f32 %v10658_v47, %v3302_v48  ;;  %v4492_v47 = vsub.f32 %v10767_v42, %v10903_v23  ;;  %v4541_v21 = vmul.f32 1.442695, %v4495_v15  ;;  %v4441_v42 = vpop.xlane.xlu1 %4440 }
 0x30d   :  { %9684 = vrot.lane.b32.xlu1 %v9683_v20, %s10122_s7  ;;  %v3231_v20 = vadd.f32 %v10624_v58, %v3212_v5 }
 0x30e   :  { %9783 = vpow2.f32 %v4543_v28  ;;  %v10956_v0 = vadd.f32 %v10660_v60, %v3321_v17  ;;  %v4535_v56 = vmul.f32 1.442695, %v4492_v47 }
 0x30f   :  { %v3250_v11 = vadd.f32 %v10638_v46, %v3231_v20 }
 0x310   :  { %4617 = vadd.xlane.f32.xlu0 %v4616_v24  ;;  %v9693_v43 = vpack.i.bf16 %v10956_v0, %v10651_v59  ;;  %9785 = vpow2.f32 %v4535_v56 }
 0x311   :  { %v4450_v45 = vpop.xlane.xlu0 %4449  ;;  %v10968_v28 = vadd.f32 %v10640_v22, %v3250_v11  ;;  %9787 = vpow2.f32 %v4541_v21 }
 0x312   :  { %v4502_v11 = vsub.f32 %v10807_v63, %v4450_v45 }
 0x313   :  { %v9688_v32 = vpack.i.bf16 %v10968_v28, %v10626_v2 }
 0x314   :  { %v10950_v40 = vpop.eup %9783 }
 0x315   :  { %v4622_v35 = vsel %vm4384_vm2, %v10950_v40, 0.0 }
 0x316   :  { %v10974_v58 = vpop.eup %9785 }
 0x317   :  { %v4610_v22 = vsel %vm4384_vm2, %v10974_v58, 0.0  ;;  %v10979_v17 = vpop.eup %9787 }
 0x318   :  { %4626 = vadd.xlane.f32.xlu0 %v4625_v53  ;;  %v4619_v5 = vsel %vm4384_vm2, %v10979_v17, 0.0 }
 0x31b   :  { %v4447_v60 = vpop.xlane.xlu2 %4446 }
 0x31c   :  { %v4501_v15 = vsub.f32 %v10811_v44, %v4447_v60 }
 0x320   :  { %4623 = vadd.xlane.f32.xlu0 %v4622_v35  ;;  %v4499_v35 = vsub.f32 %v10801_v54, %v4441_v42 }
 0x323   :  { %v4459_v62 = vpop.xlane.xlu0 %4458  ;;  %v4444_v48 = vpop.xlane.xlu2 %4443 }
 0x324   :  { %9694 = vrot.lane.b32.xlu2 %v9693_v43, %s10122_s7  ;;  %v4500_v46 = vsub.f32 %v10815_v8, %v4444_v48  ;;  %v4505_v41 = vsub.f32 %v10817_v12, %v4459_v62  ;;  %v4549_v43 = vmul.f32 1.442695, %v4499_v35  ;;  %v4555_v62 = vmul.f32 1.442695, %v4502_v11 }
 0x325   :  { %v4553_v48 = vmul.f32 1.442695, %v4501_v15 }
 0x326   :  { %v4551_v23 = vmul.f32 1.442695, %v4500_v46  ;;  %v4561_v8 = vmul.f32 1.442695, %v4505_v41 }
 0x328   :  { %9789 = vpow2.f32 %v4551_v23 }
 0x329   :  { %9791 = vpow2.f32 %v4549_v43 }
 0x32a   :  { %9793 = vpow2.f32 %v4561_v8  ;;  %v3592_v8 = vpack.c.bf16 %v10929_v6, %v10929_v6 }
 0x32b   :  { %v4462_v24 = vpop.xlane.xlu0 %4461  ;;  %v4453_v47 = vpop.xlane.xlu2 %4452  ;;  %9795 = vpow2.f32 %v4555_v62 }
 0x32c   :  { %v4503_v54 = vsub.f32 %v10825_v39, %v4453_v47  ;;  %v4506_v12 = vsub.f32 %v10823_v14, %v4462_v24  ;;  %v10995_v45 = vpop.xlane.xlu1 %4470  ;;  %9797 = vpow2.f32 %v4553_v48 }
 0x32e   :  { %v10986_v56 = vpop.eup %9789  ;;  %v4557_v63 = vmul.f32 1.442695, %v4503_v54  ;;  %v4563_v39 = vmul.f32 1.442695, %v4506_v12  ;;  %v11035_v12 = vsel %vm5188_vm1, %v3592_v8, 0 }
 0x32f   :  { %v4634_v21 = vsel %vm4384_vm2, %v10986_v56, 0.0  ;;  %v10998_v60 = vpop.eup %9791 }
 0x330   :  { %v11000_v24 = vpop.eup %9793  ;;  %9799 = vpow2.f32 %v4557_v63 }
 0x331   :  { %11784 = vst [vmem:[#allocation32_spill] sm:$0xff] %v11000_v24  ;;  %9801 = vpow2.f32 %v4563_v39  ;;  %v11007_v23 = vpop.eup %9795 }
 0x332   :  { %11785 = vst [vmem:[#allocation33_spill] sm:$0xff] %v11007_v23  ;;  %v11009_v35 = vpop.eup %9797  ;;  %v4640_v63 = vsel %vm4384_vm2, %v11007_v23, 0.0 }
 0x333   :  { %v4456_v53 = vpop.xlane.xlu0 %4455  ;;  %11786 = vst [vmem:[#allocation34_spill] sm:$0xff] %v11009_v35  ;;  %v4637_v11 = vsel %vm4384_vm2, %v11009_v35, 0.0 }
 0x334   :  { %9689 = vrot.lane.b32.xlu0 %v9688_v32, %s10122_s7  ;;  %v4504_v32 = vsub.f32 %v10835_v26, %v4456_v53 }
 0x336   :  { %v4559_v14 = vmul.f32 1.442695, %v4504_v32  ;;  %v11013_v43 = vpop.eup %9799 }
 0x337   :  { %4611 = vadd.xlane.f32.xlu1 %v4610_v22  ;;  %11787 = vst [vmem:[#allocation35_spill] sm:$0xff] %v11013_v43  ;;  %v11020_v47 = vpop.eup %9801 }
 0x338   :  { %9803 = vpow2.f32 %v4559_v14  ;;  %11788 = vst [vmem:[#allocation36_spill] sm:$0xff] %v11020_v47  ;;  %v4652_v6 = vsel %vm4384_vm2, %v11020_v47, 0.0 }
 0x33b   :  { %v4465_v27 = vpop.xlane.xlu0 %4464 }
 0x33c   :  { %v4507_v46 = vsub.f32 %v10839_v55, %v4465_v27  ;;  %v4631_v55 = vsel %vm4384_vm2, %v10998_v60, 0.0 }
 0x33e   :  { %v4565_v26 = vmul.f32 1.442695, %v4507_v46 }
 0x33f   :  { %4620 = vadd.xlane.f32.xlu1 %v4619_v5 }
 0x340   :  { %9805 = vpow2.f32 %v4565_v26 }
 0x343   :  { %v4468_v20 = vpop.xlane.xlu0 %4467 }
 0x344   :  { %v4508_v44 = vsub.f32 %v10843_v52, %v4468_v20  ;;  %v4649_v52 = vsel %vm4384_vm2, %v11000_v24, 0.0  ;;  %v11022_v20 = vpop.eup %9803 }
 0x345   :  { %11789 = vst [vmem:[#allocation37_spill] sm:$0xff] %v11022_v20  ;;  %v11053_v26 = vsel %vm4384_vm2, %v11022_v20, 0.0 }
 0x346   :  { %v4567_v53 = vmul.f32 1.442695, %v4508_v44  ;;  %v11026_v15 = vpop.eup %9805  ;;  %v4643_v44 = vsel %vm4384_vm2, %v11013_v43, 0.0 }
 0x347   :  { %4635 = vadd.xlane.f32.xlu1 %v4634_v21  ;;  %11790 = vst [vmem:[#allocation38_spill] sm:$0xff] %v11026_v15 }
 0x348   :  { %9807 = vpow2.f32 %v4567_v53  ;;  %v4655_v53 = vsel %vm4384_vm2, %v11026_v15, 0.0 }
 0x34b   :  { %v4474_v22 = vpop.xlane.xlu0 %4473 }
 0x34c   :  { %v4510_v42 = vsub.f32 %v10849_v10, %v4474_v22  ;;  %v3591_v10 = vpack.c.bf16 %v10594_v19, %v10594_v19 }
 0x34d   :  { %4632 = vadd.xlane.f32.xlu2 %v4631_v55 }
 0x34e   :  { %v4571_v41 = vmul.f32 1.442695, %v4510_v42  ;;  %v11028_v54 = vpop.eup %9807  ;;  %v11038_v62 = vsel %vm5188_vm1, %v3591_v10, 0 }
 0x34f   :  { %4650 = vadd.xlane.f32.xlu1 %v4649_v52  ;;  %11791 = vst [vmem:[#allocation39_spill] sm:$0xff] %v11028_v54  ;;  %v4658_v10 = vsel %vm4384_vm2, %v11028_v54, 0.0 }
 0x350   :  { %v4582_v27 = vpop.xlane.xlu1 %4581 }
 0x351   :  { %9809 = vrcp.f32 %v4582_v27  ;;  %v4696_v48 = vand.u32 2147483647, %v4582_v27  ;;  %v4698_v55 = vand.u32 2147483648, %v4582_v27  ;;  %vm4692_vm3 = vweird.f32 %v4582_v27 }
 0x353   :  { %v11011_v5 = vpop.xlane.xlu0 %4578  ;;  %vm11067_vm5 = vcmp.eq.f32.partialorder %v4696_v48, 8.507059e+37  ;;  %v4699_v54 = vor.u32 1.1754944e-38, %v4698_v55 }
 0x354   :  { %9811 = vrcp.f32 %v11011_v5  ;;  %v4682_v52 = vand.u32 2147483647, %v11011_v5  ;;  %vm4678_vm6 = vweird.f32 %v11011_v5 }
 0x355   :  { %9813 = vpow2.f32 %v4571_v41  ;;  %4638 = vadd.xlane.f32.xlu2 %v4637_v11  ;;  %v4684_v11 = vand.u32 2147483648, %v11011_v5 }
 0x356   :  { %vm11075_vm8 = vcmp.eq.f32.partialorder %v4682_v52, 8.507059e+37 }
 0x357   :  { %v9810_v32 = vpop.eup %9809  ;;  %v11042_v46 = vpop.xlane.xlu2 %4587  ;;  %4653 = vadd.xlane.f32.xlu1 %v4652_v6  ;;  %v4685_v24 = vor.u32 1.1754944e-38, %v4684_v11 }
 0x358   :  { %v4688_v22 = vmul.f32 %v9810_v32, %v4582_v27  ;;  %9815 = vrcp.f32 %v11042_v46  ;;  %v11049_v14 = vpop.xlane.xlu1 %4584  ;;  %vm4693_vm4 = vweird.f32 %v9810_v32  ;;  %v4724_v47 = vand.u32 2147483647, %v11042_v46 }
 0x359   :  { %9817 = vrcp.f32 %v11049_v14  ;;  %vm4720_vm9 = vweird.f32 %v11042_v46  ;;  %vm4694_vm10 = vmor %vm4692_vm3, %vm4693_vm4  ;;  %vm4706_vm11 = vweird.f32 %v11049_v14  ;;  %v4710_v55 = vand.u32 2147483647, %v11049_v14 }
 0x35a   :  { %v9812_v39 = vpop.eup %9811  ;;  %v4689_v8 = vsub.f32 1.0, %v4688_v22  ;;  %v4726_v22 = vand.u32 2147483648, %v11042_v46  ;;  %vm11094_vm13 = vcmp.eq.f32.partialorder %v4724_v47, 8.507059e+37 }
 0x35b   :  { %v4674_v42 = vmul.f32 %v9812_v39, %v11011_v5  ;;  %v11059_v41 = vpop.xlane.xlu0 %4593  ;;  %v11065_v6 = vpop.eup %9813  ;;  %vm4679_vm7 = vweird.f32 %v9812_v39  ;;  %vm11113_vm3 = vcmp.eq.f32.partialorder %v4710_v55, 8.507059e+37 }
 0x35c   :  { %11792 = vst [vmem:[#allocation40_spill] sm:$0xff] %v11065_v6  ;;  %v4690_v15 = vmul.f32 %v9810_v32, %v4689_v8  ;;  %9819 = vrcp.f32 %v11059_v41  ;;  %v11082_v8 = vsel %vm4384_vm2, %v11065_v6, 0.0  ;;  %vm4680_vm12 = vmor %vm4678_vm6, %vm4679_vm7  ;;  %v4727_v27 = vor.u32 1.1754944e-38, %v4726_v22 }
 0x35d   :  { %v4675_v21 = vsub.f32 1.0, %v4674_v42  ;;  %4641 = vadd.xlane.f32.xlu2 %v4640_v63  ;;  %v4712_v22 = vand.u32 2147483648, %v11049_v14 }
 0x35e   :  { %4644 = vadd.xlane.f32.xlu0 %v4643_v44  ;;  %v9816_v48 = vpop.eup %9815  ;;  %v4691_v42 = vadd.f32 %v9810_v32, %v4690_v15 }
 0x35f   :  { %v4676_v20 = vmul.f32 %v9812_v39, %v4675_v21  ;;  %v4716_v21 = vmul.f32 %v9816_v48, %v11042_v46  ;;  %v11089_v63 = vpop.xlane.xlu2 %4590  ;;  %4659 = vadd.xlane.f32.xlu1 %v4658_v10  ;;  %v9818_v15 = vpop.eup %9817  ;;  %vm4721_vm14 = vweird.f32 %v9816_v48 }
 0x360   :  { %v4695_v52 = vsel %vm4694_vm10, %v9810_v32, %v4691_v42  ;;  %9821 = vrcp.f32 %v11089_v63  ;;  %v4702_v10 = vmul.f32 %v9818_v15, %v11049_v14  ;;  %vm4707_vm15 = vweird.f32 %v9818_v15  ;;  %vm4722_vm4 = vmor %vm4720_vm9, %vm4721_vm14 }
 0x361   :  { %v4677_v44 = vadd.f32 %v9812_v39, %v4676_v20  ;;  %v4700_v20 = vsel %vm11067_vm5, %v4699_v54, %v4695_v52  ;;  %v4717_v23 = vsub.f32 1.0, %v4716_v21  ;;  %vm4748_vm5 = vweird.f32 %v11059_v41  ;;  %vm4708_vm7 = vmor %vm4706_vm11, %vm4707_vm15 }
 0x362   :  { %v11104_v32 = vpop.eup %9819  ;;  %v5122_v5 = vmul.f32 %v10858_v3, %v4700_v20  ;;  %v4703_v54 = vsub.f32 1.0, %v4702_v10  ;;  %v4754_v3 = vand.u32 2147483648, %v11059_v41  ;;  %vm4734_vm11 = vweird.f32 %v11089_v63 }
 0x363   :  { %v4681_v6 = vsel %vm4680_vm12, %v9812_v39, %v4677_v44  ;;  %v11102_v35 = vpop.xlane.xlu0 %4605  ;;  %v4718_v19 = vmul.f32 %v9816_v48, %v4717_v23  ;;  %v4744_v39 = vmul.f32 %v11104_v32, %v11059_v41  ;;  %v4713_v23 = vor.u32 1.1754944e-38, %v4712_v22 }
 0x364   :  { %v4686_v47 = vsel %vm11075_vm8, %v4685_v24, %v4681_v6  ;;  %v5154_v44 = vpack.c.bf16 %v5122_v5, %v5122_v5  ;;  %v4704_v6 = vmul.f32 %v9818_v15, %v4703_v54  ;;  %vm4749_vm6 = vweird.f32 %v11104_v32 }
 0x365   :  { %v5121_v42 = vmul.f32 %v10856_v36, %v4686_v47  ;;  %v4719_v43 = vadd.f32 %v9816_v48, %v4718_v19  ;;  %v4745_v52 = vsub.f32 1.0, %v4744_v39  ;;  %4647 = vadd.xlane.f32.xlu2 %v11053_v26  ;;  %9823 = vrcp.f32 %v11102_v35  ;;  %vm11152_vm8 = vmor %vm4748_vm5, %vm4749_vm6 }
 0x366   :  { %4656 = vadd.xlane.f32.xlu0 %v4655_v53  ;;  %v9822_v36 = vpop.eup %9821  ;;  %8604 = vmatmul.msk.bf16.vlgmr.msra.gmra.mxu1 %vm4384_vm2, %v5154_v44  ;;  %v4705_v55 = vadd.f32 %v9818_v15, %v4704_v6  ;;  %v4752_v5 = vand.u32 2147483647, %v11059_v41  ;;  %v4755_v47 = vor.u32 1.1754944e-38, %v4754_v3  ;;  %v11803_v41 = vpack.c.bf16 %v10968_v28, %v10968_v28 }
 0x367   :  { %v5153_v24 = vpack.c.bf16 %v5121_v42, %v5121_v42  ;;  %v4723_v53 = vsel %vm4722_vm4, %v9816_v48, %v4719_v43  ;;  %v4746_v20 = vmul.f32 %v11104_v32, %v4745_v52  ;;  %v4730_v26 = vmul.f32 %v9822_v36, %v11089_v63  ;;  %5370 = vmatpush.bf16.msra.mxu1 %v11035_v12  ;;  %v11129_v10 = vpop.xlane.xlu2 %4602  ;;  %v11141_v54 = vpop.xlane.xlu1 %4599 }
 0x368   :  { %v4728_v46 = vsel %vm11094_vm13, %v4727_v27, %v4723_v53  ;;  %v4738_v48 = vand.u32 2147483647, %v11089_v63  ;;  %v4709_v42 = vsel %vm4708_vm7, %v9818_v15, %v4705_v55  ;;  %vm4735_vm9 = vweird.f32 %v9822_v36 }
 0x369   :  { %8603 = vmatmul.msk.bf16.vlgmr.msra.gmra.mxu0 %vm4384_vm2, %v5153_v24  ;;  %v5124_v22 = vmul.f32 %v10868_v4, %v4728_v46  ;;  %v4747_v12 = vadd.f32 %v11104_v32, %v4746_v20  ;;  %v4731_v19 = vsub.f32 1.0, %v4730_v26  ;;  %v4714_v14 = vsel %vm11113_vm3, %v4713_v23, %v4709_v42  ;;  %vm4736_vm12 = vmor %vm4734_vm11, %vm4735_vm9 }
 0x36a   :  { %5351 = vmatpush.bf16.msra.mxu0 %v11038_v62  ;;  %v4740_v4 = vand.u32 2147483648, %v11089_v63  ;;  %9825 = vrcp.f32 %v11129_v10  ;;  %v5123_v62 = vmul.f32 %v10865_v13, %v4714_v14  ;;  %vm4753_vm10 = vcmp.eq.f32.partialorder %v4752_v5, 8.507059e+37 }
 0x36b   :  { %v11144_v11 = vpop.xlane.xlu0 %4596  ;;  %v5156_v15 = vpack.c.bf16 %v5124_v22, %v5124_v22  ;;  %v4751_v39 = vsel %vm11152_vm8, %v11104_v32, %v4747_v12  ;;  %v4732_v44 = vmul.f32 %v9822_v36, %v4731_v19  ;;  %v11162_v21 = vpop.eup %9823  ;;  %9827 = vrcp.f32 %v11141_v54 }
 0x36c   :  { %v5399_v3 = vsel %vm5188_vm1, %v11803_v41, 0  ;;  %v5155_v13 = vpack.c.bf16 %v5123_v62, %v5123_v62  ;;  %v4756_v24 = vsel %vm4753_vm10, %v4755_v47, %v4751_v39  ;;  %v4800_v32 = vmul.f32 %v11162_v21, %v11102_v35 }
 0x36d   :  { %v4733_v43 = vadd.f32 %v9822_v36, %v4732_v44  ;;  %8606 = vmatmul.msk.bf16.vlgmr.msra.gmra.mxu3 %vm4384_vm2, %v5156_v15  ;;  %v4741_v63 = vor.u32 1.1754944e-38, %v4740_v4  ;;  %v4808_v6 = vand.u32 2147483647, %v11102_v35  ;;  %v4810_v52 = vand.u32 2147483648, %v11102_v35 }
 0x36e   :  { %4665 = vadd.xlane.f32.xlu0 %v11082_v8  ;;  %5408 = vmatpush.bf16.msra.mxu3 %v5399_v3  ;;  %vm4739_vm13 = vcmp.eq.f32.partialorder %v4738_v48, 8.507059e+37  ;;  %v4801_v23 = vsub.f32 1.0, %v4800_v32  ;;  %v11804_v8 = vpack.c.bf16 %v10626_v2, %v10626_v2  ;;  %v5126_v26 = vmul.f32 %v10871_v31, %v4756_v24 }
 0x36f   :  { %v4737_v28 = vsel %vm4736_vm12, %v9822_v36, %v4733_v43  ;;  %8605 = vmatmul.msk.bf16.vlgmr.msra.gmra.mxu2 %vm4384_vm2, %v5155_v13  ;;  %v4480_v55 = vpop.xlane.xlu2 %4479  ;;  %9829 = vrcp.f32 %v11144_v11  ;;  %vm4804_vm14 = vweird.f32 %v11102_v35  ;;  %vm11191_vm15 = vcmp.eq.f32.partialorder %v4808_v6, 8.507059e+37 }
 0x370   :  { %v5380_v53 = vsel %vm5188_vm1, %v11804_v8, 0  ;;  %v11182_v20 = vpop.eup %9825  ;;  %v4742_v46 = vsel %vm4739_vm13, %v4741_v63, %v4737_v28  ;;  %v4802_v36 = vmul.f32 %v11162_v21, %v4801_v23  ;;  %v4811_v31 = vor.u32 1.1754944e-38, %v4810_v52 }
 0x371   :  { %5389 = vmatpush.bf16.msra.mxu2 %v5380_v53  ;;  %v4786_v5 = vmul.f32 %v11182_v20, %v11129_v10  ;;  %v9828_v2 = vpop.eup %9827  ;;  %v5125_v48 = vmul.f32 %v10881_v49, %v4742_v46  ;;  %vm4790_vm3 = vweird.f32 %v11129_v10  ;;  %vm4805_vm4 = vweird.f32 %v11162_v21 }
 0x372   :  { %v4803_v42 = vadd.f32 %v11162_v21, %v4802_v36  ;;  %v4772_v19 = vmul.f32 %v9828_v2, %v11141_v54  ;;  %v5158_v14 = vpack.c.bf16 %v5126_v26, %v5126_v26  ;;  %v4794_v27 = vand.u32 2147483647, %v11129_v10  ;;  %vm11207_vm5 = vmor %vm4804_vm14, %vm4805_vm4 }
 0x373   :  { %v4477_v47 = vpop.xlane.xlu0 %4476  ;;  %v4787_v12 = vsub.f32 1.0, %v4786_v5  ;;  %v4780_v4 = vand.u32 2147483647, %v11141_v54  ;;  %v4512_v49 = vsub.f32 %v10905_v61, %v4480_v55  ;;  %v4782_v39 = vand.u32 2147483648, %v11141_v54 }
 0x374   :  { %v4773_v62 = vsub.f32 1.0, %v4772_v19  ;;  %v4511_v44 = vsub.f32 %v10907_v50, %v4477_v47  ;;  %v5157_v3 = vpack.c.bf16 %v5125_v48, %v5125_v48  ;;  %v4796_v24 = vand.u32 2147483648, %v11129_v10 }
 0x375   :  { %v4788_v15 = vmul.f32 %v11182_v20, %v4787_v12  ;;  %v9830_v41 = vpop.eup %9829  ;;  %vm4776_vm6 = vweird.f32 %v11141_v54  ;;  %v4575_v61 = vmul.f32 1.442695, %v4512_v49  ;;  %v4807_v43 = vsel %vm11207_vm5, %v11162_v21, %v4803_v42 }
 0x376   :  { %8608 = vmatmul.msk.bf16.vlgmr.msrb.gmra.mxu1 %vm4384_vm2, %v5158_v14  ;;  %v4774_v50 = vmul.f32 %v9828_v2, %v4773_v62  ;;  %vm4777_vm7 = vweird.f32 %v9828_v2  ;;  %v4758_v32 = vmul.f32 %v9830_v41, %v11144_v11  ;;  %vm4791_vm8 = vweird.f32 %v11182_v20 }
 0x377   :  { %v11218_v35 = vpop.xlane.xlu2 %4614  ;;  %v4789_v63 = vadd.f32 %v11182_v20, %v4788_v15  ;;  %9831 = vpow2.f32 %v4575_v61  ;;  %v4573_v6 = vmul.f32 1.442695, %v4511_v44  ;;  %vm4781_vm9 = vcmp.eq.f32.partialorder %v4780_v4, 8.507059e+37  ;;  %vm4778_vm10 = vmor %vm4776_vm6, %vm4777_vm7 }
 0x378   :  { %v4775_v52 = vadd.f32 %v9828_v2, %v4774_v50  ;;  %v4783_v28 = vor.u32 1.1754944e-38, %v4782_v39  ;;  %v4759_v23 = vsub.f32 1.0, %v4758_v32  ;;  %v4812_v21 = vsel %vm11191_vm15, %v4811_v31, %v4807_v43  ;;  %vm11233_vm11 = vmor %vm4790_vm3, %vm4791_vm8 }
 0x379   :  { %8607 = vmatmul.msk.bf16.vlgmr.msrb.gmra.mxu0 %vm4384_vm2, %v5157_v3  ;;  %v4766_v53 = vand.u32 2147483647, %v11144_v11  ;;  %v4768_v55 = vand.u32 2147483648, %v11144_v11  ;;  %9833 = vpow2.f32 %v4573_v6  ;;  %vm4763_vm12 = vweird.f32 %v9830_v41 }
 0x37a   :  { %v4779_v46 = vsel %vm4778_vm10, %v9828_v2, %v4775_v52  ;;  %v4760_v36 = vmul.f32 %v9830_v41, %v4759_v23  ;;  %9835 = vrcp.f32 %v11218_v35  ;;  %v4793_v54 = vsel %vm11233_vm11, %v11182_v20, %v4789_v63 }
 0x37b   :  { %v11223_v8 = vpop.xlane.xlu0 %4608  ;;  %v4784_v5 = vsel %vm4781_vm9, %v4783_v28, %v4779_v46  ;;  %v4797_v47 = vor.u32 1.1754944e-38, %v4796_v24  ;;  %vm4762_vm13 = vweird.f32 %v11144_v11  ;;  %v11811_v2 = vpack.i.bf16 %v10691_v37, %v10674_v7 }
 0x37c   :  { %9837 = vrcp.f32 %v11223_v8  ;;  %v5128_v48 = vmul.f32 %v10891_v57, %v4784_v5  ;;  %v4761_v10 = vadd.f32 %v9830_v41, %v4760_v36  ;;  %v5130_v31 = vmul.f32 %v10883_v9, %v4812_v21  ;;  %vm4764_vm15 = vmor %vm4762_vm13, %vm4763_vm12  ;;  %v11812_v36 = vld [vmem:[#allocation29_spill] sm:$0xff] }
 0x37d   :  { %9699 = vrot.lane.b32.xlu2 %v11811_v2, %s10122_s7  ;;  %v11248_v22 = vpop.eup %9831  ;;  %vm4795_vm14 = vcmp.eq.f32.partialorder %v4794_v27, 8.507059e+37  ;;  %vm4767_vm3 = vcmp.eq.f32.partialorder %v4766_v53, 8.507059e+37  ;;  %v4769_v20 = vor.u32 1.1754944e-38, %v4768_v55  ;;  %v3599_v9 = vpack.c.bf16 %v10651_v59, %v10651_v59 }
 0x37e   :  { %v4798_v42 = vsel %vm4795_vm14, %v4797_v47, %v4793_v54  ;;  %v5160_v12 = vpack.c.bf16 %v5128_v48, %v5128_v48  ;;  %v4765_v19 = vsel %vm4764_vm15, %v9830_v41, %v4761_v10  ;;  %v4670_v57 = vsel %vm4384_vm2, %v11248_v22, 0.0 }
 0x37f   :  { %v9685_v11 = vpop.permute.xlu1 %9684  ;;  %v11253_v14 = vpop.eup %9833  ;;  %v4770_v4 = vsel %vm4767_vm3, %v4769_v20, %v4765_v19  ;;  %4671 = vadd.xlane.f32.xlu0 %v4670_v57  ;;  %v3364_v27 = vadd.f32 %v10717_v51, %v10681_v33  ;;  %v5129_v41 = vmul.f32 %v10889_v38, %v4798_v42  ;;  %v3600_v59 = vpack.c.bf16 %v10956_v0, %v10956_v0  ;;  %v11813_v57 = vld [vmem:[#allocation30_spill] sm:$0xff] }
 0x380   :  { %v11255_v49 = vpop.eup %9835  ;;  %v5127_v15 = vmul.f32 %v10894_v30, %v4770_v4  ;;  %8610 = vmatmul.msk.bf16.vlgmr.msrb.gmra.mxu3 %vm4384_vm2, %v5160_v12  ;;  %v11263_v62 = vpop.xlane.xlu2 %4629  ;;  %v9687_v13 = vunpack.i.h.bf16 %v9685_v11  ;;  %v9686_v24 = vunpack.i.l.bf16 %v9685_v11  ;;  %v5162_v51 = vpack.c.bf16 %v5130_v31, %v5130_v31 }
 0x381   :  { %v4842_v3 = vmul.f32 %v11255_v49, %v11218_v35  ;;  %9839 = vrcp.f32 %v11263_v62  ;;  %v3383_v63 = vadd.f32 %v10719_v16, %v3364_v27  ;;  %v4667_v6 = vsel %vm4384_vm2, %v11253_v14, 0.0 }
 0x382   :  { %v9838_v44 = vpop.eup %9837  ;;  %v5159_v61 = vpack.c.bf16 %v5127_v15, %v5127_v15  ;;  %v3596_v50 = vpack.c.bf16 %v9687_v13, %v9687_v13  ;;  %v3595_v32 = vpack.c.bf16 %v9686_v24, %v9686_v24  ;;  %v5161_v0 = vpack.c.bf16 %v5129_v41, %v5129_v41  ;;  %4668 = vadd.xlane.f32.xlu1 %v4667_v6 }
 0x383   :  { %v11265_v39 = vpop.xlane.xlu0 %4617  ;;  %v4814_v30 = vmul.f32 %v9838_v44, %v11223_v8  ;;  %v4843_v43 = vsub.f32 1.0, %v4842_v3  ;;  %v4824_v28 = vand.u32 2147483648, %v11223_v8  ;;  %vm4819_vm4 = vweird.f32 %v9838_v44 }
 0x384   :  { %8609 = vmatmul.msk.bf16.vlgmr.msrb.gmra.mxu2 %vm4384_vm2, %v5159_v61  ;;  %9841 = vrcp.f32 %v11265_v39  ;;  %v5418_v23 = vsel %vm5188_vm1, %v3595_v32, 0  ;;  %v4822_v16 = vand.u32 2147483647, %v11223_v8  ;;  %v5437_v53 = vsel %vm5188_vm1, %v3596_v50, 0  ;;  %v11815_v61 = vld [vmem:[#allocation28_spill] sm:$0xff] }
 0x385   :  { %v4815_v38 = vsub.f32 1.0, %v4814_v30  ;;  %v4844_v52 = vmul.f32 %v11255_v49, %v4843_v43  ;;  %5427 = vmatpush.bf16.msrb.mxu0 %v5418_v23  ;;  %vm4847_vm5 = vweird.f32 %v11255_v49  ;;  %5446 = vmatpush.bf16.msrb.mxu1 %v5437_v53  ;;  %v5513_v26 = vsel %vm5188_vm1, %v3600_v59, 0 }
 0x386   :  { %8612 = vmatmul.msk.bf16.vlgmr.msra.gmra.mxu1 %vm4384_vm2, %v5162_v51  ;;  %v5494_v46 = vsel %vm5188_vm1, %v3599_v9, 0  ;;  %v3402_v54 = vadd.f32 %v11812_v36, %v3383_v63  ;;  %v4852_v5 = vand.u32 2147483648, %v11218_v35  ;;  %vm4818_vm6 = vweird.f32 %v11223_v8 }
 0x387   :  { %v4816_v21 = vmul.f32 %v9838_v44, %v4815_v38  ;;  %v4845_v55 = vadd.f32 %v11255_v49, %v4844_v52  ;;  %v11295_v10 = vpop.eup %9839  ;;  %vm4846_vm7 = vweird.f32 %v11218_v35  ;;  %v4850_v2 = vand.u32 2147483647, %v11218_v35  ;;  %vm4820_vm8 = vmor %vm4818_vm6, %vm4819_vm4  ;;  %v11816_v38 = vld [vmem:[#allocation24_spill] sm:$0xff] }
 0x388   :  { %v4825_v31 = vor.u32 1.1754944e-38, %v4824_v28  ;;  %vm4848_vm9 = vmor %vm4846_vm7, %vm4847_vm5  ;;  %vm4823_vm10 = vcmp.eq.f32.partialorder %v4822_v16, 8.507059e+37  ;;  %v11306_v11 = vadd.f32 %v11813_v57, %v3402_v54  ;;  %v4853_v35 = vor.u32 1.1754944e-38, %v4852_v5  ;;  %v9695_v9 = vpop.permute.xlu2 %9694 }
 0x389   :  { %8611 = vmatmul.msk.bf16.vlgmr.msra.gmra.mxu0 %vm4384_vm2, %v5161_v0  ;;  %v4817_v47 = vadd.f32 %v9838_v44, %v4816_v21  ;;  %5522 = vmatpush.bf16.msra.mxu1 %v5513_v26  ;;  %v4849_v42 = vsel %vm4848_vm9, %v11255_v49, %v4845_v55  ;;  %vm4851_vm11 = vcmp.eq.f32.partialorder %v4850_v2, 8.507059e+37  ;;  %v4912_v27 = vmul.f32 %v11295_v10, %v11263_v62  ;;  %v11817_v0 = vld [vmem:[#allocation31_spill] sm:$0xff] }
 0x38a   :  { %5503 = vmatpush.bf16.msra.mxu0 %v5494_v46  ;;  %v9842_v20 = vpop.eup %9841  ;;  %v4854_v3 = vsel %vm4851_vm11, %v4853_v35, %v4849_v42  ;;  %v4866_v49 = vand.u32 2147483648, %v11265_v39  ;;  %v4864_v59 = vand.u32 2147483647, %v11265_v39  ;;  %v9696_v51 = vunpack.i.l.bf16 %v9695_v9 }
 0x38b   :  { %v11293_v48 = vpop.xlane.xlu0 %4626  ;;  %v4821_v8 = vsel %vm4820_vm8, %v9838_v44, %v4817_v47  ;;  %v4856_v19 = vmul.f32 %v9842_v20, %v11265_v39  ;;  %v11814_v44 = vld [vmem:[#allocation23_spill] sm:$0xff]  ;;  %vm4861_vm12 = vweird.f32 %v9842_v20  ;;  %vm4860_vm13 = vweird.f32 %v11265_v39  ;;  %v11818_v39 = vld [vmem:[#allocation26_spill] sm:$0xff] }
 0x38c   :  { %9843 = vrcp.f32 %v11293_v48  ;;  %v4826_v12 = vsel %vm4823_vm10, %v4825_v31, %v4821_v8  ;;  %v3359_v41 = vadd.f32 %v11814_v44, %v10681_v33  ;;  %v5133_v50 = vmul.f32 %v10917_v34, %v4854_v3  ;;  %vm4862_vm14 = vmor %vm4860_vm13, %vm4861_vm12  ;;  %v11819_v31 = vld [vmem:[#allocation27_spill] sm:$0xff] }
 0x38d   :  { %v5131_v4 = vmul.f32 %v10920_v29, %v4826_v12  ;;  %v4857_v15 = vsub.f32 1.0, %v4856_v19  ;;  %v9708_v29 = vpack.i.bf16 %v11306_v11, %v11815_v61  ;;  %v4913_v33 = vsub.f32 1.0, %v4912_v27 }
 0x38e   :  { %v9697_v63 = vunpack.i.h.bf16 %v9695_v9  ;;  %v3378_v6 = vadd.f32 %v11816_v38, %v3359_v41  ;;  %v4509_v52 = vsub.f32 %v11817_v0, %v10995_v45  ;;  %v4867_v28 = vor.u32 1.1754944e-38, %v4866_v49  ;;  %v11820_v9 = vld [vmem:[#allocation25_spill] sm:$0xff] }
 0x38f   :  { %v4858_v24 = vmul.f32 %v9842_v20, %v4857_v15  ;;  %v5163_v30 = vpack.c.bf16 %v5131_v4, %v5131_v4  ;;  %vm4865_vm15 = vcmp.eq.f32.partialorder %v4864_v59, 8.507059e+37  ;;  %v3603_v16 = vpack.c.bf16 %v9696_v51, %v9696_v51 }
 0x390   :  { %v3397_v53 = vadd.f32 %v11818_v39, %v3378_v6  ;;  %v5165_v26 = vpack.c.bf16 %v5133_v50, %v5133_v50  ;;  %v4914_v46 = vmul.f32 %v11295_v10, %v4913_v33  ;;  %v3604_v45 = vpack.c.bf16 %v9697_v63, %v9697_v63 }
 0x391   :  { %v4859_v32 = vadd.f32 %v9842_v20, %v4858_v24  ;;  %v4569_v54 = vmul.f32 1.442695, %v4509_v52  ;;  %v5570_v2 = vsel %vm5188_vm1, %v3603_v16, 0  ;;  %vm4917_vm4 = vweird.f32 %v11295_v10 }
 0x392   :  { %v9844_v13 = vpop.eup %9843  ;;  %v4908_v8 = vand.u32 2147483648, %v11293_v48  ;;  %v4915_v42 = vadd.f32 %v11295_v10, %v4914_v46  ;;  %vm4902_vm5 = vweird.f32 %v11293_v48  ;;  %v5589_v12 = vsel %vm5188_vm1, %v3604_v45, 0 }
 0x393   :  { %v4898_v43 = vmul.f32 %v9844_v13, %v11293_v48  ;;  %v4863_v21 = vsel %vm4862_vm14, %v9842_v20, %v4859_v32  ;;  %9709 = vrot.lane.b32.xlu0 %v9708_v29, %s10122_s7  ;;  %vm4903_vm3 = vweird.f32 %v9844_v13  ;;  %v3416_v20 = vadd.f32 %v11819_v31, %v3397_v53  ;;  %v11341_v4 = vpop.xlane.xlu0 %4623 }
 0x394   :  { %v4868_v55 = vsel %vm4865_vm15, %v4867_v28, %v4863_v21  ;;  %8613 = vmatmul.msk.bf16.vlgmr.msra.gmra.mxu2 %vm4384_vm2, %v5163_v30  ;;  %v4922_v19 = vand.u32 2147483648, %v11263_v62  ;;  %vm4904_vm6 = vmor %vm4902_vm5, %vm4903_vm3  ;;  %9845 = vpow2.f32 %v4569_v54  ;;  %vm4916_vm7 = vweird.f32 %v11263_v62 }
 0x395   :  { %v4899_v23 = vsub.f32 1.0, %v4898_v43  ;;  %v5134_v36 = vmul.f32 %v10933_v1, %v4868_v55  ;;  %v4906_v1 = vand.u32 2147483647, %v11293_v48  ;;  %v4920_v57 = vand.u32 2147483647, %v11263_v62  ;;  %vm4918_vm8 = vmor %vm4916_vm7, %vm4917_vm4 }
 0x396   :  { %v9703_v27 = vpack.i.bf16 %v3416_v20, %v11820_v9  ;;  %v4909_v48 = vor.u32 1.1754944e-38, %v4908_v8  ;;  %v4919_v15 = vsel %vm4918_vm8, %v11295_v10, %v4915_v42  ;;  %v4923_v44 = vor.u32 1.1754944e-38, %v4922_v19 }
 0x397   :  { %v4900_v34 = vmul.f32 %v9844_v13, %v4899_v23  ;;  %v5166_v5 = vpack.c.bf16 %v5134_v36, %v5134_v36  ;;  %vm4907_vm9 = vcmp.eq.f32.partialorder %v4906_v1, 8.507059e+37  ;;  %vm4921_vm10 = vcmp.eq.f32.partialorder %v4920_v57, 8.507059e+37 }
 0x398   :  { %v4924_v3 = vsel %vm4921_vm10, %v4923_v44, %v4919_v15  ;;  %v3608_v30 = vpack.c.bf16 %v3416_v20, %v3416_v20  ;;  %v3601_v50 = vpack.c.bf16 %v10674_v7, %v10674_v7  ;;  %9847 = vrcp.f32 %v11341_v4 }
 0x399   :  { %v4901_v47 = vadd.f32 %v9844_v13, %v4900_v34  ;;  %8615 = vmatmul.msk.bf16.vlgmr.msrb.gmra.mxu0 %vm4384_vm2, %v5165_v26  ;;  %8616 = vmatmul.msk.bf16.vlgmr.msrb.gmra.mxu1 %vm4384_vm2, %v5166_v5  ;;  %v5138_v24 = vmul.f32 %v10931_v18, %v4924_v3  ;;  %v4894_v15 = vand.u32 2147483648, %v11341_v4  ;;  %v4892_v44 = vand.u32 2147483647, %v11341_v4 }
 0x39a   :  { %5579 = vmatpush.bf16.msrb.mxu0 %v5570_v2  ;;  %5598 = vmatpush.bf16.msrb.mxu1 %v5589_v12  ;;  %v11348_v49 = vpop.eup %9845  ;;  %v5665_v0 = vsel %vm5188_vm1, %v3608_v30, 0  ;;  %v5532_v7 = vsel %vm5188_vm1, %v3601_v50, 0  ;;  %v3602_v2 = vpack.c.bf16 %v10691_v37, %v10691_v37 }
 0x39b   :  { %v4905_v35 = vsel %vm4904_vm6, %v9844_v13, %v4901_v47  ;;  %9704 = vrot.lane.b32.xlu1 %v9703_v27, %s10122_s7  ;;  %v3607_v13 = vpack.c.bf16 %v11820_v9, %v11820_v9  ;;  %v4661_v10 = vsel %vm4384_vm2, %v11348_v49, 0.0  ;;  %vm4888_vm6 = vweird.f32 %v11341_v4 }
 0x39c   :  { %v4910_v41 = vsel %vm4907_vm9, %v4909_v48, %v4905_v35  ;;  %v5551_v35 = vsel %vm5188_vm1, %v3602_v2, 0  ;;  %vm4893_vm9 = vcmp.eq.f32.partialorder %v4892_v44, 8.507059e+37  ;;  %v3610_v2 = vpack.c.bf16 %v11306_v11, %v11306_v11 }
 0x39d   :  { %v5137_v62 = vmul.f32 %v10943_v25, %v4910_v41  ;;  %v5170_v25 = vpack.c.bf16 %v5138_v24, %v5138_v24  ;;  %v5646_v63 = vsel %vm5188_vm1, %v3607_v13, 0 }
 0x39e   :  { %v9848_v52 = vpop.eup %9847 }
 0x39f   :  { %v5169_v43 = vpack.c.bf16 %v5137_v62, %v5137_v62  ;;  %v4884_v16 = vmul.f32 %v9848_v52, %v11341_v4  ;;  %vm4889_vm3 = vweird.f32 %v9848_v52 }
 0x3a0   :  { %vm4890_vm8 = vmor %vm4888_vm6, %vm4889_vm3 }
 0x3a1   :  { %v4885_v26 = vsub.f32 1.0, %v4884_v16 }
 0x3a3   :  { %v4886_v20 = vmul.f32 %v9848_v52, %v4885_v26 }
 0x3a5   :  { %v4887_v9 = vadd.f32 %v9848_v52, %v4886_v20 }
 0x3a6   :  { %v9690_v59 = vpop.permute.xlu0 %9689  ;;  %4662 = vadd.xlane.f32.xlu2 %v4661_v10  ;;  %v4895_v10 = vor.u32 1.1754944e-38, %v4894_v15 }
 0x3a7   :  { %v9692_v51 = vunpack.i.h.bf16 %v9690_v59  ;;  %v9691_v29 = vunpack.i.l.bf16 %v9690_v59  ;;  %v4891_v24 = vsel %vm4890_vm8, %v9848_v52, %v4887_v9 }
 0x3a8   :  { %v4896_v4 = vsel %vm4893_vm9, %v4895_v10, %v4891_v24  ;;  %v11823_v10 = vld [vmem:[#allocation34_spill] sm:$0xff] }
 0x3a9   :  { %v3598_v33 = vpack.c.bf16 %v9692_v51, %v9692_v51  ;;  %v3597_v32 = vpack.c.bf16 %v9691_v29, %v9691_v29  ;;  %8619 = vmatmul.msk.bf16.vlgmr.msra.gmra.mxu0 %vm4384_vm2, %v5169_v43  ;;  %8620 = vmatmul.msk.bf16.vlgmr.msra.gmra.mxu1 %vm4384_vm2, %v5170_v25 }
 0x3aa   :  { %5655 = vmatpush.bf16.msra.mxu0 %v5646_v63  ;;  %v4612_v6 = vpop.xlane.xlu1 %4611  ;;  %5674 = vmatpush.bf16.msra.mxu1 %v5665_v0 }
 0x3ab   :  { %v5456_v18 = vsel %vm5188_vm1, %v3597_v32, 0  ;;  %v5475_v38 = vsel %vm5188_vm1, %v3598_v33, 0  ;;  %9849 = vrcp.f32 %v4612_v6  ;;  %v4838_v53 = vand.u32 2147483648, %v4612_v6 }
 0x3ac   :  { %5465 = vmatpush.bf16.msrb.mxu2 %v5456_v18  ;;  %5484 = vmatpush.bf16.msrb.mxu3 %v5475_v38  ;;  %v4836_v34 = vand.u32 2147483647, %v4612_v6  ;;  %vm4832_vm12 = vweird.f32 %v4612_v6  ;;  %v5136_v32 = vmul.f32 %v10950_v40, %v4896_v4 }
 0x3ad   :  { %v4839_v45 = vor.u32 1.1754944e-38, %v4838_v53 }
 0x3ae   :  { %vm4837_vm14 = vcmp.eq.f32.partialorder %v4836_v34, 8.507059e+37 }
 0x3b0   :  { %5541 = vmatpush.bf16.msra.mxu2 %v5532_v7  ;;  %v5168_v7 = vpack.c.bf16 %v5136_v32, %v5136_v32 }
 0x3b1   :  { %v9850_v28 = vpop.eup %9849 }
 0x3b2   :  { %v4828_v23 = vmul.f32 %v9850_v28, %v4612_v6  ;;  %v4621_v21 = vpop.xlane.xlu1 %4620  ;;  %vm4833_vm11 = vweird.f32 %v9850_v28 }
 0x3b3   :  { %9851 = vrcp.f32 %v4621_v21  ;;  %vm4834_vm13 = vmor %vm4832_vm12, %vm4833_vm11  ;;  %v4880_v1 = vand.u32 2147483648, %v4621_v21  ;;  %v4878_v57 = vand.u32 2147483647, %v4621_v21  ;;  %vm4874_vm4 = vweird.f32 %v4621_v21 }
 0x3b4   :  { %v4829_v39 = vsub.f32 1.0, %v4828_v23 }
 0x3b5   :  { %vm4879_vm7 = vcmp.eq.f32.partialorder %v4878_v57, 8.507059e+37 }
 0x3b6   :  { %v4830_v55 = vmul.f32 %v9850_v28, %v4829_v39 }
 0x3b8   :  { %v4831_v46 = vadd.f32 %v9850_v28, %v4830_v55 }
 0x3b9   :  { %v9852_v36 = vpop.eup %9851 }
 0x3ba   :  { %v4835_v54 = vsel %vm4834_vm13, %v9850_v28, %v4831_v46  ;;  %v4870_v5 = vmul.f32 %v9852_v36, %v4621_v21  ;;  %v11367_v47 = vpop.xlane.xlu1 %4635  ;;  %vm4875_vm15 = vweird.f32 %v9852_v36 }
 0x3bb   :  { %v4840_v31 = vsel %vm4837_vm14, %v4839_v45, %v4835_v54  ;;  %9853 = vrcp.f32 %v11367_v47  ;;  %vm4876_vm5 = vmor %vm4874_vm4, %vm4875_vm15  ;;  %v4948_v34 = vand.u32 2147483647, %v11367_v47  ;;  %v4950_v26 = vand.u32 2147483648, %v11367_v47 }
 0x3bc   :  { %v5132_v8 = vmul.f32 %v10974_v58, %v4840_v31  ;;  %v4871_v42 = vsub.f32 1.0, %v4870_v5  ;;  %v4881_v58 = vor.u32 1.1754944e-38, %v4880_v1  ;;  %vm4944_vm15 = vweird.f32 %v11367_v47  ;;  %v11828_v31 = vld [vmem:[#allocation33_spill] sm:$0xff] }
 0x3bd   :  { %v3609_v5 = vpack.c.bf16 %v11815_v61, %v11815_v61  ;;  %v4951_v1 = vor.u32 1.1754944e-38, %v4950_v26 }
 0x3be   :  { %v5164_v12 = vpack.c.bf16 %v5132_v8, %v5132_v8  ;;  %v4872_v19 = vmul.f32 %v9852_v36, %v4871_v42 }
 0x3c0   :  { %v4873_v27 = vadd.f32 %v9852_v36, %v4872_v19  ;;  %v4633_v48 = vpop.xlane.xlu2 %4632  ;;  %8614 = vmatmul.msk.bf16.vlgmr.msra.gmra.mxu3 %vm4384_vm2, %v5164_v12 }
 0x3c1   :  { %v11375_v37 = vpop.eup %9853  ;;  %9855 = vrcp.f32 %v4633_v48  ;;  %5560 = vmatpush.bf16.msra.mxu3 %v5551_v35  ;;  %v4934_v18 = vand.u32 2147483647, %v4633_v48  ;;  %v4936_v38 = vand.u32 2147483648, %v4633_v48  ;;  %vm4930_vm11 = vweird.f32 %v4633_v48 }
 0x3c2   :  { %v4877_v41 = vsel %vm4876_vm5, %v9852_v36, %v4873_v27  ;;  %v11380_v3 = vpop.xlane.xlu1 %4650  ;;  %v4940_v13 = vmul.f32 %v11375_v37, %v11367_v47  ;;  %vm4945_vm12 = vweird.f32 %v11375_v37  ;;  %vm4949_vm5 = vcmp.eq.f32.partialorder %v4948_v34, 8.507059e+37 }
 0x3c3   :  { %v4882_v62 = vsel %vm4879_vm7, %v4881_v58, %v4877_v41  ;;  %9857 = vrcp.f32 %v11380_v3  ;;  %vm4935_vm14 = vcmp.eq.f32.partialorder %v4934_v18, 8.507059e+37  ;;  %v4937_v40 = vor.u32 1.1754944e-38, %v4936_v38  ;;  %vm11421_vm3 = vmor %vm4944_vm15, %vm4945_vm12 }
 0x3c4   :  { %v5135_v59 = vmul.f32 %v10979_v17, %v4882_v62  ;;  %v4941_v30 = vsub.f32 1.0, %v4940_v13  ;;  %v5018_v12 = vand.u32 2147483647, %v11380_v3  ;;  %v5020_v35 = vand.u32 2147483648, %v11380_v3 }
 0x3c6   :  { %v5167_v51 = vpack.c.bf16 %v5135_v59, %v5135_v59  ;;  %v4942_v17 = vmul.f32 %v11375_v37, %v4941_v30  ;;  %vm11458_vm12 = vcmp.eq.f32.partialorder %v5018_v12, 8.507059e+37 }
 0x3c7   :  { %v9856_v29 = vpop.eup %9855 }
 0x3c8   :  { %v4926_v43 = vmul.f32 %v9856_v29, %v4633_v48  ;;  %v11387_v50 = vpop.xlane.xlu2 %4638  ;;  %8617 = vmatmul.msk.bf16.vlgmr.msrb.gmra.mxu2 %vm4384_vm2, %v5167_v51  ;;  %vm4931_vm10 = vweird.f32 %v9856_v29  ;;  %v4943_v23 = vadd.f32 %v11375_v37, %v4942_v17 }
 0x3c9   :  { %v11390_v33 = vpop.eup %9857  ;;  %9859 = vrcp.f32 %v11387_v50  ;;  %vm4932_vm13 = vmor %vm4930_vm11, %vm4931_vm10  ;;  %v4962_v20 = vand.u32 2147483647, %v11387_v50  ;;  %v4964_v8 = vand.u32 2147483648, %v11387_v50  ;;  %vm4958_vm6 = vweird.f32 %v11387_v50 }
 0x3ca   :  { %v4927_v25 = vsub.f32 1.0, %v4926_v43  ;;  %v11394_v63 = vpop.xlane.xlu1 %4653  ;;  %v5010_v0 = vmul.f32 %v11390_v33, %v11380_v3  ;;  %vm5015_vm7 = vweird.f32 %v11390_v33  ;;  %vm5014_vm10 = vweird.f32 %v11380_v3  ;;  %v11830_v3 = vld [vmem:[#allocation35_spill] sm:$0xff] }
 0x3cb   :  { %9861 = vrcp.f32 %v11394_v63  ;;  %v4965_v15 = vor.u32 1.1754944e-38, %v4964_v8  ;;  %vm4963_vm9 = vcmp.eq.f32.partialorder %v4962_v20, 8.507059e+37  ;;  %vm11454_vm11 = vmor %vm5014_vm10, %vm5015_vm7  ;;  %v5021_v43 = vor.u32 1.1754944e-38, %v5020_v35 }
 0x3cc   :  { %v4928_v6 = vmul.f32 %v9856_v29, %v4927_v25  ;;  %v5011_v16 = vsub.f32 1.0, %v5010_v0  ;;  %v5034_v0 = vand.u32 2147483648, %v11394_v63 }
 0x3ce   :  { %v4929_v52 = vadd.f32 %v9856_v29, %v4928_v6  ;;  %v5012_v47 = vmul.f32 %v11390_v33, %v5011_v16  ;;  %v5032_v6 = vand.u32 2147483647, %v11394_v63 }
 0x3cf   :  { %v9860_v28 = vpop.eup %9859 }
 0x3d0   :  { %v4933_v21 = vsel %vm4932_vm13, %v9856_v29, %v4929_v52  ;;  %v4954_v39 = vmul.f32 %v9860_v28, %v11387_v50  ;;  %v11403_v53 = vpop.xlane.xlu2 %4641  ;;  %8618 = vmatmul.msk.bf16.vlgmr.msrb.gmra.mxu3 %vm4384_vm2, %v5168_v7  ;;  %vm4959_vm4 = vweird.f32 %v9860_v28  ;;  %v5013_v58 = vadd.f32 %v11390_v33, %v5012_v47 }
 0x3d1   :  { %v11406_v55 = vpop.xlane.xlu0 %4644  ;;  %v4938_v46 = vsel %vm4935_vm14, %v4937_v40, %v4933_v21  ;;  %9863 = vrcp.f32 %v11403_v53  ;;  %v11411_v36 = vpop.eup %9861  ;;  %vm4960_vm8 = vmor %vm4958_vm6, %vm4959_vm4  ;;  %v4978_v50 = vand.u32 2147483648, %v11403_v53  ;;  %vm4972_vm14 = vweird.f32 %v11403_v53 }
 0x3d2   :  { %v5139_v45 = vmul.f32 %v10998_v60, %v4938_v46  ;;  %v4955_v54 = vsub.f32 1.0, %v4954_v39  ;;  %v4947_v60 = vsel %vm11421_vm3, %v11375_v37, %v4943_v23  ;;  %v5024_v19 = vmul.f32 %v11411_v36, %v11394_v63  ;;  %v11436_v27 = vpop.xlane.xlu1 %4659 }
 0x3d3   :  { %v4952_v37 = vsel %vm4949_vm5, %v4951_v1, %v4947_v60  ;;  %9865 = vrcp.f32 %v11406_v55  ;;  %v5017_v32 = vsel %vm11454_vm11, %v11390_v33, %v5013_v58  ;;  %vm5029_vm15 = vweird.f32 %v11411_v36 }
 0x3d4   :  { %v4956_v42 = vmul.f32 %v9860_v28, %v4955_v54  ;;  %v5171_v57 = vpack.c.bf16 %v5139_v45, %v5139_v45  ;;  %v5025_v24 = vsub.f32 1.0, %v5024_v19  ;;  %9867 = vrcp.f32 %v11436_v27 }
 0x3d5   :  { %v5140_v59 = vmul.f32 %v10986_v56, %v4952_v37  ;;  %v4976_v56 = vand.u32 2147483647, %v11403_v53  ;;  %v5022_v40 = vsel %vm11458_vm12, %v5021_v43, %v5017_v32  ;;  %v4979_v23 = vor.u32 1.1754944e-38, %v4978_v50 }
 0x3d6   :  { %v4957_v9 = vadd.f32 %v9860_v28, %v4956_v42  ;;  %v5026_v38 = vmul.f32 %v11411_v36, %v5025_v24  ;;  %vm5028_vm5 = vweird.f32 %v11394_v63  ;;  %vm4986_vm6 = vweird.f32 %v11406_v55 }
 0x3d7   :  { %v9864_v48 = vpop.eup %9863  ;;  %v5172_v7 = vpack.c.bf16 %v5140_v59, %v5140_v59  ;;  %vm4977_vm4 = vcmp.eq.f32.partialorder %v4976_v56, 8.507059e+37  ;;  %v4992_v45 = vand.u32 2147483648, %v11406_v55 }
 0x3d8   :  { %v4961_v44 = vsel %vm4960_vm8, %v9860_v28, %v4957_v9  ;;  %v4968_v41 = vmul.f32 %v9864_v48, %v11403_v53  ;;  %v11442_v62 = vpop.xlane.xlu2 %4647  ;;  %8621 = vmatmul.msk.bf16.vlgmr.msra.gmra.mxu2 %vm4384_vm2, %v5171_v57  ;;  %vm4973_vm13 = vweird.f32 %v9864_v48  ;;  %v4990_v53 = vand.u32 2147483647, %v11406_v55 }
 0x3d9   :  { %v4966_v13 = vsel %vm4963_vm9, %v4965_v15, %v4961_v44  ;;  %9869 = vrcp.f32 %v11442_v62  ;;  %v11450_v4 = vpop.xlane.xlu0 %4656  ;;  %v9866_v18 = vpop.eup %9865  ;;  %vm4974_vm3 = vmor %vm4972_vm14, %vm4973_vm13  ;;  %v5027_v26 = vadd.f32 %v11411_v36, %v5026_v38  ;;  %v5004_v60 = vand.u32 2147483647, %v11442_v62 }
 0x3da   :  { %v5141_v51 = vmul.f32 %v11823_v10, %v4966_v13  ;;  %v4969_v29 = vsub.f32 1.0, %v4968_v41  ;;  %9871 = vrcp.f32 %v11450_v4  ;;  %v4982_v28 = vmul.f32 %v9866_v18, %v11406_v55  ;;  %v11474_v33 = vpop.eup %9867  ;;  %v11829_v10 = vld [vmem:[#allocation32_spill] sm:$0xff]  ;;  %vm11509_vm14 = vmor %vm5028_vm5, %vm5029_vm15 }
 0x3db   :  { %vm4987_vm7 = vweird.f32 %v9866_v18  ;;  %v5052_v42 = vmul.f32 %v11474_v33, %v11436_v27  ;;  %v4993_v15 = vor.u32 1.1754944e-38, %v4992_v45  ;;  %vm4991_vm10 = vcmp.eq.f32.partialorder %v4990_v53, 8.507059e+37 }
 0x3dc   :  { %v5173_v25 = vpack.c.bf16 %v5141_v51, %v5141_v51  ;;  %v4970_v17 = vmul.f32 %v9864_v48, %v4969_v29  ;;  %v4983_v39 = vsub.f32 1.0, %v4982_v28  ;;  %vm4988_vm8 = vmor %vm4986_vm6, %vm4987_vm7  ;;  %v5145_v51 = vmul.f32 %v11829_v10, %v5022_v40  ;;  %v11833_v40 = vld [vmem:[#allocation37_spill] sm:$0xff] }
 0x3dd   :  { %vm5000_vm11 = vweird.f32 %v11442_v62  ;;  %v5053_v55 = vsub.f32 1.0, %v5052_v42  ;;  %vm5005_vm13 = vcmp.eq.f32.partialorder %v5004_v60, 8.507059e+37  ;;  %v5035_v28 = vor.u32 1.1754944e-38, %v5034_v0 }
 0x3de   :  { %v4971_v52 = vadd.f32 %v9864_v48, %v4970_v17  ;;  %8623 = vmatmul.msk.bf16.vlgmr.msrb.gmra.mxu0 %vm4384_vm2, %v5173_v25  ;;  %v4984_v8 = vmul.f32 %v9866_v18, %v4983_v39  ;;  %v5177_v39 = vpack.c.bf16 %v5145_v51, %v5145_v51  ;;  %vm5033_vm15 = vcmp.eq.f32.partialorder %v5032_v6, 8.507059e+37 }
 0x3df   :  { %v9870_v21 = vpop.eup %9869  ;;  %v5054_v61 = vmul.f32 %v11474_v33, %v5053_v55  ;;  %v5048_v11 = vand.u32 2147483648, %v11450_v4  ;;  %v5046_v63 = vand.u32 2147483647, %v11450_v4  ;;  %vm5057_vm5 = vweird.f32 %v11474_v33 }
 0x3e0   :  { %v4975_v16 = vsel %vm4974_vm3, %v9864_v48, %v4971_v52  ;;  %v9700_v34 = vpop.permute.xlu2 %9699  ;;  %8622 = vmatmul.msk.bf16.vlgmr.msra.gmra.mxu3 %vm4384_vm2, %v5172_v7  ;;  %v4996_v54 = vmul.f32 %v9870_v21, %v11442_v62  ;;  %v11488_v47 = vpop.eup %9871  ;;  %v4985_v9 = vadd.f32 %v9866_v18, %v4984_v8  ;;  %v5006_v48 = vand.u32 2147483648, %v11442_v62 }
 0x3e1   :  { %v4980_v46 = vsel %vm4977_vm4, %v4979_v23, %v4975_v16  ;;  %v9702_v12 = vunpack.i.h.bf16 %v9700_v34  ;;  %v9701_v19 = vunpack.i.l.bf16 %v9700_v34  ;;  %v5038_v37 = vmul.f32 %v11488_v47, %v11450_v4 }
 0x3e2   :  { %v5142_v20 = vmul.f32 %v11828_v31, %v4980_v46  ;;  %v4997_v1 = vsub.f32 1.0, %v4996_v54  ;;  %vm5001_vm9 = vweird.f32 %v9870_v21  ;;  %v4989_v13 = vsel %vm4988_vm8, %v9866_v18, %v4985_v9 }
 0x3e3   :  { %v11492_v57 = vpop.f32.mrf.mxu1  ;;  %v3606_v44 = vpack.c.bf16 %v9702_v12, %v9702_v12  ;;  %v5039_v24 = vsub.f32 1.0, %v5038_v37  ;;  %v3605_v59 = vpack.c.bf16 %v9701_v19, %v9701_v19  ;;  %v4994_v29 = vsel %vm4991_vm10, %v4993_v15, %v4989_v13  ;;  %vm5002_vm12 = vmor %vm5000_vm11, %vm5001_vm9  ;;  %v11838_v13 = vld [vmem:[#allocation39_spill] sm:$0xff] }
 0x3e4   :  { %v5174_v35 = vpack.c.bf16 %v5142_v20, %v5142_v20  ;;  %v4998_v58 = vmul.f32 %v9870_v21, %v4997_v1  ;;  %v5143_v43 = vmul.f32 %v11830_v3, %v4994_v29  ;;  %v5007_v56 = vor.u32 1.1754944e-38, %v5006_v48  ;;  %v11837_v48 = vld [vmem:[#allocation38_spill] sm:$0xff] }
 0x3e5   :  { %v5040_v25 = vmul.f32 %v11488_v47, %v5039_v24  ;;  %v5608_v17 = vsel %vm5188_vm1, %v3605_v59, 0  ;;  %v5627_v62 = vsel %vm5188_vm1, %v3606_v44, 0  ;;  %v5031_v18 = vsel %vm11509_vm14, %v11411_v36, %v5027_v26 }
 0x3e6   :  { %v11499_v41 = vpop.f32.mrf.mxu0  ;;  %8624 = vmatmul.msk.bf16.vlgmr.msrb.gmra.mxu1 %vm4384_vm2, %v5174_v35  ;;  %v4999_v30 = vadd.f32 %v9870_v21, %v4998_v58  ;;  %v5175_v38 = vpack.c.bf16 %v5143_v43, %v5143_v43  ;;  %5617 = vmatpush.bf16.msrb.mxu2 %v5608_v17  ;;  %v5684_v52 = vsel %vm5188_vm1, %v3609_v5, 0  ;;  %v5703_v36 = vsel %vm5188_vm1, %v3610_v2, 0  ;;  %v11834_v2 = vld [vmem:[#allocation36_spill] sm:$0xff] }
 0x3e7   :  { %5636 = vmatpush.bf16.msrb.mxu3 %v5627_v62  ;;  %v5036_v5 = vsel %vm5033_vm15, %v5035_v28, %v5031_v18  ;;  %v5041_v0 = vadd.f32 %v11488_v47, %v5040_v25  ;;  %vm5043_vm3 = vweird.f32 %v11488_v47  ;;  %vm5042_vm4 = vweird.f32 %v11450_v4 }
 0x3e8   :  { %v5003_v32 = vsel %vm5002_vm12, %v9870_v21, %v4999_v30  ;;  %v11526_v21 = vpop.xlane.xlu0 %4665  ;;  %v5146_v6 = vmul.f32 %v11834_v2, %v5036_v5  ;;  %v5055_v26 = vadd.f32 %v11474_v33, %v5054_v61  ;;  %vm11545_vm6 = vmor %vm5042_vm4, %vm5043_vm3  ;;  %v5062_v54 = vand.u32 2147483648, %v11436_v27 }
 0x3e9   :  { %v5008_v7 = vsel %vm5005_vm13, %v5007_v56, %v5003_v32  ;;  %8625 = vmatmul.msk.bf16.vlgmr.msrb.gmra.mxu2 %vm4384_vm2, %v5175_v38  ;;  %v5045_v4 = vsel %vm11545_vm6, %v11488_v47, %v5041_v0  ;;  %vm5056_vm7 = vweird.f32 %v11436_v27  ;;  %v5060_v31 = vand.u32 2147483647, %v11436_v27 }
 0x3ea   :  { %v5144_v23 = vmul.f32 %v11833_v40, %v5008_v7  ;;  %5693 = vmatpush.bf16.msra.mxu2 %v5684_v52  ;;  %v5049_v20 = vor.u32 1.1754944e-38, %v5048_v11  ;;  %vm5058_vm8 = vmor %vm5056_vm7, %vm5057_vm5  ;;  %vm5047_vm9 = vcmp.eq.f32.partialorder %v5046_v63, 8.507059e+37  ;;  %v5178_v1 = vpack.c.bf16 %v5146_v6, %v5146_v6 }
 0x3eb   :  { %v5222_v16 = vpop.f32.mrf.mxu1  ;;  %5712 = vmatpush.bf16.msra.mxu3 %v5703_v36  ;;  %v5059_v12 = vsel %vm5058_vm8, %v11474_v33, %v5055_v26  ;;  %v5063_v35 = vor.u32 1.1754944e-38, %v5062_v54  ;;  %vm5061_vm10 = vcmp.eq.f32.partialorder %v5060_v31, 8.507059e+37  ;;  %vm5084_vm7 = vweird.f32 %v11526_v21 }
 0x3ec   :  { %v5176_v34 = vpack.c.bf16 %v5144_v23, %v5144_v23  ;;  %v5050_v19 = vsel %vm5047_vm9, %v5049_v20, %v5045_v4 }
 0x3ed   :  { %v5064_v9 = vsel %vm5061_vm10, %v5063_v35, %v5059_v12  ;;  %v5147_v37 = vmul.f32 %v11837_v48, %v5050_v19 }
 0x3ee   :  { %v5203_v53 = vpop.f32.mrf.mxu0  ;;  %8627 = vmatmul.msk.bf16.vlgmr.msra.gmra.mxu0 %vm4384_vm2, %v5177_v39  ;;  %v5148_v33 = vmul.f32 %v11838_v13, %v5064_v9  ;;  %v8749_v13 = vld [vmem:[#allocation13 + $0xe0] sm:$0xf] }
 0x3ef   :  { %v5179_v10 = vpack.c.bf16 %v5147_v37, %v5147_v37 }
 0x3f0   :  { %v11549_v45 = vpop.f32.mrf.mxu3  ;;  %8626 = vmatmul.msk.bf16.vlgmr.msrb.gmra.mxu3 %vm4384_vm2, %v5176_v34  ;;  %v5180_v3 = vpack.c.bf16 %v5148_v33, %v5148_v33 }
 0x3f2   :  { %v11558_v8 = vpop.f32.mrf.mxu2  ;;  %v4672_v60 = vpop.xlane.xlu0 %4671 }
 0x3f3   :  { %v5296_v42 = vpop.f32.mrf.mxu1  ;;  %9873 = vrcp.f32 %v4672_v60  ;;  %v5118_v25 = vand.u32 2147483648, %v4672_v60  ;;  %vm5112_vm12 = vweird.f32 %v4672_v60  ;;  %v5116_v18 = vand.u32 2147483647, %v4672_v60 }
 0x3f4   :  { %9875 = vrcp.f32 %v11526_v21 }
 0x3f5   :  { %v4669_v58 = vpop.xlane.xlu1 %4668  ;;  %v5119_v16 = vor.u32 1.1754944e-38, %v5118_v25  ;;  %vm5117_vm15 = vcmp.eq.f32.partialorder %v5116_v18, 8.507059e+37 }
 0x3f6   :  { %v5277_v47 = vpop.f32.mrf.mxu0  ;;  %8628 = vmatmul.msk.bf16.vlgmr.msra.gmra.mxu1 %vm4384_vm2, %v5178_v1  ;;  %9877 = vrcp.f32 %v4669_v58  ;;  %v5102_v40 = vand.u32 2147483647, %v4669_v58  ;;  %v5104_v23 = vand.u32 2147483648, %v4669_v58  ;;  %vm5098_vm3 = vweird.f32 %v4669_v58 }
 0x3f7   :  { %v9718_v27 = vpack.i.bf16 %v5296_v42, %v5277_v47  ;;  %v5090_v42 = vand.u32 2147483648, %v11526_v21  ;;  %v5088_v47 = vand.u32 2147483647, %v11526_v21 }
 0x3f8   :  { %v5260_v15 = vpop.f32.mrf.mxu3  ;;  %vm5103_vm5 = vcmp.eq.f32.partialorder %v5102_v40, 8.507059e+37  ;;  %v5105_v2 = vor.u32 1.1754944e-38, %v5104_v23 }
 0x3f9   :  { %9719 = vrot.lane.b32.xlu2 %v9718_v27, %s10122_s7  ;;  %v9874_v44 = vpop.eup %9873  ;;  %8629 = vmatmul.msk.bf16.vlgmr.msra.gmra.mxu2 %vm4384_vm2, %v5179_v10  ;;  %v5091_v15 = vor.u32 1.1754944e-38, %v5090_v42  ;;  %vm5089_vm9 = vcmp.eq.f32.partialorder %v5088_v47, 8.507059e+37  ;;  %v11841_v10 = vld [vmem:[#allocation40_spill] sm:$0xff]  ;;  %v8669_v47 = vld [vmem:[#allocation13 + $0x40] sm:$0xf] }
 0x3fa   :  { %v5241_v24 = vpop.f32.mrf.mxu2  ;;  %v11566_v59 = vpop.eup %9875  ;;  %v5108_v51 = vmul.f32 %v9874_v44, %v4672_v60  ;;  %vm5113_vm11 = vweird.f32 %v9874_v44 }
 0x3fb   :  { %v5298_v29 = vpop.f32.mrf.mxu1  ;;  %v5080_v43 = vmul.f32 %v11566_v59, %v11526_v21  ;;  %vm11572_vm13 = vmor %vm5112_vm12, %vm5113_vm11  ;;  %vm5085_vm6 = vweird.f32 %v11566_v59  ;;  %v9561_v21 = vld [vmem:[#allocation13 + $0xec] sm:$0xf0] }
 0x3fc   :  { %v5109_v30 = vsub.f32 1.0, %v5108_v51  ;;  %v9878_v50 = vpop.eup %9877  ;;  %vm5086_vm8 = vmor %vm5084_vm7, %vm5085_vm6 }
 0x3fd   :  { %v5094_v17 = vmul.f32 %v9878_v50, %v4669_v58  ;;  %v5081_v62 = vsub.f32 1.0, %v5080_v43  ;;  %vm5099_vm14 = vweird.f32 %v9878_v50  ;;  %v9557_v43 = vld [vmem:[#allocation13 + $0xcc] sm:$0xf0] }
 0x3fe   :  { %v5279_v55 = vpop.f32.mrf.mxu0  ;;  %v5110_v56 = vmul.f32 %v9874_v44, %v5109_v30  ;;  %vm5100_vm4 = vmor %vm5098_vm3, %vm5099_vm14 }
 0x3ff   :  { %v5095_v7 = vsub.f32 1.0, %v5094_v17  ;;  %v5082_v5 = vmul.f32 %v11566_v59, %v5081_v62  ;;  %v8750_v55 = vor.u32 %v9561_v21, %v8749_v13  ;;  %v8637_v13 = vld [vmem:[#allocation13] sm:$0xf]  ;;  %v9533_v21 = vld [vmem:[#allocation13 + $0xc] sm:$0xf0] }
 0x400   :  { %8630 = vmatmul.msk.bf16.vlgmr.msra.gmra.mxu3 %vm4384_vm2, %v5180_v3  ;;  %v5111_v32 = vadd.f32 %v9874_v44, %v5110_v56  ;;  %v8733_v3 = vld [vmem:[#allocation13 + $0xc0] sm:$0xf] }
 0x401   :  { %v5096_v39 = vmul.f32 %v9878_v50, %v5095_v7  ;;  %v5083_v31 = vadd.f32 %v11566_v59, %v5082_v5  ;;  %v8734_v18 = vor.u32 %v9557_v43, %v8733_v3  ;;  %v8717_v5 = vld [vmem:[#allocation13 + $0xa0] sm:$0xf] }
 0x402   :  { %v5115_v28 = vsel %vm11572_vm13, %v9874_v44, %v5111_v32 }
 0x403   :  { %v11576_v52 = vpop.f32.mrf.mxu1  ;;  %v11580_v36 = vpop.f32.mrf.mxu3  ;;  %v5120_v53 = vsel %vm5117_vm15, %v5119_v16, %v5115_v28  ;;  %v5097_v34 = vadd.f32 %v9878_v50, %v5096_v39  ;;  %v5087_v48 = vsel %vm5086_vm8, %v11566_v59, %v5083_v31 }
 0x404   :  { %v5152_v20 = vmul.f32 %v11248_v22, %v5120_v53  ;;  %v5092_v58 = vsel %vm5089_vm9, %v5091_v15, %v5087_v48 }
 0x405   :  { %v9710_v0 = vpop.permute.xlu0 %9709  ;;  %v5101_v26 = vsel %vm5100_vm4, %v9878_v50, %v5097_v34  ;;  %v5150_v51 = vmul.f32 %v11841_v10, %v5092_v58  ;;  %v9537_v58 = vld [vmem:[#allocation13 + $0x2c] sm:$0xf0] }
 0x406   :  { %v11582_v61 = vpop.f32.mrf.mxu0  ;;  %v9712_v11 = vunpack.i.h.bf16 %v9710_v0  ;;  %v9711_v63 = vunpack.i.l.bf16 %v9710_v0  ;;  %v5106_v60 = vsel %vm5103_vm5, %v5105_v2, %v5101_v26  ;;  %v5184_v37 = vpack.c.bf16 %v5152_v20, %v5152_v20  ;;  %v9553_v0 = vld [vmem:[#allocation13 + $0xac] sm:$0xf0] }
 0x407   :  { %v11585_v6 = vpop.f32.mrf.mxu2  ;;  %v5151_v1 = vmul.f32 %v11253_v14, %v5106_v60  ;;  %v5182_v25 = vpack.c.bf16 %v5150_v51, %v5150_v51  ;;  %v8718_v34 = vor.u32 %v9553_v0, %v8717_v5 }
 0x408   :  { %v3614_v46 = vpack.c.bf16 %v9712_v11, %v9712_v11  ;;  %v3613_v54 = vpack.c.bf16 %v9711_v63, %v9711_v63  ;;  %v9738_v4 = vpack.i.bf16 %v11580_v36, %v11585_v6  ;;  %v8701_v11 = vld [vmem:[#allocation13 + $0x80] sm:$0xf]  ;;  %v9549_v63 = vld [vmem:[#allocation13 + $0x8c] sm:$0xf0] }
 0x409   :  { %v5183_v9 = vpack.c.bf16 %v5151_v1, %v5151_v1  ;;  %v9625_v36 = vld [vmem:[#allocation13 + $0x2ec] sm:$0xf0] }
 0x40a   :  { %v5760_v12 = vsel %vm5188_vm1, %v3613_v54, 0  ;;  %v5779_v19 = vsel %vm5188_vm1, %v3614_v46, 0  ;;  %v8702_v54 = vor.u32 %v9549_v63, %v8701_v11 }
 0x40b   :  { %v5374_v35 = vpop.f32.mrf.mxu1  ;;  %v5336_v27 = vpop.f32.mrf.mxu3  ;;  %5769 = vmatpush.bf16.msrb.mxu2 %v5760_v12  ;;  %5788 = vmatpush.bf16.msrb.mxu3 %v5779_v19  ;;  %v8685_v19 = vld [vmem:[#allocation13 + $0x60] sm:$0xf] }
 0x40c   :  { %v9545_v35 = vld [vmem:[#allocation13 + $0x6c] sm:$0xf0] }
 0x40d   :  { %v9705_v44 = vpop.permute.xlu1 %9704  ;;  %v8686_v27 = vor.u32 %v9545_v35, %v8685_v19 }
 0x40e   :  { %v5355_v22 = vpop.f32.mrf.mxu0  ;;  %8633 = vmatmul.msk.bf16.vlgmr.msrb.gmra.mxu2 %vm4384_vm2, %v5183_v9  ;;  %v9707_v33 = vunpack.i.h.bf16 %v9705_v44  ;;  %v9706_v24 = vunpack.i.l.bf16 %v9705_v44  ;;  %v9541_v9 = vld [vmem:[#allocation13 + $0x4c] sm:$0xf0] }
 0x40f   :  { %v5317_v14 = vpop.f32.mrf.mxu2 }
 0x410   :  { %8634 = vmatmul.msk.bf16.vlgmr.msrb.gmra.mxu3 %vm4384_vm2, %v5184_v37  ;;  %v3612_v29 = vpack.c.bf16 %v9707_v33, %v9707_v33  ;;  %v3611_v30 = vpack.c.bf16 %v9706_v24, %v9706_v24  ;;  %v8670_v37 = vor.u32 %v9541_v9, %v8669_v47  ;;  %v8653_v14 = vld [vmem:[#allocation13 + $0x20] sm:$0xf] }
 0x411   :  { %v8654_v44 = vor.u32 %v9537_v58, %v8653_v14  ;;  %v8989_v47 = vld [vmem:[#allocation13 + $0x2c0] sm:$0xf] }
 0x412   :  { %v5722_v56 = vsel %vm5188_vm1, %v3611_v30, 0  ;;  %v5741_v50 = vsel %vm5188_vm1, %v3612_v29, 0  ;;  %v8877_v9 = vld [vmem:[#allocation13 + $0x1e0] sm:$0xf] }
 0x413   :  { %5731 = vmatpush.bf16.msrb.mxu0 %v5722_v56  ;;  %5750 = vmatpush.bf16.msrb.mxu1 %v5741_v50  ;;  %v8861_v58 = vld [vmem:[#allocation13 + $0x1c0] sm:$0xf] }
 0x416   :  { %v11602_v59 = vpop.f32.mrf.mxu0  ;;  %v11606_v32 = vpop.f32.mrf.mxu1  ;;  %8632 = vmatmul.msk.bf16.vlgmr.msrb.gmra.mxu1 %vm4384_vm2, %v5182_v25 }
 0x417   :  { %v11608_v17 = vpop.f32.mrf.mxu2  ;;  %v9723_v62 = vpack.i.bf16 %v11606_v32, %v11602_v59  ;;  %6660 = vmatpush.bf16.msra.mxu0 %v8750_v55 }
 0x419   :  { %v4663_v38 = vpop.xlane.xlu2 %4662 }
 0x41a   :  { %9879 = vrcp.f32 %v4663_v38  ;;  %v5076_v53 = vand.u32 2147483648, %v4663_v38  ;;  %v5074_v26 = vand.u32 2147483647, %v4663_v38  ;;  %vm5070_vm10 = vweird.f32 %v4663_v38 }
 0x41b   :  { %6661 = vmatpush.bf16.msra.mxu0 %v8734_v18 }
 0x41c   :  { %v5077_v60 = vor.u32 1.1754944e-38, %v5076_v53  ;;  %vm5075_vm12 = vcmp.eq.f32.partialorder %v5074_v26, 8.507059e+37 }
 0x41e   :  { %v5431_v7 = vpop.f32.mrf.mxu0  ;;  %v5450_v28 = vpop.f32.mrf.mxu1 }
 0x41f   :  { %v5393_v23 = vpop.f32.mrf.mxu2  ;;  %6662 = vmatpush.bf16.msra.mxu0 %v8718_v34 }
 0x420   :  { %v9880_v40 = vpop.eup %9879 }
 0x421   :  { %v5066_v16 = vmul.f32 %v9880_v40, %v4663_v38  ;;  %vm5071_vm1 = vweird.f32 %v9880_v40 }
 0x422   :  { %vm5072_vm11 = vmor %vm5070_vm10, %vm5071_vm1 }
 0x423   :  { %v5067_v39 = vsub.f32 1.0, %v5066_v16  ;;  %6663 = vmatpush.bf16.msra.mxu0 %v8702_v54 }
 0x425   :  { %v5068_v2 = vmul.f32 %v9880_v40, %v5067_v39 }
 0x426   :  { %v11613_v46 = vpop.f32.mrf.mxu0  ;;  %v11615_v20 = vpop.f32.mrf.mxu1 }
 0x427   :  { %v5069_v31 = vadd.f32 %v9880_v40, %v5068_v2  ;;  %6664 = vmatpush.bf16.msra.mxu0 %v8686_v27  ;;  %v9621_v27 = vld [vmem:[#allocation13 + $0x2cc] sm:$0xf0] }
 0x429   :  { %v5073_v42 = vsel %vm5072_vm11, %v9880_v40, %v5069_v31 }
 0x42a   :  { %v5078_v1 = vsel %vm5075_vm12, %v5077_v60, %v5073_v42 }
 0x42b   :  { %v5149_v12 = vmul.f32 %v11348_v49, %v5078_v1  ;;  %6665 = vmatpush.bf16.msra.mxu0 %v8670_v37  ;;  %v8638_v49 = vor.u32 %v9533_v21, %v8637_v13  ;;  %v8973_v37 = vld [vmem:[#allocation13 + $0x2a0] sm:$0xf] }
 0x42d   :  { %v5181_v22 = vpack.c.bf16 %v5149_v12, %v5149_v12  ;;  %v9005_v12 = vld [vmem:[#allocation13 + $0x2e0] sm:$0xf] }
 0x42e   :  { %v5507_v48 = vpop.f32.mrf.mxu0  ;;  %v5526_v15 = vpop.f32.mrf.mxu1  ;;  %v9006_v6 = vor.u32 %v9625_v36, %v9005_v12  ;;  %v9573_v12 = vld [vmem:[#allocation13 + $0x14c] sm:$0xf0] }
 0x42f   :  { %8631 = vmatmul.msk.bf16.vlgmr.msrb.gmra.mxu0 %vm4384_vm2, %v5181_v22  ;;  %v8990_v22 = vor.u32 %v9621_v27, %v8989_v47  ;;  %v9593_v48 = vld [vmem:[#allocation13 + $0x1ec] sm:$0xf0]  ;;  %v9559_v27 = vld [vmem:[#allocation13 + $0xe4] sm:$0xf] }
 0x430   :  { %6666 = vmatpush.bf16.msra.mxu0 %v8654_v44  ;;  %6698 = vmatpush.bf16.msra.mxu2 %v9006_v6  ;;  %v9617_v15 = vld [vmem:[#allocation13 + $0x2ac] sm:$0xf0]  ;;  %v8878_v14 = vor.u32 %v9593_v48, %v8877_v9  ;;  %v8893_v6 = vld [vmem:[#allocation13 + $0x200] sm:$0xf]  ;;  %v8735_v48 = vld [vmem:[#allocation13 + $0xd0] sm:$0xf0] }
 0x431   :  { %v9589_v44 = vld [vmem:[#allocation13 + $0x1cc] sm:$0xf0]  ;;  %v8974_v13 = vor.u32 %v9617_v15, %v8973_v37  ;;  %v9551_v15 = vld [vmem:[#allocation13 + $0xa4] sm:$0xf] }
 0x432   :  { %6679 = vmatpush.bf16.msra.mxu1 %v8878_v14  ;;  %v8862_v21 = vor.u32 %v9589_v44, %v8861_v58  ;;  %v9569_v47 = vld [vmem:[#allocation13 + $0x12c] sm:$0xf0]  ;;  %v8719_v14 = vld [vmem:[#allocation13 + $0xb0] sm:$0xf0]  ;;  %v9591_v58 = vld [vmem:[#allocation13 + $0x1e4] sm:$0xf] }
 0x433   :  { %v8879_v44 = vld [vmem:[#allocation13 + $0x1f0] sm:$0xf0] }
 0x434   :  { %6667 = vmatpush.bf16.msra.mxu0 %v8638_v49  ;;  %6699 = vmatpush.bf16.msra.mxu2 %v8990_v22  ;;  %v8957_v49 = vld [vmem:[#allocation13 + $0x280] sm:$0xf]  ;;  %v8751_v22 = vld [vmem:[#allocation13 + $0xf0] sm:$0xf0] }
 0x436   :  { %6680 = vmatpush.bf16.msra.mxu1 %v8862_v21  ;;  %v8882_v21 = vor.u32 %v9591_v58, %v8879_v44  ;;  %v9563_v58 = vld [vmem:[#allocation13 + $0x104] sm:$0xf]  ;;  %v8767_v44 = vld [vmem:[#allocation13 + $0x110] sm:$0xf0] }
 0x438   :  { %6700 = vmatpush.bf16.msra.mxu2 %v8974_v13  ;;  %v8722_v13 = vor.u32 %v9551_v15, %v8719_v14  ;;  %v9558_v15 = vld [vmem:[#allocation13 + $0xd4] sm:$0xf0] }
 0x443   :  { %v11619_v33 = vpop.f32.mrf.mxu3 }
 0x44b   :  { %v5412_v24 = vpop.f32.mrf.mxu3  ;;  %v5467_v10 = vpop.f32.mrf.mxu2 }
 0x44c   :  { %v9613_v24 = vld [vmem:[#allocation13 + $0x28c] sm:$0xf0] }
 0x453   :  { %v9720_v51 = vpop.permute.xlu2 %9719  ;;  %v5469_v29 = vpop.f32.mrf.mxu2 }
 0x454   :  { %v5486_v30 = vpop.f32.mrf.mxu3  ;;  %v9722_v55 = vunpack.i.h.bf16 %v9720_v51  ;;  %v9721_v3 = vunpack.i.l.bf16 %v9720_v51  ;;  %v9585_v51 = vld [vmem:[#allocation13 + $0x1ac] sm:$0xf0]  ;;  %v8958_v29 = vor.u32 %v9613_v24, %v8957_v49  ;;  %v9547_v49 = vld [vmem:[#allocation13 + $0x84] sm:$0xf]  ;;  %v8703_v24 = vld [vmem:[#allocation13 + $0x90] sm:$0xf0] }
 0x455   :  { %v9748_v59 = vpack.i.bf16 %v5486_v30, %v5467_v10  ;;  %v8845_v10 = vld [vmem:[#allocation13 + $0x1a0] sm:$0xf] }
 0x456   :  { %v5859_v43 = vsel %vm3615_vm0, %v11492_v57, %v9722_v55  ;;  %v5858_v56 = vsel %vm3615_vm0, %v11499_v41, %v9721_v3  ;;  %v8846_v30 = vor.u32 %v9585_v51, %v8845_v10  ;;  %v8941_v55 = vld [vmem:[#allocation13 + $0x260] sm:$0xf]  ;;  %v9609_v3 = vld [vmem:[#allocation13 + $0x26c] sm:$0xf0]  ;;  %6701 = vmatpush.bf16.msra.mxu2 %v8958_v29  ;;  %v9587_v10 = vld [vmem:[#allocation13 + $0x1c4] sm:$0xf]  ;;  %v8706_v51 = vor.u32 %v9547_v49, %v8703_v24 }
 0x457   :  { %v11625_v50 = vpack.c.bf16 %v5859_v43, %v5858_v56  ;;  %v8829_v43 = vld [vmem:[#allocation13 + $0x180] sm:$0xf]  ;;  %v9581_v56 = vld [vmem:[#allocation13 + $0x18c] sm:$0xf0]  ;;  %v8863_v29 = vld [vmem:[#allocation13 + $0x1d0] sm:$0xf0] }
 0x458   :  { %6681 = vmatpush.bf16.msra.mxu1 %v8846_v30  ;;  %v8866_v30 = vor.u32 %v9587_v10, %v8863_v29  ;;  %v8770_v10 = vor.u32 %v9563_v58, %v8767_v44  ;;  %v9554_v29 = vld [vmem:[#allocation13 + $0xb4] sm:$0xf0]  ;;  %v8661_v44 = vld [vmem:[#allocation13 + $0x28] sm:$0xf] }
 0x459   :  { %6668 = vmatmul.bf16.vlgmr.msra.gmra.mxu0 %v11625_v50 }
 0x45b   :  { %v11628_v18 = vpop.f32.mrf.mxu2  ;;  %v5581_v38 = vpop.f32.mrf.mxu0 }
 0x45c   :  { %v5488_v25 = vpop.f32.mrf.mxu3 }
 0x45d   :  { %v8942_v25 = vor.u32 %v9609_v3, %v8941_v55  ;;  %v9543_v55 = vld [vmem:[#allocation13 + $0x64] sm:$0xf]  ;;  %v8687_v3 = vld [vmem:[#allocation13 + $0x70] sm:$0xf0] }
 0x45f   :  { %6702 = vmatpush.bf16.msra.mxu2 %v8942_v25  ;;  %v8690_v25 = vor.u32 %v9543_v55, %v8687_v3  ;;  %v9594_v3 = vld [vmem:[#allocation13 + $0x1f4] sm:$0xf0] }
 0x463   :  { %v5545_v7 = vpop.f32.mrf.mxu2  ;;  %v5583_v40 = vpop.f32.mrf.mxu0 }
 0x464   :  { %v11630_v28 = vpop.f32.mrf.mxu3  ;;  %v5600_v23 = vpop.f32.mrf.mxu1  ;;  %v8925_v7 = vld [vmem:[#allocation13 + $0x240] sm:$0xf]  ;;  %v9605_v40 = vld [vmem:[#allocation13 + $0x24c] sm:$0xf0] }
 0x465   :  { %v9713_v16 = vpack.i.bf16 %v5600_v23, %v5581_v38  ;;  %v8830_v38 = vor.u32 %v9581_v56, %v8829_v43  ;;  %v9583_v43 = vld [vmem:[#allocation13 + $0x1a4] sm:$0xf]  ;;  %v8847_v56 = vld [vmem:[#allocation13 + $0x1b0] sm:$0xf0] }
 0x467   :  { %9714 = vrot.lane.b32.xlu1 %v9713_v16, %s10122_s7  ;;  %v8813_v16 = vld [vmem:[#allocation13 + $0x160] sm:$0xf]  ;;  %6682 = vmatpush.bf16.msra.mxu1 %v8830_v38  ;;  %v8850_v38 = vor.u32 %v9583_v43, %v8847_v56  ;;  %v9657_v56 = vld [vmem:[#allocation13 + $0x3ec] sm:$0xf0] }
 0x468   :  { %v9133_v43 = vld [vmem:[#allocation13 + $0x3e0] sm:$0xf] }
 0x46b   :  { %v11633_v5 = vpop.f32.mrf.mxu0 }
 0x46c   :  { %v5564_v57 = vpop.f32.mrf.mxu3  ;;  %v5602_v39 = vpop.f32.mrf.mxu1 }
 0x46d   :  { %v11639_v41 = vpop.f32.mrf.mxu2  ;;  %v9577_v57 = vld [vmem:[#allocation13 + $0x16c] sm:$0xf0] }
 0x46f   :  { %9724 = vrot.lane.b32.xlu1 %v9723_v62, %s10122_s7 }
 0x473   :  { %v5659_v34 = vpop.f32.mrf.mxu0 }
 0x474   :  { %v11641_v0 = vpop.f32.mrf.mxu3  ;;  %v11645_v11 = vpop.f32.mrf.mxu1  ;;  %v8926_v34 = vor.u32 %v9605_v40, %v8925_v7  ;;  %v9539_v7 = vld [vmem:[#allocation13 + $0x44] sm:$0xf]  ;;  %v8671_v40 = vld [vmem:[#allocation13 + $0x50] sm:$0xf0] }
 0x475   :  { %v9733_v53 = vpack.i.bf16 %v11641_v0, %v11639_v41  ;;  %v5621_v63 = vpop.f32.mrf.mxu2  ;;  %v8754_v41 = vor.u32 %v9559_v27, %v8751_v22  ;;  %v8765_v0 = vld [vmem:[#allocation13 + $0x100] sm:$0xf] }
 0x476   :  { %v8814_v63 = vor.u32 %v9577_v57, %v8813_v16  ;;  %6703 = vmatpush.bf16.msra.mxu2 %v8926_v34  ;;  %v8674_v16 = vor.u32 %v9539_v7, %v8671_v40  ;;  %v8831_v57 = vld [vmem:[#allocation13 + $0x190] sm:$0xf0]  ;;  %v9535_v34 = vld [vmem:[#allocation13 + $0x24] sm:$0xf]  ;;  %v8709_v7 = vld [vmem:[#allocation13 + $0x88] sm:$0xf] }
 0x477   :  { %9739 = vrot.lane.b32.xlu1 %v9738_v4, %s10122_s7  ;;  %6736 = vmatpush.bf16.msrb.mxu0 %v8754_v41  ;;  %v9567_v41 = vld [vmem:[#allocation13 + $0x124] sm:$0xf]  ;;  %v8869_v40 = vld [vmem:[#allocation13 + $0x1c8] sm:$0xf] }
 0x478   :  { %6683 = vmatpush.bf16.msra.mxu1 %v8814_v63  ;;  %v8655_v63 = vld [vmem:[#allocation13 + $0x30] sm:$0xf0] }
 0x47c   :  { %v5640_v2 = vpop.f32.mrf.mxu3  ;;  %v5678_v26 = vpop.f32.mrf.mxu1 }
 0x47d   :  { %v11652_v32 = vpop.f32.mrf.mxu2  ;;  %v8909_v2 = vld [vmem:[#allocation13 + $0x220] sm:$0xf]  ;;  %v9601_v26 = vld [vmem:[#allocation13 + $0x22c] sm:$0xf0] }
 0x47f   :  { %9749 = vrot.lane.b32.xlu1 %v9748_v59, %s10122_s7  ;;  %v8910_v59 = vor.u32 %v9601_v26, %v8909_v2  ;;  %v9575_v2 = vld [vmem:[#allocation13 + $0x164] sm:$0xf]  ;;  %v8815_v26 = vld [vmem:[#allocation13 + $0x170] sm:$0xf0] }
 0x481   :  { %6704 = vmatpush.bf16.msra.mxu2 %v8910_v59 }
 0x484   :  { %v11654_v62 = vpop.f32.mrf.mxu3 }
 0x485   :  { %v5697_v54 = vpop.f32.mrf.mxu2 }
 0x48c   :  { %v5716_v31 = vpop.f32.mrf.mxu3 }
 0x491   :  { %v11656_v60 = vpop.f32.mrf.mxu2 }
 0x493   :  { %v5752_v1 = vpop.f32.mrf.mxu1 }
 0x494   :  { %v11658_v42 = vpop.f32.mrf.mxu3 }
 0x495   :  { %v9743_v31 = vpack.i.bf16 %v11658_v42, %v11656_v60  ;;  %v9555_v60 = vld [vmem:[#allocation13 + $0xc4] sm:$0xf] }
 0x496   :  { %v8738_v37 = vor.u32 %v9555_v60, %v8735_v48  ;;  %v9562_v60 = vld [vmem:[#allocation13 + $0xf4] sm:$0xf0] }
 0x498   :  { %6737 = vmatpush.bf16.msrb.mxu0 %v8738_v37  ;;  %v8741_v37 = vld [vmem:[#allocation13 + $0xc8] sm:$0xf] }
 0x499   :  { %v5773_v4 = vpop.f32.mrf.mxu2 }
 0x49a   :  { %v9597_v4 = vld [vmem:[#allocation13 + $0x20c] sm:$0xf0] }
 0x49b   :  { %v5754_v35 = vpop.f32.mrf.mxu1 }
 0x49c   :  { %v5792_v19 = vpop.f32.mrf.mxu3  ;;  %v8781_v35 = vld [vmem:[#allocation13 + $0x120] sm:$0xf]  ;;  %6738 = vmatpush.bf16.msrb.mxu0 %v8722_v13  ;;  %v8742_v13 = vor.u32 %v9558_v15, %v8741_v37 }
 0x49d   :  { %v8894_v19 = vor.u32 %v9597_v4, %v8893_v6  ;;  %v8782_v9 = vor.u32 %v9569_v47, %v8781_v35  ;;  %v8639_v6 = vld [vmem:[#allocation13 + $0x10] sm:$0xf0]  ;;  %v9571_v4 = vld [vmem:[#allocation13 + $0x144] sm:$0xf] }
 0x49f   :  { %6705 = vmatpush.bf16.msra.mxu2 %v8894_v19  ;;  %v8799_v19 = vld [vmem:[#allocation13 + $0x150] sm:$0xf0] }
 0x4a0   :  { %6739 = vmatpush.bf16.msrb.mxu0 %v8706_v51  ;;  %v8802_v22 = vor.u32 %v9571_v4, %v8799_v19  ;;  %v8725_v51 = vld [vmem:[#allocation13 + $0xa8] sm:$0xf]  ;;  %v9586_v4 = vld [vmem:[#allocation13 + $0x1b4] sm:$0xf0]  ;;  %v9101_v19 = vld [vmem:[#allocation13 + $0x3a0] sm:$0xf] }
 0x4a1   :  { %v8726_v55 = vor.u32 %v9554_v29, %v8725_v51  ;;  %v9069_v51 = vld [vmem:[#allocation13 + $0x360] sm:$0xf] }
 0x4a4   :  { %6740 = vmatpush.bf16.msrb.mxu0 %v8690_v25 }
 0x4a8   :  { %6741 = vmatpush.bf16.msrb.mxu0 %v8674_v16 }
 0x4ac   :  { %v5733_v23 = vpop.f32.mrf.mxu0 }
 0x4ad   :  { %v9728_v39 = vpack.i.bf16 %v5752_v1, %v5733_v23  ;;  %v8797_v1 = vld [vmem:[#allocation13 + $0x140] sm:$0xf]  ;;  %v9579_v23 = vld [vmem:[#allocation13 + $0x184] sm:$0xf] }
 0x4ae   :  { %v8798_v36 = vor.u32 %v9573_v12, %v8797_v1  ;;  %v9531_v1 = vld [vmem:[#allocation13 + $0x4] sm:$0xf] }
 0x4af   :  { %9729 = vrot.lane.b32.xlu0 %v9728_v39, %s10122_s7  ;;  %v8834_v39 = vor.u32 %v9579_v23, %v8831_v57  ;;  %v9590_v57 = vld [vmem:[#allocation13 + $0x1d4] sm:$0xf0] }
 0x4b0   :  { %6684 = vmatpush.bf16.msra.mxu1 %v8798_v36 }
 0x4b4   :  { %v5735_v54 = vpop.f32.mrf.mxu0  ;;  %6685 = vmatpush.bf16.msra.mxu1 %v8782_v9  ;;  %v8642_v9 = vor.u32 %v9531_v1, %v8639_v6  ;;  %v8693_v1 = vld [vmem:[#allocation13 + $0x68] sm:$0xf] }
 0x4b5   :  { %v8658_v54 = vor.u32 %v9535_v34, %v8655_v63  ;;  %v9653_v34 = vld [vmem:[#allocation13 + $0x3cc] sm:$0xf0]  ;;  %v8870_v63 = vor.u32 %v9590_v57, %v8869_v40  ;;  %v9570_v40 = vld [vmem:[#allocation13 + $0x134] sm:$0xf0]  ;;  %v8759_v57 = vld [vmem:[#allocation13 + $0xf8] sm:$0xf0] }
 0x4b7   :  { %9734 = vrot.lane.b32.xlu0 %v9733_v53, %s10122_s7  ;;  %v9565_v53 = vld [vmem:[#allocation13 + $0x10c] sm:$0xf0]  ;;  %6742 = vmatpush.bf16.msrb.mxu0 %v8658_v54 }
 0x4b8   :  { %v8766_v42 = vor.u32 %v9565_v53, %v8765_v0  ;;  %v8783_v0 = vld [vmem:[#allocation13 + $0x130] sm:$0xf0]  ;;  %v8757_v53 = vld [vmem:[#allocation13 + $0xe8] sm:$0xf] }
 0x4b9   :  { %v8786_v48 = vor.u32 %v9567_v41, %v8783_v0  ;;  %v8837_v41 = vld [vmem:[#allocation13 + $0x188] sm:$0xf] }
 0x4ba   :  { %6686 = vmatpush.bf16.msra.mxu1 %v8766_v42 }
 0x4bb   :  { %6743 = vmatpush.bf16.msrb.mxu0 %v8642_v9  ;;  %v8677_v9 = vld [vmem:[#allocation13 + $0x48] sm:$0xf] }
 0x4be   :  { %6755 = vmatpush.bf16.msrb.mxu1 %v8882_v21 }
 0x4bf   :  { %9744 = vrot.lane.b32.xlu0 %v9743_v31, %s10122_s7  ;;  %v8818_v31 = vor.u32 %v9575_v2, %v8815_v26 }
 0x4c2   :  { %6756 = vmatpush.bf16.msrb.mxu1 %v8866_v30  ;;  %v8885_v30 = vld [vmem:[#allocation13 + $0x1e8] sm:$0xf] }
 0x4c6   :  { %6757 = vmatpush.bf16.msrb.mxu1 %v8850_v38  ;;  %v9134_v38 = vor.u32 %v9657_v56, %v9133_v43  ;;  %v9574_v43 = vld [vmem:[#allocation13 + $0x154] sm:$0xf0]  ;;  %v9053_v56 = vld [vmem:[#allocation13 + $0x340] sm:$0xf] }
 0x4c8   :  { %6717 = vmatpush.bf16.msra.mxu3 %v9134_v38 }
 0x4ca   :  { %6758 = vmatpush.bf16.msrb.mxu1 %v8834_v39  ;;  %v9117_v39 = vld [vmem:[#allocation13 + $0x3c0] sm:$0xf] }
 0x4cb   :  { %v9118_v54 = vor.u32 %v9653_v34, %v9117_v39  ;;  %v9037_v39 = vld [vmem:[#allocation13 + $0x320] sm:$0xf]  ;;  %v9633_v34 = vld [vmem:[#allocation13 + $0x32c] sm:$0xf0] }
 0x4cd   :  { %6718 = vmatpush.bf16.msra.mxu3 %v9118_v54 }
 0x4ce   :  { %6759 = vmatpush.bf16.msrb.mxu1 %v8818_v31 }
 0x4d2   :  { %6760 = vmatpush.bf16.msrb.mxu1 %v8802_v22  ;;  %v9542_v22 = vld [vmem:[#allocation13 + $0x54] sm:$0xf0] }
 0x4d6   :  { %6761 = vmatpush.bf16.msrb.mxu1 %v8786_v48  ;;  %v9645_v48 = vld [vmem:[#allocation13 + $0x38c] sm:$0xf0] }
 0x4d9   :  { %v9715_v59 = vpop.permute.xlu1 %9714 }
 0x4da   :  { %v9717_v12 = vunpack.i.h.bf16 %v9715_v59  ;;  %v9716_v36 = vunpack.i.l.bf16 %v9715_v59  ;;  %6762 = vmatpush.bf16.msrb.mxu1 %v8770_v10  ;;  %v9578_v10 = vld [vmem:[#allocation13 + $0x174] sm:$0xf0] }
 0x4dc   :  { %v5867_v35 = vsel %vm3615_vm0, %v11615_v20, %v9717_v12  ;;  %v5866_v47 = vsel %vm3615_vm0, %v11613_v46, %v9716_v36  ;;  %v8758_v20 = vor.u32 %v9562_v60, %v8757_v53  ;;  %v9546_v12 = vld [vmem:[#allocation13 + $0x74] sm:$0xf0]  ;;  %v8853_v36 = vld [vmem:[#allocation13 + $0x1a8] sm:$0xf] }
 0x4dd   :  { %v11672_v27 = vpack.c.bf16 %v5867_v35, %v5866_v47  ;;  %v8694_v6 = vor.u32 %v9546_v12, %v8693_v1  ;;  %v8854_v47 = vor.u32 %v9586_v4, %v8853_v36  ;;  %v9582_v60 = vld [vmem:[#allocation13 + $0x194] sm:$0xf0]  ;;  %v8773_v1 = vld [vmem:[#allocation13 + $0x108] sm:$0xf]  ;;  %v9556_v36 = vld [vmem:[#allocation13 + $0xcc] sm:$0xf] }
 0x4de   :  { %6812 = vmatpush.bf16.msra.mxu0 %v8758_v20  ;;  %v8678_v20 = vor.u32 %v9542_v22, %v8677_v9  ;;  %v9566_v12 = vld [vmem:[#allocation13 + $0x114] sm:$0xf0]  ;;  %v8743_v4 = vld [vmem:[#allocation13 + $0xd8] sm:$0xf0]  ;;  %v8991_v9 = vld [vmem:[#allocation13 + $0x2d0] sm:$0xf0] }
 0x4df   :  { %6706 = vmatmul.bf16.vlgmr.msra.gmra.mxu2 %v11672_v27  ;;  %v9552_v22 = vld [vmem:[#allocation13 + $0xac] sm:$0xf] }
 0x4e1   :  { %v9725_v42 = vpop.permute.xlu1 %9724 }
 0x4e2   :  { %v9727_v46 = vunpack.i.h.bf16 %v9725_v42  ;;  %v9726_v14 = vunpack.i.l.bf16 %v9725_v42  ;;  %6813 = vmatpush.bf16.msra.mxu0 %v8742_v13  ;;  %v9085_v42 = vld [vmem:[#allocation13 + $0x380] sm:$0xf]  ;;  %v9538_v13 = vld [vmem:[#allocation13 + $0x34] sm:$0xf0] }
 0x4e3   :  { %v9086_v58 = vor.u32 %v9645_v48, %v9085_v42 }
 0x4e4   :  { %v5863_v21 = vsel %vm3615_vm0, %v11576_v52, %v9727_v46  ;;  %v5862_v49 = vsel %vm3615_vm0, %v11582_v61, %v9726_v14  ;;  %v8886_v52 = vor.u32 %v9594_v3, %v8885_v30  ;;  %v9550_v61 = vld [vmem:[#allocation13 + $0x94] sm:$0xf0]  ;;  %v8838_v46 = vor.u32 %v9582_v60, %v8837_v41  ;;  %v8645_v30 = vld [vmem:[#allocation13 + $0x8] sm:$0xf]  ;;  %v8887_v60 = vld [vmem:[#allocation13 + $0x1f8] sm:$0xf0] }
 0x4e5   :  { %v11679_v24 = vpack.c.bf16 %v5863_v21, %v5862_v49  ;;  %v8710_v59 = vor.u32 %v9550_v61, %v8709_v7  ;;  %v8821_v21 = vld [vmem:[#allocation13 + $0x168] sm:$0xf]  ;;  %v8662_v49 = vor.u32 %v9538_v13, %v8661_v44  ;;  %v9548_v13 = vld [vmem:[#allocation13 + $0x8c] sm:$0xf] }
 0x4e6   :  { %6814 = vmatpush.bf16.msra.mxu0 %v8726_v55  ;;  %v8822_v29 = vor.u32 %v9578_v10, %v8821_v21  ;;  %v9534_v55 = vld [vmem:[#allocation13 + $0x14] sm:$0xf0]  ;;  %v8805_v3 = vld [vmem:[#allocation13 + $0x148] sm:$0xf]  ;;  %v8711_v21 = vld [vmem:[#allocation13 + $0x98] sm:$0xf0] }
 0x4e7   :  { %6687 = vmatmul.bf16.vlgmr.msra.gmra.mxu1 %v11679_v24  ;;  %v8806_v38 = vor.u32 %v9574_v43, %v8805_v3  ;;  %v8789_v61 = vld [vmem:[#allocation13 + $0x128] sm:$0xf]  ;;  %v8714_v10 = vor.u32 %v9548_v13, %v8711_v21  ;;  %v9119_v3 = vld [vmem:[#allocation13 + $0x3d0] sm:$0xf0]  ;;  %v9544_v43 = vld [vmem:[#allocation13 + $0x6c] sm:$0xf] }
 0x4e8   :  { %6831 = vmatpush.bf16.msra.mxu1 %v8886_v52  ;;  %v8646_v52 = vor.u32 %v9534_v55, %v8645_v30  ;;  %v9651_v55 = vld [vmem:[#allocation13 + $0x3c4] sm:$0xf]  ;;  %v8895_v13 = vld [vmem:[#allocation13 + $0x210] sm:$0xf0] }
 0x4e9   :  { %v9740_v25 = vpop.permute.xlu1 %9739  ;;  %v9635_v21 = vld [vmem:[#allocation13 + $0x344] sm:$0xf] }
 0x4ea   :  { %v9742_v23 = vunpack.i.h.bf16 %v9740_v25  ;;  %v9741_v16 = vunpack.i.l.bf16 %v9740_v25  ;;  %6815 = vmatpush.bf16.msra.mxu0 %v8710_v59  ;;  %v9637_v25 = vld [vmem:[#allocation13 + $0x34c] sm:$0xf0]  ;;  %v9007_v59 = vld [vmem:[#allocation13 + $0x2f0] sm:$0xf0] }
 0x4eb   :  { %v9054_v7 = vor.u32 %v9637_v25, %v9053_v56  ;;  %v9122_v56 = vor.u32 %v9651_v55, %v9119_v3  ;;  %v8695_v25 = vld [vmem:[#allocation13 + $0x78] sm:$0xf0]  ;;  %v9631_v55 = vld [vmem:[#allocation13 + $0x324] sm:$0xf]  ;;  %v9039_v3 = vld [vmem:[#allocation13 + $0x330] sm:$0xf0] }
 0x4ec   :  { %v5861_v2 = vsel %vm3615_vm0, %v11549_v45, %v9742_v23  ;;  %v5860_v26 = vsel %vm3615_vm0, %v11558_v8, %v9741_v16  ;;  %6832 = vmatpush.bf16.msra.mxu1 %v8870_v63  ;;  %v9649_v45 = vld [vmem:[#allocation13 + $0x3ac] sm:$0xf0]  ;;  %v9560_v23 = vld [vmem:[#allocation13 + $0xec] sm:$0xf]  ;;  %v8790_v16 = vor.u32 %v9570_v40, %v8789_v61  ;;  %v9607_v40 = vld [vmem:[#allocation13 + $0x264] sm:$0xf] }
 0x4ed   :  { %v11686_v31 = vpack.c.bf16 %v5861_v2, %v5860_v26  ;;  %v9102_v8 = vor.u32 %v9649_v45, %v9101_v19  ;;  %v8762_v63 = vor.u32 %v9560_v23, %v8759_v57  ;;  %v9038_v2 = vor.u32 %v9633_v34, %v9037_v39  ;;  %v9623_v26 = vld [vmem:[#allocation13 + $0x2e4] sm:$0xf]  ;;  %v9021_v19 = vld [vmem:[#allocation13 + $0x300] sm:$0xf]  ;;  %v9629_v45 = vld [vmem:[#allocation13 + $0x30c] sm:$0xf0] }
 0x4ee   :  { %6816 = vmatpush.bf16.msra.mxu0 %v8694_v6  ;;  %v9010_v54 = vor.u32 %v9623_v26, %v9007_v59  ;;  %v8774_v6 = vor.u32 %v9566_v12, %v8773_v1  ;;  %v8943_v23 = vld [vmem:[#allocation13 + $0x270] sm:$0xf0]  ;;  %v9580_v26 = vld [vmem:[#allocation13 + $0x18c] sm:$0xf]  ;;  %v9603_v1 = vld [vmem:[#allocation13 + $0x244] sm:$0xf] }
 0x4ef   :  { %6673 = vmatmul.bf16.gmra.mxu0 %v11686_v31  ;;  %6719 = vmatpush.bf16.msra.mxu3 %v9102_v8  ;;  %v9619_v8 = vld [vmem:[#allocation13 + $0x2c4] sm:$0xf]  ;;  %v8946_v57 = vor.u32 %v9607_v40, %v8943_v23  ;;  %v9103_v39 = vld [vmem:[#allocation13 + $0x3b0] sm:$0xf0]  ;;  %v9042_v23 = vor.u32 %v9631_v55, %v9039_v3  ;;  %v8917_v3 = vld [vmem:[#allocation13 + $0x228] sm:$0xf] }
 0x4f0   :  { %6833 = vmatpush.bf16.msra.mxu1 %v8854_v47  ;;  %6774 = vmatpush.bf16.msrb.mxu2 %v9010_v54  ;;  %v9022_v47 = vor.u32 %v9629_v45, %v9021_v19  ;;  %v8994_v41 = vor.u32 %v9619_v8, %v8991_v9  ;;  %v8839_v54 = vld [vmem:[#allocation13 + $0x198] sm:$0xf0]  ;;  %v8927_v12 = vld [vmem:[#allocation13 + $0x250] sm:$0xf0]  ;;  %v9536_v45 = vld [vmem:[#allocation13 + $0x2c] sm:$0xf] }
 0x4f1   :  { %v9750_v35 = vpop.permute.xlu1 %9749  ;;  %v9087_v19 = vld [vmem:[#allocation13 + $0x390] sm:$0xf0]  ;;  %v9576_v8 = vld [vmem:[#allocation13 + $0x16c] sm:$0xf]  ;;  %v8823_v9 = vld [vmem:[#allocation13 + $0x178] sm:$0xf0] }
 0x4f2   :  { %v9752_v0 = vunpack.i.h.bf16 %v9750_v35  ;;  %v9751_v53 = vunpack.i.l.bf16 %v9750_v35  ;;  %6817 = vmatpush.bf16.msra.mxu0 %v8678_v20  ;;  %v8746_v35 = vor.u32 %v9556_v36, %v8743_v4  ;;  %v9615_v20 = vld [vmem:[#allocation13 + $0x2a4] sm:$0xf]  ;;  %v8842_v36 = vor.u32 %v9580_v26, %v8839_v54 }
 0x4f3   :  { %6720 = vmatpush.bf16.msra.mxu3 %v9086_v58  ;;  %v9135_v58 = vld [vmem:[#allocation13 + $0x3f0] sm:$0xf0]  ;;  %v9643_v4 = vld [vmem:[#allocation13 + $0x384] sm:$0xf] }
 0x4f4   :  { %v5865_v37 = vsel %vm3615_vm0, %v11619_v33, %v9752_v0  ;;  %v5864_v15 = vsel %vm3615_vm0, %v11608_v17, %v9751_v53  ;;  %6834 = vmatpush.bf16.msra.mxu1 %v8838_v46  ;;  %v9641_v33 = vld [vmem:[#allocation13 + $0x36c] sm:$0xf0]  ;;  %v8727_v0 = vld [vmem:[#allocation13 + $0xb8] sm:$0xf0]  ;;  %v9592_v53 = vld [vmem:[#allocation13 + $0x1ec] sm:$0xf]  ;;  %6775 = vmatpush.bf16.msrb.mxu2 %v8994_v41  ;;  %v8826_v41 = vor.u32 %v9576_v8, %v8823_v9 }
 0x4f5   :  { %v11693_v14 = vpack.c.bf16 %v5865_v37, %v5864_v15  ;;  %v9070_v17 = vor.u32 %v9641_v33, %v9069_v51  ;;  %v8730_v42 = vor.u32 %v9552_v22, %v8727_v0  ;;  %v8890_v48 = vor.u32 %v9592_v53, %v8887_v60  ;;  %v8975_v37 = vld [vmem:[#allocation13 + $0x2b0] sm:$0xf0]  ;;  %v9655_v15 = vld [vmem:[#allocation13 + $0x3e4] sm:$0xf]  ;;  %v8871_v51 = vld [vmem:[#allocation13 + $0x1d8] sm:$0xf0] }
 0x4f6   :  { %6818 = vmatpush.bf16.msra.mxu0 %v8662_v49  ;;  %v8978_v46 = vor.u32 %v9615_v20, %v8975_v37  ;;  %v9138_v44 = vor.u32 %v9655_v15, %v9135_v58  ;;  %v9588_v49 = vld [vmem:[#allocation13 + $0x1cc] sm:$0xf]  ;;  %v9611_v33 = vld [vmem:[#allocation13 + $0x284] sm:$0xf]  ;;  %v8911_v53 = vld [vmem:[#allocation13 + $0x230] sm:$0xf0] }
 0x4f7   :  { %6692 = vmatmul.bf16.gmra.mxu1 %v11693_v14  ;;  %6721 = vmatpush.bf16.msra.mxu3 %v9070_v17  ;;  %v8874_v17 = vor.u32 %v9588_v49, %v8871_v51  ;;  %v9599_v0 = vld [vmem:[#allocation13 + $0x224] sm:$0xf]  ;;  %v9532_v20 = vld [vmem:[#allocation13 + $0xc] sm:$0xf]  ;;  %v8647_v37 = vld [vmem:[#allocation13 + $0x18] sm:$0xf0] }
 0x4f8   :  { %6835 = vmatpush.bf16.msra.mxu1 %v8822_v29  ;;  %6776 = vmatpush.bf16.msrb.mxu2 %v8978_v46  ;;  %v8959_v29 = vld [vmem:[#allocation13 + $0x290] sm:$0xf0]  ;;  %v9639_v60 = vld [vmem:[#allocation13 + $0x364] sm:$0xf]  ;;  %v9572_v46 = vld [vmem:[#allocation13 + $0x14c] sm:$0xf] }
 0x4f9   :  { %v8962_v30 = vor.u32 %v9611_v33, %v8959_v29  ;;  %v8807_v58 = vld [vmem:[#allocation13 + $0x158] sm:$0xf0]  ;;  %v9055_v49 = vld [vmem:[#allocation13 + $0x350] sm:$0xf0]  ;;  %v9125_v8 = vld [vmem:[#allocation13 + $0x3c8] sm:$0xf] }
 0x4fa   :  { %6819 = vmatpush.bf16.msra.mxu0 %v8646_v52  ;;  %v9584_v52 = vld [vmem:[#allocation13 + $0x1ac] sm:$0xf]  ;;  %v8810_v51 = vor.u32 %v9572_v46, %v8807_v58  ;;  %v9058_v29 = vor.u32 %v9635_v21, %v9055_v49  ;;  %v9654_v9 = vld [vmem:[#allocation13 + $0x3d4] sm:$0xf0]  ;;  %v9093_v21 = vld [vmem:[#allocation13 + $0x388] sm:$0xf] }
 0x4fb   :  { %6722 = vmatpush.bf16.msra.mxu3 %v9054_v7  ;;  %v8698_v7 = vor.u32 %v9544_v43, %v8695_v25  ;;  %v9013_v43 = vld [vmem:[#allocation13 + $0x2e8] sm:$0xf]  ;;  %v9650_v58 = vld [vmem:[#allocation13 + $0x3b4] sm:$0xf0] }
 0x4fc   :  { %6836 = vmatpush.bf16.msra.mxu1 %v8806_v38  ;;  %v8855_v38 = vld [vmem:[#allocation13 + $0x1b8] sm:$0xf0]  ;;  %6777 = vmatpush.bf16.msrb.mxu2 %v8962_v30  ;;  %v9646_v49 = vld [vmem:[#allocation13 + $0x394] sm:$0xf0] }
 0x4fd   :  { %v8858_v61 = vor.u32 %v9584_v52, %v8855_v38  ;;  %v8791_v30 = vld [vmem:[#allocation13 + $0x138] sm:$0xf0] }
 0x4ff   :  { %6744 = vmatmul.bf16.vlgmr.msrb.gmra.mxu0 %v11625_v50  ;;  %6723 = vmatpush.bf16.msra.mxu3 %v9038_v2  ;;  %v8679_v2 = vld [vmem:[#allocation13 + $0x58] sm:$0xf0] }
 0x500   :  { %6888 = vmatpush.bf16.msrb.mxu0 %v8762_v63  ;;  %6837 = vmatpush.bf16.msra.mxu1 %v8790_v16  ;;  %v9647_v16 = vld [vmem:[#allocation13 + $0x3a4] sm:$0xf]  ;;  %v9540_v63 = vld [vmem:[#allocation13 + $0x4c] sm:$0xf] }
 0x501   :  { %v9106_v34 = vor.u32 %v9647_v16, %v9103_v39  ;;  %6778 = vmatpush.bf16.msrb.mxu2 %v8946_v57  ;;  %v8682_v59 = vor.u32 %v9540_v63, %v8679_v2  ;;  %v8775_v16 = vld [vmem:[#allocation13 + $0x118] sm:$0xf0]  ;;  %v8997_v57 = vld [vmem:[#allocation13 + $0x2c8] sm:$0xf]  ;;  %v9622_v39 = vld [vmem:[#allocation13 + $0x2d4] sm:$0xf0] }
 0x502   :  { %v9023_v63 = vld [vmem:[#allocation13 + $0x310] sm:$0xf0] }
 0x503   :  { %6724 = vmatpush.bf16.msra.mxu3 %v9022_v47  ;;  %v8663_v47 = vld [vmem:[#allocation13 + $0x38] sm:$0xf0] }
 0x504   :  { %6838 = vmatpush.bf16.msra.mxu1 %v8774_v6  ;;  %6889 = vmatpush.bf16.msrb.mxu0 %v8746_v35  ;;  %v8930_v6 = vor.u32 %v9603_v1, %v8927_v12  ;;  %v9090_v35 = vor.u32 %v9643_v4, %v9087_v19  ;;  %v8666_v22 = vor.u32 %v9536_v45, %v8663_v47  ;;  %v9141_v4 = vld [vmem:[#allocation13 + $0x3e8] sm:$0xf]  ;;  %v9614_v47 = vld [vmem:[#allocation13 + $0x294] sm:$0xf0] }
 0x505   :  { %v8965_v45 = vld [vmem:[#allocation13 + $0x288] sm:$0xf] }
 0x506   :  { %6779 = vmatpush.bf16.msrb.mxu2 %v8930_v6  ;;  %v9618_v6 = vld [vmem:[#allocation13 + $0x2b4] sm:$0xf0] }
 0x507   :  { %6763 = vmatmul.bf16.vlgmr.msrb.gmra.mxu1 %v11679_v24  ;;  %6793 = vmatpush.bf16.msrb.mxu3 %v9138_v44  ;;  %v9595_v44 = vld [vmem:[#allocation13 + $0x204] sm:$0xf] }
 0x508   :  { %6907 = vmatpush.bf16.msrb.mxu1 %v8890_v48  ;;  %6890 = vmatpush.bf16.msrb.mxu0 %v8730_v42  ;;  %v8914_v42 = vor.u32 %v9599_v0, %v8911_v53  ;;  %v9071_v48 = vld [vmem:[#allocation13 + $0x370] sm:$0xf0]  ;;  %v8898_v33 = vor.u32 %v9595_v44, %v8895_v13  ;;  %v9606_v44 = vld [vmem:[#allocation13 + $0x254] sm:$0xf0] }
 0x509   :  { %v9074_v15 = vor.u32 %v9639_v60, %v9071_v48  ;;  %v8966_v60 = vor.u32 %v9614_v47, %v8965_v45  ;;  %v8967_v47 = vld [vmem:[#allocation13 + $0x298] sm:$0xf0] }
 0x50a   :  { %6780 = vmatpush.bf16.msrb.mxu2 %v8914_v42  ;;  %v9126_v42 = vor.u32 %v9654_v9, %v9125_v8  ;;  %v9652_v8 = vld [vmem:[#allocation13 + $0x3cc] sm:$0xf] }
 0x50b   :  { %6794 = vmatpush.bf16.msrb.mxu3 %v9122_v56  ;;  %v9626_v56 = vld [vmem:[#allocation13 + $0x2f4] sm:$0xf0] }
 0x50c   :  { %6891 = vmatpush.bf16.msrb.mxu0 %v8714_v10  ;;  %6908 = vmatpush.bf16.msrb.mxu1 %v8874_v17  ;;  %v8650_v10 = vor.u32 %v9532_v20, %v8647_v37  ;;  %v9568_v17 = vld [vmem:[#allocation13 + $0x12c] sm:$0xf]  ;;  %v9014_v38 = vor.u32 %v9626_v56, %v9013_v43  ;;  %v8949_v20 = vld [vmem:[#allocation13 + $0x268] sm:$0xf]  ;;  %v9610_v37 = vld [vmem:[#allocation13 + $0x274] sm:$0xf0] }
 0x50d   :  { %v8794_v52 = vor.u32 %v9568_v17, %v8791_v30  ;;  %v8950_v46 = vor.u32 %v9610_v37, %v8949_v20  ;;  %v9094_v30 = vor.u32 %v9646_v49, %v9093_v21  ;;  %v9602_v43 = vld [vmem:[#allocation13 + $0x234] sm:$0xf0]  ;;  %v9077_v56 = vld [vmem:[#allocation13 + $0x368] sm:$0xf]  ;;  %v9604_v37 = vld [vmem:[#allocation13 + $0x24c] sm:$0xf] }
 0x50e   :  { %6781 = vmatpush.bf16.msrb.mxu2 %v8898_v33  ;;  %v9079_v21 = vld [vmem:[#allocation13 + $0x378] sm:$0xf0] }
 0x50f   :  { %6749 = vmatmul.bf16.gmra.mxu0 %v11686_v31  ;;  %6795 = vmatpush.bf16.msrb.mxu3 %v9106_v34  ;;  %v9627_v34 = vld [vmem:[#allocation13 + $0x304] sm:$0xf] }
 0x510   :  { %6892 = vmatpush.bf16.msrb.mxu0 %v8698_v7  ;;  %6909 = vmatpush.bf16.msrb.mxu1 %v8858_v61  ;;  %v9564_v7 = vld [vmem:[#allocation13 + $0x10c] sm:$0xf]  ;;  %v9026_v12 = vor.u32 %v9627_v34, %v9023_v63  ;;  %v9015_v63 = vld [vmem:[#allocation13 + $0x2f8] sm:$0xf0] }
 0x511   :  { %v8778_v1 = vor.u32 %v9564_v7, %v8775_v16  ;;  %v9598_v7 = vld [vmem:[#allocation13 + $0x214] sm:$0xf0]  ;;  %v9045_v16 = vld [vmem:[#allocation13 + $0x328] sm:$0xf] }
 0x512   :  { %6850 = vmatpush.bf16.msra.mxu2 %v9014_v38 }
 0x513   :  { %6796 = vmatpush.bf16.msrb.mxu3 %v9090_v35 }
 0x514   :  { %6893 = vmatpush.bf16.msrb.mxu0 %v8682_v59  ;;  %6910 = vmatpush.bf16.msrb.mxu1 %v8842_v36  ;;  %v8998_v59 = vor.u32 %v9622_v39, %v8997_v57  ;;  %v8981_v36 = vld [vmem:[#allocation13 + $0x2a8] sm:$0xf]  ;;  %v9634_v57 = vld [vmem:[#allocation13 + $0x334] sm:$0xf0]  ;;  %v9624_v39 = vld [vmem:[#allocation13 + $0x2ec] sm:$0xf] }
 0x515   :  { %v8982_v19 = vor.u32 %v9618_v6, %v8981_v36  ;;  %v9046_v34 = vor.u32 %v9634_v57, %v9045_v16  ;;  %v8999_v36 = vld [vmem:[#allocation13 + $0x2d8] sm:$0xf0]  ;;  %v9616_v6 = vld [vmem:[#allocation13 + $0x2ac] sm:$0xf]  ;;  %v11741_v16 = vld [vmem:[#allocation14] sm:$0xf] }
 0x516   :  { %6851 = vmatpush.bf16.msra.mxu2 %v8998_v59  ;;  %v9630_v59 = vld [vmem:[#allocation13 + $0x314] sm:$0xf0]  ;;  %v6012_v57 = vperm.slane %v11741_v16, 0 }
 0x517   :  { %6768 = vmatmul.bf16.gmra.mxu1 %v11693_v14  ;;  %6797 = vmatpush.bf16.msrb.mxu3 %v9074_v15  ;;  %v9109_v15 = vld [vmem:[#allocation13 + $0x3a8] sm:$0xf] }
 0x518   :  { %6894 = vmatpush.bf16.msrb.mxu0 %v8666_v22  ;;  %6911 = vmatpush.bf16.msrb.mxu1 %v8826_v41 }
 0x51a   :  { %6852 = vmatpush.bf16.msra.mxu2 %v8982_v19  ;;  %v9656_v19 = vld [vmem:[#allocation13 + $0x3ec] sm:$0xf] }
 0x51b   :  { %6798 = vmatpush.bf16.msrb.mxu3 %v9058_v29 }
 0x51c   :  { %6895 = vmatpush.bf16.msrb.mxu0 %v8650_v10  ;;  %6912 = vmatpush.bf16.msrb.mxu1 %v8810_v51 }
 0x51e   :  { %6853 = vmatpush.bf16.msra.mxu2 %v8966_v60  ;;  %v9111_v60 = vld [vmem:[#allocation13 + $0x3b8] sm:$0xf0] }
 0x51f   :  { %6820 = vmatmul.bf16.vlgmr.msra.gmra.mxu0 %v11625_v50  ;;  %6799 = vmatpush.bf16.msrb.mxu3 %v9042_v23 }
 0x520   :  { %6913 = vmatpush.bf16.msrb.mxu1 %v8794_v52  ;;  %v9642_v52 = vld [vmem:[#allocation13 + $0x374] sm:$0xf0] }
 0x521   :  { %v9730_v25 = vpop.permute.xlu0 %9729  ;;  %v9078_v38 = vor.u32 %v9642_v52, %v9077_v56  ;;  %v9031_v52 = vld [vmem:[#allocation13 + $0x318] sm:$0xf0] }
 0x522   :  { %v9732_v61 = vunpack.i.h.bf16 %v9730_v25  ;;  %v9731_v40 = vunpack.i.l.bf16 %v9730_v25  ;;  %6854 = vmatpush.bf16.msra.mxu2 %v8950_v46  ;;  %v8918_v25 = vor.u32 %v9602_v43, %v8917_v3  ;;  %v9644_v46 = vld [vmem:[#allocation13 + $0x38c] sm:$0xf]  ;;  %v9047_v43 = vld [vmem:[#allocation13 + $0x338] sm:$0xf0] }
 0x523   :  { %6800 = vmatpush.bf16.msrb.mxu3 %v9026_v12  ;;  %v9632_v3 = vld [vmem:[#allocation13 + $0x32c] sm:$0xf] }
 0x524   :  { %v5871_v2 = vsel %vm3615_vm0, %v11645_v11, %v9732_v61  ;;  %v5870_v26 = vsel %vm3615_vm0, %v11633_v5, %v9731_v40  ;;  %v9658_v11 = vld [vmem:[#allocation13 + $0x3f4] sm:$0xf0]  ;;  %6914 = vmatpush.bf16.msrb.mxu1 %v8778_v1  ;;  %v9620_v1 = vld [vmem:[#allocation13 + $0x2cc] sm:$0xf]  ;;  %v9050_v56 = vor.u32 %v9632_v3, %v9047_v43 }
 0x525   :  { %v11705_v54 = vpack.c.bf16 %v5871_v2, %v5870_v26  ;;  %v9142_v5 = vor.u32 %v9658_v11, %v9141_v4  ;;  %v9638_v61 = vld [vmem:[#allocation13 + $0x354] sm:$0xf0]  ;;  %v9018_v2 = vor.u32 %v9624_v39, %v9015_v63  ;;  %v9029_v26 = vld [vmem:[#allocation13 + $0x308] sm:$0xf]  ;;  %v8983_v4 = vld [vmem:[#allocation13 + $0x2b8] sm:$0xf0] }
 0x526   :  { %v9030_v12 = vor.u32 %v9630_v59, %v9029_v26  ;;  %v9143_v11 = vld [vmem:[#allocation13 + $0x3f8] sm:$0xf0]  ;;  %v8986_v45 = vor.u32 %v9616_v6, %v8983_v4 }
 0x527   :  { %6839 = vmatmul.bf16.vlgmr.msra.gmra.mxu1 %v11679_v24  ;;  %6725 = vmatmul.bf16.vlgmr.msra.gmra.mxu3 %v11705_v54 }
 0x528   :  { %6869 = vmatpush.bf16.msra.mxu3 %v9142_v5  ;;  %v9612_v5 = vld [vmem:[#allocation13 + $0x28c] sm:$0xf] }
 0x529   :  { %v9735_v35 = vpop.permute.xlu0 %9734  ;;  %v8970_v9 = vor.u32 %v9612_v5, %v8967_v47 }
 0x52a   :  { %v9737_v22 = vunpack.i.h.bf16 %v9735_v35  ;;  %v9736_v41 = vunpack.i.l.bf16 %v9735_v35  ;;  %v9146_v35 = vor.u32 %v9656_v19, %v9143_v11 }
 0x52c   :  { %v5869_v0 = vsel %vm3615_vm0, %v11630_v28, %v9737_v22  ;;  %v5868_v53 = vsel %vm3615_vm0, %v11628_v18, %v9736_v41  ;;  %6870 = vmatpush.bf16.msra.mxu3 %v9126_v42  ;;  %v8933_v28 = vld [vmem:[#allocation13 + $0x248] sm:$0xf]  ;;  %v9110_v18 = vor.u32 %v9650_v58, %v9109_v15  ;;  %v9127_v22 = vld [vmem:[#allocation13 + $0x3d8] sm:$0xf0]  ;;  %v9608_v41 = vld [vmem:[#allocation13 + $0x26c] sm:$0xf] }
 0x52d   :  { %v11713_v48 = vpack.c.bf16 %v5869_v0, %v5868_v53  ;;  %v8934_v33 = vor.u32 %v9606_v44, %v8933_v28  ;;  %v8951_v0 = vld [vmem:[#allocation13 + $0x278] sm:$0xf0]  ;;  %v9648_v53 = vld [vmem:[#allocation13 + $0x3ac] sm:$0xf] }
 0x52e   :  { %v8954_v42 = vor.u32 %v9608_v41, %v8951_v0  ;;  %v9114_v20 = vor.u32 %v9648_v53, %v9111_v60  ;;  %v8935_v15 = vld [vmem:[#allocation13 + $0x258] sm:$0xf0]  ;;  %v9600_v44 = vld [vmem:[#allocation13 + $0x22c] sm:$0xf]  ;;  %v6013_v53 = vperm.slane %v11741_v16, 1 }
 0x52f   :  { %6825 = vmatmul.bf16.gmra.mxu0 %v11686_v31  ;;  %6711 = vmatmul.bf16.gmra.mxu2 %v11713_v48  ;;  %v8938_v58 = vor.u32 %v9604_v37, %v8935_v15  ;;  %v9095_v28 = vld [vmem:[#allocation13 + $0x398] sm:$0xf0] }
 0x530   :  { %6871 = vmatpush.bf16.msra.mxu3 %v9110_v18  ;;  %6855 = vmatpush.bf16.msra.mxu2 %v8934_v33  ;;  %v9640_v18 = vld [vmem:[#allocation13 + $0x36c] sm:$0xf]  ;;  %v8903_v33 = vld [vmem:[#allocation13 + $0x218] sm:$0xf0] }
 0x531   :  { %v9745_v13 = vpop.permute.xlu0 %9744 }
 0x532   :  { %v9747_v10 = vunpack.i.h.bf16 %v9745_v13  ;;  %v9746_v51 = vunpack.i.l.bf16 %v9745_v13  ;;  %v8919_v13 = vld [vmem:[#allocation13 + $0x238] sm:$0xf0] }
 0x533   :  { %v8922_v49 = vor.u32 %v9600_v44, %v8919_v13 }
 0x534   :  { %v5873_v29 = vsel %vm3615_vm0, %v11654_v62, %v9747_v10  ;;  %v5872_v17 = vsel %vm3615_vm0, %v11652_v32, %v9746_v51  ;;  %6872 = vmatpush.bf16.msra.mxu3 %v9094_v30  ;;  %v8901_v62 = vld [vmem:[#allocation13 + $0x208] sm:$0xf]  ;;  %6856 = vmatpush.bf16.msra.mxu2 %v8918_v25  ;;  %v9082_v10 = vor.u32 %v9640_v18, %v9079_v21  ;;  %v9596_v51 = vld [vmem:[#allocation13 + $0x20c] sm:$0xf]  ;;  %v9063_v30 = vld [vmem:[#allocation13 + $0x358] sm:$0xf0] }
 0x535   :  { %v11721_v55 = vpack.c.bf16 %v5873_v29, %v5872_v17  ;;  %v9061_v32 = vld [vmem:[#allocation13 + $0x348] sm:$0xf]  ;;  %v8902_v40 = vor.u32 %v9598_v7, %v8901_v62  ;;  %v8906_v29 = vor.u32 %v9596_v51, %v8903_v33  ;;  %v9636_v17 = vld [vmem:[#allocation13 + $0x34c] sm:$0xf] }
 0x536   :  { %v9062_v23 = vor.u32 %v9638_v61, %v9061_v32  ;;  %v9628_v25 = vld [vmem:[#allocation13 + $0x30c] sm:$0xf] }
 0x537   :  { %6844 = vmatmul.bf16.gmra.mxu1 %v11693_v14  ;;  %6730 = vmatmul.bf16.gmra.mxu3 %v11721_v55  ;;  %v9034_v62 = vor.u32 %v9628_v25, %v9031_v52 }
 0x538   :  { %6873 = vmatpush.bf16.msra.mxu3 %v9078_v38  ;;  %6857 = vmatpush.bf16.msra.mxu2 %v8902_v40  ;;  %v6669_v38 = vpop.f32.mrf.mxu0 }
 0x539   :  { %v6670_v63 = vadd.f32 %v6669_v38, %v6012_v57 }
 0x53c   :  { %6874 = vmatpush.bf16.msra.mxu3 %v9062_v23 }
 0x53f   :  { %6896 = vmatmul.bf16.vlgmr.msrb.gmra.mxu0 %v11625_v50  ;;  %6782 = vmatmul.bf16.vlgmr.msrb.gmra.mxu2 %v11672_v27  ;;  %v9002_v50 = vor.u32 %v9620_v1, %v8999_v36 }
 0x540   :  { %6926 = vmatpush.bf16.msrb.mxu2 %v9018_v2  ;;  %6875 = vmatpush.bf16.msra.mxu3 %v9046_v34  ;;  %v6671_v32 = vpop.f32.mrf.mxu0 }
 0x541   :  { %v6672_v1 = vadd.f32 %v6671_v32, %v6012_v57 }
 0x544   :  { %6876 = vmatpush.bf16.msra.mxu3 %v9030_v12  ;;  %6927 = vmatpush.bf16.msrb.mxu2 %v9002_v50 }
 0x547   :  { %6915 = vmatmul.bf16.vlgmr.msrb.gmra.mxu1 %v11679_v24  ;;  %6801 = vmatmul.bf16.vlgmr.msrb.gmra.mxu3 %v11705_v54  ;;  %v9130_v24 = vor.u32 %v9652_v8, %v9127_v22 }
 0x548   :  { %6945 = vmatpush.bf16.msrb.mxu3 %v9146_v35  ;;  %6928 = vmatpush.bf16.msrb.mxu2 %v8986_v45 }
 0x54c   :  { %6929 = vmatpush.bf16.msrb.mxu2 %v8970_v9  ;;  %6946 = vmatpush.bf16.msrb.mxu3 %v9130_v24 }
 0x54f   :  { %6901 = vmatmul.bf16.gmra.mxu0 %v11686_v31  ;;  %6787 = vmatmul.bf16.gmra.mxu2 %v11713_v48  ;;  %v9098_v31 = vor.u32 %v9644_v46, %v9095_v28 }
 0x550   :  { %6930 = vmatpush.bf16.msrb.mxu2 %v8954_v42  ;;  %6947 = vmatpush.bf16.msrb.mxu3 %v9114_v20 }
 0x554   :  { %6931 = vmatpush.bf16.msrb.mxu2 %v8938_v58  ;;  %6948 = vmatpush.bf16.msrb.mxu3 %v9098_v31 }
 0x557   :  { %6920 = vmatmul.bf16.gmra.mxu1 %v11693_v14  ;;  %6806 = vmatmul.bf16.gmra.mxu3 %v11721_v55  ;;  %v9066_v14 = vor.u32 %v9636_v17, %v9063_v30 }
 0x558   :  { %6932 = vmatpush.bf16.msrb.mxu2 %v8922_v49  ;;  %6949 = vmatpush.bf16.msrb.mxu3 %v9082_v10 }
 0x55c   :  { %6933 = vmatpush.bf16.msrb.mxu2 %v8906_v29  ;;  %6950 = vmatpush.bf16.msrb.mxu3 %v9066_v14 }
 0x55f   :  { %6858 = vmatmul.bf16.vlgmr.msra.gmra.mxu2 %v11672_v27 }
 0x560   :  { %6951 = vmatpush.bf16.msrb.mxu3 %v9050_v56 }
 0x562   :  { %v6707_v39 = vpop.f32.mrf.mxu2 }
 0x564   :  { %6952 = vmatpush.bf16.msrb.mxu3 %v9034_v62  ;;  %v6688_v7 = vpop.f32.mrf.mxu1 }
 0x565   :  { %v6689_v2 = vadd.f32 %v6688_v7, %v6670_v63 }
 0x567   :  { %6877 = vmatmul.bf16.vlgmr.msra.gmra.mxu3 %v11705_v54  ;;  %v6708_v26 = vadd.f32 %v6707_v39, %v6689_v2 }
 0x56a   :  { %v6709_v59 = vpop.f32.mrf.mxu2 }
 0x56c   :  { %v6690_v61 = vpop.f32.mrf.mxu1  ;;  %v6674_v40 = vpop.f32.mrf.mxu0 }
 0x56d   :  { %v6675_v11 = vadd.f32 %v6674_v40, %v6012_v57  ;;  %v6014_v40 = vperm.slane %v11741_v16, 2 }
 0x56f   :  { %6863 = vmatmul.bf16.gmra.mxu2 %v11713_v48 }
 0x574   :  { %v6693_v23 = vpop.f32.mrf.mxu1  ;;  %v6676_v34 = vpop.f32.mrf.mxu0 }
 0x575   :  { %v6694_v35 = vadd.f32 %v6693_v23, %v6675_v11  ;;  %v6677_v24 = vadd.f32 %v6676_v34, %v6012_v57 }
 0x577   :  { %6882 = vmatmul.bf16.gmra.mxu3 %v11721_v55 }
 0x57c   :  { %v6745_v12 = vpop.f32.mrf.mxu0 }
 0x57d   :  { %v6746_v46 = vadd.f32 %v6745_v12, %v6013_v53 }
 0x57f   :  { %6934 = vmatmul.bf16.vlgmr.msrb.gmra.mxu2 %v11672_v27  ;;  %v6695_v27 = vpop.f32.mrf.mxu1 }
 0x580   :  { %v6696_v41 = vadd.f32 %v6695_v27, %v6677_v24 }
 0x584   :  { %v6747_v45 = vpop.f32.mrf.mxu0 }
 0x585   :  { %v6748_v49 = vadd.f32 %v6747_v45, %v6013_v53 }
 0x587   :  { %6953 = vmatmul.bf16.vlgmr.msrb.gmra.mxu3 %v11705_v54  ;;  %v6764_v50 = vpop.f32.mrf.mxu1 }
 0x588   :  { %v6765_v58 = vadd.f32 %v6764_v50, %v6746_v46 }
 0x58c   :  { %v6750_v0 = vpop.f32.mrf.mxu0 }
 0x58d   :  { %v6751_v14 = vadd.f32 %v6750_v0, %v6013_v53 }
 0x58f   :  { %6939 = vmatmul.bf16.gmra.mxu2 %v11713_v48  ;;  %v6691_v48 = vadd.f32 %v6690_v61, %v6672_v1  ;;  %v6766_v5 = vpop.f32.mrf.mxu1 }
 0x590   :  { %v6767_v10 = vadd.f32 %v6766_v5, %v6748_v49 }
 0x594   :  { %v6752_v28 = vpop.f32.mrf.mxu0 }
 0x595   :  { %v6753_v38 = vadd.f32 %v6752_v28, %v6013_v53  ;;  %v6015_v53 = vperm.slane %v11741_v16, 3 }
 0x597   :  { %6958 = vmatmul.bf16.gmra.mxu3 %v11721_v55  ;;  %v6710_v55 = vadd.f32 %v6709_v59, %v6691_v48  ;;  %v6769_v60 = vpop.f32.mrf.mxu1 }
 0x598   :  { %v6770_v43 = vadd.f32 %v6769_v60, %v6751_v14 }
 0x59c   :  { %v6821_v17 = vpop.f32.mrf.mxu0 }
 0x59d   :  { %v6822_v63 = vadd.f32 %v6821_v17, %v6014_v40 }
 0x59f   :  { %v6771_v18 = vpop.f32.mrf.mxu1 }
 0x5a0   :  { %v6772_v32 = vadd.f32 %v6771_v18, %v6753_v38 }
 0x5a4   :  { %v6823_v7 = vpop.f32.mrf.mxu0 }
 0x5a7   :  { %v6840_v3 = vpop.f32.mrf.mxu1 }
 0x5a8   :  { %v6841_v27 = vadd.f32 %v6840_v3, %v6822_v63 }
 0x5aa   :  { %v6726_v54 = vpop.f32.mrf.mxu3 }
 0x5ab   :  { %v6727_v36 = vadd.f32 %v6726_v54, %v6708_v26 }
 0x5ac   :  { %v6826_v2 = vpop.f32.mrf.mxu0 }
 0x5ad   :  { %6964 = vst [vmem:[#allocation16] sm:$0xff] %v6727_v36  ;;  %v6824_v36 = vadd.f32 %v6823_v7, %v6014_v40  ;;  %v6827_v45 = vadd.f32 %v6826_v2, %v6014_v40 }
 0x5af   :  { %v6842_v61 = vpop.f32.mrf.mxu1 }
 0x5b0   :  { %v6843_v48 = vadd.f32 %v6842_v61, %v6824_v36 }
 0x5b2   :  { %v6712_v6 = vpop.f32.mrf.mxu2  ;;  %v6728_v4 = vpop.f32.mrf.mxu3 }
 0x5b3   :  { %v6729_v19 = vadd.f32 %v6728_v4, %v6710_v55  ;;  %v6713_v47 = vadd.f32 %v6712_v6, %v6694_v35 }
 0x5b4   :  { %v6828_v50 = vpop.f32.mrf.mxu0 }
 0x5b5   :  { %6968 = vst [vmem:[#allocation16 + $0x20] sm:$0xff] %v6729_v19  ;;  %v6829_v24 = vadd.f32 %v6828_v50, %v6014_v40 }
 0x5b7   :  { %v6845_v26 = vpop.f32.mrf.mxu1 }
 0x5b8   :  { %v6846_v35 = vadd.f32 %v6845_v26, %v6827_v45 }
 0x5ba   :  { %v6714_v8 = vpop.f32.mrf.mxu2  ;;  %v6731_v9 = vpop.f32.mrf.mxu3 }
 0x5bb   :  { %v6732_v22 = vadd.f32 %v6731_v9, %v6713_v47  ;;  %v6715_v42 = vadd.f32 %v6714_v8, %v6696_v41 }
 0x5bd   :  { %6972 = vst [vmem:[#allocation16 + $0x40] sm:$0xff] %v6732_v22  ;;  %v6897_v22 = vpop.f32.mrf.mxu0 }
 0x5bf   :  { %v6847_v11 = vpop.f32.mrf.mxu1 }
 0x5c0   :  { %v6848_v0 = vadd.f32 %v6847_v11, %v6829_v24 }
 0x5c2   :  { %v6733_v20 = vpop.f32.mrf.mxu3  ;;  %v6783_v37 = vpop.f32.mrf.mxu2 }
 0x5c3   :  { %v6734_v15 = vadd.f32 %v6733_v20, %v6715_v42  ;;  %v6784_v31 = vadd.f32 %v6783_v37, %v6765_v58 }
 0x5c5   :  { %6976 = vst [vmem:[#allocation16 + $0x60] sm:$0xff] %v6734_v15  ;;  %v6898_v15 = vadd.f32 %v6897_v22, %v6015_v53  ;;  %v6899_v46 = vpop.f32.mrf.mxu0 }
 0x5c7   :  { %v6916_v41 = vpop.f32.mrf.mxu1 }
 0x5c8   :  { %v6917_v58 = vadd.f32 %v6916_v41, %v6898_v15 }
 0x5ca   :  { %v6785_v44 = vpop.f32.mrf.mxu2  ;;  %v6802_v13 = vpop.f32.mrf.mxu3 }
 0x5cb   :  { %v6803_v21 = vadd.f32 %v6802_v13, %v6784_v31  ;;  %v6786_v51 = vadd.f32 %v6785_v44, %v6767_v10 }
 0x5cd   :  { %6965 = vst [vmem:[#allocation16 + $0x8] sm:$0xff] %v6803_v21  ;;  %v6900_v21 = vadd.f32 %v6899_v46, %v6015_v53  ;;  %v6902_v10 = vpop.f32.mrf.mxu0 }
 0x5cf   :  { %v6918_v28 = vpop.f32.mrf.mxu1 }
 0x5d0   :  { %v6919_v49 = vadd.f32 %v6918_v28, %v6900_v21 }
 0x5d2   :  { %v6788_v33 = vpop.f32.mrf.mxu2  ;;  %v6804_v29 = vpop.f32.mrf.mxu3 }
 0x5d3   :  { %v6805_v30 = vadd.f32 %v6804_v29, %v6786_v51  ;;  %v6789_v56 = vadd.f32 %v6788_v33, %v6770_v43 }
 0x5d5   :  { %6969 = vst [vmem:[#allocation16 + $0x28] sm:$0xff] %v6805_v30  ;;  %v6903_v30 = vadd.f32 %v6902_v10, %v6015_v53  ;;  %v6904_v43 = vpop.f32.mrf.mxu0 }
 0x5d7   :  { %v6921_v33 = vpop.f32.mrf.mxu1 }
 0x5d8   :  { %v6922_v14 = vadd.f32 %v6921_v33, %v6903_v30 }
 0x5da   :  { %v6790_v25 = vpop.f32.mrf.mxu2  ;;  %v6807_v52 = vpop.f32.mrf.mxu3 }
 0x5db   :  { %v6808_v62 = vadd.f32 %v6807_v52, %v6789_v56  ;;  %v6791_v23 = vadd.f32 %v6790_v25, %v6772_v32 }
 0x5dd   :  { %6973 = vst [vmem:[#allocation16 + $0x48] sm:$0xff] %v6808_v62  ;;  %v6905_v62 = vadd.f32 %v6904_v43, %v6015_v53 }
 0x5df   :  { %v6923_v52 = vpop.f32.mrf.mxu1 }
 0x5e0   :  { %v6924_v7 = vadd.f32 %v6923_v52, %v6905_v62 }
 0x5e2   :  { %v6809_v57 = vpop.f32.mrf.mxu3  ;;  %v6859_v39 = vpop.f32.mrf.mxu2 }
 0x5e3   :  { %v6810_v34 = vadd.f32 %v6809_v57, %v6791_v23  ;;  %v6860_v59 = vadd.f32 %v6859_v39, %v6841_v27 }
 0x5e5   :  { %6977 = vst [vmem:[#allocation16 + $0x68] sm:$0xff] %v6810_v34 }
 0x5ea   :  { %v6861_v54 = vpop.f32.mrf.mxu2  ;;  %v6878_v1 = vpop.f32.mrf.mxu3 }
 0x5eb   :  { %v6879_v12 = vadd.f32 %v6878_v1, %v6860_v59  ;;  %v6862_v55 = vadd.f32 %v6861_v54, %v6843_v48 }
 0x5ed   :  { %6966 = vst [vmem:[#allocation16 + $0x10] sm:$0xff] %v6879_v12 }
 0x5f2   :  { %v6864_v6 = vpop.f32.mrf.mxu2  ;;  %v6880_v4 = vpop.f32.mrf.mxu3 }
 0x5f3   :  { %v6881_v19 = vadd.f32 %v6880_v4, %v6862_v55  ;;  %v6865_v5 = vadd.f32 %v6864_v6, %v6846_v35 }
 0x5f5   :  { %6970 = vst [vmem:[#allocation16 + $0x30] sm:$0xff] %v6881_v19 }
 0x5fa   :  { %v6866_v47 = vpop.f32.mrf.mxu2  ;;  %v6883_v8 = vpop.f32.mrf.mxu3 }
 0x5fb   :  { %v6884_v9 = vadd.f32 %v6883_v8, %v6865_v5  ;;  %v6867_v60 = vadd.f32 %v6866_v47, %v6848_v0 }
 0x5fd   :  { %6974 = vst [vmem:[#allocation16 + $0x50] sm:$0xff] %v6884_v9 }
 0x602   :  { %v6885_v42 = vpop.f32.mrf.mxu3  ;;  %v6935_v20 = vpop.f32.mrf.mxu2 }
 0x603   :  { %v6886_v37 = vadd.f32 %v6885_v42, %v6867_v60  ;;  %v6936_v31 = vadd.f32 %v6935_v20, %v6917_v58 }
 0x605   :  { %6978 = vst [vmem:[#allocation16 + $0x70] sm:$0xff] %v6886_v37 }
 0x60a   :  { %v6937_v44 = vpop.f32.mrf.mxu2  ;;  %v6954_v13 = vpop.f32.mrf.mxu3 }
 0x60b   :  { %v6955_v18 = vadd.f32 %v6954_v13, %v6936_v31  ;;  %v6938_v51 = vadd.f32 %v6937_v44, %v6919_v49 }
 0x60d   :  { %6967 = vst [vmem:[#allocation16 + $0x18] sm:$0xff] %v6955_v18 }
 0x612   :  { %v6956_v16 = vpop.f32.mrf.mxu3  ;;  %v6940_v17 = vpop.f32.mrf.mxu2 }
 0x613   :  { %v6957_v29 = vadd.f32 %v6956_v16, %v6938_v51  ;;  %v6941_v3 = vadd.f32 %v6940_v17, %v6922_v14 }
 0x615   :  { %6971 = vst [vmem:[#allocation16 + $0x38] sm:$0xff] %v6957_v29 }
 0x61a   :  { %v6959_v56 = vpop.f32.mrf.mxu3  ;;  %v6942_v38 = vpop.f32.mrf.mxu2 }
 0x61b   :  { %v6960_v25 = vadd.f32 %v6959_v56, %v6941_v3  ;;  %v6943_v32 = vadd.f32 %v6942_v38, %v6924_v7 }
 0x61d   :  { %6975 = vst [vmem:[#allocation16 + $0x58] sm:$0xff] %v6960_v25 }
 0x622   :  { %v6961_v61 = vpop.f32.mrf.mxu3 }
 0x623   :  { %v6962_v40 = vadd.f32 %v6961_v61, %v6943_v32 }
 0x625   :  { %6979 = vst [vmem:[#allocation16 + $0x78] sm:$0xff] %v6962_v40 }
 0x626   :  { %6992 = dma.vmem_to_hbm [thread:$0]  %s6985_s18, 2048, %s6987_s5, [#allocation4], %s10116_s28, %s10116_s28, %s10117_s29  }
 0x627   :  { %10108 = dma.done.wait [#allocation4], 2048  }
 0x628   :  { %10109 = vsyncadd [#allocation4], 4294965248 }
 0x629   :  { %6997 = vsyncpa [#allocation3], 1 }
 0x62a   :  { %6998 = vsyncpa [#allocation6], 1 }
 0x62b   :  { %6999 = vsyncpa [#allocation9], 1 }
 0x62c   :  { %7000 = vsyncpa [#allocation12], 1 }
 0x62d   :  { %7001 = vsyncpa [#allocation15], 1 }
 0x62e   :  { %7002 = vsyncpa [#allocation4], 1 }

</bundles_post_ra>
